<compile_context>
chip_gen: v5e
topology: v5e:2x2
jax: 0.10.0
libtpu: 0.0.40
codegen_flags: <defaults>
</compile_context>

<pallas_src>
import math
import numpy as np
import jax
import jax.numpy as jnp
from jax import lax
from jax.experimental import pallas as pl
from jax.experimental.pallas import tpu as pltpu

N, H, W = 1, 5, 5
HW = H * W
C_IN, C_MID, C_OUT = 448, 384, 384
EPS = 1e-3          # BatchNorm2d eps=0.001
PAD1 = 6            # flat zero-pad rows for the 3x3 conv  (|dh|*W + |dw| <= 6)
PAD2 = 1            # flat zero-pad rows for the (1,3) conv


def _bn_relu(x2d, gamma, beta):
    """Training-mode BatchNorm (biased batch variance, one-pass stats) + ReLU."""
    n = x2d.shape[0]
    mean = jnp.sum(x2d, axis=0, keepdims=True) * (1.0 / n)
    meansq = jnp.sum(x2d * x2d, axis=0, keepdims=True) * (1.0 / n)
    var = meansq - mean * mean
    scale = gamma * lax.rsqrt(var + EPS)
    bias = beta - mean * scale
    return jnp.maximum(x2d * scale + bias, 0.0)


def _col_valid_mask(row_ids, dw):
    """[HW,1] bool mask: True where column j=p%W satisfies 0 <= j+dw < W.

    W is a compile-time constant, so invalid flat rows are enumerated at trace
    time with plain compares (no vector div/mod needed)."""
    if dw == 0:
        return None
    invalid = None
    for p in range(HW):
        if not (0 <= (p % W) + dw < W):
            c = row_ids == p
            invalid = c if invalid is None else (invalid | c)
    return jnp.logical_not(invalid)


def fused_kernel(x_ref, g1_ref, b1_ref, w1_ref, g2_ref, b2_ref, w2_ref, o_ref):
    row_ids = lax.broadcasted_iota(jnp.int32, (HW, 1), 0)

    # ---- BatchNorm2d(448) + ReLU -------------------------------------------
    a = _bn_relu(x_ref[...], g1_ref[...], b1_ref[...])            # [25, 448] f32

    # ---- Conv2d 448->384, 3x3, pad 1 : one im2col matmul -------------------
    zp1 = jnp.zeros((PAD1, C_IN), jnp.float32)
    apf = jnp.concatenate([zp1, a, zp1], axis=0)                  # [37, 448]
    taps = []
    for kh in range(3):
        for kw in range(3):
            dh, dw = kh - 1, kw - 1
            off = PAD1 + dh * W + dw
            t = apf[off:off + HW, :]                              # [25, 448]
            m = _col_valid_mask(row_ids, dw)
            if m is not None:
                t = jnp.where(m, t, 0.0)
            taps.append(t.astype(jnp.bfloat16))
    lhs1 = jnp.concatenate(taps, axis=1)                          # [25, 4032] bf16
    y1 = jnp.dot(lhs1, w1_ref[...],
                 preferred_element_type=jnp.float32)              # [25, 384] f32

    # ---- BatchNorm2d(384) + ReLU -------------------------------------------
    b = _bn_relu(y1, g2_ref[...], b2_ref[...])                    # [25, 384] f32

    # ---- Conv2d 384->384, (1,3), pad (0,1) : one im2col matmul -------------
    zp2 = jnp.zeros((PAD2, C_MID), jnp.float32)
    bpf = jnp.concatenate([zp2, b, zp2], axis=0)                  # [27, 384]
    taps2 = []
    for kw in range(3):
        dw = kw - 1
        off = PAD2 + dw
        t = bpf[off:off + HW, :]                                  # [25, 384]
        m = _col_valid_mask(row_ids, dw)
        if m is not None:
            t = jnp.where(m, t, 0.0)
        taps2.append(t.astype(jnp.bfloat16))
    lhs2 = jnp.concatenate(taps2, axis=1)                         # [25, 1152] bf16
    y2 = jnp.dot(lhs2, w2_ref[...],
                 preferred_element_type=jnp.float32)              # [25, 384] f32

    o_ref[...] = y2


def pack_params(w1, w2, g1, b1, g2, b2):
    """One-time (outside jit) weight re-pack into bf16 im2col layout."""
    # w1: [Cout, Cin, 3, 3] -> [(kh,kw,Cin), Cout] = [9*448, 384]
    w1p = jnp.transpose(w1, (2, 3, 1, 0)).reshape(9 * C_IN, C_MID).astype(jnp.bfloat16)
    # w2: [Cout, Cin, 1, 3] -> [(kw,Cin), Cout] = [3*384, 384]
    w2p = jnp.transpose(w2[:, :, 0, :], (2, 1, 0)).reshape(3 * C_MID, C_OUT).astype(jnp.bfloat16)
    return (g1.reshape(1, C_IN).astype(jnp.float32),
            b1.reshape(1, C_IN).astype(jnp.float32),
            w1p,
            g2.reshape(1, C_MID).astype(jnp.float32),
            b2.reshape(1, C_MID).astype(jnp.float32),
            w2p)


@jax.jit
def forward(x_nchw, g1r, b1r, w1p, g2r, b2r, w2p):
    # Only the tiny activation layout change happens per call.
    x2d = jnp.transpose(x_nchw, (0, 2, 3, 1)).reshape(HW, C_IN)   # [25, 448]
    vmem = pl.BlockSpec(memory_space=pltpu.MemorySpace.VMEM)
    y2d = pl.pallas_call(
        fused_kernel,
        out_shape=jax.ShapeDtypeStruct((HW, C_OUT), jnp.float32),
        in_specs=[vmem] * 7,
        out_specs=vmem,
        compiler_params=pltpu.CompilerParams(vmem_limit_bytes=32 * 1024 * 1024),
    )(x2d, g1r, b1r, w1p, g2r, b2r, w2p)
    return jnp.transpose(y2d.reshape(N, H, W, C_OUT), (0, 3, 1, 2))  # NCHW


def reference_forward(x, g1, b1, w1, g2, b2, w2, mm_dtype=jnp.float32):
    """Pure-JAX reference (training-mode BN + XLA convs). mm_dtype controls the
    matmul operand precision so the bf16 kernel can be checked tightly."""
    def bn_relu(t, g, b):
        m = t.mean(axis=(0, 2, 3), keepdims=True)
        v = ((t - m) ** 2).mean(axis=(0, 2, 3), keepdims=True)
        return jax.nn.relu((t - m) * lax.rsqrt(v + EPS) * g.reshape(1, -1, 1, 1)
                           + b.reshape(1, -1, 1, 1))

    h = bn_relu(x, g1, b1)
    h = lax.conv_general_dilated(h.astype(mm_dtype), w1.astype(mm_dtype), (1, 1),
                                 ((1, 1), (1, 1)),
                                 dimension_numbers=('NCHW', 'OIHW', 'NCHW'),
                                 preferred_element_type=jnp.float32,
                                 precision=lax.Precision.HIGHEST)
    h = bn_relu(h, g2, b2)
    h = lax.conv_general_dilated(h.astype(mm_dtype), w2.astype(mm_dtype), (1, 1),
                                 ((0, 0), (1, 1)),
                                 dimension_numbers=('NCHW', 'OIHW', 'NCHW'),
                                 preferred_element_type=jnp.float32,
                                 precision=lax.Precision.HIGHEST)
    return h


if __name__ == "__main__":
    key = jax.random.PRNGKey(0)
    kx, kw1, kw2, kg1, kb1, kg2, kb2 = jax.random.split(key, 7)

    # Input matches the module: [1, 448, 5, 5] NCHW.
    x = jax.random.normal(kx, (N, C_IN, H, W), jnp.float32)

    # Deterministic parameter init (shapes from the module's __init__).
    w1 = jax.random.normal(kw1, (C_MID, C_IN, 3, 3), jnp.float32) / math.sqrt(C_IN * 9)
    w2 = jax.random.normal(kw2, (C_OUT, C_MID, 1, 3), jnp.float32) / math.sqrt(C_MID * 3)
    g1 = 1.0 + 0.1 * jax.random.normal(kg1, (C_IN,), jnp.float32)
    b1 = 0.1 * jax.random.normal(kb1, (C_IN,), jnp.float32)
    g2 = 1.0 + 0.1 * jax.random.normal(kg2, (C_MID,), jnp.float32)
    b2 = 0.1 * jax.random.normal(kb2, (C_MID,), jnp.float32)

    packed = pack_params(w1, w2, g1, b1, g2, b2)       # one-time, outside jit
    out = jax.block_until_ready(forward(x, *packed))
    assert out.shape == (N, C_OUT, H, W), out.shape

    # 1) Tight check against a reference using the same bf16 operands / f32 accum.
    ref_bf16 = jax.block_until_ready(
        reference_forward(x, g1, b1, w1, g2, b2, w2, mm_dtype=jnp.bfloat16))
    err_bf16 = float(np.max(np.abs(np.asarray(out) - np.asarray(ref_bf16))))
    assert np.allclose(np.asarray(out), np.asarray(ref_bf16),
                       atol=5e-3, rtol=5e-3), err_bf16

    # 2) Bound the deliberate bf16 weight/activation quantization vs full f32.
    ref_f32 = jax.block_until_ready(
        reference_forward(x, g1, b1, w1, g2, b2, w2, mm_dtype=jnp.float32))
    err_f32 = float(np.max(np.abs(np.asarray(out) - np.asarray(ref_f32))))
    assert np.allclose(np.asarray(out), np.asarray(ref_f32),
                       atol=2e-2, rtol=2e-2), err_f32

    print("KERNEL_OK")
</pallas_src>

<mosaic_0001>
module attributes {stable_mosaic.version = 11 : i64} {
  func.func @fused_kernel(%arg0: memref<25x448xf32, #tpu.memory_space<vmem>>, %arg1: memref<1x448xf32, #tpu.memory_space<vmem>>, %arg2: memref<1x448xf32, #tpu.memory_space<vmem>>, %arg3: memref<4032x384xbf16, #tpu.memory_space<vmem>>, %arg4: memref<1x384xf32, #tpu.memory_space<vmem>>, %arg5: memref<1x384xf32, #tpu.memory_space<vmem>>, %arg6: memref<1152x384xbf16, #tpu.memory_space<vmem>>, %arg7: memref<25x384xf32, #tpu.memory_space<vmem>>) attributes {dimension_semantics = [], scalar_prefetch = 0 : i64, scratch_operands = 0 : i64, tpu.core_type = #tpu.core_type<tc>} {
    %0 = tpu.iota {dimensions = array<i32: 0>} : vector<25x1xi32>
    %c0 = arith.constant 0 : index
    %c0_0 = arith.constant 0 : index
    %1 = vector.load %arg0[%c0, %c0_0] : memref<25x448xf32, #tpu.memory_space<vmem>>, vector<25x448xf32>
    %c0_1 = arith.constant 0 : index
    %c0_2 = arith.constant 0 : index
    %2 = vector.load %arg1[%c0_1, %c0_2] : memref<1x448xf32, #tpu.memory_space<vmem>>, vector<1x448xf32>
    %c0_3 = arith.constant 0 : index
    %c0_4 = arith.constant 0 : index
    %3 = vector.load %arg2[%c0_3, %c0_4] : memref<1x448xf32, #tpu.memory_space<vmem>>, vector<1x448xf32>
    %cst = arith.constant dense<0.000000e+00> : vector<448xf32>
    %4 = vector.multi_reduction <add>, %1, %cst [0] : vector<25x448xf32> to vector<448xf32>
    %5 = vector.shape_cast %4 : vector<448xf32> to vector<1x448xf32>
    %cst_5 = arith.constant 4.000000e-02 : f32
    %6 = vector.broadcast %cst_5 : f32 to vector<1x448xf32>
    %7 = arith.mulf %5, %6 : vector<1x448xf32>
    %8 = arith.mulf %1, %1 : vector<25x448xf32>
    %cst_6 = arith.constant dense<0.000000e+00> : vector<448xf32>
    %9 = vector.multi_reduction <add>, %8, %cst_6 [0] : vector<25x448xf32> to vector<448xf32>
    %10 = vector.shape_cast %9 : vector<448xf32> to vector<1x448xf32>
    %cst_7 = arith.constant 4.000000e-02 : f32
    %11 = vector.broadcast %cst_7 : f32 to vector<1x448xf32>
    %12 = arith.mulf %10, %11 : vector<1x448xf32>
    %13 = arith.mulf %7, %7 : vector<1x448xf32>
    %14 = arith.subf %12, %13 : vector<1x448xf32>
    %cst_8 = arith.constant 1.000000e-03 : f32
    %15 = vector.broadcast %cst_8 : f32 to vector<1x448xf32>
    %16 = arith.addf %14, %15 : vector<1x448xf32>
    %17 = math.rsqrt %16 : vector<1x448xf32>
    %18 = arith.mulf %2, %17 : vector<1x448xf32>
    %19 = arith.mulf %7, %18 : vector<1x448xf32>
    %20 = arith.subf %3, %19 : vector<1x448xf32>
    %21 = vector.broadcast %18 : vector<1x448xf32> to vector<25x448xf32>
    %22 = arith.mulf %1, %21 : vector<25x448xf32>
    %23 = vector.broadcast %20 : vector<1x448xf32> to vector<25x448xf32>
    %24 = arith.addf %22, %23 : vector<25x448xf32>
    %cst_9 = arith.constant 0.000000e+00 : f32
    %25 = vector.broadcast %cst_9 : f32 to vector<25x448xf32>
    %26 = arith.maximumf %24, %25 : vector<25x448xf32>
    %cst_10 = arith.constant 0.000000e+00 : f32
    %27 = vector.broadcast %cst_10 : f32 to vector<6x448xf32>
    %28 = tpu.concatenate %27, %26, %27 in 0 : vector<6x448xf32>, vector<25x448xf32>, vector<6x448xf32> -> vector<37x448xf32>
    %29 = vector.extract_strided_slice %28 {offsets = [0, 0], sizes = [25, 448], strides = [1, 1]} : vector<37x448xf32> to vector<25x448xf32>
    %c0_i32 = arith.constant 0 : i32
    %30 = vector.broadcast %c0_i32 : i32 to vector<25x1xi32>
    %31 = arith.cmpi eq, %0, %30 : vector<25x1xi32>
    %c5_i32 = arith.constant 5 : i32
    %32 = vector.broadcast %c5_i32 : i32 to vector<25x1xi32>
    %33 = arith.cmpi eq, %0, %32 : vector<25x1xi32>
    %34 = arith.ori %31, %33 : vector<25x1xi1>
    %c10_i32 = arith.constant 10 : i32
    %35 = vector.broadcast %c10_i32 : i32 to vector<25x1xi32>
    %36 = arith.cmpi eq, %0, %35 : vector<25x1xi32>
    %37 = arith.ori %34, %36 : vector<25x1xi1>
    %c15_i32 = arith.constant 15 : i32
    %38 = vector.broadcast %c15_i32 : i32 to vector<25x1xi32>
    %39 = arith.cmpi eq, %0, %38 : vector<25x1xi32>
    %40 = arith.ori %37, %39 : vector<25x1xi1>
    %c20_i32 = arith.constant 20 : i32
    %41 = vector.broadcast %c20_i32 : i32 to vector<25x1xi32>
    %42 = arith.cmpi eq, %0, %41 : vector<25x1xi32>
    %43 = arith.ori %40, %42 : vector<25x1xi1>
    %cst_11 = arith.constant dense<true> : vector<25x1xi1>
    %44 = arith.xori %43, %cst_11 : vector<25x1xi1>
    %cst_12 = arith.constant 0.000000e+00 : f32
    %45 = vector.shape_cast %44 : vector<25x1xi1> to vector<25x1xi1>
    %46 = vector.broadcast %45 : vector<25x1xi1> to vector<25x448xi1>
    %47 = vector.broadcast %cst_12 : f32 to vector<25x448xf32>
    %48 = arith.select %46, %29, %47 : vector<25x448xi1>, vector<25x448xf32>
    %49 = arith.truncf %48 : vector<25x448xf32> to vector<25x448xbf16>
    %50 = vector.extract_strided_slice %28 {offsets = [1, 0], sizes = [25, 448], strides = [1, 1]} : vector<37x448xf32> to vector<25x448xf32>
    %51 = arith.truncf %50 : vector<25x448xf32> to vector<25x448xbf16>
    %52 = vector.extract_strided_slice %28 {offsets = [2, 0], sizes = [25, 448], strides = [1, 1]} : vector<37x448xf32> to vector<25x448xf32>
    %c4_i32 = arith.constant 4 : i32
    %53 = vector.broadcast %c4_i32 : i32 to vector<25x1xi32>
    %54 = arith.cmpi eq, %0, %53 : vector<25x1xi32>
    %c9_i32 = arith.constant 9 : i32
    %55 = vector.broadcast %c9_i32 : i32 to vector<25x1xi32>
    %56 = arith.cmpi eq, %0, %55 : vector<25x1xi32>
    %57 = arith.ori %54, %56 : vector<25x1xi1>
    %c14_i32 = arith.constant 14 : i32
    %58 = vector.broadcast %c14_i32 : i32 to vector<25x1xi32>
    %59 = arith.cmpi eq, %0, %58 : vector<25x1xi32>
    %60 = arith.ori %57, %59 : vector<25x1xi1>
    %c19_i32 = arith.constant 19 : i32
    %61 = vector.broadcast %c19_i32 : i32 to vector<25x1xi32>
    %62 = arith.cmpi eq, %0, %61 : vector<25x1xi32>
    %63 = arith.ori %60, %62 : vector<25x1xi1>
    %c24_i32 = arith.constant 24 : i32
    %64 = vector.broadcast %c24_i32 : i32 to vector<25x1xi32>
    %65 = arith.cmpi eq, %0, %64 : vector<25x1xi32>
    %66 = arith.ori %63, %65 : vector<25x1xi1>
    %cst_13 = arith.constant dense<true> : vector<25x1xi1>
    %67 = arith.xori %66, %cst_13 : vector<25x1xi1>
    %cst_14 = arith.constant 0.000000e+00 : f32
    %68 = vector.shape_cast %67 : vector<25x1xi1> to vector<25x1xi1>
    %69 = vector.broadcast %68 : vector<25x1xi1> to vector<25x448xi1>
    %70 = vector.broadcast %cst_14 : f32 to vector<25x448xf32>
    %71 = arith.select %69, %52, %70 : vector<25x448xi1>, vector<25x448xf32>
    %72 = arith.truncf %71 : vector<25x448xf32> to vector<25x448xbf16>
    %73 = vector.extract_strided_slice %28 {offsets = [5, 0], sizes = [25, 448], strides = [1, 1]} : vector<37x448xf32> to vector<25x448xf32>
    %c0_i32_15 = arith.constant 0 : i32
    %74 = vector.broadcast %c0_i32_15 : i32 to vector<25x1xi32>
    %75 = arith.cmpi eq, %0, %74 : vector<25x1xi32>
    %c5_i32_16 = arith.constant 5 : i32
    %76 = vector.broadcast %c5_i32_16 : i32 to vector<25x1xi32>
    %77 = arith.cmpi eq, %0, %76 : vector<25x1xi32>
    %78 = arith.ori %75, %77 : vector<25x1xi1>
    %c10_i32_17 = arith.constant 10 : i32
    %79 = vector.broadcast %c10_i32_17 : i32 to vector<25x1xi32>
    %80 = arith.cmpi eq, %0, %79 : vector<25x1xi32>
    %81 = arith.ori %78, %80 : vector<25x1xi1>
    %c15_i32_18 = arith.constant 15 : i32
    %82 = vector.broadcast %c15_i32_18 : i32 to vector<25x1xi32>
    %83 = arith.cmpi eq, %0, %82 : vector<25x1xi32>
    %84 = arith.ori %81, %83 : vector<25x1xi1>
    %c20_i32_19 = arith.constant 20 : i32
    %85 = vector.broadcast %c20_i32_19 : i32 to vector<25x1xi32>
    %86 = arith.cmpi eq, %0, %85 : vector<25x1xi32>
    %87 = arith.ori %84, %86 : vector<25x1xi1>
    %cst_20 = arith.constant dense<true> : vector<25x1xi1>
    %88 = arith.xori %87, %cst_20 : vector<25x1xi1>
    %cst_21 = arith.constant 0.000000e+00 : f32
    %89 = vector.shape_cast %88 : vector<25x1xi1> to vector<25x1xi1>
    %90 = vector.broadcast %89 : vector<25x1xi1> to vector<25x448xi1>
    %91 = vector.broadcast %cst_21 : f32 to vector<25x448xf32>
    %92 = arith.select %90, %73, %91 : vector<25x448xi1>, vector<25x448xf32>
    %93 = arith.truncf %92 : vector<25x448xf32> to vector<25x448xbf16>
    %94 = vector.extract_strided_slice %28 {offsets = [6, 0], sizes = [25, 448], strides = [1, 1]} : vector<37x448xf32> to vector<25x448xf32>
    %95 = arith.truncf %94 : vector<25x448xf32> to vector<25x448xbf16>
    %96 = vector.extract_strided_slice %28 {offsets = [7, 0], sizes = [25, 448], strides = [1, 1]} : vector<37x448xf32> to vector<25x448xf32>
    %c4_i32_22 = arith.constant 4 : i32
    %97 = vector.broadcast %c4_i32_22 : i32 to vector<25x1xi32>
    %98 = arith.cmpi eq, %0, %97 : vector<25x1xi32>
    %c9_i32_23 = arith.constant 9 : i32
    %99 = vector.broadcast %c9_i32_23 : i32 to vector<25x1xi32>
    %100 = arith.cmpi eq, %0, %99 : vector<25x1xi32>
    %101 = arith.ori %98, %100 : vector<25x1xi1>
    %c14_i32_24 = arith.constant 14 : i32
    %102 = vector.broadcast %c14_i32_24 : i32 to vector<25x1xi32>
    %103 = arith.cmpi eq, %0, %102 : vector<25x1xi32>
    %104 = arith.ori %101, %103 : vector<25x1xi1>
    %c19_i32_25 = arith.constant 19 : i32
    %105 = vector.broadcast %c19_i32_25 : i32 to vector<25x1xi32>
    %106 = arith.cmpi eq, %0, %105 : vector<25x1xi32>
    %107 = arith.ori %104, %106 : vector<25x1xi1>
    %c24_i32_26 = arith.constant 24 : i32
    %108 = vector.broadcast %c24_i32_26 : i32 to vector<25x1xi32>
    %109 = arith.cmpi eq, %0, %108 : vector<25x1xi32>
    %110 = arith.ori %107, %109 : vector<25x1xi1>
    %cst_27 = arith.constant dense<true> : vector<25x1xi1>
    %111 = arith.xori %110, %cst_27 : vector<25x1xi1>
    %cst_28 = arith.constant 0.000000e+00 : f32
    %112 = vector.shape_cast %111 : vector<25x1xi1> to vector<25x1xi1>
    %113 = vector.broadcast %112 : vector<25x1xi1> to vector<25x448xi1>
    %114 = vector.broadcast %cst_28 : f32 to vector<25x448xf32>
    %115 = arith.select %113, %96, %114 : vector<25x448xi1>, vector<25x448xf32>
    %116 = arith.truncf %115 : vector<25x448xf32> to vector<25x448xbf16>
    %117 = vector.extract_strided_slice %28 {offsets = [10, 0], sizes = [25, 448], strides = [1, 1]} : vector<37x448xf32> to vector<25x448xf32>
    %c0_i32_29 = arith.constant 0 : i32
    %118 = vector.broadcast %c0_i32_29 : i32 to vector<25x1xi32>
    %119 = arith.cmpi eq, %0, %118 : vector<25x1xi32>
    %c5_i32_30 = arith.constant 5 : i32
    %120 = vector.broadcast %c5_i32_30 : i32 to vector<25x1xi32>
    %121 = arith.cmpi eq, %0, %120 : vector<25x1xi32>
    %122 = arith.ori %119, %121 : vector<25x1xi1>
    %c10_i32_31 = arith.constant 10 : i32
    %123 = vector.broadcast %c10_i32_31 : i32 to vector<25x1xi32>
    %124 = arith.cmpi eq, %0, %123 : vector<25x1xi32>
    %125 = arith.ori %122, %124 : vector<25x1xi1>
    %c15_i32_32 = arith.constant 15 : i32
    %126 = vector.broadcast %c15_i32_32 : i32 to vector<25x1xi32>
    %127 = arith.cmpi eq, %0, %126 : vector<25x1xi32>
    %128 = arith.ori %125, %127 : vector<25x1xi1>
    %c20_i32_33 = arith.constant 20 : i32
    %129 = vector.broadcast %c20_i32_33 : i32 to vector<25x1xi32>
    %130 = arith.cmpi eq, %0, %129 : vector<25x1xi32>
    %131 = arith.ori %128, %130 : vector<25x1xi1>
    %cst_34 = arith.constant dense<true> : vector<25x1xi1>
    %132 = arith.xori %131, %cst_34 : vector<25x1xi1>
    %cst_35 = arith.constant 0.000000e+00 : f32
    %133 = vector.shape_cast %132 : vector<25x1xi1> to vector<25x1xi1>
    %134 = vector.broadcast %133 : vector<25x1xi1> to vector<25x448xi1>
    %135 = vector.broadcast %cst_35 : f32 to vector<25x448xf32>
    %136 = arith.select %134, %117, %135 : vector<25x448xi1>, vector<25x448xf32>
    %137 = arith.truncf %136 : vector<25x448xf32> to vector<25x448xbf16>
    %138 = vector.extract_strided_slice %28 {offsets = [11, 0], sizes = [25, 448], strides = [1, 1]} : vector<37x448xf32> to vector<25x448xf32>
    %139 = arith.truncf %138 : vector<25x448xf32> to vector<25x448xbf16>
    %140 = vector.extract_strided_slice %28 {offsets = [12, 0], sizes = [25, 448], strides = [1, 1]} : vector<37x448xf32> to vector<25x448xf32>
    %c4_i32_36 = arith.constant 4 : i32
    %141 = vector.broadcast %c4_i32_36 : i32 to vector<25x1xi32>
    %142 = arith.cmpi eq, %0, %141 : vector<25x1xi32>
    %c9_i32_37 = arith.constant 9 : i32
    %143 = vector.broadcast %c9_i32_37 : i32 to vector<25x1xi32>
    %144 = arith.cmpi eq, %0, %143 : vector<25x1xi32>
    %145 = arith.ori %142, %144 : vector<25x1xi1>
    %c14_i32_38 = arith.constant 14 : i32
    %146 = vector.broadcast %c14_i32_38 : i32 to vector<25x1xi32>
    %147 = arith.cmpi eq, %0, %146 : vector<25x1xi32>
    %148 = arith.ori %145, %147 : vector<25x1xi1>
    %c19_i32_39 = arith.constant 19 : i32
    %149 = vector.broadcast %c19_i32_39 : i32 to vector<25x1xi32>
    %150 = arith.cmpi eq, %0, %149 : vector<25x1xi32>
    %151 = arith.ori %148, %150 : vector<25x1xi1>
    %c24_i32_40 = arith.constant 24 : i32
    %152 = vector.broadcast %c24_i32_40 : i32 to vector<25x1xi32>
    %153 = arith.cmpi eq, %0, %152 : vector<25x1xi32>
    %154 = arith.ori %151, %153 : vector<25x1xi1>
    %cst_41 = arith.constant dense<true> : vector<25x1xi1>
    %155 = arith.xori %154, %cst_41 : vector<25x1xi1>
    %cst_42 = arith.constant 0.000000e+00 : f32
    %156 = vector.shape_cast %155 : vector<25x1xi1> to vector<25x1xi1>
    %157 = vector.broadcast %156 : vector<25x1xi1> to vector<25x448xi1>
    %158 = vector.broadcast %cst_42 : f32 to vector<25x448xf32>
    %159 = arith.select %157, %140, %158 : vector<25x448xi1>, vector<25x448xf32>
    %160 = arith.truncf %159 : vector<25x448xf32> to vector<25x448xbf16>
    %161 = tpu.concatenate %49, %51, %72, %93, %95, %116, %137, %139, %160 in 1 : vector<25x448xbf16>, vector<25x448xbf16>, vector<25x448xbf16>, vector<25x448xbf16>, vector<25x448xbf16>, vector<25x448xbf16>, vector<25x448xbf16>, vector<25x448xbf16>, vector<25x448xbf16> -> vector<25x4032xbf16>
    %c0_43 = arith.constant 0 : index
    %c0_44 = arith.constant 0 : index
    %162 = vector.load %arg3[%c0_43, %c0_44] : memref<4032x384xbf16, #tpu.memory_space<vmem>>, vector<4032x384xbf16>
    %cst_45 = arith.constant dense<0.000000e+00> : vector<25x384xf32>
    %163 = tpu.matmul %161, %162, %cst_45 {dimension_numbers = #tpu.dot_dimension_numbers<[1], [0], [0], [1], [0, 0, 1, 1], [], []>} : vector<25x4032xbf16>, vector<4032x384xbf16>, vector<25x384xf32> -> vector<25x384xf32>
    %c0_46 = arith.constant 0 : index
    %c0_47 = arith.constant 0 : index
    %164 = vector.load %arg4[%c0_46, %c0_47] : memref<1x384xf32, #tpu.memory_space<vmem>>, vector<1x384xf32>
    %c0_48 = arith.constant 0 : index
    %c0_49 = arith.constant 0 : index
    %165 = vector.load %arg5[%c0_48, %c0_49] : memref<1x384xf32, #tpu.memory_space<vmem>>, vector<1x384xf32>
    %cst_50 = arith.constant dense<0.000000e+00> : vector<384xf32>
    %166 = vector.multi_reduction <add>, %163, %cst_50 [0] : vector<25x384xf32> to vector<384xf32>
    %167 = vector.shape_cast %166 : vector<384xf32> to vector<1x384xf32>
    %cst_51 = arith.constant 4.000000e-02 : f32
    %168 = vector.broadcast %cst_51 : f32 to vector<1x384xf32>
    %169 = arith.mulf %167, %168 : vector<1x384xf32>
    %170 = arith.mulf %163, %163 : vector<25x384xf32>
    %cst_52 = arith.constant dense<0.000000e+00> : vector<384xf32>
    %171 = vector.multi_reduction <add>, %170, %cst_52 [0] : vector<25x384xf32> to vector<384xf32>
    %172 = vector.shape_cast %171 : vector<384xf32> to vector<1x384xf32>
    %cst_53 = arith.constant 4.000000e-02 : f32
    %173 = vector.broadcast %cst_53 : f32 to vector<1x384xf32>
    %174 = arith.mulf %172, %173 : vector<1x384xf32>
    %175 = arith.mulf %169, %169 : vector<1x384xf32>
    %176 = arith.subf %174, %175 : vector<1x384xf32>
    %cst_54 = arith.constant 1.000000e-03 : f32
    %177 = vector.broadcast %cst_54 : f32 to vector<1x384xf32>
    %178 = arith.addf %176, %177 : vector<1x384xf32>
    %179 = math.rsqrt %178 : vector<1x384xf32>
    %180 = arith.mulf %164, %179 : vector<1x384xf32>
    %181 = arith.mulf %169, %180 : vector<1x384xf32>
    %182 = arith.subf %165, %181 : vector<1x384xf32>
    %183 = vector.broadcast %180 : vector<1x384xf32> to vector<25x384xf32>
    %184 = arith.mulf %163, %183 : vector<25x384xf32>
    %185 = vector.broadcast %182 : vector<1x384xf32> to vector<25x384xf32>
    %186 = arith.addf %184, %185 : vector<25x384xf32>
    %cst_55 = arith.constant 0.000000e+00 : f32
    %187 = vector.broadcast %cst_55 : f32 to vector<25x384xf32>
    %188 = arith.maximumf %186, %187 : vector<25x384xf32>
    %cst_56 = arith.constant 0.000000e+00 : f32
    %189 = vector.broadcast %cst_56 : f32 to vector<1x384xf32>
    %190 = tpu.concatenate %189, %188, %189 in 0 : vector<1x384xf32>, vector<25x384xf32>, vector<1x384xf32> -> vector<27x384xf32>
    %191 = vector.extract_strided_slice %190 {offsets = [0, 0], sizes = [25, 384], strides = [1, 1]} : vector<27x384xf32> to vector<25x384xf32>
    %c0_i32_57 = arith.constant 0 : i32
    %192 = vector.broadcast %c0_i32_57 : i32 to vector<25x1xi32>
    %193 = arith.cmpi eq, %0, %192 : vector<25x1xi32>
    %c5_i32_58 = arith.constant 5 : i32
    %194 = vector.broadcast %c5_i32_58 : i32 to vector<25x1xi32>
    %195 = arith.cmpi eq, %0, %194 : vector<25x1xi32>
    %196 = arith.ori %193, %195 : vector<25x1xi1>
    %c10_i32_59 = arith.constant 10 : i32
    %197 = vector.broadcast %c10_i32_59 : i32 to vector<25x1xi32>
    %198 = arith.cmpi eq, %0, %197 : vector<25x1xi32>
    %199 = arith.ori %196, %198 : vector<25x1xi1>
    %c15_i32_60 = arith.constant 15 : i32
    %200 = vector.broadcast %c15_i32_60 : i32 to vector<25x1xi32>
    %201 = arith.cmpi eq, %0, %200 : vector<25x1xi32>
    %202 = arith.ori %199, %201 : vector<25x1xi1>
    %c20_i32_61 = arith.constant 20 : i32
    %203 = vector.broadcast %c20_i32_61 : i32 to vector<25x1xi32>
    %204 = arith.cmpi eq, %0, %203 : vector<25x1xi32>
    %205 = arith.ori %202, %204 : vector<25x1xi1>
    %cst_62 = arith.constant dense<true> : vector<25x1xi1>
    %206 = arith.xori %205, %cst_62 : vector<25x1xi1>
    %cst_63 = arith.constant 0.000000e+00 : f32
    %207 = vector.shape_cast %206 : vector<25x1xi1> to vector<25x1xi1>
    %208 = vector.broadcast %207 : vector<25x1xi1> to vector<25x384xi1>
    %209 = vector.broadcast %cst_63 : f32 to vector<25x384xf32>
    %210 = arith.select %208, %191, %209 : vector<25x384xi1>, vector<25x384xf32>
    %211 = arith.truncf %210 : vector<25x384xf32> to vector<25x384xbf16>
    %212 = vector.extract_strided_slice %190 {offsets = [1, 0], sizes = [25, 384], strides = [1, 1]} : vector<27x384xf32> to vector<25x384xf32>
    %213 = arith.truncf %212 : vector<25x384xf32> to vector<25x384xbf16>
    %214 = vector.extract_strided_slice %190 {offsets = [2, 0], sizes = [25, 384], strides = [1, 1]} : vector<27x384xf32> to vector<25x384xf32>
    %c4_i32_64 = arith.constant 4 : i32
    %215 = vector.broadcast %c4_i32_64 : i32 to vector<25x1xi32>
    %216 = arith.cmpi eq, %0, %215 : vector<25x1xi32>
    %c9_i32_65 = arith.constant 9 : i32
    %217 = vector.broadcast %c9_i32_65 : i32 to vector<25x1xi32>
    %218 = arith.cmpi eq, %0, %217 : vector<25x1xi32>
    %219 = arith.ori %216, %218 : vector<25x1xi1>
    %c14_i32_66 = arith.constant 14 : i32
    %220 = vector.broadcast %c14_i32_66 : i32 to vector<25x1xi32>
    %221 = arith.cmpi eq, %0, %220 : vector<25x1xi32>
    %222 = arith.ori %219, %221 : vector<25x1xi1>
    %c19_i32_67 = arith.constant 19 : i32
    %223 = vector.broadcast %c19_i32_67 : i32 to vector<25x1xi32>
    %224 = arith.cmpi eq, %0, %223 : vector<25x1xi32>
    %225 = arith.ori %222, %224 : vector<25x1xi1>
    %c24_i32_68 = arith.constant 24 : i32
    %226 = vector.broadcast %c24_i32_68 : i32 to vector<25x1xi32>
    %227 = arith.cmpi eq, %0, %226 : vector<25x1xi32>
    %228 = arith.ori %225, %227 : vector<25x1xi1>
    %cst_69 = arith.constant dense<true> : vector<25x1xi1>
    %229 = arith.xori %228, %cst_69 : vector<25x1xi1>
    %cst_70 = arith.constant 0.000000e+00 : f32
    %230 = vector.shape_cast %229 : vector<25x1xi1> to vector<25x1xi1>
    %231 = vector.broadcast %230 : vector<25x1xi1> to vector<25x384xi1>
    %232 = vector.broadcast %cst_70 : f32 to vector<25x384xf32>
    %233 = arith.select %231, %214, %232 : vector<25x384xi1>, vector<25x384xf32>
    %234 = arith.truncf %233 : vector<25x384xf32> to vector<25x384xbf16>
    %235 = tpu.concatenate %211, %213, %234 in 1 : vector<25x384xbf16>, vector<25x384xbf16>, vector<25x384xbf16> -> vector<25x1152xbf16>
    %c0_71 = arith.constant 0 : index
    %c0_72 = arith.constant 0 : index
    %236 = vector.load %arg6[%c0_71, %c0_72] : memref<1152x384xbf16, #tpu.memory_space<vmem>>, vector<1152x384xbf16>
    %cst_73 = arith.constant dense<0.000000e+00> : vector<25x384xf32>
    %237 = tpu.matmul %235, %236, %cst_73 {dimension_numbers = #tpu.dot_dimension_numbers<[1], [0], [0], [1], [0, 0, 1, 1], [], []>} : vector<25x1152xbf16>, vector<1152x384xbf16>, vector<25x384xf32> -> vector<25x384xf32>
    %c0_74 = arith.constant 0 : index
    %c0_75 = arith.constant 0 : index
    %238 = vector.load %arg7[%c0_74, %c0_75] : memref<25x384xf32, #tpu.memory_space<vmem>>, vector<25x384xf32>
    tpu.vector_store %arg7[%c0_74, %c0_75], %237 {strides = array<i32>} : memref<25x384xf32, #tpu.memory_space<vmem>>, vector<25x384xf32>,
    return
  }
}

</mosaic_0001>

<bundles_post_ra>
// kernel: forward.1
= control target key start
LH: loop header
LB: loop body
LE: loop exit
PB: predicated region body
PF: predicated region fallthrough
CT: control target
= control target key end

     0   :  { %12 = vsyncpa [#allocation3], 0  ;;  %s18673_s0 = inlined_call_operand.vmem [shape: f32[25,448], index: 0, kind: input, shape index: {}]   ;;  %s18674_s1 = inlined_call_operand.hbm [shape: f32[1,448], index: 1, kind: input, shape index: {}]   ;;  %s18675_s2 = inlined_call_operand.hbm [shape: f32[1,448], index: 2, kind: input, shape index: {}]   ;;  %s18676_s3 = inlined_call_operand.hbm [shape: bf16[4032,384], index: 3, kind: input, shape index: {}]   ;;  %s18677_s4 = inlined_call_operand.hbm [shape: f32[1,384], index: 4, kind: input, shape index: {}]   ;;  %s18678_s5 = inlined_call_operand.hbm [shape: f32[1,384], index: 5, kind: input, shape index: {}]   ;;  %s18679_s6 = inlined_call_operand.hbm [shape: bf16[1152,384], index: 6, kind: input, shape index: {}]   ;;  %s18680_s7 = inlined_call_operand.vmem [shape: f32[25,384], index: 7, kind: output, shape index: {}]  }
   0x1   :  { %13 = vsyncpa [#allocation5], 0 }
   0x2   :  { %14 = vsyncpa [#allocation8], 0  ;;  %s34_s26 = sshll.u32 %s18675_s2, 4  ;;  %s35_s26 = int_to_ptr.hbm [resolvable:$true] %s34_s26 }
   0x3   :  { %15 = vsyncpa [#allocation11], 0  ;;  %s15810_s27 = smov [#allocation4]   ;;  %s58_s8 = sshll.u32 %s18677_s4, 4  ;;  %s59_s8 = int_to_ptr.hbm [resolvable:$true] %s58_s8 }
   0x4   :  { %s36_s28 = sshll.u32 %s15810_s27, 4  ;;  %s15811_s9 = smov [#allocation7]   ;;  %s37_s28 = int_to_ptr.vmem [resolvable:$true] %s36_s28 }
   0x5   :  { %39 = dma.hbm_to_vmem [thread:$0]  %s35_s26, 64, %s37_s28, [#allocation5]  }
   0x6   :  { %s60_s10 = sshll.u32 %s15811_s9, 4  ;;  %s23_s13 = sshll.u32 %s18674_s1, 4  ;;  %s61_s10 = int_to_ptr.vmem [resolvable:$true] %s60_s10  ;;  %s24_s13 = int_to_ptr.hbm [resolvable:$true] %s23_s13 }
   0x7   :  { %63 = dma.hbm_to_vmem [thread:$0]  %s59_s8, 48, %s61_s10, [#allocation8]  }
   0x8   :  { %s44_s15 = sshll.u32 %s18676_s3, 4  ;;  %s15812_s16 = smov [#allocation2]   ;;  %s45_s15 = int_to_ptr.hbm [resolvable:$true] %s44_s15 }
   0x9   :  { %s25_s17 = sshll.u32 %s15812_s16, 4  ;;  %s15813_s4 = smov [#allocation6]   ;;  %s26_s17 = int_to_ptr.vmem [resolvable:$true] %s25_s17 }
   0xa   :  { %28 = dma.hbm_to_vmem [thread:$0]  %s24_s13, 64, %s26_s17, [#allocation3]  }
   0xb   :  { %s46_s18 = sshll.u32 %s15813_s4, 4  ;;  %s15814_s19 = smov 192   ;;  %s47_s18 = int_to_ptr.vmem [resolvable:$true] %s46_s18 }
   0xc   :  { %s15815_s20 = smov 12   ;;  %s69_s22 = sshll.u32 %s18678_s5, 4  ;;  %s70_s22 = int_to_ptr.hbm [resolvable:$true] %s69_s22 }
   0xd   :  { %52 = dma.hbm_to_vmem [thread:$0]  %s45_s15, 96768, %s47_s18, [#allocation5], %s15814_s19, %s15814_s19, %s15815_s20  }
   0xe   :  { %s15816_s23 = smov [#allocation9]   ;;  %s79_s26 = sshll.u32 %s18679_s6, 4  ;;  %s80_s26 = int_to_ptr.hbm [resolvable:$true] %s79_s26 }
   0xf   :  { %s71_s24 = sshll.u32 %s15816_s23, 4  ;;  %s15817_s27 = smov [#allocation10]   ;;  %s72_s24 = int_to_ptr.vmem [resolvable:$true] %s71_s24 }
  0x10   :  { %74 = dma.hbm_to_vmem [thread:$0]  %s70_s22, 48, %s72_s24, [#allocation8]  }
  0x11   :  { %s81_s28 = sshll.u32 %s15817_s27, 4  ;;  %s82_s28 = int_to_ptr.vmem [resolvable:$true] %s81_s28 }
  0x12   :  { %87 = dma.hbm_to_vmem [thread:$0]  %s80_s26, 27648, %s82_s28, [#allocation11], %s15814_s19, %s15814_s19, %s15815_s20  }
  0x13   :  { %15802 = dma.done.wait [#allocation3], 64  }
  0x14   :  { %15803 = vsyncadd [#allocation3], 4294967232 }
  0x15   :  { %15804 = dma.done.wait [#allocation5], 96832  }
  0x16   :  { %15805 = vsyncadd [#allocation5], 4294870464 }
  0x17   :  { %15806 = dma.done.wait [#allocation8], 96  }
  0x18   :  { %15807 = vsyncadd [#allocation8], 4294967200 }
  0x19   :  { %15808 = dma.done.wait [#allocation11], 27648  }
  0x1a   :  { %15809 = vsyncadd [#allocation11], 4294939648  ;;  %vm167_vm0 = vcmask 523264   ;;  %v15883_v0 = vld [vmem:[%s18673_s0] sm:$0xff]  ;;  %v15888_v1 = vld [vmem:[%s18673_s0 + $0x8] sm:$0xff]  ;;  %vm138_vm1 = vcmask 1040384  }
  0x1b   :  { %v15893_v2 = vld [vmem:[%s18673_s0 + $0x10] sm:$0xff]  ;;  %v15898_v3 = vld [vmem:[%s18673_s0 + $0x18] sm:$0xff]  ;;  %v15903_v4 = vld [vmem:[%s18673_s0 + $0x20] sm:$0xff]  ;;  %vm173_vm2 = vcmask 516096   ;;  %v186_v6 = vmul.f32 %v15883_v0, %v15883_v0  ;;  %v187_v13 = vmul.f32 %v15888_v1, %v15888_v1  ;;  %vm309_vm15 = vcmask 1042434  }
  0x1c   :  { %v15908_v5 = vld [vmem:[%s18673_s0 + $0x28] sm:$0xff]  ;;  %v15915_v7 = vld [vmem:[%s18673_s0 + $0x30] sm:$0xff]  ;;  %v15920_v8 = vld [vmem:[%s18673_s0 + $0x38] sm:$0xff]  ;;  %v136_v10 = vadd.f32 %v15903_v4, %v15883_v0  ;;  %v168_v12 = vsel %vm167_vm0, %v15898_v3, 0.0  ;;  %v188_v19 = vmul.f32 %v15893_v2, %v15893_v2  ;;  %v189_v20 = vmul.f32 %v15898_v3, %v15898_v3 }
  0x1d   :  { %v15925_v9 = vld [vmem:[%s18673_s0 + $0x40] sm:$0xff]  ;;  %v147_v11 = vadd.f32 %v15908_v5, %v15888_v1  ;;  %v15938_v14 = vld [vmem:[%s18673_s0 + $0x48] sm:$0xff]  ;;  %v15943_v15 = vld [vmem:[%s18673_s0 + $0x50] sm:$0xff]  ;;  %v157_v17 = vadd.f32 %v15915_v7, %v15893_v2  ;;  %v169_v18 = vsel %vm167_vm0, %v15920_v8, 0.0  ;;  %v190_v27 = vmul.f32 %v15903_v4, %v15903_v4 }
  0x1e   :  { %v15948_v16 = vld [vmem:[%s18673_s0 + $0x58] sm:$0xff]  ;;  %v15961_v21 = vld [vmem:[%s18673_s0 + $0x60] sm:$0x1]  ;;  %v15966_v22 = vld [vmem:[%s18673_s0 + $0x68] sm:$0x1]  ;;  %v137_v24 = vadd.f32 %v136_v10, %v15925_v9  ;;  %v170_v26 = vadd.f32 %v169_v18, %v168_v12  ;;  %v191_v30 = vmul.f32 %v15908_v5, %v15908_v5  ;;  %v192_v31 = vmul.f32 %v15915_v7, %v15915_v7 }
  0x1f   :  { %v15971_v23 = vld [vmem:[%s18673_s0 + $0x70] sm:$0x1]  ;;  %v148_v25 = vadd.f32 %v147_v11, %v15938_v14  ;;  %v15980_v28 = vld [vmem:[%s18673_s0 + $0x78] sm:$0x1]  ;;  %v158_v29 = vadd.f32 %v157_v17, %v15943_v15  ;;  %v193_v32 = vmul.f32 %v15920_v8, %v15920_v8  ;;  %v139_v33 = vsel %vm138_vm1, %v15961_v21, 0.0  ;;  %s15818_s0 = smov 64  }
  0x20   :  { %v149_v34 = vsel %vm138_vm1, %v15966_v22, 0.0  ;;  %v159_v35 = vsel %vm138_vm1, %v15971_v23, 0.0  ;;  %v171_v36 = vsel %vm167_vm0, %v15948_v16, 0.0  ;;  %v140_v37 = vadd.f32 %v139_v33, %v137_v24 }
  0x21   :  { %v150_v38 = vadd.f32 %v149_v34, %v148_v25  ;;  %v160_v39 = vadd.f32 %v159_v35, %v158_v29  ;;  %v172_v40 = vadd.f32 %v171_v36, %v170_v26  ;;  %v174_v41 = vsel %vm173_vm2, %v15980_v28, 0.0 }
  0x22   :  { %v194_v42 = vmul.f32 %v15925_v9, %v15925_v9  ;;  %v195_v43 = vmul.f32 %v15938_v14, %v15938_v14  ;;  %v198_v44 = vmul.f32 %v15961_v21, %v15961_v21  ;;  %v141_v45 = vrot.slane %v140_v37, 4 }
  0x23   :  { %v151_v46 = vrot.slane %v150_v38, 4  ;;  %v161_v47 = vrot.slane %v160_v39, 4  ;;  %v175_v48 = vadd.f32 %v174_v41, %v172_v40  ;;  %v196_v49 = vmul.f32 %v15943_v15, %v15943_v15 }
  0x24   :  { %v199_v50 = vmul.f32 %v15966_v22, %v15966_v22  ;;  %v200_v51 = vmul.f32 %v15971_v23, %v15971_v23  ;;  %v202_v52 = vadd.f32 %v190_v27, %v186_v6  ;;  %v142_v53 = vadd.f32 %v141_v45, %v140_v37 }
  0x25   :  { %v152_v54 = vadd.f32 %v151_v46, %v150_v38  ;;  %v162_v55 = vadd.f32 %v161_v47, %v160_v39  ;;  %v176_v56 = vrot.slane %v175_v48, 4  ;;  %v204_v58 = vsel %vm138_vm1, %v198_v44, 0.0 }
  0x26   :  { %v203_v57 = vadd.f32 %v202_v52, %v194_v42  ;;  %v212_v59 = vadd.f32 %v191_v30, %v187_v13  ;;  %v214_v60 = vsel %vm138_vm1, %v199_v50, 0.0  ;;  %v143_v61 = vrot.slane %v142_v53, 2 }
  0x27   :  { %v153_v62 = vrot.slane %v152_v54, 2  ;;  %v163_v63 = vrot.slane %v162_v55, 2  ;;  %v177_v10 = vadd.f32 %v176_v56, %v175_v48  ;;  %v197_v11 = vmul.f32 %v15948_v16, %v15948_v16 }
  0x28   :  { %v205_v12 = vadd.f32 %v204_v58, %v203_v57  ;;  %v213_v17 = vadd.f32 %v212_v59, %v195_v43  ;;  %v222_v6 = vadd.f32 %v192_v31, %v188_v19  ;;  %v144_v18 = vadd.f32 %v143_v61, %v142_v53 }
  0x29   :  { %v154_v24 = vadd.f32 %v153_v62, %v152_v54  ;;  %v164_v25 = vadd.f32 %v163_v63, %v162_v55  ;;  %v224_v26 = vsel %vm138_vm1, %v200_v51, 0.0  ;;  %v178_v27 = vrot.slane %v177_v10, 2 }
  0x2a   :  { %v206_v29 = vrot.slane %v205_v12, 4  ;;  %v215_v13 = vadd.f32 %v214_v60, %v213_v17  ;;  %v223_v30 = vadd.f32 %v222_v6, %v196_v49  ;;  %v145_v33 = vrot.slane %v144_v18, 1 }
  0x2b   :  { %v155_v34 = vrot.slane %v154_v24, 1  ;;  %v165_v35 = vrot.slane %v164_v25, 1  ;;  %v232_v36 = vsel %vm167_vm0, %v189_v20, 0.0  ;;  %v233_v40 = vsel %vm167_vm0, %v193_v32, 0.0 }
  0x2c   :  { %v207_v37 = vadd.f32 %v206_v29, %v205_v12  ;;  %v216_v38 = vrot.slane %v215_v13, 4  ;;  %v225_v39 = vadd.f32 %v224_v26, %v223_v30  ;;  %v146_v19 = vadd.f32 %v145_v33, %v144_v18 }
  0x2d   :  { %v156_v31 = vadd.f32 %v155_v34, %v154_v24  ;;  %v201_v41 = vmul.f32 %v15980_v28, %v15980_v28  ;;  %v234_v45 = vadd.f32 %v233_v40, %v232_v36  ;;  %v166_v46 = vadd.f32 %v165_v35, %v164_v25 }
  0x2e   :  { %v208_v42 = vrot.slane %v207_v37, 2  ;;  %v217_v43 = vadd.f32 %v216_v38, %v215_v13  ;;  %v226_v44 = vrot.slane %v225_v39, 4  ;;  %v179_v47 = vadd.f32 %v178_v27, %v177_v10 }
  0x2f   :  { %v16020_v48 = vmul.f32 0.04, %v146_v19  ;;  %v235_v51 = vsel %vm167_vm0, %v197_v11, 0.0  ;;  %v237_v32 = vsel %vm173_vm2, %v201_v41, 0.0  ;;  %v16024_v53 = vmul.f32 0.04, %v156_v31 }
  0x30   :  { %v209_v49 = vadd.f32 %v208_v42, %v207_v37  ;;  %v218_v20 = vrot.slane %v217_v43, 2  ;;  %v227_v50 = vadd.f32 %v226_v44, %v225_v39  ;;  %v236_v52 = vadd.f32 %v235_v51, %v234_v45 }
  0x31   :  { %v180_v57 = vrot.slane %v179_v47, 1  ;;  %v16026_v58 = vmul.f32 0.04, %v166_v46  ;;  %v249_v63 = vmul.f32 %v16020_v48, %v16020_v48  ;;  %v250_v6 = vmul.f32 %v16024_v53, %v16024_v53 }
  0x32   :  { %v210_v54 = vrot.slane %v209_v49, 1  ;;  %v219_v55 = vadd.f32 %v218_v20, %v217_v43  ;;  %v228_v56 = vrot.slane %v227_v50, 2  ;;  %v238_v59 = vadd.f32 %v237_v32, %v236_v52 }
  0x33   :  { %v181_v18 = vadd.f32 %v180_v57, %v179_v47  ;;  %v251_v27 = vmul.f32 %v16026_v58, %v16026_v58  ;;  %vm311_vm2 = vcmask 1041408  }
  0x34   :  { %v211_v60 = vadd.f32 %v210_v54, %v209_v49  ;;  %v220_v61 = vrot.slane %v219_v55, 1  ;;  %v229_v62 = vadd.f32 %v228_v56, %v227_v50  ;;  %v239_v10 = vrot.slane %v238_v59, 4 }
  0x35   :  { %v16034_v35 = vmul.f32 0.04, %v181_v18 }
  0x36   :  { %v221_v11 = vadd.f32 %v220_v61, %v219_v55  ;;  %v230_v12 = vrot.slane %v229_v62, 1  ;;  %v245_v17 = vmul.f32 0.04, %v211_v60  ;;  %v240_v24 = vadd.f32 %v239_v10, %v238_v59 }
  0x37   :  { %v252_v31 = vmul.f32 %v16034_v35, %v16034_v35 }
  0x38   :  { %v231_v25 = vadd.f32 %v230_v12, %v229_v62  ;;  %v246_v26 = vmul.f32 0.04, %v221_v11  ;;  %v253_v29 = vsub.f32 %v245_v17, %v249_v63  ;;  %v241_v13 = vrot.slane %v240_v24, 2 }
  0x3a   :  { %v247_v30 = vmul.f32 0.04, %v231_v25  ;;  %v254_v33 = vsub.f32 %v246_v26, %v250_v6  ;;  %v257_v34 = vadd.f32 0.001, %v253_v29  ;;  %v242_v36 = vadd.f32 %v241_v13, %v240_v24 }
  0x3c   :  { %v255_v37 = vsub.f32 %v247_v30, %v251_v27  ;;  %v258_v38 = vadd.f32 0.001, %v254_v33  ;;  %15644 = vrsqrt.f32 %v257_v34  ;;  %v243_v39 = vrot.slane %v242_v36, 1 }
  0x3d   :  { %vm267_vm8 = vweird.f32 %v257_v34 }
  0x3e   :  { %v259_v40 = vadd.f32 0.001, %v255_v37  ;;  %15646 = vrsqrt.f32 %v258_v38  ;;  %v244_v19 = vadd.f32 %v243_v39, %v242_v36  ;;  %vm277_vm3 = vweird.f32 %v258_v38 }
  0x40   :  { %15648 = vrsqrt.f32 %v259_v40  ;;  %v248_v41 = vmul.f32 0.04, %v244_v19  ;;  %vm287_vm5 = vweird.f32 %v259_v40 }
  0x42   :  { %v15645_v42 = vpop.eup %15644  ;;  %v256_v43 = vsub.f32 %v248_v41, %v252_v31 }
  0x43   :  { %v262_v44 = vmul.f32 %v15645_v42, %v257_v34  ;;  %vm268_vm9 = vweird.f32 %v15645_v42  ;;  %v134_v34 = vld [vmem:[#allocation2] sm:$0xf] }
  0x44   :  { %v15647_v45 = vpop.eup %15646  ;;  %v260_v46 = vadd.f32 0.001, %v256_v43  ;;  %vm269_vm13 = vmor %vm267_vm8, %vm268_vm9 }
  0x45   :  { %v272_v47 = vmul.f32 %v15647_v45, %v258_v38  ;;  %v263_v20 = vmul.f32 %v15645_v42, %v262_v44  ;;  %vm278_vm4 = vweird.f32 %v15647_v45 }
  0x46   :  { %v15649_v49 = vpop.eup %15648  ;;  %15650 = vrsqrt.f32 %v260_v46  ;;  %vm16038_vm7 = vmor %vm277_vm3, %vm278_vm4  ;;  %vm297_vm11 = vweird.f32 %v260_v46  ;;  %vm18841_vm3 = vcmask 1045504   ;;  %vm462_vm4 = vcmask 1046528  }
  0x47   :  { %v273_v50 = vmul.f32 %v15647_v45, %v272_v47  ;;  %v282_v51 = vmul.f32 %v15649_v49, %v259_v40  ;;  %v264_v54 = vmul.f32 0.5, %v263_v20  ;;  %vm288_vm6 = vweird.f32 %v15649_v49 }
  0x48   :  { %vm289_vm10 = vmor %vm287_vm5, %vm288_vm6  ;;  %vm18842_vm5 = vsmask.f32 7424  ;;  %vm671_vm6 = vcmask 1042432  }
  0x49   :  { %v274_v52 = vmul.f32 0.5, %v273_v50  ;;  %v283_v32 = vmul.f32 %v15649_v49, %v282_v51  ;;  %v265_v60 = vsub.f32 1.5, %v264_v54 }
  0x4b   :  { %v275_v55 = vsub.f32 1.5, %v274_v52  ;;  %v284_v56 = vmul.f32 0.5, %v283_v32  ;;  %v266_v12 = vmul.f32 %v15645_v42, %v265_v60 }
  0x4c   :  { %v15651_v59 = vpop.eup %15650 }
  0x4d   :  { %v285_v57 = vsub.f32 1.5, %v284_v56  ;;  %v276_v61 = vmul.f32 %v15647_v45, %v275_v55  ;;  %v292_v62 = vmul.f32 %v15651_v59, %v260_v46  ;;  %vm298_vm12 = vweird.f32 %v15651_v59 }
  0x4e   :  { %vm299_vm14 = vmor %vm297_vm11, %vm298_vm12  ;;  %v270_v26 = vsel %vm269_vm13, %v15645_v42, %v266_v12  ;;  %vm15819_vm13 = vmmov 1  }
  0x4f   :  { %v286_v10 = vmul.f32 %v15649_v49, %v285_v57  ;;  %v293_v11 = vmul.f32 %v15651_v59, %v292_v62  ;;  %v280_v17 = vsel %vm16038_vm7, %v15647_v45, %v276_v61 }
  0x50   :  { %v305_v25 = vrot.slane %v280_v17, 7 }
  0x51   :  { %v294_v6 = vmul.f32 0.5, %v293_v11  ;;  %v290_v18 = vsel %vm289_vm10, %v15649_v49, %v286_v10  ;;  %v135_v49 = vld [vmem:[#allocation4] sm:$0xf] }
  0x52   :  { %v306_v29 = vrot.slane %v290_v18, 6  ;;  %v308_v33 = vsel %vm138_vm1, %v270_v26, %v305_v25 }
  0x53   :  { %v295_v24 = vsub.f32 1.5, %v294_v6 }
  0x55   :  { %v296_v27 = vmul.f32 %v15651_v59, %v295_v24 }
  0x57   :  { %v300_v13 = vsel %vm299_vm14, %v15651_v59, %v296_v27 }
  0x58   :  { %v307_v30 = vrot.slane %v300_v13, 5 }
  0x5a   :  { %v310_v36 = vsel %vm309_vm15, %v306_v29, %v307_v30 }
  0x5b   :  { %v312_v37 = vsel %vm311_vm2, %v308_v33, %v310_v36 }
  0x5c   :  { %v314_v38 = vmul.f32 %v312_v37, %v134_v34 }
  0x5e   :  { %v316_v39 = vperm.slane %v314_v38, 0  ;;  %v317_v40 = vperm.slane %v314_v38, 1  ;;  %v318_v19 = vperm.slane %v314_v38, 2  ;;  %v319_v31 = vperm.slane %v314_v38, 3 }
  0x60   :  { %v324_v41 = vmul.f32 %v316_v39, %v16020_v48  ;;  %v325_v42 = vmul.f32 %v317_v40, %v16024_v53  ;;  %v326_v43 = vmul.f32 %v318_v19, %v16026_v58  ;;  %v327_v44 = vmul.f32 %v319_v31, %v16034_v35 }
  0x61   :  { %v342_v51 = vmul.f32 %v318_v19, %v15893_v2  ;;  %v343_v52 = vmul.f32 %v319_v31, %v15898_v3  ;;  %v346_v53 = vmul.f32 %v318_v19, %v15915_v7  ;;  %v347_v58 = vmul.f32 %v319_v31, %v15920_v8 }
  0x62   :  { %v332_v45 = vrot.slane %v325_v42, 7  ;;  %v333_v46 = vrot.slane %v326_v43, 6  ;;  %v334_v47 = vrot.slane %v327_v44, 5  ;;  %v350_v35 = vmul.f32 %v318_v19, %v15943_v15 }
  0x63   :  { %v351_v54 = vmul.f32 %v319_v31, %v15948_v16  ;;  %v354_v55 = vmul.f32 %v318_v19, %v15971_v23  ;;  %v355_v56 = vmul.f32 %v319_v31, %v15980_v28  ;;  %v340_v2 = vmul.f32 %v316_v39, %v15883_v0 }
  0x64   :  { %v335_v20 = vsel %vm138_vm1, %v324_v41, %v332_v45  ;;  %v336_v50 = vsel %vm309_vm15, %v333_v46, %v334_v47  ;;  %v341_v3 = vmul.f32 %v317_v40, %v15888_v1  ;;  %v344_v57 = vmul.f32 %v316_v39, %v15903_v4 }
  0x65   :  { %v337_v48 = vsel %vm311_vm2, %v335_v20, %v336_v50  ;;  %v345_v7 = vmul.f32 %v317_v40, %v15908_v5  ;;  %v348_v15 = vmul.f32 %v316_v39, %v15925_v9  ;;  %v349_v60 = vmul.f32 %v317_v40, %v15938_v14 }
  0x66   :  { %v339_v32 = vsub.f32 %v135_v49, %v337_v48  ;;  %v352_v16 = vmul.f32 %v316_v39, %v15961_v21  ;;  %v353_v23 = vmul.f32 %v317_v40, %v15966_v22 }
  0x68   :  { %v359_v8 = vperm.slane %v339_v32, 2  ;;  %v360_v59 = vperm.slane %v339_v32, 3  ;;  %v357_v28 = vperm.slane %v339_v32, 0  ;;  %v358_v61 = vperm.slane %v339_v32, 1 }
  0x6a   :  { %v367_v62 = vadd.f32 %v359_v8, %v342_v51  ;;  %v368_v0 = vadd.f32 %v360_v59, %v343_v52  ;;  %v371_v63 = vadd.f32 %v359_v8, %v346_v53  ;;  %v372_v1 = vadd.f32 %v360_v59, %v347_v58 }
  0x6b   :  { %v375_v10 = vadd.f32 %v359_v8, %v350_v35  ;;  %v376_v4 = vadd.f32 %v360_v59, %v351_v54  ;;  %v379_v11 = vadd.f32 %v359_v8, %v354_v55  ;;  %v380_v5 = vadd.f32 %v360_v59, %v355_v56 }
  0x6c   :  { %v383_v12 = vmax.f32 %v367_v62, 0.0  ;;  %v384_v17 = vmax.f32 %v368_v0, 0.0  ;;  %v387_v6 = vmax.f32 %v371_v63, 0.0  ;;  %v388_v9 = vmax.f32 %v372_v1, 0.0 }
  0x6d   :  { %v391_v18 = vmax.f32 %v375_v10, 0.0  ;;  %v392_v14 = vmax.f32 %v376_v4, 0.0  ;;  %v395_v24 = vmax.f32 %v379_v11, 0.0  ;;  %v396_v21 = vmax.f32 %v380_v5, 0.0 }
  0x6e   :  { %v416_v25 = vrot.slane %v383_v12, 2  ;;  %v417_v22 = vrot.slane %v384_v17, 2  ;;  %v422_v26 = vrot.slane %v387_v6, 2  ;;  %v424_v27 = vrot.slane %v388_v9, 2 }
  0x6f   :  { %v430_v29 = vrot.slane %v391_v18, 2  ;;  %v432_v13 = vrot.slane %v392_v14, 2  ;;  %v438_v30 = vrot.slane %v395_v24, 2  ;;  %v440_v33 = vrot.slane %v396_v21, 2 }
  0x70   :  { %v16071_v34 = vsel %vm18841_vm3, %v416_v25, %v422_v26  ;;  %v16074_v36 = vsel %vm18841_vm3, %v417_v22, %v424_v27  ;;  %v16077_v37 = vsel %vm18841_vm3, 0.0, %v416_v25  ;;  %v16080_v38 = vsel %vm18841_vm3, 0.0, %v417_v22 }
  0x71   :  { %18845 = vst [vmem:[#allocation16_spill] sm:$0xff] %v16071_v34  ;;  %v16083_v39 = vsel %vm18841_vm3, %v422_v26, %v430_v29  ;;  %v16086_v40 = vsel %vm18841_vm3, %v424_v27, %v432_v13  ;;  %v439_v19 = vsel %vm18841_vm3, %v430_v29, %v438_v30  ;;  %v441_v31 = vsel %vm18841_vm3, %v432_v13, %v440_v33 }
  0x72   :  { %18846 = vst [vmem:[#allocation17_spill] sm:$0xff] %v16074_v36  ;;  %v16091_v41 = vsel %vm462_vm4, %v439_v19, 0.0  ;;  %v16094_v42 = vsel %vm462_vm4, %v441_v31, 0.0  ;;  %v16098_v43 = vpack.c.bf16 %v16080_v38, %v16077_v37  ;;  %v16102_v44 = vpack.c.bf16 %v16074_v36, %v16071_v34 }
  0x73   :  { %18847 = vst [vmem:[#allocation18_spill] sm:$0xff] %v16083_v39  ;;  %v538_v45 = vpack.c.bf16 %v16094_v42, %v16091_v41  ;;  %v16108_v46 = vpack.c.bf16 %v16086_v40, %v16083_v39  ;;  %v365_v47 = vadd.f32 %v357_v28, %v340_v2  ;;  %v366_v49 = vadd.f32 %v358_v61, %v341_v3 }
  0x74   :  { %18848 = vst [vmem:[#allocation19_spill] sm:$0xff] %v16086_v40  ;;  %v947_v20 = vunpack.c.l.b16 %v16098_v43  ;;  %v18686_v50 = vunpack.c.l.b16 %v16102_v44  ;;  %v369_v51 = vadd.f32 %v357_v28, %v344_v57  ;;  %v370_v52 = vadd.f32 %v358_v61, %v345_v7 }
  0x75   :  { %18849 = vst [vmem:[#allocation20_spill] sm:$0xff] %v16091_v41  ;;  %v16112_v48 = vunpack.c.l.b16 %v538_v45  ;;  %v18685_v53 = vunpack.c.l.b16 %v16108_v46  ;;  %v373_v58 = vadd.f32 %v357_v28, %v348_v15  ;;  %v374_v35 = vadd.f32 %v358_v61, %v349_v60 }
  0x76   :  { %18850 = vst [vmem:[#allocation21_spill] sm:$0xff] %v16094_v42  ;;  %v16117_v32 = vpack.c.b16 %v18686_v50, %v947_v20  ;;  %v377_v54 = vadd.f32 %v357_v28, %v352_v16  ;;  %v378_v55 = vadd.f32 %v358_v61, %v353_v23  ;;  %v381_v56 = vmax.f32 %v365_v47, 0.0 }
  0x77   :  { %18851 = vst [vmem:[#allocation22_spill] sm:$0xff] %v16102_v44  ;;  %v16122_v2 = vpack.c.b16 %v16112_v48, %v18685_v53  ;;  %v382_v3 = vmax.f32 %v366_v49, 0.0  ;;  %v385_v57 = vmax.f32 %v369_v51, 0.0  ;;  %v386_v7 = vmax.f32 %v370_v52, 0.0 }
  0x78   :  { %18852 = vst [vmem:[#allocation23_spill] sm:$0xff] %v16108_v46  ;;  %v995_v8 = vshrl.u32 %v16117_v32, 16  ;;  %v997_v59 = vshll.u32 %v16117_v32, 16  ;;  %v389_v15 = vmax.f32 %v373_v58, 0.0  ;;  %v390_v60 = vmax.f32 %v374_v35, 0.0 }
  0x79   :  { %18853 = vst [vmem:[#allocation24_spill] sm:$0xff] %v16117_v32  ;;  %v1002_v62 = vshll.u32 %v16122_v2, 16  ;;  %v393_v0 = vmax.f32 %v377_v54, 0.0  ;;  %v394_v16 = vmax.f32 %v378_v55, 0.0  ;;  %v414_v23 = vrot.slane %v381_v56, 2 }
  0x7a   :  { %18854 = vst [vmem:[#allocation25_spill] sm:$0xff] %v16122_v2  ;;  %v999_v28 = vrot.slane %v997_v59, 1  ;;  %v415_v61 = vrot.slane %v382_v3, 2  ;;  %v418_v63 = vrot.slane %v385_v57, 2  ;;  %v420_v1 = vrot.slane %v386_v7, 2 }
  0x7b   :  { %v16127_v10 = vrot.slane %v1002_v62, 1  ;;  %v426_v4 = vrot.slane %v389_v15, 2  ;;  %v428_v11 = vrot.slane %v390_v60, 2  ;;  %v434_v5 = vrot.slane %v393_v0, 2 }
  0x7c   :  { %v1000_v12 = vor.u32 %v999_v28, %v995_v8  ;;  %v16130_v17 = vsel %vm18841_vm3, %v414_v23, %v418_v63  ;;  %v16133_v6 = vsel %vm18841_vm3, %v415_v61, %v420_v1  ;;  %v436_v9 = vrot.slane %v394_v16, 2 }
  0x7d   :  { %v16136_v18 = vsel %vm18841_vm3, %v418_v63, %v426_v4  ;;  %v16139_v14 = vsel %vm18841_vm3, %v420_v1, %v428_v11  ;;  %v435_v24 = vsel %vm18841_vm3, %v426_v4, %v434_v5  ;;  %v16143_v21 = vsel %vm18841_vm3, 0.0, %v414_v23  ;;  %v10844_v23 = vld [vmem:[#allocation6 + $0xa8] sm:$0xf]  ;;  %v14674_v4 = vld [vmem:[#allocation6 + $0xb0] sm:$0xf0] }
  0x7e   :  { %18855 = vst [vmem:[#allocation26_spill] sm:$0xff] %v16139_v14  ;;  %v1005_v25 = vsel %vm18842_vm5, %v1000_v12, %v16127_v10  ;;  %v437_v22 = vsel %vm18841_vm3, %v428_v11, %v436_v9  ;;  %v16149_v26 = vsel %vm18841_vm3, 0.0, %v415_v61  ;;  %v16152_v27 = vsel %vm462_vm4, %v435_v24, 0.0 }
  0x7f   :  { %18856 = vst [vmem:[#allocation27_spill] sm:$0xff] %v16152_v27  ;;  %1034 = vrot.lane.b32.xlu1 %v1005_v25, %s15818_s0  ;;  %v16156_v29 = vsel %vm462_vm4, %v437_v22, 0.0  ;;  %v539_v13 = vpack.c.bf16 %v16149_v26, %v16143_v21  ;;  %v16162_v30 = vpack.c.bf16 %v16133_v6, %v16130_v17  ;;  %v16166_v33 = vpack.c.bf16 %v16139_v14, %v16136_v18 }
  0x80   :  { %18857 = vst [vmem:[#allocation28_spill] sm:$0xff] %v16156_v29  ;;  %v537_v19 = vpack.c.bf16 %v16156_v29, %v16152_v27  ;;  %v16170_v31 = vunpack.c.h.b16 %v538_v45  ;;  %v948_v47 = vunpack.c.h.b16 %v16098_v43  ;;  %v18684_v49 = vunpack.c.h.b16 %v16102_v44 }
  0x81   :  { %18858 = vst [vmem:[#allocation29_spill] sm:$0xff] %v16162_v30  ;;  %v945_v20 = vunpack.c.l.b16 %v539_v13  ;;  %v18682_v51 = vunpack.c.l.b16 %v16162_v30  ;;  %v18681_v52 = vunpack.c.l.b16 %v16166_v33  ;;  %v18683_v58 = vunpack.c.h.b16 %v16108_v46  ;;  %v16344_v46 = vld [vmem:[#allocation6 + $0x38] sm:$0xf0] }
  0x82   :  { %18859 = vst [vmem:[#allocation30_spill] sm:$0xff] %v16166_v33  ;;  %v16177_v35 = vunpack.c.l.b16 %v537_v19  ;;  %v16181_v54 = vpack.c.b16 %v18684_v49, %v948_v47  ;;  %v16183_v55 = vunpack.c.h.b16 %v537_v19  ;;  %v18687_v45 = vunpack.c.h.b16 %v16166_v33  ;;  %v11120_v33 = vld [vmem:[#allocation6 + $0x2d0] sm:$0xf] }
  0x83   :  { %18860 = vst [vmem:[#allocation31_spill] sm:$0xff] %v16170_v31  ;;  %v16188_v43 = vpack.c.b16 %v18682_v51, %v945_v20  ;;  %v16193_v56 = vpack.c.b16 %v16170_v31, %v18683_v58  ;;  %v946_v3 = vunpack.c.h.b16 %v539_v13  ;;  %v18688_v57 = vunpack.c.h.b16 %v16162_v30  ;;  %v14734_v31 = vld [vmem:[#allocation6 + $0x290] sm:$0xf0] }
  0x84   :  { %18861 = vst [vmem:[#allocation32_spill] sm:$0xff] %v16181_v54  ;;  %v16199_v7 = vpack.c.b16 %v16177_v35, %v18681_v52  ;;  %v1007_v8 = vshrl.u32 %v16181_v54, 16  ;;  %v1009_v59 = vshll.u32 %v16181_v54, 16  ;;  %v16206_v15 = vpack.c.b16 %v16183_v55, %v18687_v45  ;;  %v11036_v45 = vld [vmem:[#allocation6 + $0x228] sm:$0xf] }
  0x85   :  { %18862 = vst [vmem:[#allocation33_spill] sm:$0xff] %v16188_v43  ;;  %v971_v60 = vshrl.u32 %v16188_v43, 16  ;;  %v973_v62 = vshll.u32 %v16188_v43, 16  ;;  %v1014_v0 = vshll.u32 %v16193_v56, 16  ;;  %v16213_v16 = vpack.c.b16 %v18688_v57, %v946_v3  ;;  %v10940_v3 = vld [vmem:[#allocation6 + $0x168] sm:$0xf] }
  0x86   :  { %18863 = vst [vmem:[#allocation34_spill] sm:$0xff] %v16193_v56  ;;  %v978_v28 = vshll.u32 %v16199_v7, 16  ;;  %v1011_v61 = vrot.slane %v1009_v59, 1  ;;  %v990_v63 = vshll.u32 %v16206_v15, 16  ;;  %v1021_v1 = vshrl.u32 %v16206_v15, 16 }
  0x87   :  { %18864 = vst [vmem:[#allocation35_spill] sm:$0xff] %v16199_v7  ;;  %v975_v11 = vrot.slane %v973_v62, 1  ;;  %v16218_v5 = vrot.slane %v1014_v0, 1  ;;  %v1018_v12 = vshrl.u32 %v16199_v7, 16  ;;  %v983_v9 = vshrl.u32 %v16213_v16, 16 }
  0x88   :  { %18865 = vst [vmem:[#allocation36_spill] sm:$0xff] %v16206_v15  ;;  %v980_v24 = vrot.slane %v978_v28, 1  ;;  %v1012_v25 = vor.u32 %v1011_v61, %v1007_v8  ;;  %v992_v22 = vrot.slane %v990_v63, 1  ;;  %v985_v13 = vshll.u32 %v16213_v16, 16  ;;  %v14698_v59 = vld [vmem:[#allocation6 + $0x170] sm:$0xf0] }
  0x89   :  { %18866 = vst [vmem:[#allocation37_spill] sm:$0xff] %v16213_v16  ;;  %v976_v19 = vor.u32 %v975_v11, %v971_v60  ;;  %v1024_v47 = vshrl.u32 %v16122_v2, 16  ;;  %v10845_v20 = vor.u32 %v14674_v4, %v10844_v23  ;;  %v113_v60 = vlaneseq  ;;  %v14722_v57 = vld [vmem:[#allocation6 + $0x230] sm:$0xf0] }
  0x8a   :  { %v1017_v62 = vsel %vm18842_vm5, %v1012_v25, %v16218_v5  ;;  %v1023_v0 = vor.u32 %v1021_v1, %v992_v22  ;;  %v987_v52 = vrot.slane %v985_v13, 1  ;;  %v1020_v8 = vor.u32 %v1018_v12, %v980_v24  ;;  %v10832_v25 = vld [vmem:[#allocation6 + $0x90] sm:$0xf]  ;;  %v14671_v12 = vld [vmem:[#allocation6 + $0x98] sm:$0xf0] }
  0x8b   :  { %v981_v58 = vsel %vm18842_vm5, %v976_v19, %v980_v24  ;;  %1036 = vrot.lane.b32.xlu1 %v1017_v62, %s15818_s0  ;;  %v16230_v28 = vor.u32 %v1024_v47, %v16127_v10  ;;  %6492 = vmatpush.bf16.msra.mxu0 %v10845_v20  ;;  %v10941_v61 = vor.u32 %v14698_v59, %v10940_v3  ;;  %v16233_v63 = vshrl.u32 %v113_v60, 7  ;;  %v14695_v13 = vld [vmem:[#allocation6 + $0x158] sm:$0xf0]  ;;  %v14668_v60 = vld [vmem:[#allocation6 + $0x80] sm:$0xf0] }
  0x8c   :  { %1030 = vrot.lane.b32.xlu0 %v981_v58, %s15818_s0  ;;  %v988_v23 = vor.u32 %v987_v52, %v983_v9  ;;  %v684_v1 = vrot.slane %v16136_v18, 5  ;;  %v686_v4 = vrot.slane %v16139_v14, 5  ;;  %v692_v11 = vrot.slane %v16152_v27, 5  ;;  %v10928_v9 = vld [vmem:[#allocation6 + $0x150] sm:$0xf] }
  0x8d   :  { %6511 = vmatpush.bf16.msra.mxu1 %v10941_v61  ;;  %v694_v24 = vrot.slane %v16156_v29, 5  ;;  %v672_v58 = vrot.slane %v16143_v21, 5  ;;  %v673_v52 = vrot.slane %v16130_v17, 5  ;;  %v16244_v19 = vadd.s32 16, %v16233_v63  ;;  %v10904_v61 = vld [vmem:[#allocation6 + $0x120] sm:$0xf] }
  0x8e   :  { %v993_v10 = vsel %vm18842_vm5, %v988_v23, %v992_v22  ;;  %v693_v47 = vsel %vm671_vm6, %v684_v1, %v692_v11  ;;  %v16248_v20 = vadd.s32 8, %v16233_v63  ;;  %vm467_vm7 = vcmp.eq.s32.totalorder %v16233_v63, 0  ;;  %v10820_v22 = vld [vmem:[#allocation6 + $0x78] sm:$0xf] }
  0x8f   :  { %1032 = vrot.lane.b32.xlu2 %v993_v10, %s15818_s0  ;;  %v695_v3 = vsel %vm671_vm6, %v686_v4, %v694_v24  ;;  %v16252_v59 = vpack.c.bf16 %v694_v24, %v692_v11  ;;  %vm471_vm8 = vcmp.eq.s32.totalorder %v16233_v63, 5  ;;  %v674_v62 = vsel %vm671_vm6, %v672_v58, %v673_v52  ;;  %v10916_v23 = vld [vmem:[#allocation6 + $0x138] sm:$0xf]  ;;  %v14692_v11 = vld [vmem:[#allocation6 + $0x140] sm:$0xf0] }
  0x90   :  { %vm497_vm9 = vcmp.eq.s32.totalorder %v16244_v19, 20  ;;  %vm16257_vm10 = vmor %vm467_vm7, %vm471_vm8  ;;  %vm480_vm11 = vcmp.eq.s32.totalorder %v16248_v20, 10  ;;  %vm488_vm12 = vcmp.eq.s32.totalorder %v16248_v20, 15  ;;  %v675_v10 = vrot.slane %v16149_v26, 5 }
  0x91   :  { %vm16265_vm14 = vmxor %vm497_vm9, %vm15819_vm13  ;;  %v18869_v24 = vmov 0  ;;  %v1117_v58 = vunpack.c.l.b16 %v16252_v59  ;;  %v676_v49 = vrot.slane %v16133_v6, 5  ;;  %v685_v53 = vsel %vm671_vm6, %v673_v52, %v684_v1 }
  0x92   :  { %v18870_v24 = vsel %vm16265_vm14, 4294967295, %v18869_v24  ;;  %v10833_v50 = vor.u32 %v14671_v12, %v10832_v25  ;;  %v724_v51 = vsel %vm16265_vm14, %v693_v47, 0.0  ;;  %v725_v2 = vsel %vm16265_vm14, %v695_v3, 0.0  ;;  %vm492_vm15 = vmor %vm480_vm11, %vm488_vm12 }
  0x93   :  { %18871 = vst [vmem:[#allocation38_spill] sm:$0xff] %v18870_v24  ;;  %1040 = vrot.lane.b32.xlu1 %v1023_v0, %s15818_s0  ;;  %v10929_v32 = vor.u32 %v14695_v13, %v10928_v9  ;;  %v10821_v15 = vor.u32 %v14668_v60, %v10820_v22  ;;  %v16280_v16 = vpack.c.bf16 %v725_v2, %v724_v51  ;;  %vm16285_vm4 = vmxor %vm16257_vm10, %vm15819_vm13  ;;  %v18872_v0 = vmov 0  ;;  %v10808_v22 = vld [vmem:[#allocation6 + $0x60] sm:$0xf]  ;;  %v14670_v24 = vld [vmem:[#allocation6 + $0x94] sm:$0xf] }
  0x94   :  { %1038 = vrot.lane.b32.xlu0 %v1020_v8, %s15818_s0  ;;  %v18873_v0 = vsel %vm16285_vm4, 4294967295, %v18872_v0  ;;  %v677_v1 = vsel %vm671_vm6, %v675_v10, %v676_v49  ;;  %v687_v25 = vsel %vm671_vm6, %v676_v49, %v686_v4  ;;  %6493 = vmatpush.bf16.msra.mxu0 %v10833_v50  ;;  %v678_v12 = vrot.slane %v16077_v37, 5  ;;  %vm16293_vm7 = vmxor %vm492_vm15, %vm15819_vm13 }
  0x95   :  { %18874 = vst [vmem:[#allocation39_spill] sm:$0xff] %v18873_v0  ;;  %v18875_v52 = vmov 0  ;;  %v716_v2 = vsel %vm16285_vm4, %v674_v62, 0.0  ;;  %v717_v51 = vsel %vm16285_vm4, %v677_v1, 0.0  ;;  %6512 = vmatpush.bf16.msra.mxu1 %v10929_v32  ;;  %v10917_v8 = vor.u32 %v14692_v11, %v10916_v23  ;;  %v14665_v23 = vld [vmem:[#allocation6 + $0x68] sm:$0xf0] }
  0x96   :  { %v18876_v52 = vsel %vm16293_vm7, 4294967295, %v18875_v52  ;;  %v11037_v9 = vor.u32 %v14722_v57, %v11036_v45  ;;  %v1113_v13 = vunpack.c.l.b16 %v16280_v16  ;;  %v720_v50 = vsel %vm16293_vm7, %v685_v53, 0.0  ;;  %v10834_v0 = vld [vmem:[#allocation6 + $0x9c] sm:$0xf0] }
  0x97   :  { %18877 = vst [vmem:[#allocation40_spill] sm:$0xff] %v18876_v52  ;;  %v721_v49 = vsel %vm16293_vm7, %v687_v25, 0.0  ;;  %v16306_v4 = vpack.c.bf16 %v717_v51, %v716_v2  ;;  %1042 = vrot.lane.b32.xlu2 %v16230_v28, %s15818_s0  ;;  %v679_v32 = vrot.slane %v16071_v34, 5  ;;  %v681_v45 = vrot.slane %v16080_v38, 5  ;;  %v14689_v2 = vld [vmem:[#allocation6 + $0x128] sm:$0xf0] }
  0x98   :  { %v16310_v47 = vpack.c.bf16 %v721_v49, %v720_v50  ;;  %6530 = vmatpush.bf16.msra.mxu2 %v11037_v9  ;;  %v682_v57 = vrot.slane %v16074_v36, 5  ;;  %v18878_v53 = vshrl.u32 %v16193_v56, 16  ;;  %v1125_v62 = vpack.c.b16 %v1117_v58, %v1113_v13  ;;  %6494 = vmatpush.bf16.msra.mxu0 %v10821_v15  ;;  %v11024_v51 = vld [vmem:[#allocation6 + $0x210] sm:$0xf]  ;;  %v10796_v9 = vld [vmem:[#allocation6 + $0x48] sm:$0xf] }
  0x99   :  { %v18694_v60 = vrot.slane %v16083_v39, 5  ;;  %v18693_v28 = vrot.slane %v16086_v40, 5  ;;  %v1106_v10 = vunpack.c.h.b16 %v16306_v4  ;;  %6513 = vmatpush.bf16.msra.mxu1 %v10917_v8  ;;  %v680_v11 = vsel %vm671_vm6, %v678_v12, %v679_v32  ;;  %v14662_v13 = vld [vmem:[#allocation6 + $0x50] sm:$0xf0]  ;;  %v16342_v56 = vld [vmem:[#allocation6 + $0x30] sm:$0xf] }
  0x9a   :  { %v1029_v3 = vor.u32 %v18878_v53, %v16218_v5  ;;  %v683_v1 = vsel %vm671_vm6, %v681_v45, %v682_v57  ;;  %v1105_v25 = vunpack.c.l.b16 %v16306_v4  ;;  %v14719_v5 = vld [vmem:[#allocation6 + $0x218] sm:$0xf0]  ;;  %v718_v8 = vsel %vm16285_vm4, %v680_v11, 0.0  ;;  %v10892_v45 = vld [vmem:[#allocation6 + $0x108] sm:$0xf] }
  0x9b   :  { %v689_v15 = vsel %vm671_vm6, %v679_v32, %v18694_v60  ;;  %v691_v58 = vsel %vm671_vm6, %v682_v57, %v18693_v28  ;;  %v719_v12 = vsel %vm16285_vm4, %v683_v1, 0.0  ;;  %1137 = vrot.lane.b32.xlu1 %v1125_v62, %s15818_s0  ;;  %v1110_v50 = vunpack.c.h.b16 %v16310_v47  ;;  %v14686_v57 = vld [vmem:[#allocation6 + $0x110] sm:$0xf0]  ;;  %v11012_v60 = vld [vmem:[#allocation6 + $0x1f8] sm:$0xf] }
  0x9c   :  { %v722_v49 = vsel %vm16293_vm7, %v689_v15, 0.0  ;;  %v723_v4 = vsel %vm16293_vm7, %v691_v58, 0.0  ;;  %v733_v32 = vpack.c.bf16 %v719_v12, %v718_v8  ;;  %1044 = vrot.lane.b32.xlu0 %v1029_v3, %s15818_s0  ;;  %v1109_v11 = vunpack.c.l.b16 %v16310_v47  ;;  %v14716_v62 = vld [vmem:[#allocation6 + $0x200] sm:$0xf0]  ;;  %v16346_v58 = vld [vmem:[#allocation6 + $0xf0] sm:$0xf] }
  0x9d   :  { %v735_v53 = vpack.c.bf16 %v723_v4, %v722_v49  ;;  %v10809_v1 = vor.u32 %v14665_v23, %v10808_v22  ;;  %v10905_v28 = vor.u32 %v14689_v2, %v10904_v61  ;;  %v11025_v15 = vor.u32 %v14719_v5, %v11024_v51  ;;  %v16348_v8 = vld [vmem:[#allocation6 + $0xf8] sm:$0xf0]  ;;  %v16350_v22 = vld [vmem:[#allocation6 + $0x1e0] sm:$0xf]  ;;  %v14713_v23 = vld [vmem:[#allocation6 + $0x1e8] sm:$0xf0] }
  0x9e   :  { %v1108_v54 = vunpack.c.h.b16 %v733_v32  ;;  %v1107_v7 = vunpack.c.l.b16 %v733_v32  ;;  %v10797_v43 = vor.u32 %v14662_v13, %v10796_v9  ;;  %v1121_v12 = vpack.c.b16 %v1109_v11, %v1105_v25  ;;  %v16352_v61 = vld [vmem:[#allocation6 + $0x18] sm:$0xf]  ;;  %v16354_v51 = vld [vmem:[#allocation6 + $0x20] sm:$0xf0]  ;;  %v16365_v32 = vld [vmem:[#allocation6 + $0x1c8] sm:$0xf] }
  0x9f   :  { %v1112_v3 = vunpack.c.h.b16 %v735_v53  ;;  %v1111_v49 = vunpack.c.l.b16 %v735_v53  ;;  %6495 = vmatpush.bf16.msra.mxu0 %v10809_v1  ;;  %6514 = vmatpush.bf16.msra.mxu1 %v10905_v28  ;;  %v10893_v47 = vor.u32 %v14686_v57, %v10892_v45  ;;  %v11013_v2 = vor.u32 %v14716_v62, %v11012_v60  ;;  %v16356_v5 = vld [vmem:[#allocation6 + $0xd8] sm:$0xf]  ;;  %v16358_v9 = vld [vmem:[#allocation6 + $0xe0] sm:$0xf0]  ;;  %v16367_v45 = vld [vmem:[#allocation6 + $0x1d0] sm:$0xf0] }
  0xa0   :  { %6531 = vmatpush.bf16.msra.mxu2 %v11025_v15  ;;  %v1122_v13 = vpack.c.b16 %v1110_v50, %v1106_v10  ;;  %1129 = vrot.lane.b32.xlu2 %v1121_v12, %s15818_s0  ;;  %v10785_v28 = vor.u32 %v16344_v46, %v16342_v56  ;;  %v10881_v25 = vor.u32 %v16348_v8, %v16346_v58  ;;  %v16369_v60 = vld [vmem:[#allocation6] sm:$0xf]  ;;  %v16371_v57 = vld [vmem:[#allocation6 + $0x8] sm:$0xf0]  ;;  %v696_v10 = vrot.slane %v16091_v41, 5 }
  0xa1   :  { %v1124_v4 = vpack.c.b16 %v1112_v3, %v1108_v54  ;;  %v16373_v53 = vpack.c.b16 %v1111_v49, %v1107_v7  ;;  %v11001_v54 = vor.u32 %v14713_v23, %v16350_v22  ;;  %v698_v50 = vrot.slane %v16094_v42, 5  ;;  %v16378_v46 = vld [vmem:[#allocation6 + $0xc0] sm:$0xf]  ;;  %v16380_v56 = vld [vmem:[#allocation6 + $0xc8] sm:$0xf0] }
  0xa2   :  { %v16382_v11 = vld [vmem:[#allocation6 + $0x1b0] sm:$0xf]  ;;  %v10773_v1 = vor.u32 %v16354_v51, %v16352_v61  ;;  %v10869_v7 = vor.u32 %v16358_v9, %v16356_v5  ;;  %v16388_v62 = vld [vmem:[#allocation6 + $0x1b8] sm:$0xf0]  ;;  %v515_v15 = vsel %vm16285_vm4, %v16143_v21, 0.0  ;;  %v516_v58 = vsel %vm16285_vm4, %v16149_v26, 0.0 }
  0xa3   :  { %6496 = vmatpush.bf16.msra.mxu0 %v10797_v43  ;;  %6515 = vmatpush.bf16.msra.mxu1 %v10893_v47  ;;  %v11132_v8 = vld [vmem:[#allocation6 + $0x2e8] sm:$0xf]  ;;  %v18879_v43 = vrot.slane %v16083_v39, 5  ;;  %v18880_v12 = vrot.slane %v16086_v40, 5  ;;  %v16403_v47 = vpack.c.bf16 %v698_v50, %v696_v10  ;;  %v519_v22 = vsel %vm16293_vm7, %v16130_v17, 0.0 }
  0xa4   :  { %1135 = vrot.lane.b32.xlu1 %v1124_v4, %s15818_s0  ;;  %6532 = vmatpush.bf16.msra.mxu2 %v11013_v2  ;;  %v16408_v23 = vld [vmem:[#allocation6 + $0x198] sm:$0xf]  ;;  %v16410_v61 = vld [vmem:[#allocation6 + $0x1a0] sm:$0xf0]  ;;  %v14746_v51 = vld [vmem:[#allocation6 + $0x2f0] sm:$0xf0] }
  0xa5   :  { %v697_v3 = vsel %vm671_vm6, %v18879_v43, %v696_v10  ;;  %v699_v49 = vsel %vm671_vm6, %v18880_v12, %v698_v50  ;;  %v16412_v2 = vld [vmem:[#allocation6 + $0x3a8] sm:$0xf]  ;;  %1131 = vrot.lane.b32.xlu0 %v1122_v13, %s15818_s0  ;;  %v520_v4 = vsel %vm16293_vm7, %v16133_v6, 0.0  ;;  %v531_v10 = vpack.c.bf16 %v516_v58, %v515_v15  ;;  %v16422_v50 = vld [vmem:[#allocation6 + $0x3b0] sm:$0xf0] }
  0xa6   :  { %v726_v5 = vsel %vm16265_vm14, %v697_v3, 0.0  ;;  %v727_v9 = vsel %vm16265_vm14, %v699_v49, 0.0  ;;  %v10989_v43 = vor.u32 %v16367_v45, %v16365_v32  ;;  %v10761_v13 = vor.u32 %v16371_v57, %v16369_v60  ;;  %v16430_v3 = vld [vmem:[#allocation6 + $0x468] sm:$0xf]  ;;  %v14743_v49 = vld [vmem:[#allocation6 + $0x2d8] sm:$0xf0] }
  0xa7   :  { %v16426_v12 = vpack.c.bf16 %v727_v9, %v726_v5  ;;  %v533_v44 = vpack.c.bf16 %v520_v4, %v519_v22  ;;  %6497 = vmatpush.bf16.msra.mxu0 %v10785_v28  ;;  %6516 = vmatpush.bf16.msra.mxu1 %v10881_v25  ;;  %v10857_v15 = vor.u32 %v16380_v56, %v16378_v46  ;;  %v16436_v32 = vld [vmem:[#allocation6 + $0x470] sm:$0xf0]  ;;  %v16438_v45 = vld [vmem:[#allocation6 + $0x180] sm:$0xf]  ;;  %v16440_v5 = vld [vmem:[#allocation6 + $0x188] sm:$0xf0]  ;;  %v1120_v57 = vunpack.c.h.b16 %v16403_v47 }
  0xa8   :  { %v10977_v58 = vor.u32 %v16388_v62, %v16382_v11  ;;  %v11133_v30 = vor.u32 %v14746_v51, %v11132_v8  ;;  %6533 = vmatpush.bf16.msra.mxu2 %v11001_v54  ;;  %v907_v28 = vunpack.c.l.b16 %v531_v10  ;;  %v16444_v22 = vld [vmem:[#allocation6 + $0x390] sm:$0xf]  ;;  %v16446_v46 = vld [vmem:[#allocation6 + $0x398] sm:$0xf0]  ;;  %v908_v56 = vunpack.c.h.b16 %v531_v10  ;;  %v14740_v11 = vld [vmem:[#allocation6 + $0x2c0] sm:$0xf0] }
  0xa9   :  { %v1116_v60 = vunpack.c.h.b16 %v16426_v12  ;;  %v911_v25 = vunpack.c.l.b16 %v533_v44  ;;  %v11229_v62 = vor.u32 %v16422_v50, %v16412_v2  ;;  %v11121_v8 = vor.u32 %v14743_v49, %v11120_v33  ;;  %v16452_v54 = vld [vmem:[#allocation6 + $0x450] sm:$0xf]  ;;  %v16454_v51 = vld [vmem:[#allocation6 + $0x458] sm:$0xf0] }
  0xaa   :  { %6549 = vmatpush.bf16.msra.mxu3 %v11133_v30  ;;  %v912_v9 = vunpack.c.h.b16 %v533_v44  ;;  %v11325_v4 = vor.u32 %v16436_v32, %v16430_v3  ;;  %v517_v10 = vsel %vm16285_vm4, %v16077_v37, 0.0  ;;  %v11108_v30 = vld [vmem:[#allocation6 + $0x2b8] sm:$0xf]  ;;  %v11217_v33 = vor.u32 %v16446_v46, %v16444_v22  ;;  %v16497_v22 = vld [vmem:[#allocation6 + $0x380] sm:$0xf0] }
  0xab   :  { %6498 = vmatpush.bf16.msra.mxu0 %v10773_v1  ;;  %6517 = vmatpush.bf16.msra.mxu1 %v10869_v7  ;;  %v518_v44 = vsel %vm16285_vm4, %v16080_v38, 0.0  ;;  %v521_v2 = vsel %vm16293_vm7, %v16071_v34, 0.0  ;;  %v522_v50 = vsel %vm16293_vm7, %v16074_v36, 0.0  ;;  %v1128_v3 = vpack.c.b16 %v1120_v57, %v1116_v60  ;;  %v16499_v46 = vld [vmem:[#allocation6 + $0x438] sm:$0xf] }
  0xac   :  { %6534 = vmatpush.bf16.msra.mxu2 %v10989_v43  ;;  %v16474_v49 = vpack.c.b16 %v911_v25, %v907_v28  ;;  %v11313_v1 = vor.u32 %v16454_v51, %v16452_v54  ;;  %v16478_v7 = vpack.c.bf16 %v518_v44, %v517_v10  ;;  %v11109_v32 = vor.u32 %v14740_v11, %v11108_v30  ;;  %v16495_v25 = vld [vmem:[#allocation6 + $0x378] sm:$0xf]  ;;  %v11096_v30 = vld [vmem:[#allocation6 + $0x2a0] sm:$0xf]  ;;  %v14737_v44 = vld [vmem:[#allocation6 + $0x2a8] sm:$0xf0] }
  0xad   :  { %1133 = vrot.lane.b32.xlu0 %v16373_v53, %s15818_s0  ;;  %vm547_vm6 = vcmp.eq.s32.totalorder %v16233_v63, 4  ;;  %vm552_vm8 = vcmp.eq.s32.totalorder %v16248_v20, 9  ;;  %vm560_vm9 = vcmp.eq.s32.totalorder %v16248_v20, 14  ;;  %v16485_v43 = vpack.c.b16 %v912_v9, %v908_v56 }
  0xae   :  { %18881 = vst [vmem:[#allocation41_spill] sm:$0xff] %v16474_v49  ;;  %6550 = vmatpush.bf16.msra.mxu3 %v11121_v8  ;;  %v16487_v60 = vpack.c.bf16 %v522_v50, %v521_v2  ;;  %vm16489_vm10 = vmor %vm552_vm8, %vm560_vm9  ;;  %v740_v28 = vrot.slane %v16143_v21, 7  ;;  %v741_v53 = vrot.slane %v16130_v17, 7  ;;  %v18885_v20 = vmov 0 }
  0xaf   :  { %18882 = vst [vmem:[#allocation42_spill] sm:$0xff] %v16485_v43  ;;  %6499 = vmatpush.bf16.msra.mxu0 %v10761_v13  ;;  %6518 = vmatpush.bf16.msra.mxu1 %v10857_v15  ;;  %vm16502_vm11 = vmxor %vm547_vm6, %vm15819_vm13  ;;  %v743_v56 = vrot.slane %v16149_v26, 7  ;;  %v744_v11 = vrot.slane %v16133_v6, 7  ;;  %v18711_v8 = vrot.slane %v16136_v18, 7  ;;  %v18710_v13 = vrot.slane %v16139_v14, 7 }
  0xb0   :  { %v18886_v20 = vsel %vm16502_vm11, 4294967295, %v18885_v20  ;;  %6535 = vmatpush.bf16.msra.mxu2 %v10977_v58  ;;  %v909_v15 = vunpack.c.l.b16 %v16478_v7  ;;  %vm16514_vm12 = vmxor %vm16489_vm10, %vm15819_vm13  ;;  %v18888_v54 = vmov 0  ;;  %v742_v51 = vsel %vm138_vm1, %v740_v28, %v741_v53  ;;  %v14788_v58 = vld [vmem:[#allocation6 + $0x440] sm:$0xf0] }
  0xb1   :  { %18887 = vst [vmem:[#allocation43_spill] sm:$0xff] %v18886_v20  ;;  %v18889_v54 = vsel %vm16514_vm12, 4294967295, %v18888_v54  ;;  %v1114_v9 = vunpack.c.h.b16 %v16280_v16  ;;  %v1118_v10 = vunpack.c.h.b16 %v16252_v59  ;;  %v745_v2 = vsel %vm138_vm1, %v743_v56, %v744_v11  ;;  %v14818_v59 = vld [vmem:[#allocation6 + $0x530] sm:$0xf0]  ;;  %v12068_v20 = vld [vmem:[#allocation6 + $0xa38] sm:$0xf] }
  0xb2   :  { %18890 = vst [vmem:[#allocation44_spill] sm:$0xff] %v18889_v54  ;;  %6551 = vmatpush.bf16.msra.mxu3 %v11109_v32  ;;  %v753_v50 = vsel %vm138_vm1, %v741_v53, %v18711_v8  ;;  %v755_v57 = vsel %vm138_vm1, %v744_v11, %v18710_v13  ;;  %v784_v16 = vsel %vm16502_vm11, %v742_v51, 0.0  ;;  %6500 = vmatmul.bf16.vlgmr.msra.gmra.mxu0 %v16474_v49  ;;  %v913_v56 = vunpack.c.l.b16 %v16487_v60  ;;  %v11084_v8 = vld [vmem:[#allocation6 + $0x288] sm:$0xf]  ;;  %v14956_v54 = vld [vmem:[#allocation6 + $0x980] sm:$0xf0] }
  0xb3   :  { %6568 = vmatpush.bf16.msrb.mxu0 %v11229_v62  ;;  %6587 = vmatpush.bf16.msrb.mxu1 %v11325_v4  ;;  %v11420_v62 = vld [vmem:[#allocation6 + $0x528] sm:$0xf]  ;;  %v785_v4 = vsel %vm16502_vm11, %v745_v2, 0.0  ;;  %v788_v32 = vsel %vm16514_vm12, %v753_v50, 0.0  ;;  %v789_v28 = vsel %vm16514_vm12, %v755_v57, 0.0  ;;  %v1126_v53 = vpack.c.b16 %v1118_v10, %v1114_v9 }
  0xb4   :  { %6519 = vmatmul.bf16.vlgmr.msra.gmra.mxu1 %v16485_v43  ;;  %v16539_v11 = vpack.c.bf16 %v785_v4, %v784_v16  ;;  %v16541_v51 = vpack.c.bf16 %v789_v28, %v788_v32  ;;  %v11097_v13 = vor.u32 %v14737_v44, %v11096_v30  ;;  %v18891_v49 = vor.u32 %v16410_v61, %v16408_v23  ;;  %v11408_v44 = vld [vmem:[#allocation6 + $0x510] sm:$0xf]  ;;  %v14731_v4 = vld [vmem:[#allocation6 + $0x278] sm:$0xf0] }
  0xb5   :  { %v11205_v2 = vor.u32 %v16497_v22, %v16495_v25  ;;  %v11301_v50 = vor.u32 %v14788_v58, %v16499_v46  ;;  %v523_v9 = vsel %vm16265_vm14, %v16136_v18, 0.0  ;;  %v524_v10 = vsel %vm16265_vm14, %v16139_v14, 0.0  ;;  %1143 = vrot.lane.b32.xlu0 %v1128_v3, %s15818_s0  ;;  %v11288_v25 = vld [vmem:[#allocation6 + $0x420] sm:$0xf]  ;;  %1139 = vrot.lane.b32.xlu2 %v1126_v53, %s15818_s0  ;;  %v14785_v46 = vld [vmem:[#allocation6 + $0x428] sm:$0xf0] }
  0xb6   :  { %6536 = vmatpush.bf16.msra.mxu2 %v18891_v49  ;;  %v11421_v30 = vor.u32 %v14818_v59, %v11420_v62  ;;  %v1184_v23 = vunpack.c.l.b16 %v16539_v11  ;;  %v1188_v61 = vunpack.c.l.b16 %v16541_v51  ;;  %v14761_v49 = vld [vmem:[#allocation6 + $0x368] sm:$0xf0]  ;;  %v535_v22 = vpack.c.bf16 %v524_v10, %v523_v9  ;;  %6552 = vmatpush.bf16.msra.mxu3 %v11097_v13  ;;  %v14815_v58 = vld [vmem:[#allocation6 + $0x518] sm:$0xf0]  ;;  %v11072_v59 = vld [vmem:[#allocation6 + $0x270] sm:$0xf] }
  0xb7   :  { %6569 = vmatpush.bf16.msrb.mxu0 %v11217_v33  ;;  %6588 = vmatpush.bf16.msrb.mxu1 %v11313_v1  ;;  %v11192_v33 = vld [vmem:[#allocation6 + $0x360] sm:$0xf]  ;;  %v11085_v57 = vor.u32 %v14734_v31, %v11084_v8  ;;  %v1115_v16 = vunpack.c.l.b16 %v16426_v12  ;;  %v16560_v3 = vpack.c.b16 %v913_v56, %v909_v15  ;;  %v1119_v62 = vunpack.c.l.b16 %v16403_v47  ;;  %v11180_v13 = vld [vmem:[#allocation6 + $0x348] sm:$0xf]  ;;  %v14758_v53 = vld [vmem:[#allocation6 + $0x350] sm:$0xf0] }
  0xb8   :  { %v1200_v1 = vpack.c.b16 %v1188_v61, %v1184_v23  ;;  %v18893_v32 = vor.u32 %v16440_v5, %v16438_v45  ;;  %v11193_v28 = vor.u32 %v14761_v49, %v11192_v33  ;;  %v11289_v31 = vor.u32 %v14785_v46, %v11288_v25  ;;  %v11276_v56 = vld [vmem:[#allocation6 + $0x408] sm:$0xf]  ;;  %v14782_v9 = vld [vmem:[#allocation6 + $0x410] sm:$0xf0]  ;;  %v11396_v47 = vld [vmem:[#allocation6 + $0x4f8] sm:$0xf] }
  0xb9   :  { %18892 = vst [vmem:[#allocation45_spill] sm:$0xff] %v16560_v3  ;;  %v11409_v8 = vor.u32 %v14815_v58, %v11408_v44  ;;  %v915_v12 = vunpack.c.l.b16 %v535_v22  ;;  %v916_v15 = vunpack.c.h.b16 %v535_v22  ;;  %v14812_v10 = vld [vmem:[#allocation6 + $0x500] sm:$0xf0]  ;;  %v1127_v23 = vpack.c.b16 %v1119_v62, %v1115_v16  ;;  %v11060_v49 = vld [vmem:[#allocation6 + $0x258] sm:$0xf] }
  0xba   :  { %6537 = vmatpush.bf16.msra.mxu2 %v18893_v32  ;;  %1208 = vrot.lane.b32.xlu1 %v1200_v1, %s15818_s0  ;;  %v11073_v45 = vor.u32 %v14731_v4, %v11072_v59  ;;  %v117_v5 = vadd.s32 24, %v16233_v63  ;;  %v525_v61 = vsel %vm16265_vm14, %v16083_v39, 0.0  ;;  %v526_v33 = vsel %vm16265_vm14, %v16086_v40, 0.0  ;;  %v14728_v22 = vld [vmem:[#allocation6 + $0x260] sm:$0xf0] }
  0xbb   :  { %6570 = vmatpush.bf16.msrb.mxu0 %v11205_v2  ;;  %6589 = vmatpush.bf16.msrb.mxu1 %v11301_v50  ;;  %v11181_v2 = vor.u32 %v14758_v53, %v11180_v13  ;;  %v11168_v50 = vld [vmem:[#allocation6 + $0x330] sm:$0xf]  ;;  %vm569_vm15 = vcmp.eq.s32.totalorder %v16244_v19, 19  ;;  %v11277_v25 = vor.u32 %v14782_v9, %v11276_v56  ;;  %v18894_v63 = vmov 0  ;;  %v14779_v1 = vld [vmem:[#allocation6 + $0x3f8] sm:$0xf0] }
  0xbc   :  { %6553 = vmatpush.bf16.msra.mxu3 %v11085_v57  ;;  %vm578_vm6 = vcmp.eq.s32.totalorder %v117_v5, 24  ;;  %vm16577_vm8 = vmxor %vm569_vm15, %vm15819_vm13  ;;  %v760_v46 = vrot.slane %v16152_v27, 7  ;;  %v762_v44 = vrot.slane %v16156_v29, 7  ;;  %v16584_v58 = vpack.c.b16 %v16177_v35, %v915_v12  ;;  %v11264_v16 = vld [vmem:[#allocation6 + $0x3f0] sm:$0xf] }
  0xbd   :  { %6538 = vmatmul.bf16.vlgmr.msra.gmra.mxu2 %v16560_v3  ;;  %v18895_v63 = vsel %vm16577_vm8, 4294967295, %v18894_v63  ;;  %v16587_v19 = vpack.c.b16 %v16183_v55, %v916_v15  ;;  %v11397_v57 = vor.u32 %v14812_v10, %v11396_v47  ;;  %vm16590_vm9 = vmxor %vm578_vm6, %vm15819_vm13  ;;  %v18899_v62 = vmov 0  ;;  %1141 = vrot.lane.b32.xlu2 %v1127_v23, %s15818_s0  ;;  %v11384_v59 = vld [vmem:[#allocation6 + $0x4e0] sm:$0xf]  ;;  %v14809_v4 = vld [vmem:[#allocation6 + $0x4e8] sm:$0xf0] }
  0xbe   :  { %6606 = vmatpush.bf16.msrb.mxu2 %v11421_v30  ;;  %v14755_v30 = vld [vmem:[#allocation6 + $0x338] sm:$0xf0]  ;;  %18896 = vst [vmem:[#allocation46_spill] sm:$0xff] %v18895_v63  ;;  %v18900_v62 = vsel %vm16590_vm9, 4294967295, %v18899_v62  ;;  %v16595_v32 = vpack.c.bf16 %v526_v33, %v525_v61  ;;  %v18903_v53 = vrot.slane %v16139_v14, 7  ;;  %v11061_v12 = vor.u32 %v14728_v22, %v11060_v49 }
  0xbf   :  { %6571 = vmatpush.bf16.msrb.mxu0 %v11193_v28  ;;  %6590 = vmatpush.bf16.msrb.mxu1 %v11289_v31  ;;  %18897 = vst [vmem:[#allocation47_spill] sm:$0xff] %v16584_v58  ;;  %v18902_v28 = vrot.slane %v16136_v18, 7  ;;  %v797_v9 = vsel %vm16590_vm9, %v762_v44, 0.0  ;;  %v11169_v47 = vor.u32 %v14755_v30, %v11168_v50  ;;  %v14725_v5 = vld [vmem:[#allocation6 + $0x248] sm:$0xf0]  ;;  %v11265_v61 = vor.u32 %v14779_v1, %v11264_v16 }
  0xc0   :  { %18898 = vst [vmem:[#allocation48_spill] sm:$0xff] %v16587_v19  ;;  %6554 = vmatpush.bf16.msra.mxu3 %v11073_v45  ;;  %v763_v31 = vsel %vm138_vm1, %v18903_v53, %v762_v44  ;;  %v11048_v45 = vld [vmem:[#allocation6 + $0x240] sm:$0xf]  ;;  %v11385_v33 = vor.u32 %v14809_v4, %v11384_v59  ;;  %v11156_v49 = vld [vmem:[#allocation6 + $0x318] sm:$0xf]  ;;  %vm1157_vm10 = vcmask 1044480  }
  0xc1   :  { %18901 = vst [vmem:[#allocation49_spill] sm:$0xff] %v18900_v62  ;;  %v761_v13 = vsel %vm138_vm1, %v18902_v28, %v760_v46  ;;  %v793_v56 = vsel %vm16577_vm8, %v763_v31, 0.0  ;;  %v14752_v22 = vld [vmem:[#allocation6 + $0x320] sm:$0xf0]  ;;  %v14806_v50 = vld [vmem:[#allocation6 + $0x4d0] sm:$0xf0] }
  0xc2   :  { %6607 = vmatpush.bf16.msrb.mxu2 %v11409_v8  ;;  %v796_v8 = vsel %vm16590_vm9, %v760_v46, 0.0  ;;  %v792_v15 = vsel %vm16577_vm8, %v761_v13, 0.0  ;;  %v11252_v46 = vld [vmem:[#allocation6 + $0x3d8] sm:$0xf]  ;;  %6505 = vmatmul.bf16.gmra.mxu0 %v16584_v58  ;;  %v14776_v44 = vld [vmem:[#allocation6 + $0x3e0] sm:$0xf0]  ;;  %v917_v13 = vunpack.c.l.b16 %v16595_v32 }
  0xc3   :  { %6572 = vmatpush.bf16.msrb.mxu0 %v11181_v2  ;;  %v16611_v10 = vpack.c.bf16 %v793_v56, %v792_v15  ;;  %v16613_v23 = vpack.c.bf16 %v797_v9, %v796_v8  ;;  %6591 = vmatpush.bf16.msrb.mxu1 %v11277_v25  ;;  %v11372_v2 = vld [vmem:[#allocation6 + $0x4c8] sm:$0xf]  ;;  %v11049_v25 = vor.u32 %v14725_v5, %v11048_v45  ;;  %v11144_v4 = vld [vmem:[#allocation6 + $0x300] sm:$0xf]  ;;  %v14749_v53 = vld [vmem:[#allocation6 + $0x308] sm:$0xf0]  ;;  %v910_v5 = vunpack.c.h.b16 %v16478_v7 }
  0xc4   :  { %6524 = vmatmul.bf16.gmra.mxu1 %v16587_v19  ;;  %6555 = vmatpush.bf16.msra.mxu3 %v11061_v12  ;;  %v11253_v1 = vor.u32 %v14776_v44, %v11252_v46  ;;  %v11373_v59 = vor.u32 %v14806_v50, %v11372_v2  ;;  %v11240_v31 = vld [vmem:[#allocation6 + $0x3c0] sm:$0xf]  ;;  %v14773_v8 = vld [vmem:[#allocation6 + $0x3c8] sm:$0xf0]  ;;  %v11360_v15 = vld [vmem:[#allocation6 + $0x4b0] sm:$0xf]  ;;  %v16622_v9 = vpack.c.b16 %v16112_v48, %v917_v13  ;;  %v1189_v7 = vunpack.c.h.b16 %v16541_v51 }
  0xc5   :  { %v1192_v30 = vunpack.c.l.b16 %v16611_v10  ;;  %v1196_v28 = vunpack.c.l.b16 %v16613_v23  ;;  %v14803_v56 = vld [vmem:[#allocation6 + $0x4b8] sm:$0xf0]  ;;  %v11145_v12 = vor.u32 %v14749_v53, %v11144_v4  ;;  %v11348_v46 = vld [vmem:[#allocation6 + $0x498] sm:$0xf]  ;;  %v14800_v2 = vld [vmem:[#allocation6 + $0x4a0] sm:$0xf0] }
  0xc6   :  { %6608 = vmatpush.bf16.msrb.mxu2 %v11397_v57  ;;  %v11157_v57 = vor.u32 %v14752_v22, %v11156_v49  ;;  %18904 = vst [vmem:[#allocation50_spill] sm:$0xff] %v16622_v9  ;;  %v11361_v45 = vor.u32 %v14803_v56, %v11360_v15  ;;  %v11516_v49 = vld [vmem:[#allocation6 + $0x5e8] sm:$0xf]  ;;  %v14842_v22 = vld [vmem:[#allocation6 + $0x5f0] sm:$0xf0]  ;;  %vm840_vm15 = vcmask 1043456  }
  0xc7   :  { %6573 = vmatpush.bf16.msrb.mxu0 %v11169_v47  ;;  %v1204_v16 = vpack.c.b16 %v1196_v28, %v1192_v30  ;;  %6592 = vmatpush.bf16.msrb.mxu1 %v11265_v61  ;;  %v11241_v47 = vor.u32 %v14773_v8, %v11240_v31  ;;  %v914_v61 = vunpack.c.h.b16 %v16487_v60  ;;  %v11517_v44 = vor.u32 %v14842_v22, %v11516_v49  ;;  %v11612_v50 = vld [vmem:[#allocation6 + $0x6a8] sm:$0xf]  ;;  %v14866_v30 = vld [vmem:[#allocation6 + $0x6b0] sm:$0xf0]  ;;  %v11336_v4 = vld [vmem:[#allocation6 + $0x480] sm:$0xf] }
  0xc8   :  { %6556 = vmatpush.bf16.msra.mxu3 %v11049_v25  ;;  %v11349_v28 = vor.u32 %v14800_v2, %v11348_v46  ;;  %v11613_v13 = vor.u32 %v14866_v30, %v11612_v50  ;;  %v11708_v25 = vld [vmem:[#allocation6 + $0x768] sm:$0xf]  ;;  %v14797_v53 = vld [vmem:[#allocation6 + $0x488] sm:$0xf0]  ;;  %v11600_v15 = vld [vmem:[#allocation6 + $0x690] sm:$0xf] }
  0xc9   :  { %1216 = vrot.lane.b32.xlu1 %v1204_v16, %s15818_s0  ;;  %v11504_v16 = vld [vmem:[#allocation6 + $0x5d0] sm:$0xf]  ;;  %v11337_v8 = vor.u32 %v14797_v53, %v11336_v4  ;;  %v14863_v56 = vld [vmem:[#allocation6 + $0x698] sm:$0xf0]  ;;  %v11588_v51 = vld [vmem:[#allocation6 + $0x678] sm:$0xf] }
  0xca   :  { %6609 = vmatpush.bf16.msrb.mxu2 %v11385_v33  ;;  %v16627_v33 = vpack.c.b16 %v914_v61, %v910_v5  ;;  %v14887_v5 = vld [vmem:[#allocation6 + $0x758] sm:$0xf0]  ;;  %v11492_v61 = vld [vmem:[#allocation6 + $0x5b8] sm:$0xf]  ;;  %v14860_v22 = vld [vmem:[#allocation6 + $0x680] sm:$0xf0] }
  0xcb   :  { %6574 = vmatpush.bf16.msrb.mxu0 %v11157_v57  ;;  %6593 = vmatpush.bf16.msrb.mxu1 %v11253_v1  ;;  %v14890_v57 = vld [vmem:[#allocation6 + $0x770] sm:$0xf0]  ;;  %v1185_v1 = vunpack.c.h.b16 %v16539_v11  ;;  %v14836_v11 = vld [vmem:[#allocation6 + $0x5c0] sm:$0xf0]  ;;  %v11684_v46 = vld [vmem:[#allocation6 + $0x738] sm:$0xf]  ;;  %v11589_v2 = vor.u32 %v14860_v22, %v11588_v51 }
  0xcc   :  { %6625 = vmatpush.bf16.msrb.mxu3 %v11517_v44  ;;  %v11709_v60 = vor.u32 %v14890_v57, %v11708_v25  ;;  %v11493_v44 = vor.u32 %v14836_v11, %v11492_v61  ;;  %v14884_v50 = vld [vmem:[#allocation6 + $0x740] sm:$0xf0]  ;;  %v11804_v30 = vld [vmem:[#allocation6 + $0x828] sm:$0xf]  ;;  %v746_v57 = vrot.slane %v16077_v37, 7  ;;  %v756_v4 = vrot.slane %v16083_v39, 7 }
  0xcd   :  { %6543 = vmatmul.bf16.gmra.mxu2 %v16622_v9  ;;  %v758_v53 = vrot.slane %v16086_v40, 7  ;;  %v14911_v51 = vld [vmem:[#allocation6 + $0x818] sm:$0xf0]  ;;  %v11876_v19 = vld [vmem:[#allocation6 + $0x8b8] sm:$0xf] }
  0xce   :  { %6610 = vmatpush.bf16.msrb.mxu2 %v11373_v59  ;;  %v14839_v59 = vld [vmem:[#allocation6 + $0x5d8] sm:$0xf0]  ;;  %v15010_v3 = vld [vmem:[#allocation6 + $0xb30] sm:$0xf0]  ;;  %vm1282_vm13 = vsmask.f32 6400 }
  0xcf   :  { %6575 = vmatpush.bf16.msrb.mxu0 %v11145_v12  ;;  %6594 = vmatpush.bf16.msrb.mxu1 %v11241_v47  ;;  %v11505_v31 = vor.u32 %v14839_v59, %v11504_v16  ;;  %v11696_v12 = vld [vmem:[#allocation6 + $0x750] sm:$0xf]  ;;  %v1201_v47 = vpack.c.b16 %v1189_v7, %v1185_v1  ;;  %v747_v16 = vrot.slane %v16071_v34, 7  ;;  %v11480_v1 = vld [vmem:[#allocation6 + $0x5a0] sm:$0xf]  ;;  %v750_v59 = vrot.slane %v16074_v36, 7 }
  0xd0   :  { %v11697_v49 = vor.u32 %v14887_v5, %v11696_v12  ;;  %v14833_v7 = vld [vmem:[#allocation6 + $0x5a8] sm:$0xf0]  ;;  %v11672_v12 = vld [vmem:[#allocation6 + $0x720] sm:$0xf]  ;;  %v11086_v63 = vld [vmem:[#allocation6 + $0x294] sm:$0xf0] }
  0xd1   :  { %1210 = vrot.lane.b32.xlu2 %v1201_v47, %s15818_s0  ;;  %6626 = vmatpush.bf16.msrb.mxu3 %v11505_v31  ;;  %v11576_v31 = vld [vmem:[#allocation6 + $0x660] sm:$0xf]  ;;  %v14881_v47 = vld [vmem:[#allocation6 + $0x728] sm:$0xf0]  ;;  %v757_v5 = vsel %vm138_vm1, %v747_v16, %v756_v4  ;;  %v759_v61 = vsel %vm138_vm1, %v750_v59, %v758_v53  ;;  %v11614_v62 = vld [vmem:[#allocation6 + $0x6b4] sm:$0xf0] }
  0xd2   :  { %6611 = vmatpush.bf16.msrb.mxu2 %v11361_v45  ;;  %v11601_v45 = vor.u32 %v14863_v56, %v11600_v15  ;;  %v11481_v15 = vor.u32 %v14833_v7, %v11480_v1  ;;  %v14857_v56 = vld [vmem:[#allocation6 + $0x668] sm:$0xf0] }
  0xd3   :  { %6644 = vmatpush.bf16.msra.mxu0 %v11613_v13  ;;  %6663 = vmatpush.bf16.msra.mxu1 %v11709_v60  ;;  %v11685_v13 = vor.u32 %v14884_v50, %v11684_v46  ;;  %v749_v60 = vrot.slane %v16080_v38, 7  ;;  %v790_v46 = vsel %vm16514_vm12, %v757_v5, 0.0  ;;  %v11577_v50 = vor.u32 %v14857_v56, %v11576_v31  ;;  %v14854_v31 = vld [vmem:[#allocation6 + $0x650] sm:$0xf0]  ;;  %v11660_v56 = vld [vmem:[#allocation6 + $0x708] sm:$0xf] }
  0xd5   :  { %6627 = vmatpush.bf16.msrb.mxu3 %v11493_v44  ;;  %v791_v44 = vsel %vm16514_vm12, %v759_v61, 0.0 }
  0xd6   :  { %6612 = vmatpush.bf16.msrb.mxu2 %v11349_v28  ;;  %v14914_v28 = vld [vmem:[#allocation6 + $0x830] sm:$0xf0] }
  0xd7   :  { %6645 = vmatpush.bf16.msra.mxu0 %v11601_v45  ;;  %v11805_v25 = vor.u32 %v14914_v28, %v11804_v30  ;;  %6664 = vmatpush.bf16.msra.mxu1 %v11697_v49  ;;  %v751_v45 = vsel %vm138_vm1, %v749_v60, %v750_v59  ;;  %v11792_v49 = vld [vmem:[#allocation6 + $0x810] sm:$0xf]  ;;  %v803_v28 = vpack.c.bf16 %v791_v44, %v790_v46  ;;  %v11468_v60 = vld [vmem:[#allocation6 + $0x588] sm:$0xf]  ;;  %v14830_v59 = vld [vmem:[#allocation6 + $0x590] sm:$0xf0] }
  0xd8   :  { %v787_v22 = vsel %vm16502_vm11, %v751_v45, 0.0  ;;  %v14827_v44 = vld [vmem:[#allocation6 + $0x578] sm:$0xf0] }
  0xd9   :  { %v1190_v1 = vunpack.c.l.b16 %v803_v28  ;;  %6628 = vmatpush.bf16.msrb.mxu3 %v11481_v15  ;;  %v14908_v15 = vld [vmem:[#allocation6 + $0x800] sm:$0xf0] }
  0xda   :  { %6613 = vmatpush.bf16.msrb.mxu2 %v11337_v8  ;;  %v748_v8 = vsel %vm138_vm1, %v746_v57, %v747_v16  ;;  %v11793_v57 = vor.u32 %v14911_v51, %v11792_v49  ;;  %v11780_v49 = vld [vmem:[#allocation6 + $0x7f8] sm:$0xf]  ;;  %v11456_v51 = vld [vmem:[#allocation6 + $0x570] sm:$0xf] }
  0xdb   :  { %v786_v11 = vsel %vm16502_vm11, %v748_v8, 0.0  ;;  %6646 = vmatpush.bf16.msra.mxu0 %v11589_v2  ;;  %6665 = vmatpush.bf16.msra.mxu1 %v11685_v13  ;;  %v1191_v2 = vunpack.c.h.b16 %v803_v28  ;;  %v11564_v8 = vld [vmem:[#allocation6 + $0x648] sm:$0xf]  ;;  %v11469_v13 = vor.u32 %v14830_v59, %v11468_v60  ;;  %v11781_v46 = vor.u32 %v14908_v15, %v11780_v49  ;;  %v11768_v60 = vld [vmem:[#allocation6 + $0x7e0] sm:$0xf] }
  0xdc   :  { %v801_v30 = vpack.c.bf16 %v787_v22, %v786_v11  ;;  %v1193_v28 = vunpack.c.h.b16 %v16611_v10  ;;  %v14905_v59 = vld [vmem:[#allocation6 + $0x7e8] sm:$0xf0]  ;;  %v14824_v10 = vld [vmem:[#allocation6 + $0x560] sm:$0xf0]  ;;  %v14902_v49 = vld [vmem:[#allocation6 + $0x7d0] sm:$0xf0] }
  0xdd   :  { %6629 = vmatpush.bf16.msrb.mxu3 %v11469_v13  ;;  %v14872_v13 = vld [vmem:[#allocation6 + $0x6e0] sm:$0xf0] }
  0xde   :  { %6682 = vmatpush.bf16.msra.mxu2 %v11805_v25  ;;  %v11673_v25 = vor.u32 %v14881_v47, %v11672_v12  ;;  %v1186_v16 = vunpack.c.l.b16 %v801_v30  ;;  %v1187_v7 = vunpack.c.h.b16 %v801_v30  ;;  %v14878_v12 = vld [vmem:[#allocation6 + $0x710] sm:$0xf0]  ;;  %v11565_v47 = vor.u32 %v14854_v31, %v11564_v8  ;;  %v14851_v30 = vld [vmem:[#allocation6 + $0x638] sm:$0xf0]  ;;  %v11444_v8 = vld [vmem:[#allocation6 + $0x558] sm:$0xf] }
  0xdf   :  { %6647 = vmatpush.bf16.msra.mxu0 %v11577_v50  ;;  %v11661_v11 = vor.u32 %v14878_v12, %v11660_v56  ;;  %v11552_v50 = vld [vmem:[#allocation6 + $0x630] sm:$0xf]  ;;  %v11540_v31 = vld [vmem:[#allocation6 + $0x618] sm:$0xf]  ;;  %v14848_v56 = vld [vmem:[#allocation6 + $0x620] sm:$0xf0]  ;;  %v11445_v15 = vor.u32 %v14824_v10, %v11444_v8 }
  0xe0   :  { %v1202_v5 = vpack.c.b16 %v1190_v1, %v1186_v16  ;;  %v1203_v61 = vpack.c.b16 %v1191_v2, %v1187_v7  ;;  %6666 = vmatpush.bf16.msra.mxu1 %v11673_v25  ;;  %v1197_v25 = vunpack.c.h.b16 %v16613_v23  ;;  %v11457_v16 = vor.u32 %v14827_v44, %v11456_v51  ;;  %v11648_v7 = vld [vmem:[#allocation6 + $0x6f0] sm:$0xf]  ;;  %v14875_v2 = vld [vmem:[#allocation6 + $0x6f8] sm:$0xf0]  ;;  %v11636_v12 = vld [vmem:[#allocation6 + $0x6d8] sm:$0xf] }
  0xe1   :  { %v11553_v1 = vor.u32 %v14851_v30, %v11552_v50  ;;  %v11649_v23 = vor.u32 %v14875_v2, %v11648_v7  ;;  %v11541_v51 = vor.u32 %v14848_v56, %v11540_v31  ;;  %v766_v44 = vrot.slane %v16094_v42, 7  ;;  %v11432_v50 = vld [vmem:[#allocation6 + $0x540] sm:$0xf]  ;;  %v14845_v7 = vld [vmem:[#allocation6 + $0x608] sm:$0xf0] }
  0xe2   :  { %6683 = vmatpush.bf16.msra.mxu2 %v11793_v57  ;;  %1212 = vrot.lane.b32.xlu0 %v1202_v5, %s15818_s0  ;;  %v1205_v5 = vpack.c.b16 %v1197_v25, %v1193_v28  ;;  %v14821_v28 = vld [vmem:[#allocation6 + $0x548] sm:$0xf0]  ;;  %v11528_v25 = vld [vmem:[#allocation6 + $0x600] sm:$0xf]  ;;  %v11744_v31 = vld [vmem:[#allocation6 + $0x7b0] sm:$0xf] }
  0xe3   :  { %1214 = vrot.lane.b32.xlu1 %v1203_v61, %s15818_s0  ;;  %6648 = vmatpush.bf16.msra.mxu0 %v11565_v47  ;;  %v11769_v61 = vor.u32 %v14905_v59, %v11768_v60  ;;  %v11756_v47 = vld [vmem:[#allocation6 + $0x7c8] sm:$0xf]  ;;  %v799_v60 = vsel %vm16590_vm9, %v766_v44, 0.0  ;;  %v14899_v56 = vld [vmem:[#allocation6 + $0x7b8] sm:$0xf0] }
  0xe4   :  { %6667 = vmatpush.bf16.msra.mxu1 %v11661_v11  ;;  %1218 = vrot.lane.b32.xlu2 %v1205_v5, %s15818_s0  ;;  %v11637_v11 = vor.u32 %v14872_v13, %v11636_v12  ;;  %v11757_v30 = vor.u32 %v14902_v49, %v11756_v47  ;;  %v11624_v5 = vld [vmem:[#allocation6 + $0x6c0] sm:$0xf]  ;;  %v603_v12 = vrot.slane %v16143_v21, 2  ;;  %v604_v47 = vrot.slane %v16130_v17, 2 }
  0xe5   :  { %6630 = vmatpush.bf16.msrb.mxu3 %v11457_v16  ;;  %v767_v16 = vsel %vm138_vm1, %v758_v53, %v766_v44  ;;  %v11433_v53 = vor.u32 %v14821_v28, %v11432_v50  ;;  %v11745_v50 = vor.u32 %v14899_v56, %v11744_v31  ;;  %v609_v28 = vrot.slane %v16077_v37, 2  ;;  %v11996_v56 = vld [vmem:[#allocation6 + $0x9a8] sm:$0xf] }
  0xe6   :  { %6684 = vmatpush.bf16.msra.mxu2 %v11781_v46  ;;  %v764_v46 = vrot.slane %v16091_v41, 7  ;;  %v795_v8 = vsel %vm16577_vm8, %v767_v16, 0.0  ;;  %v612_v16 = vrot.slane %v16080_v38, 2  ;;  %v14896_v38 = vld [vmem:[#allocation6 + $0x7a0] sm:$0xf0]  ;;  %v18717_v31 = vrot.slane %v16086_v40, 2 }
  0xe7   :  { %6649 = vmatpush.bf16.msra.mxu0 %v11553_v1 }
  0xe8   :  { %6668 = vmatpush.bf16.msra.mxu1 %v11649_v23  ;;  %v765_v2 = vsel %vm138_vm1, %v756_v4, %v764_v46  ;;  %v798_v1 = vsel %vm16590_vm9, %v764_v46, 0.0  ;;  %v14869_v4 = vld [vmem:[#allocation6 + $0x6c8] sm:$0xf0]  ;;  %v606_v46 = vrot.slane %v16149_v26, 2  ;;  %v18715_v26 = vrot.slane %v16136_v18, 2 }
  0xe9   :  { %v16654_v45 = vpop.permute.xlu2 %1032  ;;  %v794_v59 = vsel %vm16577_vm8, %v765_v2, 0.0  ;;  %v16685_v10 = vpack.c.bf16 %v799_v60, %v798_v1  ;;  %6631 = vmatpush.bf16.msrb.mxu3 %v11445_v15  ;;  %v607_v15 = vrot.slane %v16133_v6, 2  ;;  %v11625_v44 = vor.u32 %v14869_v4, %v11624_v5  ;;  %v11900_v60 = vld [vmem:[#allocation6 + $0x8e8] sm:$0xf]  ;;  %v11732_v5 = vld [vmem:[#allocation6 + $0x798] sm:$0xf] }
  0xea   :  { %6685 = vmatpush.bf16.msra.mxu2 %v11769_v61  ;;  %v16687_v23 = vpack.c.bf16 %v795_v8, %v794_v59  ;;  %v11529_v61 = vor.u32 %v14845_v7, %v11528_v25  ;;  %v610_v25 = vrot.slane %v16071_v34, 2  ;;  %v14938_v59 = vld [vmem:[#allocation6 + $0x8f0] sm:$0xf0]  ;;  %v613_v8 = vrot.slane %v16074_v36, 2  ;;  %v11972_v34 = vld [vmem:[#allocation6 + $0x978] sm:$0xf] }
  0xeb   :  { %6650 = vmatpush.bf16.msra.mxu0 %v11541_v51  ;;  %v1198_v13 = vunpack.c.l.b16 %v16685_v10  ;;  %v608_v1 = vsel %vm18841_vm3, %v606_v46, %v607_v15  ;;  %v918_v4 = vunpack.c.h.b16 %v16595_v32 }
  0xec   :  { %6669 = vmatpush.bf16.msra.mxu1 %v11637_v11  ;;  %v1194_v49 = vunpack.c.l.b16 %v16687_v23  ;;  %v605_v11 = vsel %vm18841_vm3, %v603_v12, %v604_v47  ;;  %v14962_v12 = vld [vmem:[#allocation6 + $0x9b0] sm:$0xf0]  ;;  %v648_v32 = vsel %vm16502_vm11, %v608_v1, 0.0 }
  0xed   :  { %6632 = vmatpush.bf16.msrb.mxu3 %v11433_v53  ;;  %v16726_v53 = vsel %vm18841_vm3, %v604_v47, %v18715_v26  ;;  %v614_v47 = vsel %vm18841_vm3, %v612_v16, %v613_v8  ;;  %v11720_v16 = vld [vmem:[#allocation6 + $0x780] sm:$0xf]  ;;  %v11984_v26 = vld [vmem:[#allocation6 + $0x990] sm:$0xf]  ;;  %v11997_v9 = vor.u32 %v14962_v12, %v11996_v56 }
  0xee   :  { %6686 = vmatpush.bf16.msra.mxu2 %v11757_v30  ;;  %v1206_v7 = vpack.c.b16 %v1198_v13, %v1194_v49  ;;  %v12092_v13 = vld [vmem:[#allocation6 + $0xa68] sm:$0xf] }
  0xef   :  { %6651 = vmatpush.bf16.msra.mxu0 %v11529_v61  ;;  %v18716_v61 = vrot.slane %v16083_v39, 2 }
  0xf0   :  { %1220 = vrot.lane.b32.xlu0 %v1206_v7, %s15818_s0  ;;  %6670 = vmatpush.bf16.msra.mxu1 %v11625_v44  ;;  %v14986_v44 = vld [vmem:[#allocation6 + $0xa70] sm:$0xf0]  ;;  %v11901_v7 = vor.u32 %v14938_v59, %v11900_v60  ;;  %v11733_v59 = vor.u32 %v14896_v38, %v11732_v5 }
  0xf1   :  { %v16656_v22 = vpop.permute.xlu1 %1034  ;;  %v16730_v49 = vpop.permute.xlu2 %1042  ;;  %v12093_v58 = vor.u32 %v14986_v44, %v12092_v13  ;;  %v14980_v44 = vld [vmem:[#allocation6 + $0xa40] sm:$0xf0] }
  0xf2   :  { %v16665_v57 = vsel %vm167_vm0, %v16654_v45, %v16656_v22  ;;  %6687 = vmatpush.bf16.msra.mxu2 %v11745_v50  ;;  %v11888_v50 = vld [vmem:[#allocation6 + $0x8d0] sm:$0xf] }
  0xf3   :  { %18905 = vst [vmem:[#allocation51_spill] sm:$0xff] %v16665_v57  ;;  %6595 = vmatmul.bf16.vlgmr.msrb.gmra.mxu1 %v16665_v57  ;;  %v651_v57 = vsel %vm16514_vm12, %v16726_v53, 0.0 }
  0xf4   :  { %6739 = vmatpush.bf16.msrb.mxu1 %v12093_v58 }
  0xf6   :  { %6688 = vmatpush.bf16.msra.mxu2 %v11733_v59 }
  0xfd   :  { %v1037_v51 = vpop.permute.xlu1 %1036 }
  0xfe   :  { %v1031_v21 = vpop.permute.xlu0 %1030  ;;  %v16699_v30 = vsel %vm167_vm0, %v16656_v22, %v1037_v51  ;;  %v18714_v22 = vrot.slane %v16139_v14, 2 }
  0xff   :  { %18906 = vst [vmem:[#allocation52_spill] sm:$0xff] %v16699_v30  ;;  %v16705_v2 = vsel %vm167_vm0, %v16627_v33, %v1031_v21  ;;  %v16709_v37 = vsel %vm167_vm0, %v1031_v21, %v16654_v45  ;;  %6614 = vmatmul.bf16.vlgmr.msrb.gmra.mxu2 %v16699_v30  ;;  %v647_v33 = vsel %vm16502_vm11, %v605_v11, 0.0  ;;  %v611_v45 = vsel %vm18841_vm3, %v609_v28, %v610_v25  ;;  %v14935_v11 = vld [vmem:[#allocation6 + $0x8d8] sm:$0xf0] }
 0x100   :  { %18907 = vst [vmem:[#allocation53_spill] sm:$0xff] %v16705_v2  ;;  %6557 = vmatmul.bf16.vlgmr.msra.gmra.mxu3 %v16705_v2  ;;  %6576 = vmatmul.bf16.vlgmr.msrb.gmra.mxu0 %v16709_v37  ;;  %v16735_v46 = vsel %vm18841_vm3, %v607_v15, %v18714_v22  ;;  %v649_v51 = vsel %vm16502_vm11, %v611_v45, 0.0  ;;  %v16745_v28 = vsel %vm18841_vm3, %v610_v25, %v18716_v61  ;;  %v650_v21 = vsel %vm16502_vm11, %v614_v47, 0.0  ;;  %v14893_v22 = vld [vmem:[#allocation6 + $0x788] sm:$0xf0] }
 0x101   :  { %18908 = vst [vmem:[#allocation54_spill] sm:$0xff] %v16709_v37  ;;  %v16750_v15 = vsel %vm18841_vm3, %v613_v8, %v18717_v31  ;;  %v653_v45 = vsel %vm16514_vm12, %v16745_v28, 0.0  ;;  %v18909_v8 = vld [vmem:[#allocation31_spill] sm:$0xff]  ;;  %v16765_v60 = vpack.c.bf16 %v648_v32, %v647_v33  ;;  %6701 = vmatpush.bf16.msra.mxu3 %v11901_v7  ;;  %v14959_v30 = vld [vmem:[#allocation6 + $0x998] sm:$0xf0]  ;;  %v16774_v32 = vpack.c.bf16 %v650_v21, %v649_v51 }
 0x102   :  { %v654_v25 = vsel %vm16514_vm12, %v16750_v15, 0.0  ;;  %v930_v31 = vpack.c.b16 %v18909_v8, %v918_v4  ;;  %v12080_v37 = vld [vmem:[#allocation6 + $0xa50] sm:$0xf]  ;;  %v14983_v2 = vld [vmem:[#allocation6 + $0xa58] sm:$0xf0]  ;;  %v652_v4 = vsel %vm16514_vm12, %v16735_v46, 0.0  ;;  %v11889_v38 = vor.u32 %v14935_v11, %v11888_v50  ;;  %6720 = vmatpush.bf16.msrb.mxu0 %v11997_v9 }
 0x103   :  { %v14932_v33 = vld [vmem:[#allocation6 + $0x8c0] sm:$0xf0]  ;;  %v16776_v5 = vpack.c.bf16 %v654_v25, %v653_v45  ;;  %v11721_v7 = vor.u32 %v14893_v22, %v11720_v16  ;;  %v11985_v43 = vor.u32 %v14959_v30, %v11984_v26  ;;  %v12081_v36 = vor.u32 %v14983_v2, %v12080_v37  ;;  %v11864_v22 = vld [vmem:[#allocation6 + $0x8a0] sm:$0xf]  ;;  %v14929_v50 = vld [vmem:[#allocation6 + $0x8a8] sm:$0xf0] }
 0x104   :  { %v16781_v12 = vpack.c.bf16 %v652_v4, %v651_v57  ;;  %v1067_v13 = vunpack.c.l.b16 %v16765_v60  ;;  %v11877_v51 = vor.u32 %v14932_v33, %v11876_v19  ;;  %v18913_v30 = vld [vmem:[#allocation29_spill] sm:$0xff]  ;;  %v18915_v2 = vld [vmem:[#allocation30_spill] sm:$0xff]  ;;  %v1069_v57 = vunpack.c.l.b16 %v16774_v32 }
 0x105   :  { %v1041_v1 = vpop.permute.xlu1 %1040  ;;  %6702 = vmatpush.bf16.msra.mxu3 %v11889_v38  ;;  %v18914_v26 = vunpack.c.h.b16 %v18913_v30  ;;  %v18916_v37 = vunpack.c.h.b16 %v18915_v2  ;;  %v15007_v11 = vld [vmem:[#allocation6 + $0xb18] sm:$0xf0]  ;;  %v1073_v16 = vunpack.c.l.b16 %v16776_v5  ;;  %6689 = vmatpush.bf16.msra.mxu2 %v11721_v7  ;;  %v1070_v19 = vunpack.c.h.b16 %v16774_v32  ;;  %v11960_v32 = vld [vmem:[#allocation6 + $0x960] sm:$0xf]  ;;  %v14953_v7 = vld [vmem:[#allocation6 + $0x968] sm:$0xf0] }
 0x106   :  { %v1039_v61 = vpop.permute.xlu0 %1038  ;;  %v16763_v47 = vsel %vm167_vm0, %v1041_v1, %v16730_v49  ;;  %v18744_v45 = vmov 0.0|0.0   ;;  %6721 = vmatpush.bf16.msrb.mxu0 %v11985_v43  ;;  %6740 = vmatpush.bf16.msrb.mxu1 %v12081_v36  ;;  %v1074_v4 = vunpack.c.h.b16 %v16776_v5  ;;  %v11865_v38 = vor.u32 %v14929_v50, %v11864_v22 }
 0x107   :  { %18910 = vst [vmem:[#allocation31_spill] sm:$0xff] %v16763_v47  ;;  %6600 = vmatmul.bf16.gmra.mxu1 %v16763_v47  ;;  %v12188_v47 = vld [vmem:[#allocation6 + $0xb28] sm:$0xf]  ;;  %v16779_v56 = vsel %vm167_vm0, %v930_v31, %v1039_v61  ;;  %v16785_v9 = vsel %vm167_vm0, %v1039_v61, %v1041_v1  ;;  %v1275_v21 = vpack.c.b16 %v18916_v37, %v18914_v26  ;;  %v12176_v31 = vld [vmem:[#allocation6 + $0xb10] sm:$0xf]  ;;  %v16795_v25 = vunpack.c.h.b16 %v18744_v45 }
 0x108   :  { %18911 = vst [vmem:[#allocation55_spill] sm:$0xff] %v16779_v56  ;;  %v12189_v58 = vor.u32 %v15010_v3, %v12188_v47  ;;  %v11973_v3 = vor.u32 %v14956_v54, %v11972_v34  ;;  %v12069_v61 = vor.u32 %v14980_v44, %v12068_v20  ;;  %v12056_v26 = vld [vmem:[#allocation6 + $0xa20] sm:$0xf]  ;;  %v12177_v37 = vor.u32 %v15007_v11, %v12176_v31  ;;  %v14977_v20 = vld [vmem:[#allocation6 + $0xa28] sm:$0xf0] }
 0x109   :  { %18912 = vst [vmem:[#allocation56_spill] sm:$0xff] %v16785_v9  ;;  %v1301_v1 = vshrl.u32 %v1275_v21, 16  ;;  %v1304_v47 = vshll.u32 %v1275_v21, 16  ;;  %6703 = vmatpush.bf16.msra.mxu3 %v11877_v51  ;;  %v1279_v33 = vpack.c.b16 %v16795_v25, %v16183_v55  ;;  %v16805_v54 = vrot.slane %v16091_v41, 2 }
 0x10a   :  { %6758 = vmatpush.bf16.msrb.mxu2 %v12189_v58  ;;  %v1068_v55 = vunpack.c.h.b16 %v16765_v60  ;;  %v16811_v44 = vrot.slane %v16152_v27, 2  ;;  %v1072_v22 = vunpack.c.h.b16 %v16781_v12  ;;  %6722 = vmatpush.bf16.msrb.mxu0 %v11973_v3  ;;  %v11961_v50 = vor.u32 %v14953_v7, %v11960_v32  ;;  %v11852_v3 = vld [vmem:[#allocation6 + $0x888] sm:$0xf]  ;;  %v14926_v32 = vld [vmem:[#allocation6 + $0x890] sm:$0xf0]  ;;  %v16827_v7 = vpop.permute.xlu2 %1129 }
 0x10b   :  { %v1303_v34 = vrot.slane %v1301_v1, 1  ;;  %v1306_v43 = vrot.slane %v1304_v47, 2  ;;  %v1309_v5 = vshrl.u32 %v1279_v33, 16  ;;  %v1312_v51 = vshll.u32 %v1279_v33, 16  ;;  %6741 = vmatpush.bf16.msrb.mxu1 %v12069_v61 }
 0x10c   :  { %v16817_v58 = vrot.slane %v16156_v29, 2  ;;  %v12057_v1 = vor.u32 %v14977_v20, %v12056_v26  ;;  %v16819_v47 = vpack.c.b16 %v1073_v16, %v1069_v57  ;;  %v18919_v33 = vrot.slane %v16083_v39, 2  ;;  %v14920_v29 = vld [vmem:[#allocation6 + $0x860] sm:$0xf0] }
 0x10d   :  { %v1307_v21 = vor.u32 %v1306_v43, %v1303_v34  ;;  %v1311_v31 = vrot.slane %v1309_v5, 1  ;;  %v1314_v11 = vrot.slane %v1312_v51, 2  ;;  %6704 = vmatpush.bf16.msra.mxu3 %v11865_v38  ;;  %v18920_v38 = vrot.slane %v16136_v18, 2  ;;  %v12044_v5 = vld [vmem:[#allocation6 + $0xa08] sm:$0xf] }
 0x10e   :  { %v1045_v59 = vpop.permute.xlu0 %1044  ;;  %18918 = vst [vmem:[#allocation30_spill] sm:$0xff] %v16819_v47  ;;  %6759 = vmatpush.bf16.msrb.mxu2 %v12177_v37  ;;  %v16838_v16 = vrot.slane %v16094_v42, 2  ;;  %6723 = vmatpush.bf16.msrb.mxu0 %v11961_v50  ;;  %v18922_v37 = vrot.slane %v16139_v14, 2  ;;  %v661_v20 = vsel %vm16590_vm9, %v16805_v54, 0.0  ;;  %v14974_v51 = vld [vmem:[#allocation6 + $0xa10] sm:$0xf0]  ;;  %v16856_v60 = vpack.c.b16 %v1072_v22, %v1068_v55 }
 0x10f   :  { %v16802_v36 = vsel %vm167_vm0, %v16730_v49, %v1045_v59  ;;  %v1071_v49 = vunpack.c.l.b16 %v16781_v12  ;;  %v1086_v59 = vpack.c.b16 %v1074_v4, %v1070_v19  ;;  %v16825_v12 = vsel %vm18841_vm3, %v18919_v33, %v16805_v54  ;;  %v11948_v19 = vld [vmem:[#allocation6 + $0x948] sm:$0xf]  ;;  %v14950_v4 = vld [vmem:[#allocation6 + $0x950] sm:$0xf0]  ;;  %6742 = vmatpush.bf16.msrb.mxu1 %v12057_v1  ;;  %v15004_v33 = vld [vmem:[#allocation6 + $0xb00] sm:$0xf0] }
 0x110   :  { %18917 = vst [vmem:[#allocation29_spill] sm:$0xff] %v16802_v36  ;;  %6562 = vmatmul.bf16.gmra.mxu3 %v16779_v56  ;;  %6581 = vmatmul.bf16.gmra.mxu0 %v16785_v9  ;;  %v16829_v61 = vor.u32 %v1314_v11, %v1311_v31  ;;  %v16835_v57 = vsel %vm18841_vm3, %v18920_v38, %v16811_v44  ;;  %v657_v43 = vsel %vm16577_vm8, %v16825_v12, 0.0  ;;  %v662_v31 = vsel %vm16590_vm9, %v16838_v16, 0.0  ;;  %v12164_v11 = vld [vmem:[#allocation6 + $0xaf8] sm:$0xf] }
 0x111   :  { %6619 = vmatmul.bf16.gmra.mxu2 %v16802_v36  ;;  %v16842_v26 = vpack.c.b16 %v1071_v49, %v1067_v13  ;;  %v16848_v34 = vsel %vm18841_vm3, %v18922_v37, %v16817_v58  ;;  %18923 = vst [vmem:[#allocation58_spill] sm:$0xff] %v16856_v60  ;;  %v18924_v49 = vrot.slane %v16086_v40, 2  ;;  %v16872_v55 = vsel %vm167_vm0, %v1086_v59, %v16827_v7  ;;  %v14971_v9 = vld [vmem:[#allocation6 + $0x9f8] sm:$0xf0]  ;;  %v11828_v40 = vld [vmem:[#allocation6 + $0x858] sm:$0xf] }
 0x112   :  { %v1316_v13 = vsel %vm1282_vm13, %v1307_v21, %v16829_v61  ;;  %18925 = vst [vmem:[#allocation59_spill] sm:$0xff] %v16872_v55  ;;  %v16881_v1 = vpack.c.bf16 %v662_v31, %v661_v20  ;;  %v656_v38 = vsel %vm16577_vm8, %v16848_v34, 0.0  ;;  %v11853_v59 = vor.u32 %v14926_v32, %v11852_v3  ;;  %v18927_v31 = vld [vmem:[#allocation22_spill] sm:$0xff] }
 0x113   :  { %18921 = vst [vmem:[#allocation57_spill] sm:$0xff] %v16842_v26  ;;  %v16864_v50 = vsel %vm18841_vm3, %v18924_v49, %v16838_v16  ;;  %1353 = vrot.lane.b32.xlu0 %v1316_v13, %s15818_s0  ;;  %v11949_v49 = vor.u32 %v14950_v4, %v11948_v19  ;;  %v12045_v45 = vor.u32 %v14974_v51, %v12044_v5  ;;  %v1195_v19 = vunpack.c.h.b16 %v16687_v23  ;;  %v12032_v13 = vld [vmem:[#allocation6 + $0x9f0] sm:$0xf] }
 0x114   :  { %v658_v21 = vsel %vm16577_vm8, %v16864_v50, 0.0  ;;  %v12165_v22 = vor.u32 %v15004_v33, %v12164_v11  ;;  %6705 = vmatpush.bf16.msra.mxu3 %v11853_v59  ;;  %v1199_v4 = vunpack.c.h.b16 %v16685_v10  ;;  %v1081_v5 = vunpack.c.l.b16 %v16881_v1 }
 0x115   :  { %v16886_v37 = vpack.c.bf16 %v658_v21, %v657_v43  ;;  %6724 = vmatpush.bf16.msrb.mxu0 %v11949_v49  ;;  %v18928_v43 = vunpack.c.l.b16 %v18927_v31  ;;  %v18929_v21 = vld [vmem:[#allocation23_spill] sm:$0xff]  ;;  %6743 = vmatpush.bf16.msrb.mxu1 %v12045_v45  ;;  %v18931_v51 = vunpack.c.h.b16 %v18927_v31  ;;  %v1281_v59 = vpack.c.b16 %v16795_v25, %v18909_v8  ;;  %v11840_v49 = vld [vmem:[#allocation6 + $0x870] sm:$0xf] }
 0x116   :  { %v18930_v3 = vunpack.c.l.b16 %v18929_v21  ;;  %6760 = vmatpush.bf16.msrb.mxu2 %v12165_v22  ;;  %v18932_v11 = vunpack.c.h.b16 %v18929_v21  ;;  %v1207_v20 = vpack.c.b16 %v1199_v4, %v1195_v19  ;;  %v11936_v45 = vld [vmem:[#allocation6 + $0x930] sm:$0xf]  ;;  %v14947_v22 = vld [vmem:[#allocation6 + $0x938] sm:$0xf0]  ;;  %v12152_v21 = vld [vmem:[#allocation6 + $0xae0] sm:$0xf] }
 0x117   :  { %6671 = vmatmul.bf16.vlgmr.msra.gmra.mxu1 %v16819_v47  ;;  %v18926_v47 = vmov 0.0|0.0   ;;  %v1077_v23 = vunpack.c.l.b16 %v16886_v37  ;;  %v1343_v8 = vshrl.u32 %v1281_v59, 16  ;;  %v1346_v25 = vshll.u32 %v1281_v59, 16 }
 0x118   :  { %v16892_v36 = vunpack.c.l.b16 %v18926_v47  ;;  %v1276_v32 = vpack.c.b16 %v18930_v3, %v18928_v43  ;;  %v1277_v33 = vpack.c.b16 %v18932_v11, %v18931_v51  ;;  %v14923_v43 = vld [vmem:[#allocation6 + $0x878] sm:$0xf0]  ;;  %v15001_v51 = vld [vmem:[#allocation6 + $0xae8] sm:$0xf0]  ;;  %1222 = vrot.lane.b32.xlu2 %v1207_v20, %s15818_s0 }
 0x119   :  { %v1348_v27 = vrot.slane %v1346_v25, 2  ;;  %v11841_v14 = vor.u32 %v14923_v43, %v11840_v49  ;;  %v12153_v43 = vor.u32 %v15001_v51, %v12152_v21  ;;  %v11912_v25 = vld [vmem:[#allocation6 + $0x900] sm:$0xf] }
 0x11a   :  { %v1280_v47 = vpack.c.b16 %v16892_v36, %v16112_v48  ;;  %v1318_v10 = vshrl.u32 %v1276_v32, 16  ;;  %v1321_v3 = vshll.u32 %v1276_v32, 16  ;;  %v1335_v31 = vshrl.u32 %v1277_v33, 16 }
 0x11b   :  { %v1338_v42 = vshll.u32 %v1277_v33, 16  ;;  %v1345_v33 = vrot.slane %v1343_v8, 1  ;;  %6706 = vmatpush.bf16.msra.mxu3 %v11841_v14  ;;  %v14917_v8 = vld [vmem:[#allocation6 + $0x848] sm:$0xf0]  ;;  %v18936_v14 = vsel %vm16590_vm9, %v16817_v58, 0.0  ;;  %6761 = vmatpush.bf16.msrb.mxu2 %v12153_v43  ;;  %v1278_v51 = vpack.c.b16 %v16892_v36, %v16177_v35 }
 0x11c   :  { %v1326_v48 = vshrl.u32 %v1280_v47, 16  ;;  %v1329_v56 = vshll.u32 %v1280_v47, 16  ;;  %v1320_v11 = vrot.slane %v1318_v10, 1  ;;  %v1323_v41 = vrot.slane %v1321_v3, 2  ;;  %v11924_v10 = vld [vmem:[#allocation6 + $0x918] sm:$0xf] }
 0x11d   :  { %v1337_v19 = vrot.slane %v1335_v31, 1  ;;  %v1340_v4 = vrot.slane %v1338_v42, 2  ;;  %v14944_v3 = vld [vmem:[#allocation6 + $0x920] sm:$0xf0]  ;;  %v12020_v31 = vld [vmem:[#allocation6 + $0x9d8] sm:$0xf]  ;;  %v16927_v49 = vor.u32 %v1348_v27, %v1345_v33  ;;  %v16946_v33 = vpop.permute.xlu1 %1137 }
 0x11e   :  { %v1328_v39 = vrot.slane %v1326_v48, 1  ;;  %v1331_v32 = vrot.slane %v1329_v56, 2  ;;  %v1324_v47 = vor.u32 %v1323_v41, %v1320_v11  ;;  %v11937_v48 = vor.u32 %v14947_v22, %v11936_v45  ;;  %v14968_v42 = vld [vmem:[#allocation6 + $0x9e0] sm:$0xf0]  ;;  %v12140_v11 = vld [vmem:[#allocation6 + $0xac8] sm:$0xf] }
 0x11f   :  { %v1341_v59 = vor.u32 %v1340_v4, %v1337_v19  ;;  %v12033_v56 = vor.u32 %v14971_v9, %v12032_v13  ;;  %v16925_v41 = vpack.c.b16 %v1081_v5, %v1077_v23  ;;  %v11829_v9 = vor.u32 %v14920_v29, %v11828_v40  ;;  %v11816_v22 = vld [vmem:[#allocation6 + $0x840] sm:$0xf]  ;;  %v14941_v29 = vld [vmem:[#allocation6 + $0x908] sm:$0xf0]  ;;  %v12284_v5 = vld [vmem:[#allocation6 + $0xbe8] sm:$0xf] }
 0x120   :  { %6633 = vmatmul.bf16.vlgmr.msrb.gmra.mxu3 %v16842_v26  ;;  %6652 = vmatmul.bf16.vlgmr.msra.gmra.mxu0 %v16856_v60  ;;  %v16917_v20 = vor.u32 %v1331_v32, %v1328_v39  ;;  %v18933_v26 = vsel %vm16577_vm8, %v16835_v57, 0.0  ;;  %v14998_v39 = vld [vmem:[#allocation6 + $0xad0] sm:$0xf0]  ;;  %v11925_v13 = vor.u32 %v14944_v3, %v11924_v10  ;;  %v12021_v40 = vor.u32 %v14968_v42, %v12020_v31  ;;  %v12008_v32 = vld [vmem:[#allocation6 + $0x9c0] sm:$0xf]  ;;  %v16948_v10 = vpop.permute.xlu0 %1131 }
 0x121   :  { %6690 = vmatmul.bf16.vlgmr.msra.gmra.mxu2 %v16872_v55  ;;  %v16923_v60 = vpack.c.bf16 %v656_v38, %v18933_v26  ;;  %18934 = vst [vmem:[#allocation22_spill] sm:$0xff] %v16925_v41  ;;  %6725 = vmatpush.bf16.msrb.mxu0 %v11937_v48  ;;  %v18935_v26 = vsel %vm16590_vm9, %v16811_v44, 0.0  ;;  %v1350_v38 = vsel %vm1282_vm13, %v1341_v59, %v16927_v49  ;;  %v15034_v23 = vld [vmem:[#allocation6 + $0xbf0] sm:$0xf0]  ;;  %v14965_v19 = vld [vmem:[#allocation6 + $0x9c8] sm:$0xf0]  ;;  %v1078_v3 = vunpack.c.h.b16 %v16886_v37 }
 0x122   :  { %v1333_v45 = vsel %vm1282_vm13, %v1324_v47, %v16917_v20  ;;  %6744 = vmatpush.bf16.msrb.mxu1 %v12033_v56  ;;  %v669_v27 = vpack.c.bf16 %v18936_v14, %v18935_v26  ;;  %1357 = vrot.lane.b32.xlu0 %v1350_v38, %s15818_s0  ;;  %v12141_v21 = vor.u32 %v14998_v39, %v12140_v11  ;;  %v12128_v4 = vld [vmem:[#allocation6 + $0xab0] sm:$0xf]  ;;  %v1082_v59 = vunpack.c.h.b16 %v16881_v1  ;;  %v14995_v56 = vld [vmem:[#allocation6 + $0xab8] sm:$0xf0]  ;;  %v12380_v31 = vld [vmem:[#allocation6 + $0xca8] sm:$0xf] }
 0x123   :  { %1355 = vrot.lane.b32.xlu1 %v1333_v45, %s15818_s0  ;;  %v1075_v47 = vunpack.c.l.b16 %v16923_v60  ;;  %6707 = vmatpush.bf16.msra.mxu3 %v11829_v9  ;;  %v11817_v48 = vor.u32 %v14917_v8, %v11816_v22  ;;  %v15058_v42 = vld [vmem:[#allocation6 + $0xcb0] sm:$0xf0]  ;;  %v1292_v35 = vshrl.u32 %v1278_v51, 16  ;;  %v1295_v36 = vshll.u32 %v1278_v51, 16  ;;  %v12476_v39 = vld [vmem:[#allocation6 + $0xd68] sm:$0xf] }
 0x124   :  { %v11913_v43 = vor.u32 %v14941_v29, %v11912_v25  ;;  %v12285_v11 = vor.u32 %v15034_v23, %v12284_v5  ;;  %v15082_v45 = vld [vmem:[#allocation6 + $0xd70] sm:$0xf0]  ;;  %v1079_v26 = vunpack.c.l.b16 %v669_v27  ;;  %v1076_v14 = vunpack.c.h.b16 %v16923_v60  ;;  %6762 = vmatpush.bf16.msrb.mxu2 %v12141_v21  ;;  %v12272_v9 = vld [vmem:[#allocation6 + $0xbd0] sm:$0xf]  ;;  %v15031_v22 = vld [vmem:[#allocation6 + $0xbd8] sm:$0xf0] }
 0x125   :  { %6726 = vmatpush.bf16.msrb.mxu0 %v11925_v13  ;;  %v1080_v37 = vunpack.c.h.b16 %v669_v27  ;;  %v12009_v1 = vor.u32 %v14965_v19, %v12008_v32  ;;  %v1294_v8 = vrot.slane %v1292_v35, 1  ;;  %v1297_v38 = vrot.slane %v1295_v36, 2  ;;  %v12116_v5 = vld [vmem:[#allocation6 + $0xa98] sm:$0xf]  ;;  %v14992_v27 = vld [vmem:[#allocation6 + $0xaa0] sm:$0xf0] }
 0x126   :  { %6745 = vmatpush.bf16.msrb.mxu1 %v12021_v40  ;;  %v12129_v55 = vor.u32 %v14995_v56, %v12128_v4  ;;  %v18937_v13 = vunpack.c.l.b16 %v18913_v30  ;;  %v18938_v51 = vunpack.c.l.b16 %v18915_v2  ;;  %v1090_v29 = vpack.c.b16 %v1082_v59, %v1078_v3  ;;  %v12368_v19 = vld [vmem:[#allocation6 + $0xc90] sm:$0xf]  ;;  %v15055_v30 = vld [vmem:[#allocation6 + $0xc98] sm:$0xf0]  ;;  %v12260_v56 = vld [vmem:[#allocation6 + $0xbb8] sm:$0xf] }
 0x127   :  { %6676 = vmatmul.bf16.gmra.mxu1 %v16925_v41  ;;  %6708 = vmatpush.bf16.msra.mxu3 %v11817_v48  ;;  %v12381_v23 = vor.u32 %v15058_v42, %v12380_v31  ;;  %v12477_v41 = vor.u32 %v15082_v45, %v12476_v39  ;;  %v1298_v60 = vor.u32 %v1297_v38, %v1294_v8  ;;  %v12464_v2 = vld [vmem:[#allocation6 + $0xd50] sm:$0xf]  ;;  %v15079_v3 = vld [vmem:[#allocation6 + $0xd58] sm:$0xf0]  ;;  %v15028_v31 = vld [vmem:[#allocation6 + $0xbc0] sm:$0xf0] }
 0x128   :  { %v1274_v25 = vpack.c.b16 %v18938_v51, %v18937_v13  ;;  %v12273_v32 = vor.u32 %v15031_v22, %v12272_v9  ;;  %v16958_v35 = vpack.c.b16 %v1079_v26, %v1075_v47  ;;  %v16960_v4 = vpack.c.b16 %v1080_v37, %v1076_v14  ;;  %6763 = vmatpush.bf16.msrb.mxu2 %v12129_v55  ;;  %v1136_v55 = vpop.permute.xlu1 %1135  ;;  %v16971_v45 = vpop.permute.xlu0 %1133  ;;  %v12356_v14 = vld [vmem:[#allocation6 + $0xc78] sm:$0xf]  ;;  %v15052_v37 = vld [vmem:[#allocation6 + $0xc80] sm:$0xf0]  ;;  %v12572_v22 = vld [vmem:[#allocation6 + $0xe28] sm:$0xf] }
 0x129   :  { %6727 = vmatpush.bf16.msrb.mxu0 %v11913_v43  ;;  %v16967_v47 = vsel %vm167_vm0, %v1090_v29, %v16946_v33  ;;  %v12117_v42 = vor.u32 %v14992_v27, %v12116_v5  ;;  %v14989_v43 = vld [vmem:[#allocation6 + $0xa88] sm:$0xf0]  ;;  %v12465_v39 = vor.u32 %v15079_v3, %v12464_v2  ;;  %v12261_v26 = vor.u32 %v15028_v31, %v12260_v56  ;;  %v15076_v9 = vld [vmem:[#allocation6 + $0xd40] sm:$0xf0]  ;;  %v15106_v8 = vld [vmem:[#allocation6 + $0xe30] sm:$0xf0]  ;;  %v16985_v31 = vpop.permute.xlu2 %1139 }
 0x12a   :  { %v1284_v40 = vshrl.u32 %v1274_v25, 16  ;;  %v1287_v21 = vshll.u32 %v1274_v25, 16  ;;  %6746 = vmatpush.bf16.msrb.mxu1 %v12009_v1  ;;  %1359 = vrot.lane.b32.xlu0 %v1298_v60, %s15818_s0  ;;  %18939 = vst [vmem:[#allocation23_spill] sm:$0xff] %v16967_v47  ;;  %v12452_v1 = vld [vmem:[#allocation6 + $0xd38] sm:$0xf]  ;;  %v16980_v27 = vsel %vm167_vm0, %v16971_v45, %v1136_v55  ;;  %v18942_v55 = vld [vmem:[#allocation35_spill] sm:$0xff] }
 0x12b   :  { %6777 = vmatpush.bf16.msrb.mxu3 %v12285_v11  ;;  %1361 = vrot.lane.b32.xlu1 %v16829_v61, %s15818_s0  ;;  %v12104_v61 = vld [vmem:[#allocation6 + $0xa80] sm:$0xf]  ;;  %v12369_v11 = vor.u32 %v15055_v30, %v12368_v19  ;;  %v15025_v29 = vld [vmem:[#allocation6 + $0xba8] sm:$0xf0]  ;;  %18940 = vst [vmem:[#allocation60_spill] sm:$0xff] %v16980_v27 }
 0x12c   :  { %v1286_v59 = vrot.slane %v1284_v40, 1  ;;  %v1289_v48 = vrot.slane %v1287_v21, 2  ;;  %6764 = vmatpush.bf16.msrb.mxu2 %v12117_v42  ;;  %v12105_v51 = vor.u32 %v14989_v43, %v12104_v61  ;;  %v12248_v25 = vld [vmem:[#allocation6 + $0xba0] sm:$0xf]  ;;  %v12573_v40 = vor.u32 %v15106_v8, %v12572_v22  ;;  %v15073_v2 = vld [vmem:[#allocation6 + $0xd28] sm:$0xf0] }
 0x12d   :  { %6796 = vmatpush.bf16.msra.mxu0 %v12381_v23  ;;  %v12357_v23 = vor.u32 %v15052_v37, %v12356_v14  ;;  %v12344_v21 = vld [vmem:[#allocation6 + $0xc60] sm:$0xf]  ;;  %v12249_v30 = vor.u32 %v15025_v29, %v12248_v25  ;;  %v12560_v3 = vld [vmem:[#allocation6 + $0xe10] sm:$0xf]  ;;  %v15022_v56 = vld [vmem:[#allocation6 + $0xb90] sm:$0xf0]  ;;  %v16996_v25 = vsel %vm167_vm0, %v16948_v10, %v16971_v45 }
 0x12e   :  { %6815 = vmatpush.bf16.msra.mxu1 %v12477_v41  ;;  %v1290_v36 = vor.u32 %v1289_v48, %v1286_v59  ;;  %v12440_v19 = vld [vmem:[#allocation6 + $0xd20] sm:$0xf]  ;;  %v15103_v59 = vld [vmem:[#allocation6 + $0xe18] sm:$0xf0]  ;;  %v12236_v48 = vld [vmem:[#allocation6 + $0xb88] sm:$0xf] }
 0x12f   :  { %6778 = vmatpush.bf16.msrb.mxu3 %v12273_v32  ;;  %v6501_v38 = vpop.f32.mrf.mxu0  ;;  %v15049_v32 = vld [vmem:[#allocation6 + $0xc68] sm:$0xf0]  ;;  %v12561_v61 = vor.u32 %v15103_v59, %v12560_v3  ;;  %v12332_v43 = vld [vmem:[#allocation6 + $0xc48] sm:$0xf]  ;;  %v12237_v14 = vor.u32 %v15022_v56, %v12236_v48  ;;  %v15100_v22 = vld [vmem:[#allocation6 + $0xe00] sm:$0xf0] }
 0x130   :  { %6638 = vmatmul.bf16.gmra.mxu3 %v16958_v35  ;;  %6657 = vmatmul.bf16.gmra.mxu0 %v16960_v4  ;;  %v1299_v41 = vsel %vm1282_vm13, %v1290_v36, %v1298_v60  ;;  %v12453_v60 = vor.u32 %v15076_v9, %v12452_v1  ;;  %v12345_v42 = vor.u32 %v15049_v32, %v12344_v21  ;;  %v12428_v37 = vld [vmem:[#allocation6 + $0xd08] sm:$0xf]  ;;  %v15070_v1 = vld [vmem:[#allocation6 + $0xd10] sm:$0xf0]  ;;  %v12224_v8 = vld [vmem:[#allocation6 + $0xb70] sm:$0xf] }
 0x131   :  { %6695 = vmatmul.bf16.gmra.mxu2 %v16967_v47  ;;  %v6520_v13 = vpop.f32.mrf.mxu1  ;;  %1351 = vrot.lane.b32.xlu2 %v1299_v41, %s15818_s0  ;;  %v12441_v36 = vor.u32 %v15073_v2, %v12440_v19  ;;  %v12548_v41 = vld [vmem:[#allocation6 + $0xdf8] sm:$0xf]  ;;  %18944 = vst [vmem:[#allocation35_spill] sm:$0xff] %v16996_v25  ;;  %v12429_v29 = vor.u32 %v15070_v1, %v12428_v37  ;;  %v15067_v21 = vld [vmem:[#allocation6 + $0xcf8] sm:$0xf0] }
 0x132   :  { %v16976_v5 = vadd.f32 %v6520_v13, %v6501_v38  ;;  %6797 = vmatpush.bf16.msra.mxu0 %v12369_v11  ;;  %6816 = vmatpush.bf16.msra.mxu1 %v12465_v39  ;;  %v15046_v11 = vld [vmem:[#allocation6 + $0xc50] sm:$0xf0]  ;;  %v15019_v38 = vld [vmem:[#allocation6 + $0xb78] sm:$0xf0]  ;;  %v12320_v13 = vld [vmem:[#allocation6 + $0xc30] sm:$0xf]  ;;  %v17005_v19 = vsel %vm167_vm0, %v16827_v7, %v16948_v10  ;;  %v1144_v7 = vpop.permute.xlu0 %1143 }
 0x133   :  { %6779 = vmatpush.bf16.msrb.mxu3 %v12261_v26  ;;  %1365 = vrot.lane.b32.xlu1 %v16927_v49, %s15818_s0  ;;  %v18941_v49 = vld [vmem:[#allocation33_spill] sm:$0xff]  ;;  %v16989_v26 = vrot.slane %v18942_v55, 3  ;;  %v12333_v9 = vor.u32 %v15046_v11, %v12332_v43  ;;  %v12536_v32 = vld [vmem:[#allocation6 + $0xde0] sm:$0xf]  ;;  %18946 = vst [vmem:[#allocation62_spill] sm:$0xff] %v17005_v19 }
 0x134   :  { %6765 = vmatpush.bf16.msrb.mxu2 %v12105_v51  ;;  %v1158_v39 = vrot.slane %v18941_v49, 3  ;;  %v15043_v51 = vld [vmem:[#allocation6 + $0xc38] sm:$0xf0]  ;;  %v15097_v45 = vld [vmem:[#allocation6 + $0xde8] sm:$0xf0] }
 0x135   :  { %18943 = vst [vmem:[#allocation33_spill] sm:$0xff] %v16989_v26  ;;  %v12212_v2 = vld [vmem:[#allocation6 + $0xb58] sm:$0xf]  ;;  %v15016_v3 = vld [vmem:[#allocation6 + $0xb60] sm:$0xf0]  ;;  %v12537_v43 = vor.u32 %v15097_v45, %v12536_v32 }
 0x136   :  { %6798 = vmatpush.bf16.msra.mxu0 %v12357_v23  ;;  %6817 = vmatpush.bf16.msra.mxu1 %v12453_v60  ;;  %v17000_v23 = vsel %vm1157_vm10, %v1158_v39, %v16989_v26  ;;  %v12225_v60 = vor.u32 %v15019_v38, %v12224_v8  ;;  %v12308_v59 = vld [vmem:[#allocation6 + $0xc18] sm:$0xf]  ;;  %v15040_v48 = vld [vmem:[#allocation6 + $0xc20] sm:$0xf0]  ;;  %v12213_v11 = vor.u32 %v15016_v3, %v12212_v2  ;;  %v12524_v39 = vld [vmem:[#allocation6 + $0xdc8] sm:$0xf] }
 0x137   :  { %6747 = vmatmul.bf16.vlgmr.msrb.gmra.mxu1 %v16980_v27  ;;  %6780 = vmatpush.bf16.msrb.mxu3 %v12249_v30  ;;  %18945 = vst [vmem:[#allocation61_spill] sm:$0xff] %v17000_v23  ;;  %v12321_v30 = vor.u32 %v15043_v51, %v12320_v13  ;;  %v17009_v56 = vpop.f32.mrf.mxu0  ;;  %v15064_v49 = vld [vmem:[#allocation6 + $0xce0] sm:$0xf0]  ;;  %v15094_v55 = vld [vmem:[#allocation6 + $0xdd0] sm:$0xf0]  ;;  %v12309_v37 = vor.u32 %v15040_v48, %v12308_v59 }
 0x138   :  { %6834 = vmatpush.bf16.msra.mxu2 %v12573_v40  ;;  %v12416_v40 = vld [vmem:[#allocation6 + $0xcf0] sm:$0xf]  ;;  %v12200_v1 = vld [vmem:[#allocation6 + $0xb40] sm:$0xf]  ;;  %v15037_v38 = vld [vmem:[#allocation6 + $0xc08] sm:$0xf0] }
 0x139   :  { %1363 = vrot.lane.b32.xlu2 %v16917_v20, %s15818_s0  ;;  %v12549_v20 = vor.u32 %v15100_v22, %v12548_v41  ;;  %v12417_v10 = vor.u32 %v15067_v21, %v12416_v40  ;;  %v15013_v41 = vld [vmem:[#allocation6 + $0xb48] sm:$0xf0]  ;;  %v12668_v13 = vld [vmem:[#allocation6 + $0xee8] sm:$0xf]  ;;  %v15130_v51 = vld [vmem:[#allocation6 + $0xef0] sm:$0xf0]  ;;  %v12525_v40 = vor.u32 %v15094_v55, %v12524_v39 }
 0x13a   :  { %6799 = vmatpush.bf16.msra.mxu0 %v12345_v42  ;;  %6818 = vmatpush.bf16.msra.mxu1 %v12441_v36  ;;  %v17011_v42 = vpop.f32.mrf.mxu1  ;;  %v17014_v36 = vpop.permute.xlu2 %1141  ;;  %v12201_v21 = vor.u32 %v15013_v41, %v12200_v1  ;;  %v12392_v32 = vld [vmem:[#allocation6 + $0xcc0] sm:$0xf]  ;;  %v12512_v45 = vld [vmem:[#allocation6 + $0xdb0] sm:$0xf]  ;;  %v15091_v2 = vld [vmem:[#allocation6 + $0xdb8] sm:$0xf0]  ;;  %v12669_v3 = vor.u32 %v15130_v51, %v12668_v13 }
 0x13b   :  { %6781 = vmatpush.bf16.msrb.mxu3 %v12237_v14  ;;  %v17021_v8 = vsel %vm167_vm0, %v17014_v36, %v1144_v7  ;;  %v12860_v59 = vld [vmem:[#allocation6 + $0x1068] sm:$0xf]  ;;  %v15178_v48 = vld [vmem:[#allocation6 + $0x1070] sm:$0xf0]  ;;  %v12513_v39 = vor.u32 %v15091_v2, %v12512_v45  ;;  %v12500_v55 = vld [vmem:[#allocation6 + $0xd98] sm:$0xf] }
 0x13c   :  { %6835 = vmatpush.bf16.msra.mxu2 %v12561_v61  ;;  %v12404_v61 = vld [vmem:[#allocation6 + $0xcd8] sm:$0xf]  ;;  %18947 = vst [vmem:[#allocation63_spill] sm:$0xff] %v17021_v8  ;;  %v12861_v1 = vor.u32 %v15178_v48, %v12860_v59  ;;  %v15151_v41 = vld [vmem:[#allocation6 + $0xf98] sm:$0xf0] }
 0x13d   :  { %v12848_v13 = vld [vmem:[#allocation6 + $0x1050] sm:$0xf]  ;;  %v15175_v51 = vld [vmem:[#allocation6 + $0x1058] sm:$0xf0]  ;;  %v12488_v2 = vld [vmem:[#allocation6 + $0xd80] sm:$0xf] }
 0x13e   :  { %6800 = vmatpush.bf16.msra.mxu0 %v12333_v9  ;;  %6819 = vmatpush.bf16.msra.mxu1 %v12429_v29  ;;  %v12296_v9 = vld [vmem:[#allocation6 + $0xc00] sm:$0xf]  ;;  %v12405_v29 = vor.u32 %v15064_v49, %v12404_v61  ;;  %v15127_v61 = vld [vmem:[#allocation6 + $0xed8] sm:$0xf0]  ;;  %v12740_v59 = vld [vmem:[#allocation6 + $0xf78] sm:$0xf] }
 0x13f   :  { %6782 = vmatpush.bf16.msrb.mxu3 %v12225_v60  ;;  %v15154_v60 = vld [vmem:[#allocation6 + $0xfb0] sm:$0xf0]  ;;  %v6506_v49 = vpop.f32.mrf.mxu0  ;;  %v15148_v48 = vld [vmem:[#allocation6 + $0xf80] sm:$0xf0] }
 0x140   :  { %6709 = vmatmul.bf16.vlgmr.msra.gmra.mxu3 %v17005_v19  ;;  %6728 = vmatmul.bf16.vlgmr.msrb.gmra.mxu0 %v16996_v25  ;;  %v6539_v14 = vpop.f32.mrf.mxu2  ;;  %v15367_v25 = vld [vmem:[#allocation6 + $0x1658] sm:$0xf0] }
 0x141   :  { %6766 = vmatmul.bf16.vlgmr.msrb.gmra.mxu2 %v17000_v23  ;;  %v17017_v22 = vadd.f32 %v6539_v14, %v16976_v5  ;;  %v12297_v5 = vor.u32 %v15037_v38, %v12296_v9  ;;  %v15088_v9 = vld [vmem:[#allocation6 + $0xda0] sm:$0xf0]  ;;  %v15223_v23 = vld [vmem:[#allocation6 + $0x11d8] sm:$0xf0] }
 0x142   :  { %6836 = vmatpush.bf16.msra.mxu2 %v12549_v20  ;;  %6801 = vmatpush.bf16.msra.mxu0 %v12321_v30  ;;  %v12764_v20 = vld [vmem:[#allocation6 + $0xfa8] sm:$0xf]  ;;  %v15061_v30 = vld [vmem:[#allocation6 + $0xcc8] sm:$0xf0]  ;;  %v6525_v14 = vpop.f32.mrf.mxu1 }
 0x143   :  { %6820 = vmatpush.bf16.msra.mxu1 %v12417_v10  ;;  %6783 = vmatpush.bf16.msrb.mxu3 %v12213_v11  ;;  %v12765_v7 = vor.u32 %v15154_v60, %v12764_v20  ;;  %v12656_v10 = vld [vmem:[#allocation6 + $0xed0] sm:$0xf]  ;;  %v17024_v11 = vadd.f32 %v6525_v14, %v6506_v49  ;;  %v12644_v20 = vld [vmem:[#allocation6 + $0xeb8] sm:$0xf]  ;;  %v15124_v60 = vld [vmem:[#allocation6 + $0xec0] sm:$0xf0] }
 0x144   :  { %v12657_v38 = vor.u32 %v15127_v61, %v12656_v10  ;;  %v12645_v10 = vor.u32 %v15124_v60, %v12644_v20  ;;  %v12836_v61 = vld [vmem:[#allocation6 + $0x1038] sm:$0xf]  ;;  %v15172_v49 = vld [vmem:[#allocation6 + $0x1040] sm:$0xf0]  ;;  %v12956_v14 = vld [vmem:[#allocation6 + $0x1128] sm:$0xf] }
 0x145   :  { %v12824_v20 = vld [vmem:[#allocation6 + $0x1020] sm:$0xf]  ;;  %v15169_v60 = vld [vmem:[#allocation6 + $0x1028] sm:$0xf0] }
 0x146   :  { %6837 = vmatpush.bf16.msra.mxu2 %v12537_v43  ;;  %6802 = vmatpush.bf16.msra.mxu0 %v12309_v37  ;;  %v12393_v43 = vor.u32 %v15061_v30, %v12392_v32  ;;  %v12752_v37 = vld [vmem:[#allocation6 + $0xf90] sm:$0xf]  ;;  %v18950_v32 = vld [vmem:[#allocation34_spill] sm:$0xff] }
 0x147   :  { %6752 = vmatmul.bf16.gmra.mxu1 %v17021_v8  ;;  %6784 = vmatpush.bf16.msrb.mxu3 %v12201_v21  ;;  %v18772_v30 = vrot.slane %v18950_v32, 3  ;;  %v12753_v45 = vor.u32 %v15151_v41, %v12752_v37  ;;  %v15121_v37 = vld [vmem:[#allocation6 + $0xea8] sm:$0xf0] }
 0x148   :  { %6821 = vmatpush.bf16.msra.mxu1 %v12405_v29  ;;  %v17029_v29 = vsel %vm167_vm0, %v16985_v31, %v17014_v36  ;;  %v15085_v36 = vld [vmem:[#allocation6 + $0xd88] sm:$0xf0] }
 0x149   :  { %18948 = vst [vmem:[#allocation64_spill] sm:$0xff] %v17029_v29  ;;  %v12489_v41 = vor.u32 %v15085_v36, %v12488_v2  ;;  %v819_v2 = vsel %vm16285_vm4, %v16726_v53, 0.0  ;;  %v12825_v36 = vor.u32 %v15169_v60, %v12824_v20  ;;  %v18957_v60 = vld [vmem:[#allocation25_spill] sm:$0xff] }
 0x14a   :  { %6838 = vmatpush.bf16.msra.mxu2 %v12525_v40  ;;  %6803 = vmatpush.bf16.msra.mxu0 %v12297_v5  ;;  %v18949_v40 = vld [vmem:[#allocation32_spill] sm:$0xff]  ;;  %v12501_v5 = vor.u32 %v15088_v9, %v12500_v55  ;;  %v12741_v55 = vor.u32 %v15148_v48, %v12740_v59  ;;  %v12837_v9 = vor.u32 %v15172_v49, %v12836_v61  ;;  %v15142_v61 = vld [vmem:[#allocation6 + $0xf50] sm:$0xf0]  ;;  %v823_v49 = vsel %vm16293_vm7, %v16835_v57, 0.0 }
 0x14b   :  { %6853 = vmatpush.bf16.msra.mxu3 %v12669_v3  ;;  %v1167_v21 = vrot.slane %v18949_v40, 3  ;;  %v12849_v3 = vor.u32 %v15175_v51, %v12848_v13  ;;  %v15145_v13 = vld [vmem:[#allocation6 + $0xf68] sm:$0xf0]  ;;  %v12620_v48 = vld [vmem:[#allocation6 + $0xe88] sm:$0xf] }
 0x14c   :  { %6822 = vmatpush.bf16.msra.mxu1 %v12393_v43  ;;  %v15202_v43 = vld [vmem:[#allocation6 + $0x1130] sm:$0xf0] }
 0x14d   :  { %v12957_v51 = vor.u32 %v15202_v43, %v12956_v14  ;;  %v824_v14 = vsel %vm16293_vm7, %v16848_v34, 0.0  ;;  %v12812_v43 = vld [vmem:[#allocation6 + $0x1008] sm:$0xf]  ;;  %v17071_v34 = vrot.slane %v18957_v60, 3  ;;  %v15139_v60 = vld [vmem:[#allocation6 + $0xf38] sm:$0xf0] }
 0x14e   :  { %6872 = vmatpush.bf16.msrb.mxu0 %v12765_v7  ;;  %6839 = vmatpush.bf16.msra.mxu2 %v12513_v39  ;;  %v17036_v7 = vsel %vm167_vm0, %v16946_v33, %v16985_v31  ;;  %v17040_v39 = vpop.f32.mrf.mxu2  ;;  %v1169_v33 = vsel %vm1157_vm10, %v1167_v21, %v18772_v30  ;;  %v17046_v31 = vpop.permute.xlu1 %1208  ;;  %v12944_v30 = vld [vmem:[#allocation6 + $0x1110] sm:$0xf] }
 0x14f   :  { %18951 = vst [vmem:[#allocation32_spill] sm:$0xff] %v17036_v7  ;;  %6854 = vmatpush.bf16.msra.mxu3 %v12657_v38  ;;  %v12728_v38 = vld [vmem:[#allocation6 + $0xf60] sm:$0xf]  ;;  %v17050_v40 = vsel %vm167_vm0, %v1169_v33, %v17046_v31  ;;  %v15166_v33 = vld [vmem:[#allocation6 + $0x1010] sm:$0xf0] }
 0x150   :  { %6891 = vmatpush.bf16.msrb.mxu1 %v12861_v1  ;;  %6714 = vmatmul.bf16.gmra.mxu3 %v17036_v7  ;;  %v12632_v1 = vld [vmem:[#allocation6 + $0xea0] sm:$0xf]  ;;  %18952 = vst [vmem:[#allocation34_spill] sm:$0xff] %v17050_v40  ;;  %v12729_v59 = vor.u32 %v15145_v13, %v12728_v38  ;;  %v15196_v38 = vld [vmem:[#allocation6 + $0x1100] sm:$0xf0]  ;;  %v18956_v13 = vld [vmem:[#allocation24_spill] sm:$0xff] }
 0x151   :  { %6733 = vmatmul.bf16.gmra.mxu0 %v17029_v29  ;;  %6771 = vmatmul.bf16.gmra.mxu2 %v16989_v26  ;;  %v12633_v21 = vor.u32 %v15121_v37, %v12632_v1  ;;  %v18954_v1 = vld [vmem:[#allocation36_spill] sm:$0xff]  ;;  %v1164_v20 = vrot.slane %v18956_v13, 3  ;;  %v12800_v26 = vld [vmem:[#allocation6 + $0xff0] sm:$0xf]  ;;  %v15160_v29 = vld [vmem:[#allocation6 + $0xfe0] sm:$0xf0] }
 0x152   :  { %6873 = vmatpush.bf16.msrb.mxu0 %v12753_v45  ;;  %6840 = vmatpush.bf16.msra.mxu2 %v12501_v5  ;;  %v15199_v45 = vld [vmem:[#allocation6 + $0x1118] sm:$0xf0]  ;;  %v15118_v5 = vld [vmem:[#allocation6 + $0xe90] sm:$0xf0]  ;;  %v17067_v37 = vrot.slane %v18954_v1, 3  ;;  %18958 = vst [vmem:[#allocation36_spill] sm:$0xff] %v17071_v34 }
 0x153   :  { %6855 = vmatpush.bf16.msra.mxu3 %v12645_v10  ;;  %v12716_v10 = vld [vmem:[#allocation6 + $0xf48] sm:$0xf]  ;;  %v12945_v53 = vor.u32 %v15199_v45, %v12944_v30  ;;  %v12813_v45 = vor.u32 %v15166_v33, %v12812_v43  ;;  %v15115_v1 = vld [vmem:[#allocation6 + $0xe78] sm:$0xf0]  ;;  %v12596_v33 = vld [vmem:[#allocation6 + $0xe58] sm:$0xf] }
 0x154   :  { %6892 = vmatpush.bf16.msrb.mxu1 %v12849_v3  ;;  %v820_v3 = vsel %vm16285_vm4, %v16735_v46, 0.0  ;;  %v18953_v46 = vld [vmem:[#allocation37_spill] sm:$0xff] }
 0x155   :  { %18955 = vst [vmem:[#allocation37_spill] sm:$0xff] %v17067_v37 }
 0x156   :  { %6874 = vmatpush.bf16.msrb.mxu0 %v12741_v55  ;;  %6841 = vmatpush.bf16.msra.mxu2 %v12489_v41  ;;  %v1161_v55 = vrot.slane %v18953_v46, 3  ;;  %v12621_v41 = vor.u32 %v15118_v5, %v12620_v48  ;;  %v6544_v57 = vpop.f32.mrf.mxu2  ;;  %v12608_v46 = vld [vmem:[#allocation6 + $0xe70] sm:$0xf]  ;;  %v17078_v48 = vpack.c.bf16 %v824_v14, %v823_v49  ;;  %v17080_v5 = vpop.permute.xlu2 %1210 }
 0x157   :  { %6823 = vmatmul.bf16.vlgmr.msra.gmra.mxu1 %v17050_v40  ;;  %6856 = vmatpush.bf16.msra.mxu3 %v12633_v21  ;;  %v17074_v30 = vadd.f32 %v6544_v57, %v17024_v11  ;;  %v12704_v40 = vld [vmem:[#allocation6 + $0xf30] sm:$0xf]  ;;  %v17076_v21 = vpack.c.bf16 %v820_v3, %v819_v2  ;;  %v15193_v11 = vld [vmem:[#allocation6 + $0x10e8] sm:$0xf0]  ;;  %v17090_v3 = vsel %vm1157_vm10, %v1164_v20, %v17071_v34  ;;  %v15136_v57 = vld [vmem:[#allocation6 + $0xf20] sm:$0xf0] }
 0x158   :  { %6893 = vmatpush.bf16.msrb.mxu1 %v12837_v9  ;;  %v12932_v9 = vld [vmem:[#allocation6 + $0x10f8] sm:$0xf]  ;;  %v17086_v2 = vsel %vm1157_vm10, %v1161_v55, %v17067_v37  ;;  %18960 = vst [vmem:[#allocation25_spill] sm:$0xff] %v17090_v3  ;;  %v12609_v49 = vor.u32 %v15115_v1, %v12608_v46  ;;  %v17095_v14 = vsel %vm167_vm0, %v17046_v31, %v17080_v5  ;;  %v15190_v31 = vld [vmem:[#allocation6 + $0x10d0] sm:$0xf0] }
 0x159   :  { %v12933_v13 = vor.u32 %v15196_v38, %v12932_v9  ;;  %18959 = vst [vmem:[#allocation24_spill] sm:$0xff] %v17086_v2  ;;  %v12692_v9 = vld [vmem:[#allocation6 + $0xf18] sm:$0xf]  ;;  %v15109_v46 = vld [vmem:[#allocation6 + $0xe48] sm:$0xf0] }
 0x15a   :  { %6910 = vmatpush.bf16.msrb.mxu2 %v12957_v51  ;;  %6875 = vmatpush.bf16.msrb.mxu0 %v12729_v59  ;;  %v12717_v51 = vor.u32 %v15142_v61, %v12716_v10  ;;  %v15163_v59 = vld [vmem:[#allocation6 + $0xff8] sm:$0xf0]  ;;  %v12920_v10 = vld [vmem:[#allocation6 + $0x10e0] sm:$0xf]  ;;  %v1247_v61 = vunpack.c.l.b16 %v17078_v48  ;;  %18961 = vst [vmem:[#allocation65_spill] sm:$0xff] %v17095_v14  ;;  %v12693_v1 = vor.u32 %v15136_v57, %v12692_v9 }
 0x15b   :  { %6857 = vmatpush.bf16.msra.mxu3 %v12621_v41  ;;  %v12801_v43 = vor.u32 %v15163_v59, %v12800_v26  ;;  %v15112_v41 = vld [vmem:[#allocation6 + $0xe60] sm:$0xf0]  ;;  %v12921_v55 = vor.u32 %v15193_v11, %v12920_v10  ;;  %v12788_v20 = vld [vmem:[#allocation6 + $0xfd8] sm:$0xf]  ;;  %v15133_v59 = vld [vmem:[#allocation6 + $0xf08] sm:$0xf0] }
 0x15c   :  { %6894 = vmatpush.bf16.msrb.mxu1 %v12825_v36  ;;  %v1243_v36 = vunpack.c.l.b16 %v17076_v21  ;;  %v12597_v26 = vor.u32 %v15112_v41, %v12596_v33  ;;  %v12776_v10 = vld [vmem:[#allocation6 + $0xfc0] sm:$0xf]  ;;  %v13052_v33 = vld [vmem:[#allocation6 + $0x11e8] sm:$0xf]  ;;  %v15226_v41 = vld [vmem:[#allocation6 + $0x11f0] sm:$0xf0] }
 0x15d   :  { %v13244_v9 = vld [vmem:[#allocation6 + $0x1368] sm:$0xf]  ;;  %v15274_v57 = vld [vmem:[#allocation6 + $0x1370] sm:$0xf0] }
 0x15e   :  { %6911 = vmatpush.bf16.msrb.mxu2 %v12945_v53  ;;  %6876 = vmatpush.bf16.msrb.mxu0 %v12717_v51  ;;  %v12705_v53 = vor.u32 %v15139_v60, %v12704_v40  ;;  %v17097_v38 = vpack.c.b16 %v1247_v61, %v1243_v36  ;;  %v12908_v51 = vld [vmem:[#allocation6 + $0x10c8] sm:$0xf]  ;;  %v17102_v40 = vpop.permute.xlu1 %1216  ;;  %v12680_v60 = vld [vmem:[#allocation6 + $0xf00] sm:$0xf]  ;;  %v15157_v36 = vld [vmem:[#allocation6 + $0xfc8] sm:$0xf0]  ;;  %v13245_v8 = vor.u32 %v15274_v57, %v13244_v9 }
 0x15f   :  { %6858 = vmatpush.bf16.msra.mxu3 %v12609_v49  ;;  %v12909_v11 = vor.u32 %v15190_v31, %v12908_v51  ;;  %v12896_v61 = vld [vmem:[#allocation6 + $0x10b0] sm:$0xf]  ;;  %v17112_v51 = vpop.f32.mrf.mxu1  ;;  %v12777_v31 = vor.u32 %v15157_v36, %v12776_v10  ;;  %v15181_v36 = vld [vmem:[#allocation6 + $0x1088] sm:$0xf0]  ;;  %v15244_v57 = vld [vmem:[#allocation6 + $0x1280] sm:$0xf0] }
 0x160   :  { %6895 = vmatpush.bf16.msrb.mxu1 %v12813_v45  ;;  %18962 = vst [vmem:[#allocation66_spill] sm:$0xff] %v17097_v38  ;;  %6785 = vmatmul.bf16.vlgmr.msrb.gmra.mxu3 %v17086_v2  ;;  %v12584_v45 = vld [vmem:[#allocation6 + $0xe40] sm:$0xf]  ;;  %v13053_v2 = vor.u32 %v15226_v41, %v13052_v33  ;;  %v13232_v10 = vld [vmem:[#allocation6 + $0x1350] sm:$0xf] }
 0x161   :  { %6804 = vmatmul.bf16.vlgmr.msra.gmra.mxu0 %v17090_v3  ;;  %6842 = vmatmul.bf16.vlgmr.msra.gmra.mxu2 %v17095_v14  ;;  %v15187_v3 = vld [vmem:[#allocation6 + $0x10b8] sm:$0xf0]  ;;  %v18963_v14 = vrot.slane %v18950_v32, 3  ;;  %v12681_v32 = vor.u32 %v15133_v59, %v12680_v60  ;;  %v12872_v59 = vld [vmem:[#allocation6 + $0x1080] sm:$0xf] }
 0x162   :  { %6912 = vmatpush.bf16.msrb.mxu2 %v12933_v13  ;;  %6877 = vmatpush.bf16.msrb.mxu0 %v12705_v53  ;;  %v12789_v13 = vor.u32 %v15160_v29, %v12788_v20  ;;  %v13148_v53 = vld [vmem:[#allocation6 + $0x12a8] sm:$0xf]  ;;  %v15250_v29 = vld [vmem:[#allocation6 + $0x12b0] sm:$0xf0]  ;;  %v1248_v20 = vunpack.c.h.b16 %v17078_v48  ;;  %v13136_v48 = vld [vmem:[#allocation6 + $0x1290] sm:$0xf] }
 0x163   :  { %v17108_v49 = vsel %vm167_vm0, %v18963_v14, %v17102_v40  ;;  %6859 = vmatpush.bf16.msra.mxu3 %v12597_v26  ;;  %v12897_v14 = vor.u32 %v15187_v3, %v12896_v61  ;;  %v12884_v26 = vld [vmem:[#allocation6 + $0x1098] sm:$0xf]  ;;  %v13149_v7 = vor.u32 %v15250_v29, %v13148_v53  ;;  %v15220_v33 = vld [vmem:[#allocation6 + $0x11c0] sm:$0xf0]  ;;  %v13340_v53 = vld [vmem:[#allocation6 + $0x1428] sm:$0xf] }
 0x164   :  { %6896 = vmatpush.bf16.msrb.mxu1 %v12801_v43  ;;  %18964 = vst [vmem:[#allocation67_spill] sm:$0xff] %v17108_v49  ;;  %v12585_v43 = vor.u32 %v15109_v46, %v12584_v45  ;;  %v15184_v46 = vld [vmem:[#allocation6 + $0x10a0] sm:$0xf0]  ;;  %v13028_v61 = vld [vmem:[#allocation6 + $0x11b8] sm:$0xf] }
 0x165   :  { %v12885_v60 = vor.u32 %v15184_v46, %v12884_v26  ;;  %v13328_v26 = vld [vmem:[#allocation6 + $0x1410] sm:$0xf]  ;;  %v15295_v46 = vld [vmem:[#allocation6 + $0x1418] sm:$0xf0] }
 0x166   :  { %6913 = vmatpush.bf16.msrb.mxu2 %v12921_v55  ;;  %v1244_v55 = vunpack.c.h.b16 %v17076_v21  ;;  %6878 = vmatpush.bf16.msrb.mxu0 %v12693_v1  ;;  %v13040_v21 = vld [vmem:[#allocation6 + $0x11d0] sm:$0xf]  ;;  %v15247_v1 = vld [vmem:[#allocation6 + $0x1298] sm:$0xf0] }
 0x167   :  { %6828 = vmatmul.bf16.gmra.mxu1 %v17108_v49  ;;  %6860 = vmatpush.bf16.msra.mxu3 %v12585_v43  ;;  %v13041_v3 = vor.u32 %v15223_v23, %v13040_v21  ;;  %v13137_v41 = vor.u32 %v15247_v1, %v13136_v48  ;;  %v15298_v43 = vld [vmem:[#allocation6 + $0x1430] sm:$0xf0]  ;;  %v12873_v23 = vor.u32 %v15181_v36, %v12872_v59  ;;  %v18791_v21 = vmov 0.0   ;;  %v17132_v59 = vpop.f32.mrf.mxu0  ;;  %v15265_v36 = vld [vmem:[#allocation6 + $0x1328] sm:$0xf0] }
 0x168   :  { %6897 = vmatpush.bf16.msrb.mxu1 %v12789_v13  ;;  %v17115_v45 = vpack.c.b16 %v1248_v20, %v1244_v55  ;;  %v17117_v13 = vpop.permute.xlu2 %1218  ;;  %v13029_v55 = vor.u32 %v15220_v33, %v13028_v61  ;;  %v17130_v48 = vrot.slane %v18791_v21, 2  ;;  %v13329_v61 = vor.u32 %v15295_v46, %v13328_v26  ;;  %v13004_v33 = vld [vmem:[#allocation6 + $0x1188] sm:$0xf]  ;;  %v12992_v26 = vld [vmem:[#allocation6 + $0x1170] sm:$0xf] }
 0x169   :  { %v17122_v29 = vsel %vm167_vm0, %v17102_v40, %v17117_v13  ;;  %v15211_v46 = vld [vmem:[#allocation6 + $0x1178] sm:$0xf0]  ;;  %v15232_v21 = vld [vmem:[#allocation6 + $0x1220] sm:$0xf0] }
 0x16a   :  { %6914 = vmatpush.bf16.msrb.mxu2 %v12909_v11  ;;  %18965 = vst [vmem:[#allocation68_spill] sm:$0xff] %v17115_v45  ;;  %6879 = vmatpush.bf16.msrb.mxu0 %v12681_v32  ;;  %v15271_v11 = vld [vmem:[#allocation6 + $0x1358] sm:$0xf0]  ;;  %v13341_v32 = vor.u32 %v15298_v43, %v13340_v53  ;;  %v810_v43 = vsel %vm18841_vm3, %v16811_v44, %v17130_v48 }
 0x16b   :  { %6929 = vmatpush.bf16.msrb.mxu3 %v13053_v2  ;;  %18966 = vst [vmem:[#allocation69_spill] sm:$0xff] %v17122_v29  ;;  %v13233_v9 = vor.u32 %v15271_v11, %v13232_v10  ;;  %v13124_v2 = vld [vmem:[#allocation6 + $0x1278] sm:$0xf]  ;;  %v13208_v11 = vld [vmem:[#allocation6 + $0x1320] sm:$0xf] }
 0x16c   :  { %6898 = vmatpush.bf16.msrb.mxu1 %v12777_v31  ;;  %v13016_v31 = vld [vmem:[#allocation6 + $0x11a0] sm:$0xf]  ;;  %v13125_v40 = vor.u32 %v15244_v57, %v13124_v2  ;;  %v13316_v2 = vld [vmem:[#allocation6 + $0x13f8] sm:$0xf]  ;;  %v15292_v57 = vld [vmem:[#allocation6 + $0x1400] sm:$0xf0] }
 0x16e   :  { %6915 = vmatpush.bf16.msrb.mxu2 %v12897_v14  ;;  %6948 = vmatpush.bf16.msra.mxu0 %v13149_v7  ;;  %v13220_v7 = vld [vmem:[#allocation6 + $0x1338] sm:$0xf]  ;;  %v15217_v14 = vld [vmem:[#allocation6 + $0x11a8] sm:$0xf0] }
 0x16f   :  { %6930 = vmatpush.bf16.msrb.mxu3 %v13041_v3  ;;  %v15241_v3 = vld [vmem:[#allocation6 + $0x1268] sm:$0xf0]  ;;  %v13017_v10 = vor.u32 %v15217_v14, %v13016_v31  ;;  %v13196_v31 = vld [vmem:[#allocation6 + $0x1308] sm:$0xf]  ;;  %v17147_v14 = vpop.f32.mrf.mxu2 }
 0x170   :  { %6967 = vmatpush.bf16.msra.mxu1 %v13245_v8  ;;  %v15268_v8 = vld [vmem:[#allocation6 + $0x1340] sm:$0xf0]  ;;  %6790 = vmatmul.bf16.gmra.mxu3 %v17067_v37  ;;  %v17126_v20 = vpop.f32.mrf.mxu1 }
 0x171   :  { %6809 = vmatmul.bf16.gmra.mxu0 %v17071_v34  ;;  %6847 = vmatmul.bf16.gmra.mxu2 %v17122_v29  ;;  %v13221_v1 = vor.u32 %v15268_v8, %v13220_v7  ;;  %v13209_v7 = vor.u32 %v15265_v36, %v13208_v11  ;;  %v13100_v8 = vld [vmem:[#allocation6 + $0x1248] sm:$0xf]  ;;  %v13088_v36 = vld [vmem:[#allocation6 + $0x1230] sm:$0xf] }
 0x172   :  { %6916 = vmatpush.bf16.msrb.mxu2 %v12885_v60  ;;  %6949 = vmatpush.bf16.msra.mxu0 %v13137_v41  ;;  %v13112_v60 = vld [vmem:[#allocation6 + $0x1260] sm:$0xf]  ;;  %v15214_v41 = vld [vmem:[#allocation6 + $0x1190] sm:$0xf0] }
 0x173   :  { %6931 = vmatpush.bf16.msrb.mxu3 %v13029_v55  ;;  %v13113_v53 = vor.u32 %v15241_v3, %v13112_v60  ;;  %v826_v55 = vsel %vm16293_vm7, %v16864_v50, 0.0  ;;  %v13005_v44 = vor.u32 %v15214_v41, %v13004_v33  ;;  %v13317_v50 = vor.u32 %v15292_v57, %v13316_v2  ;;  %v1215_v3 = vpop.permute.xlu1 %1214  ;;  %v13184_v33 = vld [vmem:[#allocation6 + $0x12f0] sm:$0xf]  ;;  %v13304_v2 = vld [vmem:[#allocation6 + $0x13e0] sm:$0xf] }
 0x174   :  { %6968 = vmatpush.bf16.msra.mxu1 %v13233_v9  ;;  %v811_v9 = vsel %vm18841_vm3, %v16817_v58, %v17130_v48  ;;  %v15262_v58 = vld [vmem:[#allocation6 + $0x1310] sm:$0xf0]  ;;  %v15289_v57 = vld [vmem:[#allocation6 + $0x13e8] sm:$0xf0] }
 0x175   :  { %v13197_v11 = vor.u32 %v15262_v58, %v13196_v31 }
 0x176   :  { %6917 = vmatpush.bf16.msrb.mxu2 %v12873_v23  ;;  %6950 = vmatpush.bf16.msra.mxu0 %v13125_v40  ;;  %v825_v23 = vsel %vm16293_vm7, %v16825_v12, 0.0  ;;  %v827_v12 = vsel %vm16265_vm14, %v810_v43, 0.0  ;;  %v828_v40 = vsel %vm16265_vm14, %v811_v9, 0.0  ;;  %v17161_v43 = vpack.c.bf16 %v17130_v48, %v17130_v48 }
 0x177   :  { %6899 = vmatmul.bf16.vlgmr.msrb.gmra.mxu1 %v17097_v38  ;;  %6932 = vmatpush.bf16.msrb.mxu3 %v13017_v10  ;;  %v17153_v60 = vpack.c.bf16 %v826_v55, %v825_v23  ;;  %v17157_v41 = vpack.c.bf16 %v828_v40, %v827_v12  ;;  %v12993_v9 = vor.u32 %v15211_v46, %v12992_v26  ;;  %v1213_v23 = vpop.permute.xlu0 %1212  ;;  %v12980_v55 = vld [vmem:[#allocation6 + $0x1158] sm:$0xf]  ;;  %v13292_v38 = vld [vmem:[#allocation6 + $0x13c8] sm:$0xf] }
 0x178   :  { %6969 = vmatpush.bf16.msra.mxu1 %v13221_v1  ;;  %v17155_v10 = vpop.f32.mrf.mxu1  ;;  %v13305_v12 = vor.u32 %v15289_v57, %v13304_v2  ;;  %v13076_v40 = vld [vmem:[#allocation6 + $0x1218] sm:$0xf]  ;;  %v17168_v26 = vsel %vm167_vm0, %v17080_v5, %v1213_v23 }
 0x179   :  { %18968 = vst [vmem:[#allocation71_spill] sm:$0xff] %v17168_v26  ;;  %v13077_v5 = vor.u32 %v15232_v21, %v13076_v40  ;;  %v15283_v21 = vld [vmem:[#allocation6 + $0x13b8] sm:$0xf0]  ;;  %v13532_v40 = vld [vmem:[#allocation6 + $0x15a8] sm:$0xf] }
 0x17a   :  { %6986 = vmatpush.bf16.msra.mxu2 %v13341_v32  ;;  %v15238_v32 = vld [vmem:[#allocation6 + $0x1250] sm:$0xf0]  ;;  %6951 = vmatpush.bf16.msra.mxu0 %v13113_v53  ;;  %v15259_v53 = vld [vmem:[#allocation6 + $0x12f8] sm:$0xf0] }
 0x17b   :  { %v13101_v1 = vor.u32 %v15238_v32, %v13100_v8  ;;  %6933 = vmatpush.bf16.msrb.mxu3 %v13005_v44  ;;  %v15208_v8 = vld [vmem:[#allocation6 + $0x1160] sm:$0xf0]  ;;  %v17164_v32 = vsel %vm167_vm0, %v1213_v23, %v1215_v3  ;;  %v13185_v58 = vor.u32 %v15259_v53, %v13184_v33  ;;  %v13172_v44 = vld [vmem:[#allocation6 + $0x12d8] sm:$0xf]  ;;  %v13436_v33 = vld [vmem:[#allocation6 + $0x14e8] sm:$0xf] }
 0x17c   :  { %6970 = vmatpush.bf16.msra.mxu1 %v13209_v7  ;;  %18967 = vst [vmem:[#allocation70_spill] sm:$0xff] %v17164_v32  ;;  %v12981_v52 = vor.u32 %v15208_v8, %v12980_v55  ;;  %v15256_v3 = vld [vmem:[#allocation6 + $0x12e0] sm:$0xf0]  ;;  %v15322_v53 = vld [vmem:[#allocation6 + $0x14f0] sm:$0xf0] }
 0x17d   :  { %v6577_v7 = vpop.f32.mrf.mxu0  ;;  %v15229_v23 = vld [vmem:[#allocation6 + $0x1208] sm:$0xf0]  ;;  %v13160_v55 = vld [vmem:[#allocation6 + $0x12c0] sm:$0xf] }
 0x17e   :  { %6987 = vmatpush.bf16.msra.mxu2 %v13329_v61  ;;  %v15235_v61 = vld [vmem:[#allocation6 + $0x1238] sm:$0xf0]  ;;  %6952 = vmatpush.bf16.msra.mxu0 %v13101_v1  ;;  %v15286_v1 = vld [vmem:[#allocation6 + $0x13d0] sm:$0xf0]  ;;  %v15253_v8 = vld [vmem:[#allocation6 + $0x12c8] sm:$0xf0] }
 0x17f   :  { %v13089_v31 = vor.u32 %v15235_v61, %v13088_v36  ;;  %6934 = vmatpush.bf16.msrb.mxu3 %v12993_v9  ;;  %v15205_v36 = vld [vmem:[#allocation6 + $0x1148] sm:$0xf0]  ;;  %v13064_v61 = vld [vmem:[#allocation6 + $0x1200] sm:$0xf]  ;;  %v13173_v9 = vor.u32 %v15256_v3, %v13172_v44  ;;  %v13293_v57 = vor.u32 %v15286_v1, %v13292_v38  ;;  %v13628_v38 = vld [vmem:[#allocation6 + $0x1668] sm:$0xf]  ;;  %v6523_v3 = vadd.f32 %v17011_v42, %v17009_v56  ;;  %v17184_v37 = vpop.permute.xlu0 %1220 }
 0x180   :  { %6971 = vmatpush.bf16.msra.mxu1 %v13197_v11  ;;  %6861 = vmatmul.bf16.vlgmr.msra.gmra.mxu3 %v17168_v26  ;;  %v12968_v11 = vld [vmem:[#allocation6 + $0x1140] sm:$0xf]  ;;  %v15370_v44 = vld [vmem:[#allocation6 + $0x1670] sm:$0xf0]  ;;  %v13520_v56 = vld [vmem:[#allocation6 + $0x1590] sm:$0xf] }
 0x181   :  { %6880 = vmatmul.bf16.vlgmr.msrb.gmra.mxu0 %v17164_v32  ;;  %6918 = vmatmul.bf16.vlgmr.msrb.gmra.mxu2 %v17115_v45  ;;  %v18969_v32 = vunpack.c.l.b16 %v17161_v43  ;;  %v12969_v45 = vor.u32 %v15205_v36, %v12968_v11  ;;  %v13268_v36 = vld [vmem:[#allocation6 + $0x1398] sm:$0xf]  ;;  %v13629_v49 = vor.u32 %v15370_v44, %v13628_v38 }
 0x182   :  { %6988 = vmatpush.bf16.msra.mxu2 %v13317_v50  ;;  %v1251_v50 = vunpack.c.l.b16 %v17157_v41  ;;  %6953 = vmatpush.bf16.msra.mxu0 %v13089_v31  ;;  %v6615_v2 = vpop.f32.mrf.mxu2  ;;  %v13280_v31 = vld [vmem:[#allocation6 + $0x13b0] sm:$0xf]  ;;  %v13508_v38 = vld [vmem:[#allocation6 + $0x1578] sm:$0xf] }
 0x183   :  { %v6558_v46 = vpop.f32.mrf.mxu3  ;;  %6935 = vmatpush.bf16.msrb.mxu3 %v12981_v52  ;;  %v13065_v52 = vor.u32 %v15229_v23, %v13064_v61  ;;  %v15343_v61 = vld [vmem:[#allocation6 + $0x1598] sm:$0xf0]  ;;  %v13616_v23 = vld [vmem:[#allocation6 + $0x1650] sm:$0xf] }
 0x184   :  { %6972 = vmatpush.bf16.msra.mxu1 %v13185_v58  ;;  %v17177_v26 = vpack.c.b16 %v18969_v32, %v1251_v50  ;;  %v6559_v29 = vadd.f32 %v6558_v46, %v17017_v22  ;;  %v17180_v34 = vpop.f32.mrf.mxu1  ;;  %v13437_v58 = vor.u32 %v15322_v53, %v13436_v33  ;;  %v13424_v32 = vld [vmem:[#allocation6 + $0x14d0] sm:$0xf]  ;;  %v15319_v50 = vld [vmem:[#allocation6 + $0x14d8] sm:$0xf0]  ;;  %v13161_v22 = vor.u32 %v15253_v8, %v13160_v55  ;;  %v15280_v33 = vld [vmem:[#allocation6 + $0x13a0] sm:$0xf0] }
 0x185   :  { %v6579_v1 = vpop.f32.mrf.mxu0  ;;  %v13281_v46 = vor.u32 %v15283_v21, %v13280_v31  ;;  %v13269_v8 = vor.u32 %v15280_v33, %v13268_v36  ;;  %v15316_v31 = vld [vmem:[#allocation6 + $0x14c0] sm:$0xf0]  ;;  %v821_v33 = vsel %vm16285_vm4, %v16745_v28, 0.0 }
 0x186   :  { %6989 = vmatpush.bf16.msra.mxu2 %v13305_v12  ;;  %18970 = vst [vmem:[#allocation72_spill] sm:$0xff] %v17177_v26  ;;  %v15346_v12 = vld [vmem:[#allocation6 + $0x15b0] sm:$0xf0]  ;;  %6954 = vmatpush.bf16.msra.mxu0 %v13077_v5  ;;  %v6578_v11 = vadd.f32 %v6577_v7, %v6559_v29  ;;  %v13425_v5 = vor.u32 %v15319_v50, %v13424_v32  ;;  %v1223_v29 = vpop.permute.xlu2 %1222  ;;  %v1252_v7 = vunpack.c.h.b16 %v17157_v41 }
 0x187   :  { %6904 = vmatmul.bf16.gmra.mxu1 %v17177_v26  ;;  %6936 = vmatpush.bf16.msrb.mxu3 %v12969_v45  ;;  %v13533_v53 = vor.u32 %v15346_v12, %v13532_v40  ;;  %v6542_v45 = vadd.f32 %v17040_v39, %v6523_v3  ;;  %v13256_v40 = vld [vmem:[#allocation6 + $0x1380] sm:$0xf]  ;;  %v13521_v12 = vor.u32 %v15343_v61, %v13520_v56  ;;  %v15340_v39 = vld [vmem:[#allocation6 + $0x1580] sm:$0xf0] }
 0x188   :  { %6973 = vmatpush.bf16.msra.mxu1 %v13173_v9  ;;  %v6597_v42 = vadd.f32 %v17126_v20, %v6578_v11  ;;  %v18812_v9 = vunpack.c.h.b16 %v17161_v43  ;;  %v13412_v20 = vld [vmem:[#allocation6 + $0x14b8] sm:$0xf]  ;;  %v13617_v41 = vor.u32 %v15367_v25, %v13616_v23  ;;  %v15364_v3 = vld [vmem:[#allocation6 + $0x1640] sm:$0xf0]  ;;  %v17197_v50 = vsel %vm167_vm0, %v17184_v37, %v1223_v29  ;;  %v17203_v11 = vpop.permute.xlu0 %1353  ;;  %v13496_v29 = vld [vmem:[#allocation6 + $0x1560] sm:$0xf] }
 0x189   :  { %v13413_v25 = vor.u32 %v15316_v31, %v13412_v20  ;;  %v17214_v61 = vsel %vm167_vm0, %v17117_v13, %v17184_v37  ;;  %v15361_v20 = vld [vmem:[#allocation6 + $0x1628] sm:$0xf0]  ;;  %v13712_v31 = vld [vmem:[#allocation6 + $0x1710] sm:$0xf] }
 0x18a   :  { %6990 = vmatpush.bf16.msra.mxu2 %v13293_v57  ;;  %6955 = vmatpush.bf16.msra.mxu0 %v13065_v52  ;;  %v17191_v57 = vadd.f32 %v6615_v2, %v6597_v42  ;;  %v6617_v55 = vpop.f32.mrf.mxu2  ;;  %v13604_v2 = vld [vmem:[#allocation6 + $0x1638] sm:$0xf]  ;;  %v13400_v42 = vld [vmem:[#allocation6 + $0x14a0] sm:$0xf] }
 0x18b   :  { %7005 = vmatpush.bf16.msra.mxu3 %v13437_v58  ;;  %v6560_v21 = vpop.f32.mrf.mxu3  ;;  %v15277_v58 = vld [vmem:[#allocation6 + $0x1388] sm:$0xf0]  ;;  %v13605_v23 = vor.u32 %v15364_v3, %v13604_v2 }
 0x18c   :  { %6974 = vmatpush.bf16.msra.mxu1 %v13161_v22  ;;  %v6561_v44 = vadd.f32 %v6560_v21, %v6542_v45  ;;  %v17193_v52 = vpop.f32.mrf.mxu1  ;;  %v13724_v22 = vld [vmem:[#allocation6 + $0x1728] sm:$0xf]  ;;  %v13257_v56 = vor.u32 %v15277_v58, %v13256_v40  ;;  %v13592_v45 = vld [vmem:[#allocation6 + $0x1620] sm:$0xf]  ;;  %v15391_v21 = vld [vmem:[#allocation6 + $0x1718] sm:$0xf0] }
 0x18d   :  { %v6582_v32 = vpop.f32.mrf.mxu0  ;;  %v13388_v58 = vld [vmem:[#allocation6 + $0x1488] sm:$0xf]  ;;  %v13713_v3 = vor.u32 %v15391_v21, %v13712_v31  ;;  %v13472_v31 = vld [vmem:[#allocation6 + $0x1530] sm:$0xf]  ;;  %v15331_v21 = vld [vmem:[#allocation6 + $0x1538] sm:$0xf0] }
 0x18e   :  { %6991 = vmatpush.bf16.msra.mxu2 %v13281_v46  ;;  %7024 = vmatpush.bf16.msrb.mxu0 %v13533_v53  ;;  %v15394_v46 = vld [vmem:[#allocation6 + $0x1730] sm:$0xf0]  ;;  %v6580_v36 = vadd.f32 %v6579_v1, %v6561_v44  ;;  %v822_v53 = vsel %vm16285_vm4, %v16750_v15, 0.0  ;;  %v13509_v1 = vor.u32 %v15340_v39, %v13508_v38  ;;  %v17222_v37 = vpop.permute.xlu2 %1351 }
 0x18f   :  { %7006 = vmatpush.bf16.msra.mxu3 %v13425_v5  ;;  %v15313_v5 = vld [vmem:[#allocation6 + $0x14a8] sm:$0xf0]  ;;  %v13725_v15 = vor.u32 %v15394_v46, %v13724_v22  ;;  %v17232_v2 = vsel %vm167_vm0, %v17222_v37, %v17203_v11  ;;  %v15334_v22 = vld [vmem:[#allocation6 + $0x1550] sm:$0xf0]  ;;  %v13580_v46 = vld [vmem:[#allocation6 + $0x1608] sm:$0xf] }
 0x190   :  { %7043 = vmatpush.bf16.msrb.mxu1 %v13629_v49  ;;  %v17201_v49 = vpack.c.b16 %v18812_v9, %v1252_v7  ;;  %6866 = vmatmul.bf16.gmra.mxu3 %v17214_v61  ;;  %v6599_v28 = vadd.f32 %v17155_v10, %v6580_v36  ;;  %v15337_v7 = vld [vmem:[#allocation6 + $0x1568] sm:$0xf0]  ;;  %v13401_v13 = vor.u32 %v15313_v5, %v13400_v42  ;;  %v15310_v10 = vld [vmem:[#allocation6 + $0x1490] sm:$0xf0]  ;;  %v13700_v42 = vld [vmem:[#allocation6 + $0x16f8] sm:$0xf] }
 0x191   :  { %6885 = vmatmul.bf16.gmra.mxu0 %v17197_v50  ;;  %v15388_v5 = vld [vmem:[#allocation6 + $0x1700] sm:$0xf0]  ;;  %v13664_v9 = vld [vmem:[#allocation6 + $0x16b0] sm:$0xf] }
 0x192   :  { %6992 = vmatpush.bf16.msra.mxu2 %v13269_v8  ;;  %7025 = vmatpush.bf16.msrb.mxu0 %v13521_v12  ;;  %v17220_v8 = vpack.c.bf16 %v822_v53, %v821_v33  ;;  %v17224_v40 = vadd.f32 %v6617_v55, %v6599_v28  ;;  %v13593_v55 = vor.u32 %v15361_v20, %v13592_v45 }
 0x193   :  { %6923 = vmatmul.bf16.gmra.mxu2 %v17201_v49  ;;  %7007 = vmatpush.bf16.msra.mxu3 %v13413_v25  ;;  %v6563_v12 = vpop.f32.mrf.mxu3  ;;  %v13484_v25 = vld [vmem:[#allocation6 + $0x1548] sm:$0xf]  ;;  %v13389_v53 = vor.u32 %v15310_v10, %v13388_v58  ;;  %v17243_v28 = vsel %vm18841_vm3, %v16805_v54, %v17130_v48 }
 0x194   :  { %7044 = vmatpush.bf16.msrb.mxu1 %v13617_v41  ;;  %v13497_v41 = vor.u32 %v15337_v7, %v13496_v29  ;;  %v6564_v38 = vadd.f32 %v6563_v12, %v17074_v30  ;;  %v6620_v44 = vpop.f32.mrf.mxu2  ;;  %v17227_v39 = vpop.f32.mrf.mxu1  ;;  %v1246_v33 = vunpack.c.h.b16 %v17220_v8  ;;  %v1250_v30 = vunpack.c.h.b16 %v17153_v60  ;;  %v15307_v29 = vld [vmem:[#allocation6 + $0x1478] sm:$0xf0]  ;;  %v13568_v12 = vld [vmem:[#allocation6 + $0x15f0] sm:$0xf] }
 0x195   :  { %v17234_v36 = vpop.f32.mrf.mxu0  ;;  %v1245_v7 = vunpack.c.l.b16 %v17220_v8  ;;  %v17247_v45 = vpop.permute.xlu1 %1355  ;;  %v13485_v20 = vor.u32 %v15334_v22, %v13484_v25  ;;  %v829_v8 = vsel %vm16265_vm14, %v17243_v28, 0.0  ;;  %v13364_v25 = vld [vmem:[#allocation6 + $0x1458] sm:$0xf] }
 0x196   :  { %6993 = vmatpush.bf16.msra.mxu2 %v13257_v56  ;;  %7026 = vmatpush.bf16.msrb.mxu0 %v13509_v1  ;;  %v15358_v56 = vld [vmem:[#allocation6 + $0x1610] sm:$0xf0]  ;;  %v6528_v1 = vadd.f32 %v17112_v51, %v17132_v59  ;;  %v1249_v59 = vunpack.c.l.b16 %v17153_v60  ;;  %v1260_v58 = vpack.c.b16 %v1250_v30, %v1246_v33  ;;  %v813_v60 = vsel %vm18841_vm3, %v16838_v16, %v17130_v48  ;;  %v15304_v33 = vld [vmem:[#allocation6 + $0x1460] sm:$0xf0]  ;;  %v13460_v30 = vld [vmem:[#allocation6 + $0x1518] sm:$0xf] }
 0x197   :  { %7008 = vmatpush.bf16.msra.mxu3 %v13401_v13  ;;  %6975 = vmatmul.bf16.vlgmr.msra.gmra.mxu1 %v17232_v2  ;;  %v17249_v13 = vpop.permute.xlu0 %1357  ;;  %v13581_v54 = vor.u32 %v15358_v56, %v13580_v46  ;;  %v13473_v46 = vor.u32 %v15331_v21, %v13472_v31  ;;  %v17268_v16 = vld [vmem:[#allocation6 + $0x15e0] sm:$0xf0]  ;;  %v841_v48 = vrot.slane %v16130_v17, 4  ;;  %v15325_v21 = vld [vmem:[#allocation6 + $0x1508] sm:$0xf0] }
 0x198   :  { %7045 = vmatpush.bf16.msrb.mxu1 %v13605_v23  ;;  %v6583_v23 = vadd.f32 %v6582_v32, %v6564_v38  ;;  %v13701_v32 = vor.u32 %v15388_v5, %v13700_v42  ;;  %v6547_v38 = vadd.f32 %v17147_v14, %v6528_v1  ;;  %v17262_v42 = vpack.c.b16 %v1249_v59, %v1245_v7  ;;  %v17280_v7 = vld [vmem:[#allocation6 + $0x16c8] sm:$0xf]  ;;  %v13352_v59 = vld [vmem:[#allocation6 + $0x1440] sm:$0xf] }
 0x199   :  { %v842_v1 = vrot.slane %v16136_v18, 4  ;;  %v17276_v28 = vsel %vm167_vm0, %v1260_v58, %v17222_v37  ;;  %v17288_v18 = vsel %vm167_vm0, %v17203_v11, %v17247_v45  ;;  %v13365_v37 = vor.u32 %v15304_v33, %v13364_v25  ;;  %v14673_v25 = vld [vmem:[#allocation6 + $0xac] sm:$0xf]  ;;  %v13772_v33 = vld [vmem:[#allocation6 + $0x1788] sm:$0xf] }
 0x19a   :  { %7062 = vmatpush.bf16.msrb.mxu2 %v13725_v15  ;;  %v13376_v15 = vld [vmem:[#allocation6 + $0x1470] sm:$0xf]  ;;  %7027 = vmatpush.bf16.msrb.mxu0 %v13497_v41  ;;  %v6602_v51 = vadd.f32 %v17180_v34, %v6583_v23  ;;  %v15355_v41 = vld [vmem:[#allocation6 + $0x15f8] sm:$0xf0]  ;;  %18971 = vst [vmem:[#allocation73_spill] sm:$0xff] %v17288_v18  ;;  %v844_v58 = vrot.slane %v16133_v6, 4 }
 0x19b   :  { %7009 = vmatpush.bf16.msra.mxu3 %v13389_v53  ;;  %v13377_v10 = vor.u32 %v15307_v29, %v13376_v15  ;;  %v6565_v22 = vpop.f32.mrf.mxu3  ;;  %v15328_v53 = vld [vmem:[#allocation6 + $0x1520] sm:$0xf0]  ;;  %v830_v15 = vsel %vm16265_vm14, %v813_v60, 0.0  ;;  %v13569_v29 = vor.u32 %v15355_v41, %v13568_v12  ;;  %v17301_v60 = vsel %vm840_vm15, %v841_v48, %v842_v1 }
 0x19c   :  { %7046 = vmatpush.bf16.msrb.mxu1 %v13593_v55  ;;  %v17257_v34 = vadd.f32 %v6620_v44, %v6602_v51  ;;  %v13688_v55 = vld [vmem:[#allocation6 + $0x16e0] sm:$0xf]  ;;  %v6566_v56 = vadd.f32 %v6565_v22, %v6547_v38  ;;  %v6622_v5 = vpop.f32.mrf.mxu2  ;;  %v17264_v14 = vpop.f32.mrf.mxu1  ;;  %v17266_v44 = vld [vmem:[#allocation6 + $0x15d8] sm:$0xf]  ;;  %v13461_v31 = vor.u32 %v15328_v53, %v13460_v30  ;;  %v15406_v30 = vld [vmem:[#allocation6 + $0x1790] sm:$0xf0] }
 0x19d   :  { %v17272_v23 = vpop.f32.mrf.mxu0  ;;  %v18973_v41 = vld [vmem:[#allocation27_spill] sm:$0xff]  ;;  %v17305_v6 = vpop.permute.xlu1 %1361  ;;  %v10846_v53 = vld [vmem:[#allocation6 + $0xb4] sm:$0xf0] }
 0x19e   :  { %7063 = vmatpush.bf16.msrb.mxu2 %v13713_v3  ;;  %v15385_v3 = vld [vmem:[#allocation6 + $0x16e8] sm:$0xf0]  ;;  %7028 = vmatpush.bf16.msrb.mxu0 %v13485_v20  ;;  %v17282_v20 = vld [vmem:[#allocation6 + $0x16d0] sm:$0xf0]  ;;  %v6585_v17 = vadd.f32 %v17234_v36, %v6566_v56  ;;  %v18813_v36 = vrot.slane %v18973_v41, 4 }
 0x19f   :  { %7010 = vmatpush.bf16.msra.mxu3 %v13377_v10  ;;  %v13689_v51 = vor.u32 %v15385_v3, %v13688_v55  ;;  %v18972_v10 = vld [vmem:[#allocation26_spill] sm:$0xff]  ;;  %v17298_v38 = vld [vmem:[#allocation6 + $0x15c0] sm:$0xf]  ;;  %v18974_v55 = vld [vmem:[#allocation28_spill] sm:$0xff]  ;;  %v17307_v22 = vpop.permute.xlu0 %1359  ;;  %v13677_v48 = vor.u32 %v17282_v20, %v17280_v7 }
 0x1a0   :  { %7047 = vmatpush.bf16.msrb.mxu1 %v13581_v54  ;;  %v15301_v54 = vld [vmem:[#allocation6 + $0x1448] sm:$0xf0]  ;;  %v845_v12 = vrot.slane %v18972_v10, 4  ;;  %6937 = vmatmul.bf16.vlgmr.msrb.gmra.mxu3 %v17262_v42  ;;  %v6604_v11 = vadd.f32 %v17193_v52, %v6585_v17  ;;  %v13557_v52 = vor.u32 %v17268_v16, %v17266_v44  ;;  %v15379_v3 = vld [vmem:[#allocation6 + $0x16b8] sm:$0xf0] }
 0x1a1   :  { %6956 = vmatmul.bf16.vlgmr.msra.gmra.mxu0 %v17276_v28  ;;  %v13353_v17 = vor.u32 %v15301_v54, %v13352_v59  ;;  %v15349_v10 = vld [vmem:[#allocation6 + $0x15c8] sm:$0xf0]  ;;  %v10942_v7 = vld [vmem:[#allocation6 + $0x174] sm:$0xf0]  ;;  %v17331_v54 = vsel %vm167_vm0, %v17307_v22, %v17305_v6 }
 0x1a2   :  { %7064 = vmatpush.bf16.msrb.mxu2 %v13701_v32  ;;  %v17290_v32 = vld [vmem:[#allocation6 + $0x1500] sm:$0xf]  ;;  %7029 = vmatpush.bf16.msrb.mxu0 %v13473_v46  ;;  %v17309_v46 = vpack.c.bf16 %v830_v15, %v829_v8  ;;  %v17313_v56 = vadd.f32 %v6622_v5, %v6604_v11  ;;  %v846_v44 = vsel %vm840_vm15, %v844_v58, %v845_v12  ;;  %v10798_v16 = vld [vmem:[#allocation6 + $0x54] sm:$0xf0] }
 0x1a3   :  { %6994 = vmatmul.bf16.vlgmr.msra.gmra.mxu2 %v17288_v18  ;;  %7011 = vmatpush.bf16.msra.mxu3 %v13365_v37  ;;  %v6634_v8 = vpop.f32.mrf.mxu3  ;;  %v13449_v15 = vor.u32 %v15325_v21, %v17290_v32  ;;  %v854_v5 = vsel %vm840_vm15, %v842_v1, %v18813_v36  ;;  %18976 = vst [vmem:[#allocation26_spill] sm:$0xff] %v17331_v54  ;;  %v15376_v36 = vld [vmem:[#allocation6 + $0x16a0] sm:$0xf0]  ;;  %v13760_v18 = vld [vmem:[#allocation6 + $0x1770] sm:$0xf] }
 0x1a4   :  { %7048 = vmatpush.bf16.msrb.mxu1 %v13569_v29  ;;  %v879_v29 = vsel %vm16502_vm11, %v17301_v60, 0.0  ;;  %v6635_v20 = vadd.f32 %v6634_v8, %v17191_v57  ;;  %v6691_v37 = vpop.f32.mrf.mxu2  ;;  %v17326_v59 = vpop.f32.mrf.mxu1  ;;  %v13773_v32 = vor.u32 %v15406_v30, %v13772_v33  ;;  %v10849_v1 = vor.u32 %v14673_v25, %v10846_v53  ;;  %v18978_v53 = vld [vmem:[#allocation16_spill] sm:$0xff] }
 0x1a5   :  { %v17335_v21 = vpop.f32.mrf.mxu0  ;;  %v1254_v58 = vunpack.c.h.b16 %v17309_v46  ;;  %v13545_v11 = vor.u32 %v15349_v10, %v17298_v38  ;;  %v13665_v57 = vor.u32 %v15379_v3, %v13664_v9  ;;  %v18977_v60 = vrot.slane %v18974_v55, 4  ;;  %v15403_v38 = vld [vmem:[#allocation6 + $0x1778] sm:$0xf0]  ;;  %v14694_v10 = vld [vmem:[#allocation6 + $0x154] sm:$0xf] }
 0x1a6   :  { %7065 = vmatpush.bf16.msrb.mxu2 %v13689_v51  ;;  %7030 = vmatpush.bf16.msrb.mxu0 %v13461_v31  ;;  %v14697_v51 = vld [vmem:[#allocation6 + $0x16c] sm:$0xf]  ;;  %v17333_v31 = vld [vmem:[#allocation6 + $0x1698] sm:$0xf]  ;;  %v6654_v33 = vadd.f32 %v17272_v23, %v6635_v20  ;;  %v880_v25 = vsel %vm16502_vm11, %v846_v44, 0.0  ;;  %v1253_v9 = vunpack.c.l.b16 %v17309_v46  ;;  %v883_v3 = vsel %vm16514_vm12, %v854_v5, 0.0 }
 0x1a7   :  { %v856_v8 = vsel %vm840_vm15, %v845_v12, %v18977_v60  ;;  %7012 = vmatpush.bf16.msra.mxu3 %v13353_v17  ;;  %v10945_v30 = vor.u32 %v14697_v51, %v10942_v7  ;;  %6980 = vmatmul.bf16.gmra.mxu1 %v17331_v54  ;;  %v10930_v23 = vld [vmem:[#allocation6 + $0x15c] sm:$0xf0]  ;;  %v10837_v51 = vor.u32 %v14670_v24, %v10834_v0  ;;  %v18981_v46 = vunpack.c.h.b16 %v17161_v43  ;;  %v15373_v54 = vld [vmem:[#allocation6 + $0x1688] sm:$0xf0]  ;;  %v11638_v12 = vld [vmem:[#allocation6 + $0x6e4] sm:$0xf0] }
 0x1a8   :  { %7049 = vmatpush.bf16.msrb.mxu1 %v13557_v52  ;;  %v847_v52 = vrot.slane %v18978_v53, 4  ;;  %v6673_v20 = vadd.f32 %v17227_v39, %v6654_v33  ;;  %v884_v44 = vsel %vm16514_vm12, %v856_v8, 0.0  ;;  %v13761_v7 = vor.u32 %v15403_v38, %v13760_v18  ;;  %v18983_v0 = vld [vmem:[#allocation19_spill] sm:$0xff]  ;;  %v14667_v8 = vld [vmem:[#allocation6 + $0x7c] sm:$0xf] }
 0x1a9   :  { %v1264_v60 = vpack.c.b16 %v18981_v46, %v1254_v58  ;;  %v17358_v5 = vpack.c.bf16 %v880_v25, %v879_v29  ;;  %v13653_v53 = vor.u32 %v15376_v36, %v17333_v31  ;;  %v851_v18 = vrot.slane %v18983_v0, 4  ;;  %v10822_v58 = vld [vmem:[#allocation6 + $0x84] sm:$0xf0]  ;;  %v14691_v25 = vld [vmem:[#allocation6 + $0x13c] sm:$0xf] }
 0x1aa   :  { %7066 = vmatpush.bf16.msrb.mxu2 %v13677_v48  ;;  %7031 = vmatpush.bf16.msrb.mxu0 %v13449_v15  ;;  %v18980_v48 = vld [vmem:[#allocation18_spill] sm:$0xff]  ;;  %v17356_v15 = vpop.permute.xlu2 %1363  ;;  %v17361_v39 = vadd.f32 %v6691_v37, %v6673_v20  ;;  %v17365_v38 = vpack.c.bf16 %v884_v44, %v883_v3  ;;  %v18984_v36 = vld [vmem:[#allocation20_spill] sm:$0xff]  ;;  %v10825_v0 = vor.u32 %v14667_v8, %v10822_v58  ;;  %v10810_v37 = vld [vmem:[#allocation6 + $0x6c] sm:$0xf0] }
 0x1ab   :  { %v848_v17 = vrot.slane %v18980_v48, 4  ;;  %7085 = vmatpush.bf16.msrb.mxu3 %v13773_v32  ;;  %v13640_v48 = vld [vmem:[#allocation6 + $0x1680] sm:$0xf]  ;;  %v10933_v32 = vor.u32 %v14694_v10, %v10930_v23  ;;  %v6636_v33 = vpop.f32.mrf.mxu3  ;;  %v18822_v31 = vrot.slane %v18984_v36, 4  ;;  %v18986_v10 = vunpack.c.l.b16 %v17161_v43  ;;  %v14721_v3 = vld [vmem:[#allocation6 + $0x22c] sm:$0xf] }
 0x1ac   :  { %7050 = vmatpush.bf16.msrb.mxu1 %v13545_v11  ;;  %v18985_v11 = vld [vmem:[#allocation21_spill] sm:$0xff]  ;;  %v6693_v20 = vpop.f32.mrf.mxu2  ;;  %v17377_v46 = vpop.f32.mrf.mxu1  ;;  %v11038_v44 = vld [vmem:[#allocation6 + $0x234] sm:$0xf0]  ;;  %v1387_v43 = vunpack.c.h.b16 %v17358_v5  ;;  %v11026_v58 = vld [vmem:[#allocation6 + $0x21c] sm:$0xf0] }
 0x1ad   :  { %v17368_v29 = vsel %vm840_vm15, %v847_v52, %v848_v17  ;;  %v17375_v23 = vpack.c.b16 %v18986_v10, %v1253_v9  ;;  %v17382_v52 = vsel %vm167_vm0, %v17305_v6, %v17356_v15  ;;  %v13641_v9 = vor.u32 %v15373_v54, %v13640_v48  ;;  %v14664_v10 = vld [vmem:[#allocation6 + $0x64] sm:$0xf] }
 0x1ae   :  { %7100 = vmatpush.bf16.msra.mxu0 %v10849_v1  ;;  %7067 = vmatpush.bf16.msrb.mxu2 %v13665_v57  ;;  %v18982_v1 = vld [vmem:[#allocation17_spill] sm:$0xff]  ;;  %v10918_v57 = vld [vmem:[#allocation6 + $0x144] sm:$0xf0]  ;;  %v858_v54 = vsel %vm840_vm15, %v848_v17, %v18822_v31  ;;  %v14688_v48 = vld [vmem:[#allocation6 + $0x124] sm:$0xf] }
 0x1af   :  { %v850_v24 = vrot.slane %v18982_v1, 4  ;;  %7086 = vmatpush.bf16.msrb.mxu3 %v13761_v7  ;;  %v6658_v1 = vpop.f32.mrf.mxu0  ;;  %v10921_v7 = vor.u32 %v14691_v25, %v10918_v57  ;;  %v15400_v25 = vld [vmem:[#allocation6 + $0x1760] sm:$0xf0]  ;;  %v18988_v57 = vmov 0.0   ;;  %v14661_v31 = vld [vmem:[#allocation6 + $0x4c] sm:$0xf] }
 0x1b0   :  { %7119 = vmatpush.bf16.msra.mxu1 %v10945_v30  ;;  %v6637_v30 = vadd.f32 %v6636_v33, %v17224_v40  ;;  %v17386_v40 = vsel %vm167_vm0, %v1264_v60, %v17307_v22  ;;  %v1391_v22 = vunpack.c.h.b16 %v17365_v38  ;;  %v18987_v60 = vrot.slane %v18985_v11, 4  ;;  %6942 = vmatmul.bf16.gmra.mxu3 %v17375_v23 }
 0x1b1   :  { %v852_v6 = vsel %vm840_vm15, %v850_v24, %v851_v18  ;;  %v14718_v24 = vld [vmem:[#allocation6 + $0x214] sm:$0xf]  ;;  %6961 = vmatmul.bf16.gmra.mxu0 %v17386_v40 }
 0x1b2   :  { %7101 = vmatpush.bf16.msra.mxu0 %v10837_v51  ;;  %v6656_v33 = vadd.f32 %v17335_v21, %v6637_v30  ;;  %7068 = vmatpush.bf16.msrb.mxu2 %v13653_v53  ;;  %v881_v51 = vsel %vm16502_vm11, %v17368_v29, 0.0  ;;  %v860_v21 = vsel %vm840_vm15, %v851_v18, %v18987_v60  ;;  %v11041_v53 = vor.u32 %v14721_v3, %v11038_v44  ;;  %v13748_v29 = vld [vmem:[#allocation6 + $0x1758] sm:$0xf] }
 0x1b3   :  { %6999 = vmatmul.bf16.gmra.mxu2 %v17382_v52  ;;  %v882_v17 = vsel %vm16502_vm11, %v852_v6, 0.0  ;;  %v10813_v18 = vor.u32 %v14664_v10, %v10810_v37  ;;  %v17408_v30 = vrot.slane %v18988_v57, 4  ;;  %v13749_v3 = vor.u32 %v15400_v25, %v13748_v29  ;;  %v6639_v6 = vpop.f32.mrf.mxu3  ;;  %v14685_v10 = vld [vmem:[#allocation6 + $0x10c] sm:$0xf]  ;;  %v13736_v57 = vld [vmem:[#allocation6 + $0x1740] sm:$0xf] }
 0x1b4   :  { %7120 = vmatpush.bf16.msra.mxu1 %v10933_v32  ;;  %v10906_v32 = vld [vmem:[#allocation6 + $0x12c] sm:$0xf0]  ;;  %v6675_v8 = vadd.f32 %v17264_v14, %v6656_v33  ;;  %v885_v14 = vsel %vm16514_vm12, %v858_v54, 0.0  ;;  %v886_v33 = vsel %vm16514_vm12, %v860_v21, 0.0  ;;  %v11029_v37 = vor.u32 %v14718_v24, %v11026_v58  ;;  %v17419_v29 = vpop.f32.mrf.mxu1  ;;  %v14715_v21 = vld [vmem:[#allocation6 + $0x1fc] sm:$0xf] }
 0x1b5   :  { %v10909_v60 = vor.u32 %v14688_v48, %v10906_v32  ;;  %7087 = vmatpush.bf16.msrb.mxu3 %v13749_v3  ;;  %v17421_v54 = vpack.c.bf16 %v882_v17, %v881_v51  ;;  %v17423_v32 = vpack.c.bf16 %v886_v33, %v885_v14  ;;  %v10801_v24 = vor.u32 %v14661_v31, %v10798_v16  ;;  %v14658_v58 = vld [vmem:[#allocation6 + $0x34] sm:$0xf]  ;;  %v10786_v17 = vld [vmem:[#allocation6 + $0x3c] sm:$0xf0]  ;;  %v15397_v3 = vld [vmem:[#allocation6 + $0x1748] sm:$0xf0] }
 0x1b6   :  { %7102 = vmatpush.bf16.msra.mxu0 %v10825_v0  ;;  %v17410_v44 = vadd.f32 %v6693_v20, %v6675_v8  ;;  %7069 = vmatpush.bf16.msrb.mxu2 %v13641_v9  ;;  %v17416_v0 = vpack.c.b16 %v1391_v22, %v1387_v43  ;;  %v10894_v20 = vld [vmem:[#allocation6 + $0x114] sm:$0xf0]  ;;  %v6640_v9 = vadd.f32 %v6639_v6, %v17257_v34  ;;  %v6696_v8 = vpop.f32.mrf.mxu2  ;;  %v18989_v43 = vrot.slane %v18973_v41, 4  ;;  %v14682_v14 = vld [vmem:[#allocation6 + $0xf4] sm:$0xf] }
 0x1b7   :  { %v6660_v48 = vpop.f32.mrf.mxu0  ;;  %v10897_v25 = vor.u32 %v14685_v10, %v10894_v20  ;;  %v891_v41 = vsel %vm16590_vm9, %v17408_v30, 0.0  ;;  %v10882_v33 = vld [vmem:[#allocation6 + $0xfc] sm:$0xf0]  ;;  %v13737_v16 = vor.u32 %v15397_v3, %v13736_v57  ;;  %v14712_v6 = vld [vmem:[#allocation6 + $0x1e4] sm:$0xf]  ;;  %v1388_v10 = vunpack.c.l.b16 %v17421_v54 }
 0x1b8   :  { %7121 = vmatpush.bf16.msra.mxu1 %v10921_v7  ;;  %v11014_v7 = vld [vmem:[#allocation6 + $0x204] sm:$0xf0]  ;;  %v862_v22 = vsel %vm840_vm15, %v18989_v43, %v17408_v30  ;;  %v6659_v51 = vadd.f32 %v6658_v1, %v6640_v9  ;;  %v1390_v1 = vunpack.c.l.b16 %v17365_v38  ;;  %v1392_v20 = vunpack.c.l.b16 %v17423_v32 }
 0x1b9   :  { %7051 = vmatmul.bf16.vlgmr.msrb.gmra.mxu1 %v17416_v0  ;;  %v10789_v9 = vor.u32 %v14658_v58, %v10786_v17  ;;  %7088 = vmatpush.bf16.msrb.mxu3 %v13737_v16  ;;  %v10885_v38 = vor.u32 %v14682_v14, %v10882_v33  ;;  %v10774_v43 = vld [vmem:[#allocation6 + $0x24] sm:$0xf0]  ;;  %v14709_v17 = vld [vmem:[#allocation6 + $0x1cc] sm:$0xf]  ;;  %v14652_v16 = vld [vmem:[#allocation6 + $0x4] sm:$0xf] }
 0x1ba   :  { %7138 = vmatpush.bf16.msra.mxu2 %v11041_v53  ;;  %7103 = vmatpush.bf16.msra.mxu0 %v10813_v18  ;;  %v18990_v53 = vrot.slane %v18974_v55, 4  ;;  %v1386_v18 = vunpack.c.l.b16 %v17358_v5  ;;  %v11017_v55 = vor.u32 %v14715_v21, %v11014_v7  ;;  %v6678_v31 = vadd.f32 %v17326_v59, %v6659_v51  ;;  %v14655_v7 = vld [vmem:[#allocation6 + $0x1c] sm:$0xf]  ;;  %v10870_v57 = vld [vmem:[#allocation6 + $0xe4] sm:$0xf0] }
 0x1bb   :  { %v17448_v59 = vpack.c.bf16 %v891_v41, %v891_v41  ;;  %v14679_v51 = vld [vmem:[#allocation6 + $0xdc] sm:$0xf]  ;;  %v10990_v41 = vld [vmem:[#allocation6 + $0x1d4] sm:$0xf0]  ;;  %v17462_v33 = vpack.c.b16 %v1392_v20, %v1388_v10  ;;  %v18992_v10 = vrot.slane %v18985_v11, 4 }
 0x1bc   :  { %v863_v34 = vsel %vm840_vm15, %v18990_v53, %v17408_v30  ;;  %7122 = vmatpush.bf16.msra.mxu1 %v10909_v60  ;;  %v887_v60 = vsel %vm16577_vm8, %v862_v22, 0.0  ;;  %v17446_v21 = vadd.f32 %v6696_v8, %v6678_v31  ;;  %v6641_v22 = vpop.f32.mrf.mxu3  ;;  %v17455_v8 = vpop.f32.mrf.mxu1  ;;  %v10762_v31 = vld [vmem:[#allocation6 + $0xc] sm:$0xf0]  ;;  %v10993_v20 = vor.u32 %v14709_v17, %v10990_v41 }
 0x1bd   :  { %v888_v5 = vsel %vm16577_vm8, %v863_v34, 0.0  ;;  %v6642_v3 = vadd.f32 %v6641_v22, %v17313_v56  ;;  %v14706_v22 = vld [vmem:[#allocation6 + $0x1b4] sm:$0xf] }
 0x1be   :  { %7139 = vmatpush.bf16.msra.mxu2 %v11029_v37  ;;  %v11002_v37 = vld [vmem:[#allocation6 + $0x1ec] sm:$0xf0]  ;;  %7104 = vmatpush.bf16.msra.mxu0 %v10801_v24  ;;  %v17450_v53 = vpack.c.bf16 %v888_v5, %v887_v60  ;;  %v17453_v24 = vpack.c.b16 %v1390_v1, %v1386_v18  ;;  %v6698_v58 = vpop.f32.mrf.mxu2  ;;  %v18824_v18 = vunpack.c.h.b16 %v17448_v59  ;;  %v18991_v1 = vrot.slane %v18984_v36, 4 }
 0x1bf   :  { %v11005_v34 = vor.u32 %v14712_v6, %v11002_v37  ;;  %v6729_v14 = vpop.f32.mrf.mxu0  ;;  %v6661_v56 = vadd.f32 %v6660_v48, %v6642_v3  ;;  %v10873_v5 = vor.u32 %v14679_v51, %v10870_v57  ;;  %v14676_v6 = vld [vmem:[#allocation6 + $0xc4] sm:$0xf]  ;;  %v865_v48 = vsel %vm840_vm15, %v18992_v10, %v17408_v30  ;;  %v10978_v51 = vld [vmem:[#allocation6 + $0x1bc] sm:$0xf0]  ;;  %v11326_v57 = vld [vmem:[#allocation6 + $0x474] sm:$0xf0] }
 0x1c0   :  { %7123 = vmatpush.bf16.msra.mxu1 %v10897_v25  ;;  %v17460_v25 = vsel %vm167_vm0, %v17247_v45, %v17249_v13  ;;  %v864_v60 = vsel %vm840_vm15, %v18991_v1, %v17408_v30  ;;  %v14745_v45 = vld [vmem:[#allocation6 + $0x2ec] sm:$0xf]  ;;  %v11134_v13 = vld [vmem:[#allocation6 + $0x2f4] sm:$0xf0]  ;;  %v1395_v37 = vunpack.c.h.b16 %v17450_v53  ;;  %v10765_v30 = vor.u32 %v14652_v16, %v10762_v31  ;;  %v11122_v1 = vld [vmem:[#allocation6 + $0x2dc] sm:$0xf0] }
 0x1c1   :  { %7013 = vmatmul.bf16.vlgmr.msra.gmra.mxu3 %v17460_v25  ;;  %7032 = vmatmul.bf16.vlgmr.msrb.gmra.mxu0 %v17453_v24  ;;  %v6680_v36 = vadd.f32 %v17377_v46, %v6661_v56  ;;  %v889_v11 = vsel %vm16577_vm8, %v864_v60, 0.0  ;;  %v890_v17 = vsel %vm16577_vm8, %v865_v48, 0.0  ;;  %v14742_v56 = vld [vmem:[#allocation6 + $0x2d4] sm:$0xf]  ;;  %v11218_v31 = vld [vmem:[#allocation6 + $0x39c] sm:$0xf0] }
 0x1c2   :  { %7140 = vmatpush.bf16.msra.mxu2 %v11017_v55  ;;  %7105 = vmatpush.bf16.msra.mxu0 %v10789_v9  ;;  %v10777_v55 = vor.u32 %v14655_v7, %v10774_v43  ;;  %v10858_v9 = vld [vmem:[#allocation6 + $0xcc] sm:$0xf0]  ;;  %v14769_v7 = vld [vmem:[#allocation6 + $0x3ac] sm:$0xf]  ;;  %v11230_v43 = vld [vmem:[#allocation6 + $0x3b4] sm:$0xf0] }
 0x1c3   :  { %7070 = vmatmul.bf16.vlgmr.msrb.gmra.mxu2 %v17462_v33  ;;  %v17480_v3 = vadd.f32 %v6698_v58, %v6680_v36  ;;  %v10861_v41 = vor.u32 %v14676_v6, %v10858_v9  ;;  %v11233_v46 = vor.u32 %v14769_v7, %v11230_v43  ;;  %v14766_v16 = vld [vmem:[#allocation6 + $0x394] sm:$0xf]  ;;  %v10966_v6 = vld [vmem:[#allocation6 + $0x1a4] sm:$0xf0]  ;;  %v11125_v9 = vor.u32 %v14742_v56, %v11122_v1 }
 0x1c4   :  { %7124 = vmatpush.bf16.msra.mxu1 %v10885_v38  ;;  %v11137_v38 = vor.u32 %v14745_v45, %v11134_v13  ;;  %v6710_v45 = vpop.f32.mrf.mxu3  ;;  %v17486_v13 = vpack.c.b16 %v18824_v18, %v1395_v37  ;;  %v17489_v10 = vpop.f32.mrf.mxu1  ;;  %v17491_v7 = vpack.c.bf16 %v890_v17, %v889_v11  ;;  %v14790_v43 = vld [vmem:[#allocation6 + $0x454] sm:$0xf]  ;;  %v11314_v37 = vld [vmem:[#allocation6 + $0x45c] sm:$0xf0]  ;;  %v10954_v17 = vld [vmem:[#allocation6 + $0x18c] sm:$0xf0] }
 0x1c5   :  { %v6711_v58 = vadd.f32 %v6710_v45, %v17361_v39  ;;  %v1398_v39 = vunpack.c.l.b16 %v17448_v59  ;;  %v11290_v18 = vld [vmem:[#allocation6 + $0x42c] sm:$0xf0] }
 0x1c6   :  { %7141 = vmatpush.bf16.msra.mxu2 %v11005_v34  ;;  %7106 = vmatpush.bf16.msra.mxu0 %v10777_v55  ;;  %v14793_v34 = vld [vmem:[#allocation6 + $0x46c] sm:$0xf]  ;;  %v10981_v55 = vor.u32 %v14706_v22, %v10978_v51  ;;  %v6767_v60 = vpop.f32.mrf.mxu2  ;;  %v14739_v22 = vld [vmem:[#allocation6 + $0x2bc] sm:$0xf]  ;;  %v11110_v51 = vld [vmem:[#allocation6 + $0x2c4] sm:$0xf0]  ;;  %v1396_v56 = vunpack.c.l.b16 %v17491_v7 }
 0x1c7   :  { %7157 = vmatpush.bf16.msra.mxu3 %v11137_v38  ;;  %v11329_v48 = vor.u32 %v14793_v34, %v11326_v57  ;;  %v6731_v38 = vpop.f32.mrf.mxu0  ;;  %v6730_v36 = vadd.f32 %v6729_v14, %v6711_v58  ;;  %v14763_v34 = vld [vmem:[#allocation6 + $0x37c] sm:$0xf]  ;;  %v11206_v57 = vld [vmem:[#allocation6 + $0x384] sm:$0xf0]  ;;  %v14700_v14 = vld [vmem:[#allocation6 + $0x184] sm:$0xf] }
 0x1c8   :  { %7125 = vmatpush.bf16.msra.mxu1 %v10873_v5  ;;  %v14703_v5 = vld [vmem:[#allocation6 + $0x19c] sm:$0xf]  ;;  %v14817_v58 = vld [vmem:[#allocation6 + $0x52c] sm:$0xf] }
 0x1c9   :  { %7056 = vmatmul.bf16.gmra.mxu1 %v17486_v13  ;;  %v10969_v45 = vor.u32 %v14703_v5, %v10966_v6  ;;  %v6749_v11 = vadd.f32 %v17419_v29, %v6730_v36  ;;  %v1366_v6 = vpop.permute.xlu1 %1365  ;;  %v10957_v29 = vor.u32 %v14700_v14, %v10954_v17  ;;  %v14784_v17 = vld [vmem:[#allocation6 + $0x424] sm:$0xf] }
 0x1ca   :  { %7142 = vmatpush.bf16.msra.mxu2 %v10993_v20  ;;  %7107 = vmatpush.bf16.msra.mxu0 %v10765_v30  ;;  %v11221_v20 = vor.u32 %v14766_v16, %v11218_v31  ;;  %v1394_v30 = vunpack.c.l.b16 %v17450_v53  ;;  %v11209_v16 = vor.u32 %v14763_v34, %v11206_v57  ;;  %v11302_v31 = vld [vmem:[#allocation6 + $0x444] sm:$0xf0]  ;;  %v11422_v53 = vld [vmem:[#allocation6 + $0x534] sm:$0xf0]  ;;  %v17505_v34 = vpack.c.b16 %v1398_v39, %v1396_v56 }
 0x1cb   :  { %7158 = vmatpush.bf16.msra.mxu3 %v11125_v9  ;;  %v17498_v1 = vadd.f32 %v6767_v60, %v6749_v11  ;;  %v11098_v9 = vld [vmem:[#allocation6 + $0x2ac] sm:$0xf0]  ;;  %v14760_v60 = vld [vmem:[#allocation6 + $0x364] sm:$0xf]  ;;  %v11425_v11 = vor.u32 %v14817_v58, %v11422_v53  ;;  %v11182_v56 = vld [vmem:[#allocation6 + $0x354] sm:$0xf0] }
 0x1cc   :  { %7126 = vmatpush.bf16.msra.mxu1 %v10861_v41  ;;  %v11317_v41 = vor.u32 %v14790_v43, %v11314_v37  ;;  %v6712_v5 = vpop.f32.mrf.mxu3  ;;  %v17501_v43 = vpack.c.b16 %v1398_v39, %v1394_v30  ;;  %v17509_v30 = vsel %vm167_vm0, %v17356_v15, %v1366_v6  ;;  %v14757_v39 = vld [vmem:[#allocation6 + $0x34c] sm:$0xf]  ;;  %v11278_v6 = vld [vmem:[#allocation6 + $0x414] sm:$0xf0] }
 0x1cd   :  { %v6713_v36 = vadd.f32 %v6712_v5, %v17410_v44  ;;  %v14814_v44 = vld [vmem:[#allocation6 + $0x514] sm:$0xf]  ;;  %v14733_v5 = vld [vmem:[#allocation6 + $0x28c] sm:$0xf] }
 0x1ce   :  { %7176 = vmatpush.bf16.msrb.mxu0 %v11233_v46  ;;  %7143 = vmatpush.bf16.msra.mxu2 %v10981_v55  ;;  %v11113_v46 = vor.u32 %v14739_v22, %v11110_v51  ;;  %v14787_v55 = vld [vmem:[#allocation6 + $0x43c] sm:$0xf]  ;;  %v6769_v37 = vpop.f32.mrf.mxu2  ;;  %v17503_v22 = vpop.f32.mrf.mxu1  ;;  %v14781_v58 = vld [vmem:[#allocation6 + $0x40c] sm:$0xf] }
 0x1cf   :  { %v6734_v51 = vpop.f32.mrf.mxu0  ;;  %v11305_v57 = vor.u32 %v14787_v55, %v11302_v31  ;;  %v11089_v31 = vor.u32 %v14733_v5, %v11086_v63  ;;  %v18993_v5 = vld [vmem:[#allocation42_spill] sm:$0xff] }
 0x1d0   :  { %7195 = vmatpush.bf16.msrb.mxu1 %v11329_v48  ;;  %v14736_v48 = vld [vmem:[#allocation6 + $0x2a4] sm:$0xf]  ;;  %7159 = vmatpush.bf16.msra.mxu3 %v11113_v46  ;;  %v11410_v46 = vld [vmem:[#allocation6 + $0x51c] sm:$0xf0] }
 0x1d1   :  { %v11101_v14 = vor.u32 %v14736_v48, %v11098_v9  ;;  %7018 = vmatmul.bf16.gmra.mxu3 %v17509_v30  ;;  %7037 = vmatmul.bf16.gmra.mxu0 %v17501_v43  ;;  %v11413_v15 = vor.u32 %v14814_v44, %v11410_v46  ;;  %v11185_v48 = vor.u32 %v14757_v39, %v11182_v56  ;;  %v11398_v9 = vld [vmem:[#allocation6 + $0x504] sm:$0xf0]  ;;  %v14778_v44 = vld [vmem:[#allocation6 + $0x3f4] sm:$0xf]  ;;  %v14808_v46 = vld [vmem:[#allocation6 + $0x4e4] sm:$0xf] }
 0x1d2   :  { %7177 = vmatpush.bf16.msrb.mxu0 %v11221_v20  ;;  %7144 = vmatpush.bf16.msra.mxu2 %v10969_v45  ;;  %v11194_v20 = vld [vmem:[#allocation6 + $0x36c] sm:$0xf0]  ;;  %v6732_v45 = vadd.f32 %v6731_v38, %v6713_v36  ;;  %v11074_v36 = vld [vmem:[#allocation6 + $0x27c] sm:$0xf0]  ;;  %v14727_v39 = vld [vmem:[#allocation6 + $0x25c] sm:$0xf] }
 0x1d3   :  { %7075 = vmatmul.bf16.gmra.mxu2 %v17505_v34  ;;  %v11062_v56 = vld [vmem:[#allocation6 + $0x264] sm:$0xf0] }
 0x1d4   :  { %7196 = vmatpush.bf16.msrb.mxu1 %v11317_v41  ;;  %v11197_v41 = vor.u32 %v14760_v60, %v11194_v20  ;;  %v6751_v38 = vadd.f32 %v17455_v8, %v6732_v45  ;;  %7160 = vmatpush.bf16.msra.mxu3 %v11101_v14  ;;  %v6715_v53 = vpop.f32.mrf.mxu3  ;;  %v14730_v8 = vld [vmem:[#allocation6 + $0x274] sm:$0xf] }
 0x1d5   :  { %v6716_v60 = vadd.f32 %v6715_v53, %v17446_v21  ;;  %v1389_v53 = vunpack.c.h.b16 %v17421_v54 }
 0x1d6   :  { %7178 = vmatpush.bf16.msrb.mxu0 %v11209_v16  ;;  %7145 = vmatpush.bf16.msra.mxu2 %v10957_v29  ;;  %v11293_v16 = vor.u32 %v14784_v17, %v11290_v18  ;;  %v17515_v55 = vadd.f32 %v6769_v37, %v6751_v38  ;;  %v14811_v29 = vld [vmem:[#allocation6 + $0x4fc] sm:$0xf]  ;;  %v6772_v20 = vpop.f32.mrf.mxu2  ;;  %v14754_v18 = vld [vmem:[#allocation6 + $0x334] sm:$0xf]  ;;  %v11170_v37 = vld [vmem:[#allocation6 + $0x33c] sm:$0xf0]  ;;  %v11077_v17 = vor.u32 %v14730_v8, %v11074_v36 }
 0x1d7   :  { %v6736_v45 = vpop.f32.mrf.mxu0  ;;  %v6735_v63 = vadd.f32 %v6734_v51, %v6716_v60  ;;  %v11401_v14 = vor.u32 %v14811_v29, %v11398_v9  ;;  %v11173_v21 = vor.u32 %v14754_v18, %v11170_v37  ;;  %v11386_v38 = vld [vmem:[#allocation6 + $0x4ec] sm:$0xf0]  ;;  %v14775_v9 = vld [vmem:[#allocation6 + $0x3dc] sm:$0xf]  ;;  %v11254_v8 = vld [vmem:[#allocation6 + $0x3e4] sm:$0xf0] }
 0x1d8   :  { %7197 = vmatpush.bf16.msrb.mxu1 %v11305_v57  ;;  %v17518_v57 = vpop.f32.mrf.mxu1  ;;  %7161 = vmatpush.bf16.msra.mxu3 %v11089_v31  ;;  %v11158_v31 = vld [vmem:[#allocation6 + $0x324] sm:$0xf0]  ;;  %v11389_v29 = vor.u32 %v14808_v46, %v11386_v38  ;;  %v14805_v36 = vld [vmem:[#allocation6 + $0x4cc] sm:$0xf]  ;;  %v11374_v18 = vld [vmem:[#allocation6 + $0x4d4] sm:$0xf0] }
 0x1d9   :  { %7127 = vmatmul.bf16.vlgmr.msra.gmra.mxu1 %v18993_v5  ;;  %v6754_v51 = vadd.f32 %v17489_v10, %v6735_v63  ;;  %v11050_v37 = vld [vmem:[#allocation6 + $0x24c] sm:$0xf0]  ;;  %v14772_v46 = vld [vmem:[#allocation6 + $0x3c4] sm:$0xf] }
 0x1da   :  { %7214 = vmatpush.bf16.msrb.mxu2 %v11425_v11  ;;  %7179 = vmatpush.bf16.msrb.mxu0 %v11197_v41  ;;  %v11281_v11 = vor.u32 %v14781_v58, %v11278_v6  ;;  %v11266_v41 = vld [vmem:[#allocation6 + $0x3fc] sm:$0xf0]  ;;  %v11242_v38 = vld [vmem:[#allocation6 + $0x3cc] sm:$0xf0] }
 0x1db   :  { %v11269_v58 = vor.u32 %v14778_v44, %v11266_v41  ;;  %v17524_v6 = vadd.f32 %v6772_v20, %v6754_v51  ;;  %v11257_v41 = vor.u32 %v14775_v9, %v11254_v8  ;;  %v14802_v51 = vld [vmem:[#allocation6 + $0x4b4] sm:$0xf]  ;;  %v11710_v9 = vld [vmem:[#allocation6 + $0x774] sm:$0xf0] }
 0x1dc   :  { %7198 = vmatpush.bf16.msrb.mxu1 %v11293_v16  ;;  %v1393_v16 = vunpack.c.h.b16 %v17423_v32  ;;  %7162 = vmatpush.bf16.msra.mxu3 %v11077_v17  ;;  %v6717_v60 = vpop.f32.mrf.mxu3  ;;  %v14724_v32 = vld [vmem:[#allocation6 + $0x244] sm:$0xf]  ;;  %v11146_v17 = vld [vmem:[#allocation6 + $0x30c] sm:$0xf0] }
 0x1dd   :  { %v6718_v10 = vadd.f32 %v6717_v60, %v17480_v3  ;;  %v11518_v3 = vld [vmem:[#allocation6 + $0x5f4] sm:$0xf0]  ;;  %v14865_v60 = vld [vmem:[#allocation6 + $0x6ac] sm:$0xf]  ;;  %v18995_v8 = vld [vmem:[#allocation45_spill] sm:$0xff] }
 0x1de   :  { %7215 = vmatpush.bf16.msrb.mxu2 %v11413_v15  ;;  %7180 = vmatpush.bf16.msrb.mxu0 %v11185_v48  ;;  %v14751_v15 = vld [vmem:[#allocation6 + $0x31c] sm:$0xf]  ;;  %v11065_v48 = vor.u32 %v14727_v39, %v11062_v56  ;;  %v17527_v63 = vpack.c.b16 %v1393_v16, %v1389_v53  ;;  %v11053_v56 = vor.u32 %v14724_v32, %v11050_v37  ;;  %v11362_v16 = vld [vmem:[#allocation6 + $0x4bc] sm:$0xf0] }
 0x1df   :  { %v11161_v54 = vor.u32 %v14751_v15, %v11158_v31  ;;  %v6805_v44 = vpop.f32.mrf.mxu0  ;;  %v6737_v39 = vadd.f32 %v6736_v45, %v6718_v10  ;;  %v14841_v15 = vld [vmem:[#allocation6 + $0x5ec] sm:$0xf]  ;;  %v14799_v32 = vld [vmem:[#allocation6 + $0x49c] sm:$0xf]  ;;  %v14838_v10 = vld [vmem:[#allocation6 + $0x5d4] sm:$0xf] }
 0x1e0   :  { %7199 = vmatpush.bf16.msrb.mxu1 %v11281_v11  ;;  %v6774_v11 = vpop.f32.mrf.mxu2  ;;  %v17529_v20 = vpop.f32.mrf.mxu1  ;;  %7163 = vmatpush.bf16.msra.mxu3 %v11065_v48  ;;  %v11521_v31 = vor.u32 %v14841_v15, %v11518_v3  ;;  %v14889_v48 = vld [vmem:[#allocation6 + $0x76c] sm:$0xf]  ;;  %v11602_v15 = vld [vmem:[#allocation6 + $0x69c] sm:$0xf0] }
 0x1e1   :  { %13782 = vmatmul.msk.bf16.vlgmr.msrb.gmra.mxu3 %vm167_vm0, %v17527_v63  ;;  %v6756_v45 = vadd.f32 %v17503_v22, %v6737_v39  ;;  %v11713_v37 = vor.u32 %v14889_v48, %v11710_v9  ;;  %v11350_v22 = vld [vmem:[#allocation6 + $0x4a4] sm:$0xf0]  ;;  %v14862_v39 = vld [vmem:[#allocation6 + $0x694] sm:$0xf]  ;;  %v14859_v9 = vld [vmem:[#allocation6 + $0x67c] sm:$0xf] }
 0x1e2   :  { %7216 = vmatpush.bf16.msrb.mxu2 %v11401_v14  ;;  %7181 = vmatpush.bf16.msrb.mxu0 %v11173_v21  ;;  %v14748_v14 = vld [vmem:[#allocation6 + $0x304] sm:$0xf]  ;;  %v11377_v21 = vor.u32 %v14805_v36, %v11374_v18  ;;  %v11245_v36 = vor.u32 %v14772_v46, %v11242_v38  ;;  %v11365_v18 = vor.u32 %v14802_v51, %v11362_v16  ;;  %v14886_v38 = vld [vmem:[#allocation6 + $0x754] sm:$0xf]  ;;  %v11338_v16 = vld [vmem:[#allocation6 + $0x48c] sm:$0xf0] }
 0x1e3   :  { %v11149_v53 = vor.u32 %v14748_v14, %v11146_v17  ;;  %7146 = vmatmul.bf16.vlgmr.msra.gmra.mxu2 %v18995_v8  ;;  %v11506_v14 = vld [vmem:[#allocation6 + $0x5dc] sm:$0xf0]  ;;  %v14796_v51 = vld [vmem:[#allocation6 + $0x484] sm:$0xf]  ;;  %v11494_v48 = vld [vmem:[#allocation6 + $0x5c4] sm:$0xf0] }
 0x1e4   :  { %7200 = vmatpush.bf16.msrb.mxu1 %v11269_v58  ;;  %v18994_v58 = vld [vmem:[#allocation41_spill] sm:$0xff]  ;;  %7164 = vmatpush.bf16.msra.mxu3 %v11053_v56  ;;  %v6786_v17 = vpop.f32.mrf.mxu3 }
 0x1e5   :  { %7108 = vmatmul.bf16.vlgmr.msra.gmra.mxu0 %v18994_v58  ;;  %v6787_v3 = vadd.f32 %v6786_v17, %v17498_v1  ;;  %v18996_v1 = vld [vmem:[#allocation48_spill] sm:$0xff] }
 0x1e6   :  { %7217 = vmatpush.bf16.msrb.mxu2 %v11389_v29  ;;  %7182 = vmatpush.bf16.msrb.mxu0 %v11161_v54  ;;  %v11617_v29 = vor.u32 %v14865_v60, %v11614_v62  ;;  %v17536_v54 = vadd.f32 %v6774_v11, %v6756_v45  ;;  %v11509_v62 = vor.u32 %v14838_v10, %v11506_v14  ;;  %v14835_v45 = vld [vmem:[#allocation6 + $0x5bc] sm:$0xf]  ;;  %v11686_v17 = vld [vmem:[#allocation6 + $0x744] sm:$0xf0] }
 0x1e7   :  { %v11605_v11 = vor.u32 %v14862_v39, %v11602_v15  ;;  %v6807_v56 = vpop.f32.mrf.mxu0  ;;  %v6806_v60 = vadd.f32 %v6805_v44, %v6787_v3  ;;  %v11497_v10 = vor.u32 %v14835_v45, %v11494_v48  ;;  %v14883_v14 = vld [vmem:[#allocation6 + $0x73c] sm:$0xf]  ;;  %v14832_v3 = vld [vmem:[#allocation6 + $0x5a4] sm:$0xf] }
 0x1e8   :  { %7201 = vmatpush.bf16.msrb.mxu1 %v11257_v41  ;;  %7233 = vmatpush.bf16.msrb.mxu3 %v11521_v31  ;;  %v6843_v41 = vpop.f32.mrf.mxu2  ;;  %v17539_v46 = vpop.f32.mrf.mxu1  ;;  %v11689_v15 = vor.u32 %v14883_v14, %v11686_v17 }
 0x1e9   :  { %7132 = vmatmul.bf16.gmra.mxu1 %v18996_v1  ;;  %v6825_v39 = vadd.f32 %v17518_v57, %v6806_v60  ;;  %v11578_v57 = vld [vmem:[#allocation6 + $0x66c] sm:$0xf0]  ;;  %v14880_v60 = vld [vmem:[#allocation6 + $0x724] sm:$0xf] }
 0x1ea   :  { %7218 = vmatpush.bf16.msrb.mxu2 %v11377_v21  ;;  %7183 = vmatpush.bf16.msrb.mxu0 %v11149_v53  ;;  %v11698_v21 = vld [vmem:[#allocation6 + $0x75c] sm:$0xf0]  ;;  %v11353_v53 = vor.u32 %v14799_v32, %v11350_v22  ;;  %v11806_v32 = vld [vmem:[#allocation6 + $0x834] sm:$0xf0]  ;;  %v11341_v22 = vor.u32 %v14796_v51, %v11338_v16  ;;  %v14910_v16 = vld [vmem:[#allocation6 + $0x814] sm:$0xf] }
 0x1eb   :  { %v11701_v31 = vor.u32 %v14886_v38, %v11698_v21  ;;  %v14856_v38 = vld [vmem:[#allocation6 + $0x664] sm:$0xf] }
 0x1ec   :  { %7202 = vmatpush.bf16.msrb.mxu1 %v11245_v36  ;;  %7234 = vmatpush.bf16.msrb.mxu3 %v11509_v62  ;;  %v1397_v36 = vunpack.c.h.b16 %v17491_v7  ;;  %v11482_v62 = vld [vmem:[#allocation6 + $0x5ac] sm:$0xf0]  ;;  %v6788_v21 = vpop.f32.mrf.mxu3  ;;  %v11581_v14 = vor.u32 %v14856_v38, %v11578_v57  ;;  %v19000_v38 = vld [vmem:[#allocation50_spill] sm:$0xff]  ;;  %v14826_v57 = vld [vmem:[#allocation6 + $0x574] sm:$0xf] }
 0x1ed   :  { %v11485_v48 = vor.u32 %v14832_v3, %v11482_v62  ;;  %v11674_v7 = vld [vmem:[#allocation6 + $0x72c] sm:$0xf0]  ;;  %v14877_v3 = vld [vmem:[#allocation6 + $0x70c] sm:$0xf]  ;;  %v11662_v62 = vld [vmem:[#allocation6 + $0x714] sm:$0xf0] }
 0x1ee   :  { %7252 = vmatpush.bf16.msra.mxu0 %v11617_v29  ;;  %7219 = vmatpush.bf16.msrb.mxu2 %v11365_v18  ;;  %v11590_v29 = vld [vmem:[#allocation6 + $0x684] sm:$0xf0]  ;;  %v14913_v18 = vld [vmem:[#allocation6 + $0x82c] sm:$0xf]  ;;  %v11677_v17 = vor.u32 %v14880_v60, %v11674_v7  ;;  %v11458_v60 = vld [vmem:[#allocation6 + $0x57c] sm:$0xf0] }
 0x1ef   :  { %v11593_v44 = vor.u32 %v14859_v9, %v11590_v29  ;;  %v11809_v45 = vor.u32 %v14913_v18, %v11806_v32  ;;  %v18997_v9 = vunpack.c.h.b16 %v17448_v59  ;;  %v6810_v29 = vpop.f32.mrf.mxu0  ;;  %v11470_v18 = vld [vmem:[#allocation6 + $0x594] sm:$0xf0]  ;;  %v14853_v32 = vld [vmem:[#allocation6 + $0x64c] sm:$0xf]  ;;  %v14850_v7 = vld [vmem:[#allocation6 + $0x634] sm:$0xf] }
 0x1f0   :  { %7271 = vmatpush.bf16.msra.mxu1 %v11713_v37  ;;  %v17544_v37 = vadd.f32 %v6843_v41, %v6825_v39  ;;  %7235 = vmatpush.bf16.msrb.mxu3 %v11497_v10  ;;  %v17551_v51 = vpop.f32.mrf.mxu1  ;;  %v14829_v39 = vld [vmem:[#allocation6 + $0x58c] sm:$0xf] }
 0x1f1   :  { %v17549_v41 = vpack.c.b16 %v18997_v9, %v1397_v36  ;;  %v11566_v36 = vld [vmem:[#allocation6 + $0x654] sm:$0xf0] }
 0x1f2   :  { %7253 = vmatpush.bf16.msra.mxu0 %v11605_v11  ;;  %7220 = vmatpush.bf16.msrb.mxu2 %v11353_v53  ;;  %v6789_v11 = vadd.f32 %v6788_v21, %v17515_v55  ;;  %v6845_v53 = vpop.f32.mrf.mxu2  ;;  %v11473_v55 = vor.u32 %v14829_v39, %v11470_v18  ;;  %v11569_v21 = vor.u32 %v14853_v32, %v11566_v36  ;;  %v11770_v32 = vld [vmem:[#allocation6 + $0x7ec] sm:$0xf0] }
 0x1f3   :  { %18998 = vst [vmem:[#allocation27_spill] sm:$0xff] %v17549_v41  ;;  %13783 = vmatmul.msk.bf16.gmra.mxu3 %vm167_vm0, %v17549_v41  ;;  %7151 = vmatmul.bf16.gmra.mxu2 %v19000_v38  ;;  %v14901_v38 = vld [vmem:[#allocation6 + $0x7cc] sm:$0xf] }
 0x1f4   :  { %7272 = vmatpush.bf16.msra.mxu1 %v11701_v31  ;;  %v11794_v31 = vld [vmem:[#allocation6 + $0x81c] sm:$0xf0]  ;;  %v6808_v10 = vadd.f32 %v6807_v56, %v6789_v11  ;;  %7236 = vmatpush.bf16.msrb.mxu3 %v11485_v48  ;;  %v11665_v48 = vor.u32 %v14877_v3, %v11662_v62  ;;  %v6791_v11 = vpop.f32.mrf.mxu3  ;;  %v14997_v41 = vld [vmem:[#allocation6 + $0xacc] sm:$0xf] }
 0x1f5   :  { %v11797_v59 = vor.u32 %v14910_v16, %v11794_v31  ;;  %v11554_v16 = vld [vmem:[#allocation6 + $0x63c] sm:$0xf0]  ;;  %v14874_v31 = vld [vmem:[#allocation6 + $0x6f4] sm:$0xf] }
 0x1f6   :  { %7254 = vmatpush.bf16.msra.mxu0 %v11593_v44  ;;  %7221 = vmatpush.bf16.msrb.mxu2 %v11341_v22  ;;  %v18999_v44 = vld [vmem:[#allocation47_spill] sm:$0xff]  ;;  %v6827_v56 = vadd.f32 %v17529_v20, %v6808_v10  ;;  %v14907_v22 = vld [vmem:[#allocation6 + $0x7fc] sm:$0xf]  ;;  %v6792_v10 = vadd.f32 %v6791_v11, %v17524_v6  ;;  %v11557_v36 = vor.u32 %v14850_v7, %v11554_v16  ;;  %v11542_v6 = vld [vmem:[#allocation6 + $0x624] sm:$0xf0] }
 0x1f7   :  { %7113 = vmatmul.bf16.gmra.mxu0 %v18999_v44  ;;  %v11650_v20 = vld [vmem:[#allocation6 + $0x6fc] sm:$0xf0]  ;;  %v14871_v11 = vld [vmem:[#allocation6 + $0x6dc] sm:$0xf]  ;;  %v14820_v16 = vld [vmem:[#allocation6 + $0x544] sm:$0xf] }
 0x1f8   :  { %7273 = vmatpush.bf16.msra.mxu1 %v11689_v15  ;;  %v11782_v15 = vld [vmem:[#allocation6 + $0x804] sm:$0xf0]  ;;  %7237 = vmatpush.bf16.msrb.mxu3 %v11473_v55  ;;  %v17561_v18 = vpop.f32.mrf.mxu1  ;;  %v6811_v3 = vadd.f32 %v6810_v29, %v6792_v10  ;;  %v11653_v62 = vor.u32 %v14874_v31, %v11650_v20  ;;  %v11641_v7 = vor.u32 %v14871_v11, %v11638_v12  ;;  %v11434_v31 = vld [vmem:[#allocation6 + $0x54c] sm:$0xf0]  ;;  %v14844_v20 = vld [vmem:[#allocation6 + $0x604] sm:$0xf] }
 0x1f9   :  { %v11785_v9 = vor.u32 %v14907_v22, %v11782_v15  ;;  %v11446_v55 = vld [vmem:[#allocation6 + $0x564] sm:$0xf0]  ;;  %v19001_v22 = vld [vmem:[#allocation51_spill] sm:$0xff]  ;;  %v11437_v12 = vor.u32 %v14820_v16, %v11434_v31 }
 0x1fa   :  { %7290 = vmatpush.bf16.msra.mxu2 %v11809_v45  ;;  %7255 = vmatpush.bf16.msra.mxu0 %v11581_v14  ;;  %v17558_v45 = vadd.f32 %v6845_v53, %v6827_v56  ;;  %v6848_v39 = vpop.f32.mrf.mxu2  ;;  %v11461_v14 = vor.u32 %v14826_v57, %v11458_v60  ;;  %v14904_v53 = vld [vmem:[#allocation6 + $0x7e4] sm:$0xf]  ;;  %v14847_v56 = vld [vmem:[#allocation6 + $0x61c] sm:$0xf]  ;;  %v6830_v57 = vadd.f32 %v17539_v46, %v6811_v3  ;;  %v19004_v31 = vld [vmem:[#allocation52_spill] sm:$0xff] }
 0x1fb   :  { %7203 = vmatmul.bf16.vlgmr.msrb.gmra.mxu1 %v19001_v22  ;;  %v11773_v15 = vor.u32 %v14904_v53, %v11770_v32  ;;  %v11545_v29 = vor.u32 %v14847_v56, %v11542_v6  ;;  %v11530_v53 = vld [vmem:[#allocation6 + $0x60c] sm:$0xf0]  ;;  %v14868_v32 = vld [vmem:[#allocation6 + $0x6c4] sm:$0xf] }
 0x1fc   :  { %7274 = vmatpush.bf16.msra.mxu1 %v11677_v17  ;;  %v6812_v17 = vpop.f32.mrf.mxu0  ;;  %7238 = vmatpush.bf16.msrb.mxu3 %v11461_v14  ;;  %v11626_v22 = vld [vmem:[#allocation6 + $0x6cc] sm:$0xf0] }
 0x1fd   :  { %v11629_v56 = vor.u32 %v14868_v32, %v11626_v22 }
 0x1fe   :  { %7291 = vmatpush.bf16.msra.mxu2 %v11797_v59  ;;  %7256 = vmatpush.bf16.msra.mxu0 %v11569_v21  ;;  %v14823_v59 = vld [vmem:[#allocation6 + $0x55c] sm:$0xf]  ;;  %v11758_v21 = vld [vmem:[#allocation6 + $0x7d4] sm:$0xf0] }
 0x1ff   :  { %v11449_v60 = vor.u32 %v14823_v59, %v11446_v55  ;;  %v11761_v10 = vor.u32 %v14901_v38, %v11758_v21  ;;  %v11533_v55 = vor.u32 %v14844_v20, %v11530_v53  ;;  %v11902_v38 = vld [vmem:[#allocation6 + $0x8f4] sm:$0xf0]  ;;  %v11890_v53 = vld [vmem:[#allocation6 + $0x8dc] sm:$0xf0] }
 0x200   :  { %7275 = vmatpush.bf16.msra.mxu1 %v11665_v48  ;;  %v17565_v48 = vadd.f32 %v6848_v39, %v6830_v57  ;;  %v17568_v3 = vpop.f32.mrf.mxu1  ;;  %v11746_v39 = vld [vmem:[#allocation6 + $0x7bc] sm:$0xf0]  ;;  %v14895_v57 = vld [vmem:[#allocation6 + $0x79c] sm:$0xf]  ;;  %v11998_v21 = vld [vmem:[#allocation6 + $0x9b4] sm:$0xf0] }
 0x201   :  { %7239 = vmatpush.bf16.msrb.mxu3 %v11449_v60  ;;  %v19003_v60 = vld [vmem:[#allocation54_spill] sm:$0xff] }
 0x202   :  { %7292 = vmatpush.bf16.msra.mxu2 %v11785_v9  ;;  %7257 = vmatpush.bf16.msra.mxu0 %v11557_v36  ;;  %v6793_v9 = vpop.f32.mrf.mxu3  ;;  %v6850_v14 = vpop.f32.mrf.mxu2  ;;  %v14898_v36 = vld [vmem:[#allocation6 + $0x7b4] sm:$0xf] }
 0x203   :  { %v6794_v46 = vadd.f32 %v6793_v9, %v17536_v54  ;;  %v11749_v6 = vor.u32 %v14898_v36, %v11746_v39  ;;  %v14961_v54 = vld [vmem:[#allocation6 + $0x9ac] sm:$0xf]  ;;  %v19002_v9 = vld [vmem:[#allocation53_spill] sm:$0xff]  ;;  %7222 = vmatmul.bf16.vlgmr.msrb.gmra.mxu2 %v19004_v31  ;;  %v14892_v36 = vld [vmem:[#allocation6 + $0x784] sm:$0xf] }
 0x204   :  { %7276 = vmatpush.bf16.msra.mxu1 %v11653_v62  ;;  %v6881_v59 = vpop.f32.mrf.mxu0  ;;  %7165 = vmatmul.bf16.vlgmr.msra.gmra.mxu3 %v19002_v9  ;;  %v12001_v16 = vor.u32 %v14961_v54, %v11998_v21  ;;  %v11986_v39 = vld [vmem:[#allocation6 + $0x99c] sm:$0xf0]  ;;  %v12070_v31 = vld [vmem:[#allocation6 + $0xa44] sm:$0xf0]  ;;  %v15003_v9 = vld [vmem:[#allocation6 + $0xafc] sm:$0xf] }
 0x205   :  { %v6813_v62 = vadd.f32 %v6812_v17, %v6794_v46  ;;  %v14985_v17 = vld [vmem:[#allocation6 + $0xa6c] sm:$0xf]  ;;  %7240 = vmatpush.bf16.msrb.mxu3 %v11437_v12 }
 0x206   :  { %7293 = vmatpush.bf16.msra.mxu2 %v11773_v15  ;;  %7258 = vmatpush.bf16.msra.mxu0 %v11545_v29  ;;  %v14937_v15 = vld [vmem:[#allocation6 + $0x8ec] sm:$0xf]  ;;  %v11734_v29 = vld [vmem:[#allocation6 + $0x7a4] sm:$0xf0] }
 0x207   :  { %v11905_v11 = vor.u32 %v14937_v15, %v11902_v38  ;;  %7184 = vmatmul.bf16.vlgmr.msrb.gmra.mxu0 %v19003_v60  ;;  %v6832_v44 = vadd.f32 %v17551_v51, %v6813_v62  ;;  %v11737_v46 = vor.u32 %v14895_v57, %v11734_v29  ;;  %v14958_v51 = vld [vmem:[#allocation6 + $0x994] sm:$0xf]  ;;  %v11878_v57 = vld [vmem:[#allocation6 + $0x8c4] sm:$0xf0]  ;;  %v14955_v29 = vld [vmem:[#allocation6 + $0x97c] sm:$0xf] }
 0x208   :  { %7277 = vmatpush.bf16.msra.mxu1 %v11641_v7  ;;  %v12094_v7 = vld [vmem:[#allocation6 + $0xa74] sm:$0xf0]  ;;  %v17577_v38 = vpop.f32.mrf.mxu1  ;;  %v11989_v12 = vor.u32 %v14958_v51, %v11986_v39  ;;  %v12058_v60 = vld [vmem:[#allocation6 + $0xa2c] sm:$0xf0] }
 0x209   :  { %v12097_v22 = vor.u32 %v14985_v17, %v12094_v7  ;;  %v17574_v20 = vadd.f32 %v6850_v14, %v6832_v44  ;;  %7309 = vmatpush.bf16.msra.mxu3 %v11905_v11  ;;  %v11722_v14 = vld [vmem:[#allocation6 + $0x78c] sm:$0xf0]  ;;  %v14931_v11 = vld [vmem:[#allocation6 + $0x8bc] sm:$0xf]  ;;  %v19005_v17 = vld [vmem:[#allocation31_spill] sm:$0xff] }
 0x20a   :  { %7294 = vmatpush.bf16.msra.mxu2 %v11761_v10  ;;  %7259 = vmatpush.bf16.msra.mxu0 %v11533_v55  ;;  %v14934_v10 = vld [vmem:[#allocation6 + $0x8d4] sm:$0xf]  ;;  %v6862_v32 = vpop.f32.mrf.mxu3  ;;  %v6919_v15 = vpop.f32.mrf.mxu2  ;;  %v11974_v7 = vld [vmem:[#allocation6 + $0x984] sm:$0xf0]  ;;  %v12190_v51 = vld [vmem:[#allocation6 + $0xb34] sm:$0xf0] }
 0x20b   :  { %v6863_v62 = vadd.f32 %v6862_v32, %v17544_v37  ;;  %v11893_v44 = vor.u32 %v14934_v10, %v11890_v53  ;;  %v14982_v55 = vld [vmem:[#allocation6 + $0xa54] sm:$0xf]  ;;  %7208 = vmatmul.bf16.gmra.mxu1 %v19005_v17  ;;  %v11725_v37 = vor.u32 %v14892_v36, %v11722_v14  ;;  %v14979_v32 = vld [vmem:[#allocation6 + $0xa3c] sm:$0xf]  ;;  %v11977_v10 = vor.u32 %v14955_v29, %v11974_v7  ;;  %v15009_v53 = vld [vmem:[#allocation6 + $0xb2c] sm:$0xf] }
 0x20c   :  { %7278 = vmatpush.bf16.msra.mxu1 %v11629_v56  ;;  %v12082_v56 = vld [vmem:[#allocation6 + $0xa5c] sm:$0xf0]  ;;  %v6883_v54 = vpop.f32.mrf.mxu0  ;;  %v12193_v39 = vor.u32 %v15009_v53, %v12190_v51  ;;  %v11962_v14 = vld [vmem:[#allocation6 + $0x96c] sm:$0xf0]  ;;  %v14976_v17 = vld [vmem:[#allocation6 + $0xa24] sm:$0xf] }
 0x20d   :  { %v12085_v21 = vor.u32 %v14982_v55, %v12082_v56  ;;  %7310 = vmatpush.bf16.msra.mxu3 %v11893_v44  ;;  %v14928_v55 = vld [vmem:[#allocation6 + $0x8a4] sm:$0xf]  ;;  %v11866_v56 = vld [vmem:[#allocation6 + $0x8ac] sm:$0xf0]  ;;  %v12061_v29 = vor.u32 %v14976_v17, %v12058_v60  ;;  %v11854_v7 = vld [vmem:[#allocation6 + $0x894] sm:$0xf0] }
 0x20e   :  { %7295 = vmatpush.bf16.msra.mxu2 %v11749_v6  ;;  %7328 = vmatpush.bf16.msrb.mxu0 %v12001_v16  ;;  %v6882_v6 = vadd.f32 %v6881_v59, %v6863_v62  ;;  %v12073_v59 = vor.u32 %v14979_v32, %v12070_v31  ;;  %v12178_v31 = vld [vmem:[#allocation6 + $0xb1c] sm:$0xf0]  ;;  %v14949_v32 = vld [vmem:[#allocation6 + $0x94c] sm:$0xf]  ;;  %v11950_v53 = vld [vmem:[#allocation6 + $0x954] sm:$0xf0] }
 0x20f   :  { %v12046_v51 = vld [vmem:[#allocation6 + $0xa14] sm:$0xf0]  ;;  %v11953_v17 = vor.u32 %v14949_v32, %v11950_v53 }
 0x210   :  { %7347 = vmatpush.bf16.msrb.mxu1 %v12097_v22  ;;  %v6901_v16 = vadd.f32 %v17561_v18, %v6882_v6  ;;  %v11881_v22 = vor.u32 %v14931_v11, %v11878_v57 }
 0x212   :  { %7296 = vmatpush.bf16.msra.mxu2 %v11737_v46  ;;  %7329 = vmatpush.bf16.msrb.mxu0 %v11989_v12  ;;  %v17581_v62 = vadd.f32 %v6919_v15, %v6901_v16  ;;  %v14952_v46 = vld [vmem:[#allocation6 + $0x964] sm:$0xf]  ;;  %v6864_v36 = vpop.f32.mrf.mxu3  ;;  %v6921_v44 = vpop.f32.mrf.mxu2  ;;  %v11869_v15 = vor.u32 %v14928_v55, %v11866_v56  ;;  %v14922_v56 = vld [vmem:[#allocation6 + $0x874] sm:$0xf] }
 0x213   :  { %v6865_v18 = vadd.f32 %v6864_v36, %v17558_v45  ;;  %v17584_v12 = vpop.f32.mrf.mxu1  ;;  %7311 = vmatpush.bf16.msra.mxu3 %v11881_v22  ;;  %v11965_v57 = vor.u32 %v14952_v46, %v11962_v14  ;;  %v14973_v45 = vld [vmem:[#allocation6 + $0xa0c] sm:$0xf]  ;;  %v19006_v36 = vld [vmem:[#allocation55_spill] sm:$0xff]  ;;  %v14946_v14 = vld [vmem:[#allocation6 + $0x934] sm:$0xf] }
 0x214   :  { %7348 = vmatpush.bf16.msrb.mxu1 %v12085_v21  ;;  %v15006_v21 = vld [vmem:[#allocation6 + $0xb14] sm:$0xf]  ;;  %v6886_v6 = vpop.f32.mrf.mxu0  ;;  %7170 = vmatmul.bf16.gmra.mxu3 %v19006_v36  ;;  %v19007_v22 = vld [vmem:[#allocation56_spill] sm:$0xff]  ;;  %v12049_v55 = vor.u32 %v14973_v45, %v12046_v51  ;;  %v11842_v46 = vld [vmem:[#allocation6 + $0x87c] sm:$0xf0] }
 0x215   :  { %v6884_v11 = vadd.f32 %v6883_v54, %v6865_v18  ;;  %v12181_v16 = vor.u32 %v15006_v21, %v12178_v31  ;;  %v11938_v31 = vld [vmem:[#allocation6 + $0x93c] sm:$0xf0]  ;;  %v14943_v45 = vld [vmem:[#allocation6 + $0x91c] sm:$0xf] }
 0x216   :  { %7297 = vmatpush.bf16.msra.mxu2 %v11725_v37  ;;  %7330 = vmatpush.bf16.msrb.mxu0 %v11977_v10  ;;  %v14925_v37 = vld [vmem:[#allocation6 + $0x88c] sm:$0xf]  ;;  %v11941_v32 = vor.u32 %v14946_v14, %v11938_v31  ;;  %v19009_v51 = vld [vmem:[#allocation30_spill] sm:$0xff]  ;;  %v14940_v14 = vld [vmem:[#allocation6 + $0x904] sm:$0xf] }
 0x217   :  { %7189 = vmatmul.bf16.gmra.mxu0 %v19007_v22  ;;  %v6903_v10 = vadd.f32 %v17568_v3, %v6884_v11  ;;  %7312 = vmatpush.bf16.msra.mxu3 %v11869_v15  ;;  %v11857_v54 = vor.u32 %v14925_v37, %v11854_v7  ;;  %v14970_v3 = vld [vmem:[#allocation6 + $0x9f4] sm:$0xf]  ;;  %v12034_v11 = vld [vmem:[#allocation6 + $0x9fc] sm:$0xf0]  ;;  %v12154_v37 = vld [vmem:[#allocation6 + $0xaec] sm:$0xf0] }
 0x218   :  { %7349 = vmatpush.bf16.msrb.mxu1 %v12073_v59  ;;  %v12166_v59 = vld [vmem:[#allocation6 + $0xb04] sm:$0xf0]  ;;  %v12037_v53 = vor.u32 %v14970_v3, %v12034_v11  ;;  %v11914_v3 = vld [vmem:[#allocation6 + $0x90c] sm:$0xf0]  ;;  %v14964_v11 = vld [vmem:[#allocation6 + $0x9c4] sm:$0xf] }
 0x219   :  { %v17590_v60 = vadd.f32 %v6921_v44, %v6903_v10  ;;  %v12169_v21 = vor.u32 %v15003_v9, %v12166_v59  ;;  %v15000_v44 = vld [vmem:[#allocation6 + $0xae4] sm:$0xf]  ;;  %v11830_v9 = vld [vmem:[#allocation6 + $0x864] sm:$0xf0]  ;;  %v14967_v59 = vld [vmem:[#allocation6 + $0x9dc] sm:$0xf] }
 0x21a   :  { %7366 = vmatpush.bf16.msrb.mxu2 %v12193_v39  ;;  %v19008_v39 = vld [vmem:[#allocation29_spill] sm:$0xff]  ;;  %7331 = vmatpush.bf16.msrb.mxu0 %v11965_v57  ;;  %v6867_v18 = vpop.f32.mrf.mxu3  ;;  %v11926_v10 = vld [vmem:[#allocation6 + $0x924] sm:$0xf0] }
 0x21b   :  { %7227 = vmatmul.bf16.gmra.mxu2 %v19008_v39  ;;  %v6868_v22 = vadd.f32 %v6867_v18, %v17565_v48  ;;  %v6924_v39 = vpop.f32.mrf.mxu2  ;;  %v17593_v15 = vpop.f32.mrf.mxu1  ;;  %7313 = vmatpush.bf16.msra.mxu3 %v11857_v54  ;;  %v12157_v48 = vor.u32 %v15000_v44, %v12154_v37  ;;  %v12022_v18 = vld [vmem:[#allocation6 + $0x9e4] sm:$0xf0]  ;;  %v12142_v54 = vld [vmem:[#allocation6 + $0xad4] sm:$0xf0]  ;;  %v12010_v44 = vld [vmem:[#allocation6 + $0x9cc] sm:$0xf0] }
 0x21c   :  { %7350 = vmatpush.bf16.msrb.mxu1 %v12061_v29  ;;  %v6888_v57 = vpop.f32.mrf.mxu0  ;;  %v11845_v29 = vor.u32 %v14922_v56, %v11842_v46  ;;  %v14916_v56 = vld [vmem:[#allocation6 + $0x844] sm:$0xf]  ;;  %v11818_v46 = vld [vmem:[#allocation6 + $0x84c] sm:$0xf0]  ;;  %v12145_v31 = vor.u32 %v14997_v41, %v12142_v54  ;;  %v12286_v41 = vld [vmem:[#allocation6 + $0xbf4] sm:$0xf0] }
 0x21d   :  { %v6887_v7 = vadd.f32 %v6886_v6, %v6868_v22  ;;  %7279 = vmatmul.bf16.vlgmr.msra.gmra.mxu1 %v19009_v51  ;;  %v19010_v54 = vld [vmem:[#allocation57_spill] sm:$0xff] }
 0x21e   :  { %7367 = vmatpush.bf16.msrb.mxu2 %v12181_v16  ;;  %7332 = vmatpush.bf16.msrb.mxu0 %v11953_v17  ;;  %v14919_v16 = vld [vmem:[#allocation6 + $0x85c] sm:$0xf]  ;;  %v11929_v17 = vor.u32 %v14943_v45, %v11926_v10  ;;  %v15033_v45 = vld [vmem:[#allocation6 + $0xbec] sm:$0xf] }
 0x21f   :  { %v6906_v36 = vadd.f32 %v17577_v38, %v6887_v7  ;;  %7314 = vmatpush.bf16.msra.mxu3 %v11845_v29  ;;  %v11833_v6 = vor.u32 %v14919_v16, %v11830_v9  ;;  %v11917_v16 = vor.u32 %v14940_v14, %v11914_v3  ;;  %v12013_v9 = vor.u32 %v14964_v11, %v12010_v44  ;;  %v15030_v3 = vld [vmem:[#allocation6 + $0xbd4] sm:$0xf]  ;;  %v12274_v11 = vld [vmem:[#allocation6 + $0xbdc] sm:$0xf0] }
 0x220   :  { %7351 = vmatpush.bf16.msrb.mxu1 %v12049_v55  ;;  %v12025_v55 = vor.u32 %v14967_v59, %v12022_v18  ;;  %v12289_v10 = vor.u32 %v15033_v45, %v12286_v41  ;;  %v14991_v59 = vld [vmem:[#allocation6 + $0xa9c] sm:$0xf]  ;;  %v12382_v18 = vld [vmem:[#allocation6 + $0xcb4] sm:$0xf0] }
 0x221   :  { %v17597_v22 = vadd.f32 %v6924_v39, %v6906_v36  ;;  %v14994_v36 = vld [vmem:[#allocation6 + $0xab4] sm:$0xf]  ;;  %v12130_v39 = vld [vmem:[#allocation6 + $0xabc] sm:$0xf0] }
 0x222   :  { %7368 = vmatpush.bf16.msrb.mxu2 %v12169_v21  ;;  %7333 = vmatpush.bf16.msrb.mxu0 %v11941_v32  ;;  %v6869_v21 = vpop.f32.mrf.mxu3  ;;  %v11821_v32 = vor.u32 %v14916_v56, %v11818_v46  ;;  %v12118_v56 = vld [vmem:[#allocation6 + $0xaa4] sm:$0xf0]  ;;  %v19012_v46 = vld [vmem:[#allocation59_spill] sm:$0xff] }
 0x223   :  { %v6870_v38 = vadd.f32 %v6869_v21, %v17574_v20  ;;  %v6926_v37 = vpop.f32.mrf.mxu2  ;;  %v17600_v29 = vpop.f32.mrf.mxu1  ;;  %7315 = vmatpush.bf16.msra.mxu3 %v11833_v6  ;;  %v15057_v20 = vld [vmem:[#allocation6 + $0xcac] sm:$0xf]  ;;  %v19011_v21 = vld [vmem:[#allocation58_spill] sm:$0xff] }
 0x224   :  { %7352 = vmatpush.bf16.msrb.mxu1 %v12037_v53  ;;  %v6957_v7 = vpop.f32.mrf.mxu0  ;;  %7241 = vmatmul.bf16.vlgmr.msrb.gmra.mxu3 %v19010_v54 }
 0x225   :  { %v6889_v53 = vadd.f32 %v6888_v57, %v6870_v38  ;;  %v12385_v57 = vor.u32 %v15057_v20, %v12382_v18  ;;  %v12121_v38 = vor.u32 %v14991_v59, %v12118_v56  ;;  %v12466_v20 = vld [vmem:[#allocation6 + $0xd5c] sm:$0xf0]  ;;  %v12262_v59 = vld [vmem:[#allocation6 + $0xbc4] sm:$0xf0]  ;;  %v15051_v56 = vld [vmem:[#allocation6 + $0xc7c] sm:$0xf] }
 0x226   :  { %7369 = vmatpush.bf16.msrb.mxu2 %v12157_v48  ;;  %7334 = vmatpush.bf16.msrb.mxu0 %v11929_v17  ;;  %v12133_v48 = vor.u32 %v14994_v36, %v12130_v39  ;;  %v15081_v17 = vld [vmem:[#allocation6 + $0xd6c] sm:$0xf]  ;;  %v14988_v36 = vld [vmem:[#allocation6 + $0xa84] sm:$0xf]  ;;  %v12370_v39 = vld [vmem:[#allocation6 + $0xc9c] sm:$0xf0] }
 0x227   :  { %7260 = vmatmul.bf16.vlgmr.msra.gmra.mxu0 %v19011_v21  ;;  %v6908_v6 = vadd.f32 %v17584_v12, %v6889_v53  ;;  %7316 = vmatpush.bf16.msra.mxu3 %v11821_v32  ;;  %v15054_v12 = vld [vmem:[#allocation6 + $0xc94] sm:$0xf]  ;;  %v12106_v32 = vld [vmem:[#allocation6 + $0xa8c] sm:$0xf0] }
 0x228   :  { %7353 = vmatpush.bf16.msrb.mxu1 %v12025_v55  ;;  %v12478_v55 = vld [vmem:[#allocation6 + $0xd74] sm:$0xf0]  ;;  %v12442_v21 = vld [vmem:[#allocation6 + $0xd2c] sm:$0xf0] }
 0x229   :  { %v12481_v14 = vor.u32 %v15081_v17, %v12478_v55  ;;  %v19013_v17 = vld [vmem:[#allocation22_spill] sm:$0xff]  ;;  %v12358_v55 = vld [vmem:[#allocation6 + $0xc84] sm:$0xf0] }
 0x22a   :  { %7370 = vmatpush.bf16.msrb.mxu2 %v12145_v31  ;;  %v17606_v31 = vadd.f32 %v6926_v37, %v6908_v6  ;;  %7335 = vmatpush.bf16.msrb.mxu0 %v11917_v16  ;;  %v6938_v44 = vpop.f32.mrf.mxu3  ;;  %v12277_v37 = vor.u32 %v15030_v3, %v12274_v11  ;;  %v12373_v16 = vor.u32 %v15054_v12, %v12370_v39  ;;  %v15105_v11 = vld [vmem:[#allocation6 + $0xe2c] sm:$0xf]  ;;  %v12574_v12 = vld [vmem:[#allocation6 + $0xe34] sm:$0xf0] }
 0x22b   :  { %7298 = vmatmul.bf16.vlgmr.msra.gmra.mxu2 %v19012_v46  ;;  %7385 = vmatpush.bf16.msrb.mxu3 %v12289_v10  ;;  %v6939_v53 = vadd.f32 %v6938_v44, %v17581_v62  ;;  %v6995_v45 = vpop.f32.mrf.mxu2  ;;  %v17609_v41 = vpop.f32.mrf.mxu1  ;;  %v15027_v10 = vld [vmem:[#allocation6 + $0xbbc] sm:$0xf]  ;;  %v12109_v62 = vor.u32 %v14988_v36, %v12106_v32  ;;  %v12454_v46 = vld [vmem:[#allocation6 + $0xd44] sm:$0xf0]  ;;  %v12361_v3 = vor.u32 %v15051_v56, %v12358_v55  ;;  %v12346_v32 = vld [vmem:[#allocation6 + $0xc6c] sm:$0xf0] }
 0x22c   :  { %7354 = vmatpush.bf16.msrb.mxu1 %v12013_v9  ;;  %v15078_v9 = vld [vmem:[#allocation6 + $0xd54] sm:$0xf]  ;;  %v6959_v18 = vpop.f32.mrf.mxu0  ;;  %v15075_v44 = vld [vmem:[#allocation6 + $0xd3c] sm:$0xf]  ;;  %v12577_v39 = vor.u32 %v15105_v11, %v12574_v12  ;;  %v12238_v55 = vld [vmem:[#allocation6 + $0xb94] sm:$0xf0] }
 0x22d   :  { %v12469_v6 = vor.u32 %v15078_v9, %v12466_v20  ;;  %7284 = vmatmul.bf16.gmra.mxu1 %v19013_v17  ;;  %v15024_v9 = vld [vmem:[#allocation6 + $0xba4] sm:$0xf]  ;;  %v12250_v20 = vld [vmem:[#allocation6 + $0xbac] sm:$0xf0]  ;;  %v12334_v11 = vld [vmem:[#allocation6 + $0xc54] sm:$0xf0] }
 0x22e   :  { %7371 = vmatpush.bf16.msrb.mxu2 %v12133_v48  ;;  %7404 = vmatpush.bf16.msra.mxu0 %v12385_v57  ;;  %v6958_v48 = vadd.f32 %v6957_v7, %v6939_v53  ;;  %v12457_v7 = vor.u32 %v15075_v44, %v12454_v46  ;;  %v15072_v17 = vld [vmem:[#allocation6 + $0xd24] sm:$0xf]  ;;  %v12562_v46 = vld [vmem:[#allocation6 + $0xe1c] sm:$0xf0]  ;;  %v15045_v44 = vld [vmem:[#allocation6 + $0xc4c] sm:$0xf] }
 0x22f   :  { %7386 = vmatpush.bf16.msrb.mxu3 %v12277_v37  ;;  %v12445_v56 = vor.u32 %v15072_v17, %v12442_v21  ;;  %v12430_v12 = vld [vmem:[#allocation6 + $0xd14] sm:$0xf0]  ;;  %v12337_v17 = vor.u32 %v15045_v44, %v12334_v11 }
 0x230   :  { %7423 = vmatpush.bf16.msra.mxu1 %v12481_v14  ;;  %v6977_v57 = vadd.f32 %v17593_v15, %v6958_v48  ;;  %v12265_v14 = vor.u32 %v15027_v10, %v12262_v59 }
 0x232   :  { %7372 = vmatpush.bf16.msrb.mxu2 %v12121_v38  ;;  %7405 = vmatpush.bf16.msra.mxu0 %v12373_v16  ;;  %v17613_v53 = vadd.f32 %v6995_v45, %v6977_v57  ;;  %v15048_v38 = vld [vmem:[#allocation6 + $0xc64] sm:$0xf]  ;;  %v6940_v36 = vpop.f32.mrf.mxu3  ;;  %v12253_v45 = vor.u32 %v15024_v9, %v12250_v20  ;;  %v15018_v9 = vld [vmem:[#allocation6 + $0xb74] sm:$0xf]  ;;  %v12226_v20 = vld [vmem:[#allocation6 + $0xb7c] sm:$0xf0] }
 0x233   :  { %v6941_v15 = vadd.f32 %v6940_v36, %v17590_v60  ;;  %v6997_v37 = vpop.f32.mrf.mxu2  ;;  %v17616_v16 = vpop.f32.mrf.mxu1  ;;  %7387 = vmatpush.bf16.msrb.mxu3 %v12265_v14  ;;  %v12349_v59 = vor.u32 %v15048_v38, %v12346_v32  ;;  %v15069_v60 = vld [vmem:[#allocation6 + $0xd0c] sm:$0xf]  ;;  %v15042_v38 = vld [vmem:[#allocation6 + $0xc34] sm:$0xf] }
 0x234   :  { %7424 = vmatpush.bf16.msra.mxu1 %v12469_v6  ;;  %v15102_v6 = vld [vmem:[#allocation6 + $0xe14] sm:$0xf]  ;;  %v6962_v48 = vpop.f32.mrf.mxu0  ;;  %7246 = vmatmul.bf16.gmra.mxu3 %v16958_v35 }
 0x235   :  { %v6960_v10 = vadd.f32 %v6959_v18, %v6941_v15  ;;  %v12565_v57 = vor.u32 %v15102_v6, %v12562_v46  ;;  %v12322_v15 = vld [vmem:[#allocation6 + $0xc3c] sm:$0xf0] }
 0x236   :  { %7373 = vmatpush.bf16.msrb.mxu2 %v12109_v62  ;;  %7406 = vmatpush.bf16.msra.mxu0 %v12361_v3  ;;  %v15021_v62 = vld [vmem:[#allocation6 + $0xb8c] sm:$0xf]  ;;  %v15099_v3 = vld [vmem:[#allocation6 + $0xdfc] sm:$0xf]  ;;  %v12418_v6 = vld [vmem:[#allocation6 + $0xcfc] sm:$0xf0]  ;;  %v12325_v44 = vor.u32 %v15042_v38, %v12322_v15 }
 0x237   :  { %7265 = vmatmul.bf16.gmra.mxu0 %v16960_v4  ;;  %v6979_v14 = vadd.f32 %v17600_v29, %v6960_v10  ;;  %7388 = vmatpush.bf16.msrb.mxu3 %v12253_v45  ;;  %v12241_v18 = vor.u32 %v15021_v62, %v12238_v55  ;;  %v15066_v29 = vld [vmem:[#allocation6 + $0xcf4] sm:$0xf]  ;;  %v12538_v62 = vld [vmem:[#allocation6 + $0xdec] sm:$0xf0]  ;;  %v15036_v15 = vld [vmem:[#allocation6 + $0xc04] sm:$0xf] }
 0x238   :  { %7425 = vmatpush.bf16.msra.mxu1 %v12457_v7  ;;  %v12550_v7 = vld [vmem:[#allocation6 + $0xe04] sm:$0xf0]  ;;  %v12421_v11 = vor.u32 %v15066_v29, %v12418_v6  ;;  %v12202_v38 = vld [vmem:[#allocation6 + $0xb4c] sm:$0xf0] }
 0x239   :  { %v17622_v21 = vadd.f32 %v6997_v37, %v6979_v14  ;;  %v12553_v32 = vor.u32 %v15099_v3, %v12550_v7  ;;  %v15096_v37 = vld [vmem:[#allocation6 + $0xde4] sm:$0xf]  ;;  %v12310_v14 = vld [vmem:[#allocation6 + $0xc24] sm:$0xf0]  ;;  %v15063_v3 = vld [vmem:[#allocation6 + $0xcdc] sm:$0xf] }
 0x23a   :  { %7442 = vmatpush.bf16.msra.mxu2 %v12577_v39  ;;  %7407 = vmatpush.bf16.msra.mxu0 %v12349_v59  ;;  %v12433_v39 = vor.u32 %v15069_v60, %v12430_v12  ;;  %v6943_v36 = vpop.f32.mrf.mxu3  ;;  %v12214_v60 = vld [vmem:[#allocation6 + $0xb64] sm:$0xf0]  ;;  %v15039_v12 = vld [vmem:[#allocation6 + $0xc1c] sm:$0xf]  ;;  %v12298_v6 = vld [vmem:[#allocation6 + $0xc0c] sm:$0xf0] }
 0x23b   :  { %7303 = vmatmul.bf16.gmra.mxu2 %v16967_v47  ;;  %v6944_v46 = vadd.f32 %v6943_v36, %v17597_v22  ;;  %v7000_v10 = vpop.f32.mrf.mxu2  ;;  %v17625_v45 = vpop.f32.mrf.mxu1  ;;  %7389 = vmatpush.bf16.msrb.mxu3 %v12241_v18  ;;  %v12541_v22 = vor.u32 %v15096_v37, %v12538_v62  ;;  %v12406_v7 = vld [vmem:[#allocation6 + $0xce4] sm:$0xf0]  ;;  %v15093_v47 = vld [vmem:[#allocation6 + $0xdcc] sm:$0xf]  ;;  %v12526_v18 = vld [vmem:[#allocation6 + $0xdd4] sm:$0xf0] }
 0x23c   :  { %7426 = vmatpush.bf16.msra.mxu1 %v12445_v56  ;;  %v6964_v59 = vpop.f32.mrf.mxu0  ;;  %v12229_v56 = vor.u32 %v15018_v9, %v12226_v20  ;;  %v12409_v9 = vor.u32 %v15063_v3, %v12406_v7  ;;  %v15012_v20 = vld [vmem:[#allocation6 + $0xb44] sm:$0xf]  ;;  %v12529_v29 = vor.u32 %v15093_v47, %v12526_v18  ;;  %v12394_v37 = vld [vmem:[#allocation6 + $0xccc] sm:$0xf0]  ;;  %v12670_v47 = vld [vmem:[#allocation6 + $0xef4] sm:$0xf0] }
 0x23d   :  { %v6963_v55 = vadd.f32 %v6962_v48, %v6944_v46  ;;  %7355 = vmatmul.bf16.vlgmr.msrb.gmra.mxu1 %v16980_v27  ;;  %v15060_v46 = vld [vmem:[#allocation6 + $0xcc4] sm:$0xf]  ;;  %v15087_v7 = vld [vmem:[#allocation6 + $0xd9c] sm:$0xf]  ;;  %v15285_v27 = vld [vmem:[#allocation6 + $0x13cc] sm:$0xf] }
 0x23e   :  { %7443 = vmatpush.bf16.msra.mxu2 %v12565_v57  ;;  %7408 = vmatpush.bf16.msra.mxu0 %v12337_v17  ;;  %v15015_v57 = vld [vmem:[#allocation6 + $0xb5c] sm:$0xf]  ;;  %v19014_v18 = vld [vmem:[#allocation35_spill] sm:$0xff] }
 0x23f   :  { %v6982_v36 = vadd.f32 %v17609_v41, %v6963_v55  ;;  %7390 = vmatpush.bf16.msrb.mxu3 %v12229_v56  ;;  %v12217_v48 = vor.u32 %v15015_v57, %v12214_v60  ;;  %v12514_v55 = vld [vmem:[#allocation6 + $0xdbc] sm:$0xf0]  ;;  %v12301_v60 = vor.u32 %v15036_v15, %v12298_v6 }
 0x240   :  { %7427 = vmatpush.bf16.msra.mxu1 %v12433_v39  ;;  %v12313_v39 = vor.u32 %v15039_v12, %v12310_v14  ;;  %v12397_v12 = vor.u32 %v15060_v46, %v12394_v37  ;;  %v12658_v6 = vld [vmem:[#allocation6 + $0xedc] sm:$0xf0] }
 0x241   :  { %v17629_v17 = vadd.f32 %v7000_v10, %v6982_v36  ;;  %v15090_v10 = vld [vmem:[#allocation6 + $0xdb4] sm:$0xf]  ;;  %v12766_v36 = vld [vmem:[#allocation6 + $0xfb4] sm:$0xf0] }
 0x242   :  { %7444 = vmatpush.bf16.msra.mxu2 %v12553_v32  ;;  %7409 = vmatpush.bf16.msra.mxu0 %v12325_v44  ;;  %v6945_v32 = vpop.f32.mrf.mxu3  ;;  %v12517_v14 = vor.u32 %v15090_v10, %v12514_v55  ;;  %v12754_v10 = vld [vmem:[#allocation6 + $0xf9c] sm:$0xf0] }
 0x243   :  { %v6946_v41 = vadd.f32 %v6945_v32, %v17606_v31  ;;  %v7002_v62 = vpop.f32.mrf.mxu2  ;;  %v17632_v56 = vpop.f32.mrf.mxu1  ;;  %7391 = vmatpush.bf16.msrb.mxu3 %v12217_v48  ;;  %v15153_v31 = vld [vmem:[#allocation6 + $0xfac] sm:$0xf] }
 0x244   :  { %7428 = vmatpush.bf16.msra.mxu1 %v12421_v11  ;;  %v7033_v44 = vpop.f32.mrf.mxu0  ;;  %v12205_v11 = vor.u32 %v15012_v20, %v12202_v38  ;;  %7317 = vmatmul.bf16.vlgmr.msra.gmra.mxu3 %v17005_v19  ;;  %v12502_v20 = vld [vmem:[#allocation6 + $0xda4] sm:$0xf0]  ;;  %v19015_v38 = vld [vmem:[#allocation61_spill] sm:$0xff]  ;;  %v15189_v19 = vld [vmem:[#allocation6 + $0x10cc] sm:$0xf] }
 0x245   :  { %v6965_v57 = vadd.f32 %v6964_v59, %v6946_v41  ;;  %v12769_v59 = vor.u32 %v15153_v31, %v12766_v36  ;;  %v12505_v37 = vor.u32 %v15087_v7, %v12502_v20  ;;  %v15084_v41 = vld [vmem:[#allocation6 + $0xd84] sm:$0xf]  ;;  %v12646_v7 = vld [vmem:[#allocation6 + $0xec4] sm:$0xf0] }
 0x246   :  { %7445 = vmatpush.bf16.msra.mxu2 %v12541_v22  ;;  %7410 = vmatpush.bf16.msra.mxu0 %v12313_v39  ;;  %v15129_v22 = vld [vmem:[#allocation6 + $0xeec] sm:$0xf]  ;;  %v19016_v20 = vld [vmem:[#allocation63_spill] sm:$0xff] }
 0x247   :  { %v12673_v3 = vor.u32 %v15129_v22, %v12670_v47  ;;  %7336 = vmatmul.bf16.vlgmr.msrb.gmra.mxu0 %v19014_v18  ;;  %v6984_v48 = vadd.f32 %v17616_v16, %v6965_v57  ;;  %v15177_v39 = vld [vmem:[#allocation6 + $0x106c] sm:$0xf]  ;;  %7392 = vmatpush.bf16.msrb.mxu3 %v12205_v11  ;;  %v15150_v16 = vld [vmem:[#allocation6 + $0xf94] sm:$0xf]  ;;  %v12490_v11 = vld [vmem:[#allocation6 + $0xd8c] sm:$0xf0] }
 0x248   :  { %7429 = vmatpush.bf16.msra.mxu1 %v12409_v9  ;;  %v12862_v9 = vld [vmem:[#allocation6 + $0x1074] sm:$0xf0]  ;;  %v12850_v47 = vld [vmem:[#allocation6 + $0x105c] sm:$0xf0]  ;;  %v15195_v18 = vld [vmem:[#allocation6 + $0x10fc] sm:$0xf] }
 0x249   :  { %v12865_v15 = vor.u32 %v15177_v39, %v12862_v9  ;;  %v17638_v32 = vadd.f32 %v7002_v62, %v6984_v48  ;;  %v15147_v48 = vld [vmem:[#allocation6 + $0xf7c] sm:$0xf]  ;;  %v12742_v39 = vld [vmem:[#allocation6 + $0xf84] sm:$0xf0] }
 0x24a   :  { %7446 = vmatpush.bf16.msra.mxu2 %v12529_v29  ;;  %7411 = vmatpush.bf16.msra.mxu0 %v12301_v60  ;;  %v15126_v29 = vld [vmem:[#allocation6 + $0xed4] sm:$0xf]  ;;  %v7014_v46 = vpop.f32.mrf.mxu3  ;;  %v12757_v60 = vor.u32 %v15150_v16, %v12754_v10  ;;  %v15171_v9 = vld [vmem:[#allocation6 + $0x103c] sm:$0xf]  ;;  %v12958_v16 = vld [vmem:[#allocation6 + $0x1134] sm:$0xf0] }
 0x24b   :  { %7374 = vmatmul.bf16.vlgmr.msrb.gmra.mxu2 %v19015_v38  ;;  %7461 = vmatpush.bf16.msra.mxu3 %v12673_v3  ;;  %v7015_v55 = vadd.f32 %v7014_v46, %v17613_v53  ;;  %v7071_v57 = vpop.f32.mrf.mxu2  ;;  %v17641_v22 = vpop.f32.mrf.mxu1  ;;  %v12661_v62 = vor.u32 %v15126_v29, %v12658_v6  ;;  %v15123_v3 = vld [vmem:[#allocation6 + $0xebc] sm:$0xf]  ;;  %v12493_v53 = vor.u32 %v15084_v41, %v12490_v11  ;;  %v12838_v46 = vld [vmem:[#allocation6 + $0x1044] sm:$0xf0]  ;;  %v15201_v6 = vld [vmem:[#allocation6 + $0x112c] sm:$0xf] }
 0x24c   :  { %7430 = vmatpush.bf16.msra.mxu1 %v12397_v12  ;;  %v15174_v12 = vld [vmem:[#allocation6 + $0x1054] sm:$0xf]  ;;  %v7035_v31 = vpop.f32.mrf.mxu0  ;;  %v12745_v29 = vor.u32 %v15147_v48, %v12742_v39  ;;  %v12961_v10 = vor.u32 %v15201_v6, %v12958_v16  ;;  %v12730_v11 = vld [vmem:[#allocation6 + $0xf6c] sm:$0xf0]  ;;  %v12718_v6 = vld [vmem:[#allocation6 + $0xf54] sm:$0xf0] }
 0x24d   :  { %v12853_v36 = vor.u32 %v15174_v12, %v12850_v47  ;;  %7360 = vmatmul.bf16.gmra.mxu1 %v19016_v20  ;;  %v15120_v12 = vld [vmem:[#allocation6 + $0xea4] sm:$0xf]  ;;  %v12634_v47 = vld [vmem:[#allocation6 + $0xeac] sm:$0xf0]  ;;  %v12814_v16 = vld [vmem:[#allocation6 + $0x1014] sm:$0xf0] }
 0x24e   :  { %7447 = vmatpush.bf16.msra.mxu2 %v12517_v14  ;;  %7480 = vmatpush.bf16.msrb.mxu0 %v12769_v59  ;;  %v7034_v14 = vadd.f32 %v7033_v44, %v7015_v55  ;;  %v12841_v44 = vor.u32 %v15171_v9, %v12838_v46  ;;  %v15168_v20 = vld [vmem:[#allocation6 + $0x1024] sm:$0xf]  ;;  %v12826_v38 = vld [vmem:[#allocation6 + $0x102c] sm:$0xf0]  ;;  %v12622_v9 = vld [vmem:[#allocation6 + $0xe94] sm:$0xf0] }
 0x24f   :  { %7462 = vmatpush.bf16.msra.mxu3 %v12661_v62  ;;  %v12829_v39 = vor.u32 %v15168_v20, %v12826_v38  ;;  %v15141_v46 = vld [vmem:[#allocation6 + $0xf4c] sm:$0xf] }
 0x250   :  { %7499 = vmatpush.bf16.msrb.mxu1 %v12865_v15  ;;  %v7053_v59 = vadd.f32 %v17625_v45, %v7034_v14  ;;  %v12649_v15 = vor.u32 %v15123_v3, %v12646_v7  ;;  %v12946_v14 = vld [vmem:[#allocation6 + $0x111c] sm:$0xf0]  ;;  %v12721_v20 = vor.u32 %v15141_v46, %v12718_v6 }
 0x252   :  { %7448 = vmatpush.bf16.msra.mxu2 %v12505_v37  ;;  %7481 = vmatpush.bf16.msrb.mxu0 %v12757_v60  ;;  %v17645_v55 = vadd.f32 %v7071_v57, %v7053_v59  ;;  %v15144_v37 = vld [vmem:[#allocation6 + $0xf64] sm:$0xf]  ;;  %v7016_v41 = vpop.f32.mrf.mxu3  ;;  %v12637_v57 = vor.u32 %v15120_v12, %v12634_v47  ;;  %v15114_v47 = vld [vmem:[#allocation6 + $0xe74] sm:$0xf] }
 0x253   :  { %v7017_v45 = vadd.f32 %v7016_v41, %v17622_v21  ;;  %v7073_v62 = vpop.f32.mrf.mxu2  ;;  %v17648_v60 = vpop.f32.mrf.mxu1  ;;  %7463 = vmatpush.bf16.msra.mxu3 %v12649_v15  ;;  %v12733_v48 = vor.u32 %v15144_v37, %v12730_v11  ;;  %v15165_v21 = vld [vmem:[#allocation6 + $0x100c] sm:$0xf]  ;;  %v12610_v37 = vld [vmem:[#allocation6 + $0xe7c] sm:$0xf0]  ;;  %v15138_v11 = vld [vmem:[#allocation6 + $0xf34] sm:$0xf] }
 0x254   :  { %7500 = vmatpush.bf16.msrb.mxu1 %v12853_v36  ;;  %v15198_v36 = vld [vmem:[#allocation6 + $0x1114] sm:$0xf]  ;;  %v7038_v3 = vpop.f32.mrf.mxu0  ;;  %v19017_v41 = vld [vmem:[#allocation32_spill] sm:$0xff]  ;;  %v12817_v12 = vor.u32 %v15165_v21, %v12814_v16  ;;  %v15111_v21 = vld [vmem:[#allocation6 + $0xe5c] sm:$0xf] }
 0x255   :  { %v7036_v7 = vadd.f32 %v7035_v31, %v7017_v45  ;;  %v12949_v59 = vor.u32 %v15198_v36, %v12946_v14  ;;  %7322 = vmatmul.bf16.gmra.mxu3 %v19017_v41  ;;  %v19018_v15 = vld [vmem:[#allocation64_spill] sm:$0xff]  ;;  %v12706_v14 = vld [vmem:[#allocation6 + $0xf3c] sm:$0xf0]  ;;  %v19020_v16 = vld [vmem:[#allocation34_spill] sm:$0xff] }
 0x256   :  { %7449 = vmatpush.bf16.msra.mxu2 %v12493_v53  ;;  %7482 = vmatpush.bf16.msrb.mxu0 %v12745_v29  ;;  %v15117_v53 = vld [vmem:[#allocation6 + $0xe8c] sm:$0xf]  ;;  %v12709_v46 = vor.u32 %v15138_v11, %v12706_v14  ;;  %v15132_v11 = vld [vmem:[#allocation6 + $0xf04] sm:$0xf] }
 0x257   :  { %7341 = vmatmul.bf16.gmra.mxu0 %v19018_v15  ;;  %v7055_v29 = vadd.f32 %v17632_v56, %v7036_v7  ;;  %7464 = vmatpush.bf16.msra.mxu3 %v12637_v57  ;;  %v12625_v31 = vor.u32 %v15117_v53, %v12622_v9  ;;  %v15162_v56 = vld [vmem:[#allocation6 + $0xff4] sm:$0xf]  ;;  %v12802_v7 = vld [vmem:[#allocation6 + $0xffc] sm:$0xf0]  ;;  %v15192_v53 = vld [vmem:[#allocation6 + $0x10e4] sm:$0xf] }
 0x258   :  { %7501 = vmatpush.bf16.msrb.mxu1 %v12841_v44  ;;  %v12934_v44 = vld [vmem:[#allocation6 + $0x1104] sm:$0xf0]  ;;  %v12805_v6 = vor.u32 %v15162_v56, %v12802_v7  ;;  %v12682_v56 = vld [vmem:[#allocation6 + $0xf0c] sm:$0xf0]  ;;  %v15156_v7 = vld [vmem:[#allocation6 + $0xfc4] sm:$0xf] }
 0x259   :  { %v17654_v38 = vadd.f32 %v7073_v62, %v7055_v29  ;;  %v12937_v36 = vor.u32 %v15195_v18, %v12934_v44  ;;  %v12922_v62 = vld [vmem:[#allocation6 + $0x10ec] sm:$0xf0]  ;;  %v15135_v18 = vld [vmem:[#allocation6 + $0xf1c] sm:$0xf] }
 0x25a   :  { %7518 = vmatpush.bf16.msrb.mxu2 %v12961_v10  ;;  %v19019_v10 = vld [vmem:[#allocation33_spill] sm:$0xff]  ;;  %7483 = vmatpush.bf16.msrb.mxu0 %v12733_v48  ;;  %v7019_v45 = vpop.f32.mrf.mxu3  ;;  %v12613_v48 = vor.u32 %v15114_v47, %v12610_v37  ;;  %v12925_v29 = vor.u32 %v15192_v53, %v12922_v62  ;;  %v15159_v44 = vld [vmem:[#allocation6 + $0xfdc] sm:$0xf]  ;;  %v15108_v47 = vld [vmem:[#allocation6 + $0xe44] sm:$0xf] }
 0x25b   :  { %7379 = vmatmul.bf16.gmra.mxu2 %v19019_v10  ;;  %v7020_v15 = vadd.f32 %v7019_v45, %v17629_v17  ;;  %v7076_v10 = vpop.f32.mrf.mxu2  ;;  %v7128_v57 = vpop.f32.mrf.mxu1  ;;  %7465 = vmatpush.bf16.msra.mxu3 %v12625_v31  ;;  %v12694_v17 = vld [vmem:[#allocation6 + $0xf24] sm:$0xf0]  ;;  %v12910_v31 = vld [vmem:[#allocation6 + $0x10d4] sm:$0xf0]  ;;  %v12586_v37 = vld [vmem:[#allocation6 + $0xe4c] sm:$0xf0] }
 0x25c   :  { %7502 = vmatpush.bf16.msrb.mxu1 %v12829_v39  ;;  %v7040_v9 = vpop.f32.mrf.mxu0  ;;  %v12790_v45 = vld [vmem:[#allocation6 + $0xfe4] sm:$0xf0]  ;;  %v12913_v14 = vor.u32 %v15189_v19, %v12910_v31  ;;  %v12778_v53 = vld [vmem:[#allocation6 + $0xfcc] sm:$0xf0]  ;;  %v13054_v19 = vld [vmem:[#allocation6 + $0x11f4] sm:$0xf0] }
 0x25d   :  { %v7039_v39 = vadd.f32 %v7038_v3, %v7020_v15  ;;  %7431 = vmatmul.bf16.vlgmr.msra.gmra.mxu1 %v19020_v16  ;;  %v13150_v31 = vld [vmem:[#allocation6 + $0x12b4] sm:$0xf0]  ;;  %v19022_v16 = vld [vmem:[#allocation25_spill] sm:$0xff] }
 0x25e   :  { %7519 = vmatpush.bf16.msrb.mxu2 %v12949_v59  ;;  %7484 = vmatpush.bf16.msrb.mxu0 %v12721_v20  ;;  %v12598_v59 = vld [vmem:[#allocation6 + $0xe64] sm:$0xf0]  ;;  %v12697_v20 = vor.u32 %v15135_v18, %v12694_v17  ;;  %v12781_v18 = vor.u32 %v15156_v7, %v12778_v53 }
 0x25f   :  { %v7058_v41 = vadd.f32 %v17641_v22, %v7039_v39  ;;  %7466 = vmatpush.bf16.msra.mxu3 %v12613_v48  ;;  %v12601_v3 = vor.u32 %v15111_v21, %v12598_v59  ;;  %v15186_v39 = vld [vmem:[#allocation6 + $0x10b4] sm:$0xf] }
 0x260   :  { %7503 = vmatpush.bf16.msrb.mxu1 %v12817_v12  ;;  %v12793_v12 = vor.u32 %v15159_v44, %v12790_v45  ;;  %v15183_v45 = vld [vmem:[#allocation6 + $0x109c] sm:$0xf] }
 0x261   :  { %v17659_v15 = vadd.f32 %v7076_v10, %v7058_v41  ;;  %v12898_v41 = vld [vmem:[#allocation6 + $0x10bc] sm:$0xf0] }
 0x262   :  { %7520 = vmatpush.bf16.msrb.mxu2 %v12937_v36  ;;  %7485 = vmatpush.bf16.msrb.mxu0 %v12709_v46  ;;  %v7021_v36 = vpop.f32.mrf.mxu3  ;;  %v12589_v46 = vor.u32 %v15108_v47, %v12586_v37  ;;  %v12901_v17 = vor.u32 %v15186_v39, %v12898_v41  ;;  %v12886_v47 = vld [vmem:[#allocation6 + $0x10a4] sm:$0xf0]  ;;  %v13138_v39 = vld [vmem:[#allocation6 + $0x129c] sm:$0xf0] }
 0x263   :  { %v7022_v22 = vadd.f32 %v7021_v36, %v17638_v32  ;;  %v7078_v62 = vpop.f32.mrf.mxu2  ;;  %v7130_v48 = vpop.f32.mrf.mxu1  ;;  %7467 = vmatpush.bf16.msra.mxu3 %v12601_v3  ;;  %v15249_v32 = vld [vmem:[#allocation6 + $0x12ac] sm:$0xf]  ;;  %v12889_v53 = vor.u32 %v15183_v45, %v12886_v47  ;;  %v15219_v45 = vld [vmem:[#allocation6 + $0x11bc] sm:$0xf]  ;;  %v19025_v47 = vld [vmem:[#allocation67_spill] sm:$0xff] }
 0x264   :  { %7504 = vmatpush.bf16.msrb.mxu1 %v12805_v6  ;;  %v7109_v10 = vpop.f32.mrf.mxu0  ;;  %v12685_v6 = vor.u32 %v15132_v11, %v12682_v56  ;;  %v19021_v36 = vld [vmem:[#allocation24_spill] sm:$0xff]  ;;  %v13042_v56 = vld [vmem:[#allocation6 + $0x11dc] sm:$0xf0] }
 0x265   :  { %v7041_v21 = vadd.f32 %v7040_v9, %v7022_v22  ;;  %v7129_v59 = vadd.f32 %v7128_v57, %v7109_v10  ;;  %7393 = vmatmul.bf16.vlgmr.msrb.gmra.mxu3 %v19021_v36  ;;  %v13153_v9 = vor.u32 %v15249_v32, %v13150_v31  ;;  %v15273_v57 = vld [vmem:[#allocation6 + $0x136c] sm:$0xf]  ;;  %v15180_v22 = vld [vmem:[#allocation6 + $0x1084] sm:$0xf]  ;;  %v13030_v31 = vld [vmem:[#allocation6 + $0x11c4] sm:$0xf0] }
 0x266   :  { %7521 = vmatpush.bf16.msrb.mxu2 %v12925_v29  ;;  %7486 = vmatpush.bf16.msrb.mxu0 %v12697_v20  ;;  %v15225_v29 = vld [vmem:[#allocation6 + $0x11ec] sm:$0xf]  ;;  %v13246_v20 = vld [vmem:[#allocation6 + $0x1374] sm:$0xf0]  ;;  %v13174_v36 = vld [vmem:[#allocation6 + $0x12e4] sm:$0xf0] }
 0x267   :  { %v13057_v44 = vor.u32 %v15225_v29, %v13054_v19  ;;  %7412 = vmatmul.bf16.vlgmr.msra.gmra.mxu0 %v19022_v16  ;;  %v7060_v3 = vadd.f32 %v17648_v60, %v7041_v21  ;;  %7468 = vmatpush.bf16.msra.mxu3 %v12589_v46  ;;  %v13249_v37 = vor.u32 %v15273_v57, %v13246_v20  ;;  %v15246_v60 = vld [vmem:[#allocation6 + $0x1294] sm:$0xf]  ;;  %v12874_v46 = vld [vmem:[#allocation6 + $0x108c] sm:$0xf0]  ;;  %v13234_v29 = vld [vmem:[#allocation6 + $0x135c] sm:$0xf0] }
 0x268   :  { %7505 = vmatpush.bf16.msrb.mxu1 %v12793_v12  ;;  %v19023_v12 = vld [vmem:[#allocation65_spill] sm:$0xff]  ;;  %v13126_v57 = vld [vmem:[#allocation6 + $0x1284] sm:$0xf0]  ;;  %v15255_v16 = vld [vmem:[#allocation6 + $0x12dc] sm:$0xf] }
 0x269   :  { %v17666_v11 = vadd.f32 %v7078_v62, %v7060_v3  ;;  %v15243_v3 = vld [vmem:[#allocation6 + $0x127c] sm:$0xf]  ;;  %v13222_v20 = vld [vmem:[#allocation6 + $0x1344] sm:$0xf0] }
 0x26a   :  { %7522 = vmatpush.bf16.msrb.mxu2 %v12913_v14  ;;  %7487 = vmatpush.bf16.msrb.mxu0 %v12685_v6  ;;  %v15222_v14 = vld [vmem:[#allocation6 + $0x11d4] sm:$0xf]  ;;  %v7090_v7 = vpop.f32.mrf.mxu3  ;;  %v13141_v6 = vor.u32 %v15246_v60, %v13138_v39  ;;  %v13018_v39 = vld [vmem:[#allocation6 + $0x11ac] sm:$0xf0] }
 0x26b   :  { %7450 = vmatmul.bf16.vlgmr.msra.gmra.mxu2 %v19023_v12  ;;  %7537 = vmatpush.bf16.msrb.mxu3 %v13057_v44  ;;  %v17669_v41 = vadd.f32 %v7090_v7, %v17645_v55  ;;  %v7147_v10 = vpop.f32.mrf.mxu2  ;;  %v7133_v21 = vpop.f32.mrf.mxu1  ;;  %v13045_v62 = vor.u32 %v15222_v14, %v13042_v56  ;;  %v12877_v55 = vor.u32 %v15180_v22, %v12874_v46  ;;  %v15297_v56 = vld [vmem:[#allocation6 + $0x142c] sm:$0xf]  ;;  %v13342_v7 = vld [vmem:[#allocation6 + $0x1434] sm:$0xf0]  ;;  %v13210_v22 = vld [vmem:[#allocation6 + $0x132c] sm:$0xf0] }
 0x26c   :  { %7506 = vmatpush.bf16.msrb.mxu1 %v12781_v18  ;;  %v15270_v18 = vld [vmem:[#allocation6 + $0x1354] sm:$0xf]  ;;  %v7111_v19 = vpop.f32.mrf.mxu0  ;;  %v17671_v32 = vadd.f32 %v7147_v10, %v7129_v59  ;;  %v13129_v14 = vor.u32 %v15243_v3, %v13126_v57  ;;  %v13345_v60 = vor.u32 %v15297_v56, %v13342_v7  ;;  %v15240_v10 = vld [vmem:[#allocation6 + $0x1264] sm:$0xf]  ;;  %v15237_v7 = vld [vmem:[#allocation6 + $0x124c] sm:$0xf] }
 0x26d   :  { %19024 = vst [vmem:[#allocation28_spill] sm:$0xff] %v17669_v41  ;;  %v7131_v44 = vadd.f32 %v7130_v48, %v7111_v19  ;;  %7436 = vmatmul.bf16.gmra.mxu1 %v19025_v47  ;;  %v15216_v48 = vld [vmem:[#allocation6 + $0x11a4] sm:$0xf]  ;;  %v8351_v46 = vmul.f32 %v17669_v41, %v17669_v41  ;;  %v13102_v47 = vld [vmem:[#allocation6 + $0x1254] sm:$0xf0] }
 0x26e   :  { %7523 = vmatpush.bf16.msrb.mxu2 %v12901_v17  ;;  %7556 = vmatpush.bf16.msra.mxu0 %v13153_v9  ;;  %v13237_v17 = vor.u32 %v15270_v18, %v13234_v29  ;;  %v15267_v9 = vld [vmem:[#allocation6 + $0x133c] sm:$0xf]  ;;  %v13114_v29 = vld [vmem:[#allocation6 + $0x126c] sm:$0xf0] }
 0x26f   :  { %7538 = vmatpush.bf16.msrb.mxu3 %v13045_v62  ;;  %v13225_v59 = vor.u32 %v15267_v9, %v13222_v20  ;;  %v13117_v57 = vor.u32 %v15240_v10, %v13114_v29  ;;  %v13318_v10 = vld [vmem:[#allocation6 + $0x1404] sm:$0xf0]  ;;  %v19029_v29 = vld [vmem:[#allocation69_spill] sm:$0xff] }
 0x270   :  { %7575 = vmatpush.bf16.msra.mxu1 %v13249_v37  ;;  %v13033_v37 = vor.u32 %v15219_v45, %v13030_v31  ;;  %v13330_v45 = vld [vmem:[#allocation6 + $0x141c] sm:$0xf0] }
 0x272   :  { %7524 = vmatpush.bf16.msrb.mxu2 %v12889_v53  ;;  %7557 = vmatpush.bf16.msra.mxu0 %v13141_v6  ;;  %v7092_v18 = vpop.f32.mrf.mxu3  ;;  %v15264_v53 = vld [vmem:[#allocation6 + $0x1324] sm:$0xf] }
 0x273   :  { %v17677_v62 = vadd.f32 %v7092_v18, %v17654_v38  ;;  %v7149_v6 = vpop.f32.mrf.mxu2  ;;  %v7135_v19 = vpop.f32.mrf.mxu1  ;;  %7539 = vmatpush.bf16.msrb.mxu3 %v13033_v37  ;;  %v13213_v56 = vor.u32 %v15264_v53, %v13210_v22  ;;  %v15213_v37 = vld [vmem:[#allocation6 + $0x118c] sm:$0xf]  ;;  %v13105_v53 = vor.u32 %v15237_v7, %v13102_v47 }
 0x274   :  { %7576 = vmatpush.bf16.msra.mxu1 %v13237_v17  ;;  %v15294_v17 = vld [vmem:[#allocation6 + $0x1414] sm:$0xf]  ;;  %v7114_v31 = vpop.f32.mrf.mxu0  ;;  %v17679_v3 = vadd.f32 %v7149_v6, %v7131_v44  ;;  %v15261_v44 = vld [vmem:[#allocation6 + $0x130c] sm:$0xf]  ;;  %v13198_v6 = vld [vmem:[#allocation6 + $0x1314] sm:$0xf0] }
 0x275   :  { %19026 = vst [vmem:[#allocation16_spill] sm:$0xff] %v17677_v62  ;;  %v17683_v9 = vadd.f32 %v17677_v62, %v17669_v41  ;;  %v8354_v38 = vmul.f32 %v17677_v62, %v17677_v62  ;;  %v7134_v20 = vadd.f32 %v7133_v21, %v7114_v31  ;;  %v13333_v18 = vor.u32 %v15294_v17, %v13330_v45  ;;  %v15210_v17 = vld [vmem:[#allocation6 + $0x1174] sm:$0xf]  ;;  %v12994_v45 = vld [vmem:[#allocation6 + $0x117c] sm:$0xf0] }
 0x276   :  { %7525 = vmatpush.bf16.msrb.mxu2 %v12877_v55  ;;  %7558 = vmatpush.bf16.msra.mxu0 %v13129_v14  ;;  %v13021_v55 = vor.u32 %v15216_v48, %v13018_v39  ;;  %v13006_v14 = vld [vmem:[#allocation6 + $0x1194] sm:$0xf0]  ;;  %v19028_v48 = vld [vmem:[#allocation36_spill] sm:$0xff]  ;;  %v15291_v39 = vld [vmem:[#allocation6 + $0x13fc] sm:$0xf]  ;;  %v13201_v22 = vor.u32 %v15261_v44, %v13198_v6 }
 0x277   :  { %7417 = vmatmul.bf16.gmra.mxu0 %v19028_v48  ;;  %v13009_v21 = vor.u32 %v15213_v37, %v13006_v14  ;;  %v15234_v31 = vld [vmem:[#allocation6 + $0x1234] sm:$0xf]  ;;  %v12997_v37 = vor.u32 %v15210_v17, %v12994_v45  ;;  %v15207_v44 = vld [vmem:[#allocation6 + $0x115c] sm:$0xf]  ;;  %v12982_v6 = vld [vmem:[#allocation6 + $0x1164] sm:$0xf0] }
 0x278   :  { %7577 = vmatpush.bf16.msra.mxu1 %v13225_v59  ;;  %v17687_v59 = vadd.f32 %v8354_v38, %v8351_v46  ;;  %7540 = vmatpush.bf16.msrb.mxu3 %v13021_v55  ;;  %v13321_v46 = vor.u32 %v15291_v39, %v13318_v10  ;;  %v13090_v38 = vld [vmem:[#allocation6 + $0x123c] sm:$0xf0]  ;;  %v15258_v41 = vld [vmem:[#allocation6 + $0x12f4] sm:$0xf]  ;;  %v15288_v55 = vld [vmem:[#allocation6 + $0x13e4] sm:$0xf] }
 0x279   :  { %v13093_v7 = vor.u32 %v15234_v31, %v13090_v38  ;;  %v15231_v39 = vld [vmem:[#allocation6 + $0x121c] sm:$0xf]  ;;  %v13078_v10 = vld [vmem:[#allocation6 + $0x1224] sm:$0xf0]  ;;  %v13066_v31 = vld [vmem:[#allocation6 + $0x120c] sm:$0xf0] }
 0x27a   :  { %7594 = vmatpush.bf16.msra.mxu2 %v13345_v60  ;;  %v19027_v60 = vld [vmem:[#allocation37_spill] sm:$0xff]  ;;  %7559 = vmatpush.bf16.msra.mxu0 %v13117_v57  ;;  %v7095_v62 = vpop.f32.mrf.mxu3 }
 0x27b   :  { %7398 = vmatmul.bf16.gmra.mxu3 %v19027_v60  ;;  %7455 = vmatmul.bf16.gmra.mxu2 %v19029_v29  ;;  %v13186_v60 = vld [vmem:[#allocation6 + $0x12fc] sm:$0xf0]  ;;  %v17693_v48 = vadd.f32 %v7095_v62, %v17659_v15  ;;  %v7152_v12 = vpop.f32.mrf.mxu2  ;;  %v17695_v29 = vpop.f32.mrf.mxu1  ;;  %v13306_v57 = vld [vmem:[#allocation6 + $0x13ec] sm:$0xf0]  ;;  %v19031_v15 = vld [vmem:[#allocation66_spill] sm:$0xff] }
 0x27c   :  { %7578 = vmatpush.bf16.msra.mxu1 %v13213_v56  ;;  %v7116_v56 = vpop.f32.mrf.mxu0  ;;  %v17697_v47 = vadd.f32 %v7152_v12, %v7134_v20  ;;  %7541 = vmatpush.bf16.msrb.mxu3 %v13009_v21  ;;  %v13309_v62 = vor.u32 %v15288_v55, %v13306_v57  ;;  %v13294_v12 = vld [vmem:[#allocation6 + $0x13d4] sm:$0xf0]  ;;  %v12985_v20 = vor.u32 %v15207_v44, %v12982_v6  ;;  %v13162_v38 = vld [vmem:[#allocation6 + $0x12cc] sm:$0xf0] }
 0x27d   :  { %19030 = vst [vmem:[#allocation18_spill] sm:$0xff] %v17693_v48  ;;  %v7136_v14 = vadd.f32 %v7135_v19, %v7116_v56  ;;  %7507 = vmatmul.bf16.vlgmr.msrb.gmra.mxu1 %v19031_v15  ;;  %v13081_v19 = vor.u32 %v15231_v39, %v13078_v10  ;;  %v13177_v21 = vor.u32 %v15255_v16, %v13174_v36  ;;  %v13282_v16 = vld [vmem:[#allocation6 + $0x13bc] sm:$0xf0]  ;;  %v13438_v10 = vld [vmem:[#allocation6 + $0x14f4] sm:$0xf0] }
 0x27e   :  { %7595 = vmatpush.bf16.msra.mxu2 %v13333_v18  ;;  %7560 = vmatpush.bf16.msra.mxu0 %v13105_v53  ;;  %v13189_v18 = vor.u32 %v15258_v41, %v13186_v60  ;;  %v15204_v53 = vld [vmem:[#allocation6 + $0x1144] sm:$0xf]  ;;  %v12970_v41 = vld [vmem:[#allocation6 + $0x114c] sm:$0xf0]  ;;  %v13297_v45 = vor.u32 %v15285_v27, %v13294_v12  ;;  %v8319_v36 = vadd.f32 %v17683_v9, %v17693_v48 }
 0x27f   :  { %v15228_v60 = vld [vmem:[#allocation6 + $0x1204] sm:$0xf]  ;;  %v12973_v44 = vor.u32 %v15204_v53, %v12970_v41  ;;  %v13270_v53 = vld [vmem:[#allocation6 + $0x13a4] sm:$0xf0]  ;;  %v15345_v41 = vld [vmem:[#allocation6 + $0x15ac] sm:$0xf] }
 0x280   :  { %7579 = vmatpush.bf16.msra.mxu1 %v13201_v22  ;;  %7542 = vmatpush.bf16.msrb.mxu3 %v12997_v37  ;;  %v8357_v22 = vmul.f32 %v17693_v48, %v17693_v48  ;;  %v15282_v37 = vld [vmem:[#allocation6 + $0x13b4] sm:$0xf]  ;;  %v13069_v6 = vor.u32 %v15228_v60, %v13066_v31  ;;  %v19033_v48 = vld [vmem:[#allocation71_spill] sm:$0xff] }
 0x282   :  { %7596 = vmatpush.bf16.msra.mxu2 %v13321_v46  ;;  %7561 = vmatpush.bf16.msra.mxu0 %v13093_v7  ;;  %v7097_v17 = vpop.f32.mrf.mxu3  ;;  %v15252_v46 = vld [vmem:[#allocation6 + $0x12c4] sm:$0xf]  ;;  %v8364_v12 = vadd.f32 %v17687_v59, %v8357_v22  ;;  %v13630_v22 = vld [vmem:[#allocation6 + $0x1674] sm:$0xf0] }
 0x283   :  { %v17703_v55 = vadd.f32 %v7097_v17, %v17666_v11  ;;  %v7154_v57 = vpop.f32.mrf.mxu2  ;;  %v17705_v56 = vpop.f32.mrf.mxu1  ;;  %v13165_v39 = vor.u32 %v15252_v46, %v13162_v38  ;;  %v19035_v46 = vld [vmem:[#allocation68_spill] sm:$0xff]  ;;  %v15318_v38 = vld [vmem:[#allocation6 + $0x14d4] sm:$0xf] }
 0x284   :  { %7580 = vmatpush.bf16.msra.mxu1 %v13189_v18  ;;  %v7185_v7 = vpop.f32.mrf.mxu0  ;;  %v17709_v18 = vadd.f32 %v7154_v57, %v7136_v14  ;;  %7543 = vmatpush.bf16.msrb.mxu3 %v12985_v20  ;;  %v13285_v14 = vor.u32 %v15282_v37, %v13282_v16  ;;  %v15279_v20 = vld [vmem:[#allocation6 + $0x139c] sm:$0xf]  ;;  %v13426_v37 = vld [vmem:[#allocation6 + $0x14dc] sm:$0xf0]  ;;  %v15276_v16 = vld [vmem:[#allocation6 + $0x1384] sm:$0xf] }
 0x285   :  { %19032 = vst [vmem:[#allocation17_spill] sm:$0xff] %v17703_v55  ;;  %v8320_v27 = vsel %vm138_vm1, %v17703_v55, 0.0  ;;  %v8360_v11 = vmul.f32 %v17703_v55, %v17703_v55  ;;  %v19034_v55 = vld [vmem:[#allocation70_spill] sm:$0xff] }
 0x286   :  { %7597 = vmatpush.bf16.msra.mxu2 %v13309_v62  ;;  %7562 = vmatpush.bf16.msra.mxu0 %v13081_v19  ;;  %v15321_v62 = vld [vmem:[#allocation6 + $0x14ec] sm:$0xf]  ;;  %v8321_v9 = vadd.f32 %v8320_v27, %v8319_v36  ;;  %v13534_v19 = vld [vmem:[#allocation6 + $0x15b4] sm:$0xf0] }
 0x287   :  { %v13441_v17 = vor.u32 %v15321_v62, %v13438_v10  ;;  %v8365_v57 = vsel %vm138_vm1, %v8360_v11, 0.0  ;;  %7488 = vmatmul.bf16.vlgmr.msrb.gmra.mxu0 %v19034_v55  ;;  %v13537_v59 = vor.u32 %v15345_v41, %v13534_v19  ;;  %v13273_v62 = vor.u32 %v15279_v20, %v13270_v53  ;;  %v13258_v10 = vld [vmem:[#allocation6 + $0x138c] sm:$0xf0]  ;;  %v15342_v55 = vld [vmem:[#allocation6 + $0x1594] sm:$0xf] }
 0x288   :  { %7581 = vmatpush.bf16.msra.mxu1 %v13177_v21  ;;  %v15369_v21 = vld [vmem:[#allocation6 + $0x166c] sm:$0xf]  ;;  %v8322_v60 = vrot.slane %v8321_v9, 4  ;;  %v8366_v31 = vadd.f32 %v8365_v57, %v8364_v12  ;;  %7544 = vmatpush.bf16.msrb.mxu3 %v12973_v44  ;;  %v15366_v41 = vld [vmem:[#allocation6 + $0x1654] sm:$0xf] }
 0x289   :  { %v13618_v19 = vld [vmem:[#allocation6 + $0x165c] sm:$0xf0]  ;;  %v15315_v20 = vld [vmem:[#allocation6 + $0x14bc] sm:$0xf]  ;;  %v13414_v53 = vld [vmem:[#allocation6 + $0x14c4] sm:$0xf0] }
 0x28a   :  { %7598 = vmatpush.bf16.msra.mxu2 %v13297_v45  ;;  %7563 = vmatpush.bf16.msra.mxu0 %v13069_v6  ;;  %v13633_v45 = vor.u32 %v15369_v21, %v13630_v22  ;;  %v8323_v36 = vadd.f32 %v8322_v60, %v8321_v9  ;;  %v8367_v27 = vrot.slane %v8366_v31, 4  ;;  %v7166_v11 = vpop.f32.mrf.mxu3  ;;  %v13429_v6 = vor.u32 %v15318_v38, %v13426_v37  ;;  %v15363_v38 = vld [vmem:[#allocation6 + $0x163c] sm:$0xf] }
 0x28b   :  { %7469 = vmatmul.bf16.vlgmr.msra.gmra.mxu3 %v19033_v48  ;;  %7526 = vmatmul.bf16.vlgmr.msrb.gmra.mxu2 %v19035_v46  ;;  %v7167_v12 = vadd.f32 %v7166_v11, %v17671_v32  ;;  %v7223_v57 = vpop.f32.mrf.mxu2  ;;  %v17721_v44 = vpop.f32.mrf.mxu1  ;;  %v15339_v46 = vld [vmem:[#allocation6 + $0x157c] sm:$0xf]  ;;  %v15393_v11 = vld [vmem:[#allocation6 + $0x172c] sm:$0xf] }
 0x28c   :  { %7582 = vmatpush.bf16.msra.mxu1 %v13165_v39  ;;  %7613 = vmatpush.bf16.msra.mxu3 %v13441_v17  ;;  %v13522_v39 = vld [vmem:[#allocation6 + $0x159c] sm:$0xf0]  ;;  %v8324_v21 = vrot.slane %v8323_v36, 2  ;;  %v8368_v9 = vadd.f32 %v8367_v27, %v8366_v31  ;;  %v7187_v60 = vpop.f32.mrf.mxu0  ;;  %v13417_v31 = vor.u32 %v15315_v20, %v13414_v53 }
 0x28d   :  { %v13525_v22 = vor.u32 %v15342_v55, %v13522_v39  ;;  %v7186_v17 = vadd.f32 %v7185_v7, %v7167_v12  ;;  %7512 = vmatmul.bf16.gmra.mxu1 %v17177_v26  ;;  %v13606_v55 = vld [vmem:[#allocation6 + $0x1644] sm:$0xf0]  ;;  %v13726_v7 = vld [vmem:[#allocation6 + $0x1734] sm:$0xf0] }
 0x28e   :  { %7599 = vmatpush.bf16.msra.mxu2 %v13285_v14  ;;  %7632 = vmatpush.bf16.msrb.mxu0 %v13537_v59  ;;  %v13621_v14 = vor.u32 %v15366_v41, %v13618_v19  ;;  %v8325_v48 = vadd.f32 %v8324_v21, %v8323_v36  ;;  %v8369_v32 = vrot.slane %v8368_v9, 2  ;;  %v13261_v59 = vor.u32 %v15276_v16, %v13258_v10  ;;  %v13402_v16 = vld [vmem:[#allocation6 + $0x14ac] sm:$0xf0]  ;;  %v15336_v10 = vld [vmem:[#allocation6 + $0x1564] sm:$0xf] }
 0x28f   :  { %v7205_v37 = vadd.f32 %v17695_v29, %v7186_v17  ;;  %v13609_v36 = vor.u32 %v15363_v38, %v13606_v55  ;;  %v13729_v41 = vor.u32 %v15393_v11, %v13726_v7  ;;  %v15309_v55 = vld [vmem:[#allocation6 + $0x148c] sm:$0xf] }
 0x290   :  { %7651 = vmatpush.bf16.msrb.mxu1 %v13633_v45  ;;  %v13510_v45 = vld [vmem:[#allocation6 + $0x1584] sm:$0xf0]  ;;  %7614 = vmatpush.bf16.msra.mxu3 %v13429_v6  ;;  %v8326_v12 = vrot.slane %v8325_v48, 1  ;;  %v8370_v39 = vadd.f32 %v8369_v32, %v8368_v9  ;;  %v13498_v6 = vld [vmem:[#allocation6 + $0x156c] sm:$0xf0] }
 0x291   :  { %v13513_v27 = vor.u32 %v15339_v46, %v13510_v45  ;;  %v17725_v19 = vadd.f32 %v7223_v57, %v7205_v37  ;;  %v13594_v9 = vld [vmem:[#allocation6 + $0x162c] sm:$0xf0]  ;;  %v13714_v57 = vld [vmem:[#allocation6 + $0x171c] sm:$0xf0]  ;;  %v13501_v38 = vor.u32 %v15336_v10, %v13498_v6  ;;  %v15333_v11 = vld [vmem:[#allocation6 + $0x154c] sm:$0xf] }
 0x292   :  { %7600 = vmatpush.bf16.msra.mxu2 %v13273_v62  ;;  %7633 = vmatpush.bf16.msrb.mxu0 %v13525_v22  ;;  %v15312_v62 = vld [vmem:[#allocation6 + $0x14a4] sm:$0xf]  ;;  %v8327_v21 = vadd.f32 %v8326_v12, %v8325_v48  ;;  %v8371_v26 = vrot.slane %v8370_v39, 1  ;;  %v7168_v29 = vpop.f32.mrf.mxu3  ;;  %v13486_v12 = vld [vmem:[#allocation6 + $0x1554] sm:$0xf0] }
 0x293   :  { %v15360_v22 = vld [vmem:[#allocation6 + $0x1624] sm:$0xf]  ;;  %v7169_v46 = vadd.f32 %v7168_v29, %v17679_v3  ;;  %v7225_v17 = vpop.f32.mrf.mxu2  ;;  %v17728_v20 = vpop.f32.mrf.mxu1  ;;  %v13405_v48 = vor.u32 %v15312_v62, %v13402_v16  ;;  %v13390_v3 = vld [vmem:[#allocation6 + $0x1494] sm:$0xf0]  ;;  %v13489_v10 = vor.u32 %v15333_v11, %v13486_v12  ;;  %v15306_v6 = vld [vmem:[#allocation6 + $0x1474] sm:$0xf] }
 0x294   :  { %7652 = vmatpush.bf16.msrb.mxu1 %v13621_v14  ;;  %7615 = vmatpush.bf16.msra.mxu3 %v13417_v31  ;;  %v15390_v14 = vld [vmem:[#allocation6 + $0x1714] sm:$0xf]  ;;  %v17730_v53 = vmul.f32 0.04, %v8327_v21  ;;  %v8372_v32 = vadd.f32 %v8371_v26, %v8370_v39  ;;  %v7190_v45 = vpop.f32.mrf.mxu0  ;;  %v13597_v37 = vor.u32 %v15360_v22, %v13594_v9  ;;  %v15357_v21 = vld [vmem:[#allocation6 + $0x160c] sm:$0xf]  ;;  %v13393_v62 = vor.u32 %v15309_v55, %v13390_v3 }
 0x295   :  { %v15387_v39 = vld [vmem:[#allocation6 + $0x16fc] sm:$0xf]  ;;  %v13378_v22 = vld [vmem:[#allocation6 + $0x147c] sm:$0xf0]  ;;  %v15330_v9 = vld [vmem:[#allocation6 + $0x1534] sm:$0xf] }
 0x296   :  { %7601 = vmatpush.bf16.msra.mxu2 %v13261_v59  ;;  %7634 = vmatpush.bf16.msrb.mxu0 %v13513_v27  ;;  %19036 = vst [vmem:[#allocation19_spill] sm:$0xff] %v17730_v53  ;;  %v7188_v59 = vadd.f32 %v7187_v60, %v7169_v46  ;;  %v17732_v7 = vmul.f32 0.04, %v8372_v32  ;;  %v17736_v31 = vmul.f32 %v17730_v53, %v17730_v53  ;;  %v13582_v60 = vld [vmem:[#allocation6 + $0x1614] sm:$0xf0] }
 0x297   :  { %v13717_v27 = vor.u32 %v15390_v14, %v13714_v57  ;;  %7493 = vmatmul.bf16.gmra.mxu0 %v17197_v50  ;;  %v13585_v29 = vor.u32 %v15357_v21, %v13582_v60  ;;  %v13474_v14 = vld [vmem:[#allocation6 + $0x153c] sm:$0xf0]  ;;  %v15354_v57 = vld [vmem:[#allocation6 + $0x15f4] sm:$0xf]  ;;  %v13690_v55 = vld [vmem:[#allocation6 + $0x16ec] sm:$0xf0] }
 0x298   :  { %7653 = vmatpush.bf16.msrb.mxu1 %v13609_v36  ;;  %v7207_v26 = vadd.f32 %v17705_v56, %v7188_v59  ;;  %v13702_v36 = vld [vmem:[#allocation6 + $0x1704] sm:$0xf0]  ;;  %7616 = vmatpush.bf16.msra.mxu3 %v13405_v48  ;;  %v13570_v48 = vld [vmem:[#allocation6 + $0x15fc] sm:$0xf0]  ;;  %v13477_v11 = vor.u32 %v15330_v9, %v13474_v14  ;;  %v15303_v12 = vld [vmem:[#allocation6 + $0x145c] sm:$0xf] }
 0x299   :  { %v13705_v56 = vor.u32 %v15387_v39, %v13702_v36  ;;  %v13366_v21 = vld [vmem:[#allocation6 + $0x1464] sm:$0xf0]  ;;  %v15351_v39 = vld [vmem:[#allocation6 + $0x15dc] sm:$0xf]  ;;  %v15381_v53 = vld [vmem:[#allocation6 + $0x16cc] sm:$0xf] }
 0x29a   :  { %7670 = vmatpush.bf16.msrb.mxu2 %v13729_v41  ;;  %v17744_v16 = vadd.f32 %v7225_v17, %v7207_v26  ;;  %7635 = vmatpush.bf16.msrb.mxu0 %v13501_v38  ;;  %v7171_v46 = vpop.f32.mrf.mxu3  ;;  %v15384_v17 = vld [vmem:[#allocation6 + $0x16e4] sm:$0xf]  ;;  %v15327_v26 = vld [vmem:[#allocation6 + $0x151c] sm:$0xf]  ;;  %v13462_v60 = vld [vmem:[#allocation6 + $0x1524] sm:$0xf0] }
 0x29b   :  { %7474 = vmatmul.bf16.gmra.mxu3 %v17214_v61  ;;  %7531 = vmatmul.bf16.gmra.mxu2 %v17201_v49  ;;  %v7172_v32 = vadd.f32 %v7171_v46, %v17697_v47  ;;  %v17747_v41 = vpop.f32.mrf.mxu1  ;;  %v13693_v47 = vor.u32 %v15384_v17, %v13690_v55  ;;  %v13558_v36 = vld [vmem:[#allocation6 + $0x15e4] sm:$0xf0]  ;;  %v13354_v9 = vld [vmem:[#allocation6 + $0x144c] sm:$0xf0]  ;;  %v15324_v14 = vld [vmem:[#allocation6 + $0x1504] sm:$0xf] }
 0x29c   :  { %7654 = vmatpush.bf16.msrb.mxu1 %v13597_v37  ;;  %v7192_v38 = vpop.f32.mrf.mxu0  ;;  %7617 = vmatpush.bf16.msra.mxu3 %v13393_v62  ;;  %v13381_v37 = vor.u32 %v15306_v6, %v13378_v22  ;;  %v13678_v62 = vld [vmem:[#allocation6 + $0x16d4] sm:$0xf0]  ;;  %v13561_v6 = vor.u32 %v15351_v39, %v13558_v36  ;;  %v15300_v22 = vld [vmem:[#allocation6 + $0x1444] sm:$0xf]  ;;  %v13546_v17 = vld [vmem:[#allocation6 + $0x15cc] sm:$0xf0] }
 0x29d   :  { %v7191_v3 = vadd.f32 %v7190_v45, %v7172_v32  ;;  %7583 = vmatmul.bf16.vlgmr.msra.gmra.mxu1 %v17232_v2  ;;  %v13369_v45 = vor.u32 %v15303_v12, %v13366_v21  ;;  %v13450_v32 = vld [vmem:[#allocation6 + $0x150c] sm:$0xf0]  ;;  %v14675_v39 = vld [vmem:[#allocation6 + $0xb8] sm:$0xf0] }
 0x29e   :  { %7671 = vmatpush.bf16.msrb.mxu2 %v13717_v27  ;;  %v7228_v59 = vpop.f32.mrf.mxu2  ;;  %7636 = vmatpush.bf16.msrb.mxu0 %v13489_v10  ;;  %v13573_v27 = vor.u32 %v15354_v57, %v13570_v48  ;;  %v13681_v57 = vor.u32 %v15381_v53, %v13678_v62  ;;  %v15348_v48 = vld [vmem:[#allocation6 + $0x15c4] sm:$0xf]  ;;  %v13453_v21 = vor.u32 %v15324_v14, %v13450_v32  ;;  %v10852_v53 = vld [vmem:[#allocation6 + $0xb0] sm:$0xf]  ;;  %v15405_v62 = vld [vmem:[#allocation6 + $0x178c] sm:$0xf] }
 0x29f   :  { %v7210_v46 = vadd.f32 %v17721_v44, %v7191_v3  ;;  %v13666_v3 = vld [vmem:[#allocation6 + $0x16bc] sm:$0xf0]  ;;  %v10948_v36 = vld [vmem:[#allocation6 + $0x170] sm:$0xf]  ;;  %v10840_v32 = vld [vmem:[#allocation6 + $0x98] sm:$0xf] }
 0x2a0   :  { %7655 = vmatpush.bf16.msrb.mxu1 %v13585_v29  ;;  %7618 = vmatpush.bf16.msra.mxu3 %v13381_v37  ;;  %v13465_v29 = vor.u32 %v15327_v26, %v13462_v60  ;;  %v13549_v26 = vor.u32 %v15348_v48, %v13546_v17  ;;  %v14672_v48 = vld [vmem:[#allocation6 + $0xa0] sm:$0xf0] }
 0x2a1   :  { %v17751_v10 = vadd.f32 %v7228_v59, %v7210_v46  ;;  %v15378_v59 = vld [vmem:[#allocation6 + $0x16b4] sm:$0xf] }
 0x2a2   :  { %7672 = vmatpush.bf16.msrb.mxu2 %v13705_v56  ;;  %7637 = vmatpush.bf16.msrb.mxu0 %v13477_v11  ;;  %v7173_v56 = vpop.f32.mrf.mxu3  ;;  %v13669_v60 = vor.u32 %v15378_v59, %v13666_v3  ;;  %v15372_v3 = vld [vmem:[#allocation6 + $0x1684] sm:$0xf] }
 0x2a3   :  { %v7174_v44 = vadd.f32 %v7173_v56, %v17709_v18  ;;  %v17754_v37 = vpop.f32.mrf.mxu1  ;;  %v14699_v18 = vld [vmem:[#allocation6 + $0x178] sm:$0xf0] }
 0x2a4   :  { %7656 = vmatpush.bf16.msrb.mxu1 %v13573_v27  ;;  %v7261_v11 = vpop.f32.mrf.mxu0  ;;  %7619 = vmatpush.bf16.msra.mxu3 %v13369_v45  ;;  %v13357_v27 = vor.u32 %v15300_v22, %v13354_v9  ;;  %v13774_v45 = vld [vmem:[#allocation6 + $0x1794] sm:$0xf0]  ;;  %v19037_v22 = vld [vmem:[#allocation73_spill] sm:$0xff] }
 0x2a5   :  { %v7193_v12 = vadd.f32 %v7192_v38, %v7174_v44  ;;  %v13654_v38 = vld [vmem:[#allocation6 + $0x16a4] sm:$0xf0]  ;;  %v13777_v9 = vor.u32 %v15405_v62, %v13774_v45  ;;  %v10924_v62 = vld [vmem:[#allocation6 + $0x140] sm:$0xf]  ;;  %v14693_v45 = vld [vmem:[#allocation6 + $0x148] sm:$0xf0] }
 0x2a6   :  { %7673 = vmatpush.bf16.msrb.mxu2 %v13693_v47  ;;  %v7230_v55 = vpop.f32.mrf.mxu2  ;;  %7638 = vmatpush.bf16.msrb.mxu0 %v13465_v29  ;;  %v15375_v47 = vld [vmem:[#allocation6 + $0x169c] sm:$0xf]  ;;  %v10853_v29 = vor.u32 %v14675_v39, %v10852_v53  ;;  %v13762_v39 = vld [vmem:[#allocation6 + $0x177c] sm:$0xf0] }
 0x2a7   :  { %7564 = vmatmul.bf16.vlgmr.msra.gmra.mxu0 %v17276_v28  ;;  %v7212_v46 = vadd.f32 %v17728_v20, %v7193_v12  ;;  %v10936_v20 = vld [vmem:[#allocation6 + $0x158] sm:$0xf]  ;;  %v14696_v12 = vld [vmem:[#allocation6 + $0x160] sm:$0xf0] }
 0x2a8   :  { %7657 = vmatpush.bf16.msrb.mxu1 %v13561_v6  ;;  %v10949_v6 = vor.u32 %v14699_v18, %v10948_v36  ;;  %7620 = vmatpush.bf16.msra.mxu3 %v13357_v27  ;;  %v13642_v27 = vld [vmem:[#allocation6 + $0x168c] sm:$0xf0]  ;;  %v19038_v36 = vld [vmem:[#allocation26_spill] sm:$0xff] }
 0x2a9   :  { %v17760_v14 = vadd.f32 %v7230_v55, %v7212_v46  ;;  %v10841_v55 = vor.u32 %v14672_v48, %v10840_v32  ;;  %v13645_v18 = vor.u32 %v15372_v3, %v13642_v27  ;;  %v14669_v46 = vld [vmem:[#allocation6 + $0x88] sm:$0xf0]  ;;  %v10816_v48 = vld [vmem:[#allocation6 + $0x68] sm:$0xf]  ;;  %v14690_v3 = vld [vmem:[#allocation6 + $0x130] sm:$0xf0] }
 0x2aa   :  { %7674 = vmatpush.bf16.msrb.mxu2 %v13681_v57  ;;  %7639 = vmatpush.bf16.msrb.mxu0 %v13453_v21  ;;  %v7242_v56 = vpop.f32.mrf.mxu3  ;;  %v13657_v57 = vor.u32 %v15375_v47, %v13654_v38  ;;  %v10828_v47 = vld [vmem:[#allocation6 + $0x80] sm:$0xf]  ;;  %v11032_v27 = vld [vmem:[#allocation6 + $0x218] sm:$0xf] }
 0x2ab   :  { %7545 = vmatmul.bf16.vlgmr.msrb.gmra.mxu3 %v17262_v42  ;;  %7602 = vmatmul.bf16.vlgmr.msra.gmra.mxu2 %v19037_v22  ;;  %v7243_v17 = vadd.f32 %v7242_v56, %v17725_v19  ;;  %v17763_v59 = vpop.f32.mrf.mxu1  ;;  %v14723_v56 = vld [vmem:[#allocation6 + $0x238] sm:$0xf0] }
 0x2ac   :  { %7658 = vmatpush.bf16.msrb.mxu1 %v13549_v26  ;;  %7693 = vmatpush.bf16.msrb.mxu3 %v13777_v9  ;;  %v7263_v21 = vpop.f32.mrf.mxu0  ;;  %v10937_v26 = vor.u32 %v14696_v12, %v10936_v20  ;;  %v11044_v9 = vld [vmem:[#allocation6 + $0x230] sm:$0xf]  ;;  %v14666_v20 = vld [vmem:[#allocation6 + $0x70] sm:$0xf0]  ;;  %v14720_v12 = vld [vmem:[#allocation6 + $0x220] sm:$0xf0] }
 0x2ad   :  { %v7262_v53 = vadd.f32 %v7261_v11, %v7243_v17  ;;  %7588 = vmatmul.bf16.gmra.mxu1 %v19038_v36  ;;  %v11045_v11 = vor.u32 %v14723_v56, %v11044_v9 }
 0x2ae   :  { %7675 = vmatpush.bf16.msrb.mxu2 %v13669_v60  ;;  %v7299_v44 = vpop.f32.mrf.mxu2  ;;  %7708 = vmatpush.bf16.msra.mxu0 %v10853_v29  ;;  %v15402_v60 = vld [vmem:[#allocation6 + $0x1774] sm:$0xf]  ;;  %v10829_v29 = vor.u32 %v14669_v46, %v10828_v47  ;;  %v11033_v47 = vor.u32 %v14720_v12, %v11032_v27  ;;  %v14663_v46 = vld [vmem:[#allocation6 + $0x58] sm:$0xf0]  ;;  %v14684_v27 = vld [vmem:[#allocation6 + $0x100] sm:$0xf0] }
 0x2af   :  { %v13765_v19 = vor.u32 %v15402_v60, %v13762_v39  ;;  %v7281_v38 = vadd.f32 %v17747_v41, %v7262_v53  ;;  %v10817_v60 = vor.u32 %v14666_v20, %v10816_v48  ;;  %v10792_v20 = vld [vmem:[#allocation6 + $0x38] sm:$0xf]  ;;  %v14714_v12 = vld [vmem:[#allocation6 + $0x1f0] sm:$0xf0] }
 0x2b0   :  { %7727 = vmatpush.bf16.msra.mxu1 %v10949_v6  ;;  %v10925_v6 = vor.u32 %v14693_v45, %v10924_v62  ;;  %v10900_v62 = vld [vmem:[#allocation6 + $0x110] sm:$0xf]  ;;  %v11020_v45 = vld [vmem:[#allocation6 + $0x200] sm:$0xf] }
 0x2b1   :  { %7694 = vmatpush.bf16.msrb.mxu3 %v13765_v19  ;;  %v17767_v32 = vadd.f32 %v7299_v44, %v7281_v38  ;;  %v10804_v19 = vld [vmem:[#allocation6 + $0x50] sm:$0xf]  ;;  %v14717_v38 = vld [vmem:[#allocation6 + $0x208] sm:$0xf0] }
 0x2b2   :  { %7676 = vmatpush.bf16.msrb.mxu2 %v13657_v57  ;;  %7709 = vmatpush.bf16.msra.mxu0 %v10841_v55  ;;  %v10912_v57 = vld [vmem:[#allocation6 + $0x128] sm:$0xf]  ;;  %v7244_v17 = vpop.f32.mrf.mxu3  ;;  %v10805_v9 = vor.u32 %v14663_v46, %v10804_v19  ;;  %v11021_v48 = vor.u32 %v14717_v38, %v11020_v45  ;;  %v10780_v45 = vld [vmem:[#allocation6 + $0x20] sm:$0xf] }
 0x2b3   :  { %v7245_v41 = vadd.f32 %v7244_v17, %v17744_v16  ;;  %v10913_v39 = vor.u32 %v14690_v3, %v10912_v57  ;;  %v14660_v57 = vld [vmem:[#allocation6 + $0x40] sm:$0xf0]  ;;  %v10888_v17 = vld [vmem:[#allocation6 + $0xf8] sm:$0xf] }
 0x2b4   :  { %7728 = vmatpush.bf16.msra.mxu1 %v10937_v26  ;;  %v17770_v26 = vpop.f32.mrf.mxu1  ;;  %v7266_v53 = vpop.f32.mrf.mxu0 }
 0x2b5   :  { %v7264_v44 = vadd.f32 %v7263_v21, %v7245_v41 }
 0x2b6   :  { %7677 = vmatpush.bf16.msrb.mxu2 %v13645_v18  ;;  %v7301_v55 = vpop.f32.mrf.mxu2  ;;  %7710 = vmatpush.bf16.msra.mxu0 %v10829_v29  ;;  %v14687_v18 = vld [vmem:[#allocation6 + $0x118] sm:$0xf0] }
 0x2b7   :  { %7569 = vmatmul.bf16.gmra.mxu0 %v17386_v40  ;;  %v7283_v16 = vadd.f32 %v17754_v37, %v7264_v44  ;;  %v15399_v29 = vld [vmem:[#allocation6 + $0x175c] sm:$0xf]  ;;  %v11008_v37 = vld [vmem:[#allocation6 + $0x1e8] sm:$0xf] }
 0x2b8   :  { %7729 = vmatpush.bf16.msra.mxu1 %v10925_v6  ;;  %v13750_v6 = vld [vmem:[#allocation6 + $0x1764] sm:$0xf0]  ;;  %v11009_v46 = vor.u32 %v14714_v12, %v11008_v37  ;;  %v14678_v37 = vld [vmem:[#allocation6 + $0xd0] sm:$0xf0]  ;;  %v10984_v12 = vld [vmem:[#allocation6 + $0x1b8] sm:$0xf] }
 0x2b9   :  { %v13753_v21 = vor.u32 %v15399_v29, %v13750_v6  ;;  %v17776_v56 = vadd.f32 %v7301_v55, %v7283_v16  ;;  %v10793_v55 = vor.u32 %v14660_v57, %v10792_v20  ;;  %v14657_v16 = vld [vmem:[#allocation6 + $0x28] sm:$0xf0]  ;;  %v10876_v29 = vld [vmem:[#allocation6 + $0xe0] sm:$0xf]  ;;  %v10768_v20 = vld [vmem:[#allocation6 + $0x8] sm:$0xf] }
 0x2ba   :  { %7746 = vmatpush.bf16.msra.mxu2 %v11045_v11  ;;  %7711 = vmatpush.bf16.msra.mxu0 %v10817_v60  ;;  %v10901_v11 = vor.u32 %v14687_v18, %v10900_v62  ;;  %v7247_v3 = vpop.f32.mrf.mxu3  ;;  %v15396_v62 = vld [vmem:[#allocation6 + $0x1744] sm:$0xf]  ;;  %v13738_v18 = vld [vmem:[#allocation6 + $0x174c] sm:$0xf0]  ;;  %v14654_v57 = vld [vmem:[#allocation6 + $0x10] sm:$0xf0] }
 0x2bb   :  { %7550 = vmatmul.bf16.gmra.mxu3 %v17375_v23  ;;  %7607 = vmatmul.bf16.gmra.mxu2 %v17382_v52  ;;  %v7248_v41 = vadd.f32 %v7247_v3, %v17751_v10  ;;  %v13741_v38 = vor.u32 %v15396_v62, %v13738_v18  ;;  %v14681_v10 = vld [vmem:[#allocation6 + $0xe8] sm:$0xf0]  ;;  %v14711_v3 = vld [vmem:[#allocation6 + $0x1d8] sm:$0xf0] }
 0x2bc   :  { %7730 = vmatpush.bf16.msra.mxu1 %v10913_v39  ;;  %7695 = vmatpush.bf16.msrb.mxu3 %v13753_v21  ;;  %v17779_v60 = vpop.f32.mrf.mxu1  ;;  %v7268_v19 = vpop.f32.mrf.mxu0  ;;  %v10996_v21 = vld [vmem:[#allocation6 + $0x1d0] sm:$0xf] }
 0x2bd   :  { %v7267_v39 = vadd.f32 %v7266_v53, %v7248_v41  ;;  %7659 = vmatmul.bf16.vlgmr.msrb.gmra.mxu1 %v17416_v0  ;;  %v10781_v53 = vor.u32 %v14657_v16, %v10780_v45  ;;  %v14708_v41 = vld [vmem:[#allocation6 + $0x1c0] sm:$0xf0]  ;;  %v11140_v45 = vld [vmem:[#allocation6 + $0x2f0] sm:$0xf]  ;;  %v10972_v16 = vld [vmem:[#allocation6 + $0x1a0] sm:$0xf] }
 0x2be   :  { %7747 = vmatpush.bf16.msra.mxu2 %v11033_v47  ;;  %v7304_v44 = vpop.f32.mrf.mxu2  ;;  %7712 = vmatpush.bf16.msra.mxu0 %v10805_v9  ;;  %v10889_v47 = vor.u32 %v14684_v27, %v10888_v17  ;;  %v10864_v17 = vld [vmem:[#allocation6 + $0xc8] sm:$0xf] }
 0x2bf   :  { %v7286_v6 = vadd.f32 %v17763_v59, %v7267_v39 }
 0x2c0   :  { %7731 = vmatpush.bf16.msra.mxu1 %v10901_v11  ;;  %7696 = vmatpush.bf16.msrb.mxu3 %v13741_v38  ;;  %v10877_v11 = vor.u32 %v14681_v10, %v10876_v29  ;;  %v14747_v38 = vld [vmem:[#allocation6 + $0x2f8] sm:$0xf0]  ;;  %v14705_v10 = vld [vmem:[#allocation6 + $0x1a8] sm:$0xf0] }
 0x2c1   :  { %v17783_v9 = vadd.f32 %v7304_v44, %v7286_v6  ;;  %v10769_v44 = vor.u32 %v14654_v57, %v10768_v20  ;;  %v11141_v29 = vor.u32 %v14747_v38, %v11140_v45  ;;  %v11236_v6 = vld [vmem:[#allocation6 + $0x3b0] sm:$0xf]  ;;  %v10973_v20 = vor.u32 %v14705_v10, %v10972_v16  ;;  %v11128_v57 = vld [vmem:[#allocation6 + $0x2d8] sm:$0xf] }
 0x2c2   :  { %7748 = vmatpush.bf16.msra.mxu2 %v11021_v48  ;;  %7713 = vmatpush.bf16.msra.mxu0 %v10793_v55  ;;  %v10997_v48 = vor.u32 %v14711_v3, %v10996_v21  ;;  %v7249_v27 = vpop.f32.mrf.mxu3  ;;  %v14771_v21 = vld [vmem:[#allocation6 + $0x3b8] sm:$0xf0] }
 0x2c3   :  { %v7250_v59 = vadd.f32 %v7249_v27, %v17760_v14  ;;  %v11237_v3 = vor.u32 %v14771_v21, %v11236_v6  ;;  %v10960_v27 = vld [vmem:[#allocation6 + $0x188] sm:$0xf]  ;;  %v14741_v21 = vld [vmem:[#allocation6 + $0x2c8] sm:$0xf0] }
 0x2c4   :  { %7732 = vmatpush.bf16.msra.mxu1 %v10889_v47  ;;  %v17786_v62 = vpop.f32.mrf.mxu1  ;;  %v7337_v55 = vpop.f32.mrf.mxu0  ;;  %v10865_v47 = vor.u32 %v14678_v37, %v10864_v17  ;;  %v14744_v17 = vld [vmem:[#allocation6 + $0x2e0] sm:$0xf0] }
 0x2c5   :  { %v7269_v18 = vadd.f32 %v7268_v19, %v7250_v59  ;;  %v14795_v19 = vld [vmem:[#allocation6 + $0x478] sm:$0xf0]  ;;  %v14768_v59 = vld [vmem:[#allocation6 + $0x3a0] sm:$0xf0] }
 0x2c6   :  { %7749 = vmatpush.bf16.msra.mxu2 %v11009_v46  ;;  %v7306_v39 = vpop.f32.mrf.mxu2  ;;  %7714 = vmatpush.bf16.msra.mxu0 %v10781_v53  ;;  %v10985_v46 = vor.u32 %v14708_v41, %v10984_v12  ;;  %v11332_v53 = vld [vmem:[#allocation6 + $0x470] sm:$0xf]  ;;  %v11129_v12 = vor.u32 %v14744_v17, %v11128_v57  ;;  %v11224_v41 = vld [vmem:[#allocation6 + $0x398] sm:$0xf] }
 0x2c7   :  { %7640 = vmatmul.bf16.vlgmr.msrb.gmra.mxu0 %v17453_v24  ;;  %v7288_v14 = vadd.f32 %v17770_v26, %v7269_v18  ;;  %v14702_v26 = vld [vmem:[#allocation6 + $0x190] sm:$0xf0] }
 0x2c8   :  { %7733 = vmatpush.bf16.msra.mxu1 %v10877_v11  ;;  %v11333_v11 = vor.u32 %v14795_v19, %v11332_v53  ;;  %v10961_v6 = vor.u32 %v14702_v26, %v10960_v27  ;;  %v11308_v53 = vld [vmem:[#allocation6 + $0x440] sm:$0xf]  ;;  %v14789_v19 = vld [vmem:[#allocation6 + $0x448] sm:$0xf0]  ;;  %v11104_v26 = vld [vmem:[#allocation6 + $0x2a8] sm:$0xf] }
 0x2c9   :  { %v11309_v17 = vor.u32 %v14789_v19, %v11308_v53  ;;  %v14735_v19 = vld [vmem:[#allocation6 + $0x298] sm:$0xf0] }
 0x2ca   :  { %7750 = vmatpush.bf16.msra.mxu2 %v10997_v48  ;;  %7715 = vmatpush.bf16.msra.mxu0 %v10769_v44  ;;  %v17792_v48 = vadd.f32 %v7306_v39, %v7288_v14  ;;  %v7318_v37 = vpop.f32.mrf.mxu3  ;;  %v11225_v39 = vor.u32 %v14768_v59, %v11224_v41  ;;  %v11212_v14 = vld [vmem:[#allocation6 + $0x380] sm:$0xf]  ;;  %v14738_v41 = vld [vmem:[#allocation6 + $0x2b0] sm:$0xf0]  ;;  %v11200_v59 = vld [vmem:[#allocation6 + $0x368] sm:$0xf] }
 0x2cb   :  { %7621 = vmatmul.bf16.vlgmr.msra.gmra.mxu3 %v17460_v25  ;;  %7678 = vmatmul.bf16.vlgmr.msrb.gmra.mxu2 %v17462_v33  ;;  %v7319_v18 = vadd.f32 %v7318_v37, %v17767_v32  ;;  %v14765_v32 = vld [vmem:[#allocation6 + $0x388] sm:$0xf0]  ;;  %v11428_v37 = vld [vmem:[#allocation6 + $0x530] sm:$0xf] }
 0x2cc   :  { %7734 = vmatpush.bf16.msra.mxu1 %v10865_v47  ;;  %7765 = vmatpush.bf16.msra.mxu3 %v11141_v29  ;;  %v17795_v44 = vpop.f32.mrf.mxu1  ;;  %v11320_v47 = vld [vmem:[#allocation6 + $0x458] sm:$0xf]  ;;  %v7339_v38 = vpop.f32.mrf.mxu0  ;;  %v11116_v29 = vld [vmem:[#allocation6 + $0x2c0] sm:$0xf]  ;;  %v11213_v57 = vor.u32 %v14765_v32, %v11212_v14 }
 0x2cd   :  { %v7338_v10 = vadd.f32 %v7337_v55, %v7319_v18  ;;  %7664 = vmatmul.bf16.gmra.mxu1 %v17486_v13  ;;  %v14819_v55 = vld [vmem:[#allocation6 + $0x538] sm:$0xf0]  ;;  %v11105_v18 = vor.u32 %v14738_v41, %v11104_v26  ;;  %v14813_v26 = vld [vmem:[#allocation6 + $0x508] sm:$0xf0] }
 0x2ce   :  { %7751 = vmatpush.bf16.msra.mxu2 %v10985_v46  ;;  %7784 = vmatpush.bf16.msrb.mxu0 %v11237_v3  ;;  %v7375_v45 = vpop.f32.mrf.mxu2  ;;  %v14792_v46 = vld [vmem:[#allocation6 + $0x460] sm:$0xf0]  ;;  %v11117_v3 = vor.u32 %v14741_v21, %v11116_v29 }
 0x2cf   :  { %v11321_v16 = vor.u32 %v14792_v46, %v11320_v47  ;;  %v14762_v47 = vld [vmem:[#allocation6 + $0x370] sm:$0xf0]  ;;  %v11296_v46 = vld [vmem:[#allocation6 + $0x428] sm:$0xf]  ;;  %v14816_v29 = vld [vmem:[#allocation6 + $0x520] sm:$0xf0] }
 0x2d0   :  { %7803 = vmatpush.bf16.msrb.mxu1 %v11333_v11  ;;  %7766 = vmatpush.bf16.msra.mxu3 %v11129_v12  ;;  %v7357_v11 = vadd.f32 %v17779_v60, %v7338_v10  ;;  %v14786_v60 = vld [vmem:[#allocation6 + $0x430] sm:$0xf0]  ;;  %v11201_v21 = vor.u32 %v14762_v47, %v11200_v59  ;;  %v14732_v47 = vld [vmem:[#allocation6 + $0x280] sm:$0xf0] }
 0x2d1   :  { %v11297_v53 = vor.u32 %v14786_v60, %v11296_v46  ;;  %v11176_v46 = vld [vmem:[#allocation6 + $0x338] sm:$0xf] }
 0x2d2   :  { %7752 = vmatpush.bf16.msra.mxu2 %v10973_v20  ;;  %7785 = vmatpush.bf16.msrb.mxu0 %v11225_v39  ;;  %v11429_v20 = vor.u32 %v14819_v55, %v11428_v37  ;;  %v17799_v27 = vadd.f32 %v7375_v45, %v7357_v11  ;;  %v7320_v12 = vpop.f32.mrf.mxu3  ;;  %v11416_v45 = vld [vmem:[#allocation6 + $0x518] sm:$0xf]  ;;  %v11188_v11 = vld [vmem:[#allocation6 + $0x350] sm:$0xf]  ;;  %v14759_v55 = vld [vmem:[#allocation6 + $0x358] sm:$0xf0] }
 0x2d3   :  { %v7321_v39 = vadd.f32 %v7320_v12, %v17776_v56  ;;  %v11417_v14 = vor.u32 %v14816_v29, %v11416_v45  ;;  %v11284_v56 = vld [vmem:[#allocation6 + $0x410] sm:$0xf]  ;;  %v14756_v45 = vld [vmem:[#allocation6 + $0x340] sm:$0xf0] }
 0x2d4   :  { %7804 = vmatpush.bf16.msrb.mxu1 %v11321_v16  ;;  %7767 = vmatpush.bf16.msra.mxu3 %v11117_v3  ;;  %v17802_v10 = vpop.f32.mrf.mxu1  ;;  %v11092_v3 = vld [vmem:[#allocation6 + $0x290] sm:$0xf]  ;;  %v14780_v29 = vld [vmem:[#allocation6 + $0x400] sm:$0xf0] }
 0x2d5   :  { %v7340_v32 = vadd.f32 %v7339_v38, %v7321_v39  ;;  %v11093_v37 = vor.u32 %v14735_v19, %v11092_v3  ;;  %v11189_v38 = vor.u32 %v14759_v55, %v11188_v11  ;;  %v11392_v3 = vld [vmem:[#allocation6 + $0x4e8] sm:$0xf] }
 0x2d6   :  { %7753 = vmatpush.bf16.msra.mxu2 %v10961_v6  ;;  %v7377_v16 = vpop.f32.mrf.mxu2  ;;  %7786 = vmatpush.bf16.msrb.mxu0 %v11213_v57  ;;  %v7342_v6 = vpop.f32.mrf.mxu0 }
 0x2d7   :  { %7645 = vmatmul.bf16.gmra.mxu0 %v17501_v43  ;;  %v7359_v57 = vadd.f32 %v17786_v62, %v7340_v32  ;;  %v11272_v62 = vld [vmem:[#allocation6 + $0x3f8] sm:$0xf] }
 0x2d8   :  { %7805 = vmatpush.bf16.msrb.mxu1 %v11309_v17  ;;  %7768 = vmatpush.bf16.msra.mxu3 %v11105_v18  ;;  %v11404_v17 = vld [vmem:[#allocation6 + $0x500] sm:$0xf]  ;;  %v11080_v18 = vld [vmem:[#allocation6 + $0x278] sm:$0xf] }
 0x2d9   :  { %v11405_v41 = vor.u32 %v14813_v26, %v11404_v17  ;;  %v17808_v59 = vadd.f32 %v7377_v16, %v7359_v57  ;;  %v11081_v39 = vor.u32 %v14732_v47, %v11080_v18  ;;  %v14810_v16 = vld [vmem:[#allocation6 + $0x4f0] sm:$0xf0]  ;;  %v11164_v57 = vld [vmem:[#allocation6 + $0x320] sm:$0xf]  ;;  %v11380_v47 = vld [vmem:[#allocation6 + $0x4d0] sm:$0xf] }
 0x2da   :  { %7822 = vmatpush.bf16.msrb.mxu2 %v11429_v20  ;;  %v14783_v20 = vld [vmem:[#allocation6 + $0x418] sm:$0xf0]  ;;  %7787 = vmatpush.bf16.msrb.mxu0 %v11201_v21  ;;  %v7323_v60 = vpop.f32.mrf.mxu3  ;;  %v11393_v11 = vor.u32 %v14810_v16, %v11392_v3  ;;  %v11260_v26 = vld [vmem:[#allocation6 + $0x3e0] sm:$0xf]  ;;  %v11248_v3 = vld [vmem:[#allocation6 + $0x3c8] sm:$0xf] }
 0x2db   :  { %7626 = vmatmul.bf16.gmra.mxu3 %v17509_v30  ;;  %7683 = vmatmul.bf16.gmra.mxu2 %v17505_v34  ;;  %v11285_v12 = vor.u32 %v14783_v20, %v11284_v56  ;;  %v11273_v56 = vor.u32 %v14780_v29, %v11272_v62  ;;  %v14729_v20 = vld [vmem:[#allocation6 + $0x268] sm:$0xf0]  ;;  %v14726_v62 = vld [vmem:[#allocation6 + $0x250] sm:$0xf0] }
 0x2dc   :  { %7806 = vmatpush.bf16.msrb.mxu1 %v11297_v53  ;;  %7769 = vmatpush.bf16.msra.mxu3 %v11093_v37  ;;  %v17811_v21 = vpop.f32.mrf.mxu1  ;;  %v11177_v53 = vor.u32 %v14756_v45, %v11176_v46  ;;  %v11068_v37 = vld [vmem:[#allocation6 + $0x260] sm:$0xf]  ;;  %v11056_v45 = vld [vmem:[#allocation6 + $0x248] sm:$0xf]  ;;  %v14774_v16 = vld [vmem:[#allocation6 + $0x3d0] sm:$0xf0] }
 0x2dd   :  { %7735 = vmatmul.bf16.vlgmr.msra.gmra.mxu1 %v18993_v5  ;;  %v11069_v17 = vor.u32 %v14729_v20, %v11068_v37  ;;  %v11152_v5 = vld [vmem:[#allocation6 + $0x308] sm:$0xf]  ;;  %v11057_v29 = vor.u32 %v14726_v62, %v11056_v45 }
 0x2de   :  { %7823 = vmatpush.bf16.msrb.mxu2 %v11417_v14  ;;  %v7324_v14 = vadd.f32 %v7323_v60, %v17783_v9  ;;  %v7380_v32 = vpop.f32.mrf.mxu2  ;;  %v7344_v19 = vpop.f32.mrf.mxu0  ;;  %7788 = vmatpush.bf16.msrb.mxu0 %v11189_v38  ;;  %v14753_v9 = vld [vmem:[#allocation6 + $0x328] sm:$0xf0]  ;;  %v14807_v38 = vld [vmem:[#allocation6 + $0x4d8] sm:$0xf0] }
 0x2df   :  { %v11165_v46 = vor.u32 %v14753_v9, %v11164_v57  ;;  %v11249_v57 = vor.u32 %v14774_v16, %v11248_v3  ;;  %v11608_v16 = vld [vmem:[#allocation6 + $0x698] sm:$0xf] }
 0x2e0   :  { %v7343_v55 = vadd.f32 %v7342_v6, %v7324_v14  ;;  %7807 = vmatpush.bf16.msrb.mxu1 %v11285_v12  ;;  %7770 = vmatpush.bf16.msra.mxu3 %v11081_v39  ;;  %v11381_v6 = vor.u32 %v14807_v38, %v11380_v47  ;;  %v14750_v14 = vld [vmem:[#allocation6 + $0x310] sm:$0xf0]  ;;  %v14801_v47 = vld [vmem:[#allocation6 + $0x4a8] sm:$0xf0]  ;;  %v14867_v38 = vld [vmem:[#allocation6 + $0x6b8] sm:$0xf0] }
 0x2e2   :  { %7824 = vmatpush.bf16.msrb.mxu2 %v11405_v41  ;;  %v14777_v41 = vld [vmem:[#allocation6 + $0x3e8] sm:$0xf0]  ;;  %v7362_v18 = vadd.f32 %v17795_v44, %v7343_v55  ;;  %7789 = vmatpush.bf16.msrb.mxu0 %v11177_v53  ;;  %v7325_v39 = vpop.f32.mrf.mxu3  ;;  %v11368_v53 = vld [vmem:[#allocation6 + $0x4b8] sm:$0xf] }
 0x2e3   :  { %v11261_v60 = vor.u32 %v14777_v41, %v11260_v26  ;;  %v7326_v44 = vadd.f32 %v7325_v39, %v17792_v48  ;;  %v14843_v26 = vld [vmem:[#allocation6 + $0x5f8] sm:$0xf0]  ;;  %v11356_v41 = vld [vmem:[#allocation6 + $0x4a0] sm:$0xf]  ;;  %v11620_v48 = vld [vmem:[#allocation6 + $0x6b0] sm:$0xf] }
 0x2e4   :  { %v17815_v12 = vadd.f32 %v7380_v32, %v7362_v18  ;;  %7808 = vmatpush.bf16.msrb.mxu1 %v11273_v56  ;;  %7771 = vmatpush.bf16.msra.mxu3 %v11069_v17  ;;  %v17818_v55 = vpop.f32.mrf.mxu1  ;;  %v14804_v32 = vld [vmem:[#allocation6 + $0x4c0] sm:$0xf0]  ;;  %v11153_v56 = vor.u32 %v14750_v14, %v11152_v5  ;;  %v11524_v17 = vld [vmem:[#allocation6 + $0x5f0] sm:$0xf]  ;;  %v11357_v5 = vor.u32 %v14801_v47, %v11356_v41  ;;  %v11512_v39 = vld [vmem:[#allocation6 + $0x5d8] sm:$0xf] }
 0x2e5   :  { %v7345_v20 = vadd.f32 %v7344_v19, %v7326_v44  ;;  %v11369_v9 = vor.u32 %v14804_v32, %v11368_v53  ;;  %v11525_v18 = vor.u32 %v14843_v26, %v11524_v17  ;;  %v11716_v19 = vld [vmem:[#allocation6 + $0x770] sm:$0xf]  ;;  %v11344_v14 = vld [vmem:[#allocation6 + $0x488] sm:$0xf]  ;;  %v14864_v44 = vld [vmem:[#allocation6 + $0x6a0] sm:$0xf0] }
 0x2e6   :  { %7825 = vmatpush.bf16.msrb.mxu2 %v11393_v11  ;;  %v7382_v11 = vpop.f32.mrf.mxu2  ;;  %v7413_v37 = vpop.f32.mrf.mxu0  ;;  %7790 = vmatpush.bf16.msrb.mxu0 %v11165_v46  ;;  %v11500_v41 = vld [vmem:[#allocation6 + $0x5c0] sm:$0xf] }
 0x2e7   :  { %7716 = vmatmul.bf16.vlgmr.msra.gmra.mxu0 %v18994_v58  ;;  %v7364_v46 = vadd.f32 %v17802_v10, %v7345_v20  ;;  %v14798_v10 = vld [vmem:[#allocation6 + $0x490] sm:$0xf0]  ;;  %v14888_v20 = vld [vmem:[#allocation6 + $0x760] sm:$0xf0]  ;;  %v11596_v47 = vld [vmem:[#allocation6 + $0x680] sm:$0xf] }
 0x2e8   :  { %7809 = vmatpush.bf16.msrb.mxu1 %v11261_v60  ;;  %7772 = vmatpush.bf16.msra.mxu3 %v11057_v29  ;;  %v14891_v60 = vld [vmem:[#allocation6 + $0x778] sm:$0xf0]  ;;  %v14840_v29 = vld [vmem:[#allocation6 + $0x5e0] sm:$0xf0]  ;;  %v11345_v26 = vor.u32 %v14798_v10, %v11344_v14  ;;  %v14834_v14 = vld [vmem:[#allocation6 + $0x5b0] sm:$0xf0] }
 0x2e9   :  { %v11717_v45 = vor.u32 %v14891_v60, %v11716_v19  ;;  %v17825_v62 = vadd.f32 %v7382_v11, %v7364_v46  ;;  %v11513_v58 = vor.u32 %v14840_v29, %v11512_v39  ;;  %v11609_v11 = vor.u32 %v14864_v44, %v11608_v16  ;;  %v14885_v46 = vld [vmem:[#allocation6 + $0x748] sm:$0xf0]  ;;  %v11488_v29 = vld [vmem:[#allocation6 + $0x5a8] sm:$0xf]  ;;  %v14858_v10 = vld [vmem:[#allocation6 + $0x670] sm:$0xf0] }
 0x2ea   :  { %7826 = vmatpush.bf16.msrb.mxu2 %v11381_v6  ;;  %v11621_v6 = vor.u32 %v14867_v38, %v11620_v48  ;;  %7791 = vmatpush.bf16.msrb.mxu0 %v11153_v56  ;;  %v7394_v3 = vpop.f32.mrf.mxu3  ;;  %v11704_v56 = vld [vmem:[#allocation6 + $0x758] sm:$0xf]  ;;  %v11692_v38 = vld [vmem:[#allocation6 + $0x740] sm:$0xf]  ;;  %v11680_v16 = vld [vmem:[#allocation6 + $0x728] sm:$0xf] }
 0x2eb   :  { %13784 = vmatmul.msk.bf16.vlgmr.msrb.gmra.mxu3 %vm167_vm0, %v17527_v63  ;;  %7754 = vmatmul.bf16.vlgmr.msra.gmra.mxu2 %v18995_v8  ;;  %v7395_v53 = vadd.f32 %v7394_v3, %v17799_v27  ;;  %v14861_v27 = vld [vmem:[#allocation6 + $0x688] sm:$0xf0]  ;;  %v11693_v60 = vor.u32 %v14885_v46, %v11692_v38  ;;  %v14855_v38 = vld [vmem:[#allocation6 + $0x658] sm:$0xf0] }
 0x2ec   :  { %7810 = vmatpush.bf16.msrb.mxu1 %v11249_v57  ;;  %7841 = vmatpush.bf16.msrb.mxu3 %v11525_v18  ;;  %v17828_v32 = vpop.f32.mrf.mxu1  ;;  %v14837_v18 = vld [vmem:[#allocation6 + $0x5c8] sm:$0xf0]  ;;  %v11597_v19 = vor.u32 %v14861_v27, %v11596_v47  ;;  %v14831_v47 = vld [vmem:[#allocation6 + $0x598] sm:$0xf0] }
 0x2ed   :  { %v7414_v17 = vadd.f32 %v7413_v37, %v7395_v53  ;;  %7740 = vmatmul.bf16.gmra.mxu1 %v18996_v1  ;;  %v11501_v48 = vor.u32 %v14837_v18, %v11500_v41  ;;  %v14915_v37 = vld [vmem:[#allocation6 + $0x838] sm:$0xf0]  ;;  %v11584_v1 = vld [vmem:[#allocation6 + $0x668] sm:$0xf]  ;;  %v11476_v18 = vld [vmem:[#allocation6 + $0x590] sm:$0xf] }
 0x2ee   :  { %7827 = vmatpush.bf16.msrb.mxu2 %v11369_v9  ;;  %7860 = vmatpush.bf16.msra.mxu0 %v11621_v6  ;;  %v7451_v8 = vpop.f32.mrf.mxu2  ;;  %v7415_v57 = vpop.f32.mrf.mxu0  ;;  %v11705_v9 = vor.u32 %v14888_v20, %v11704_v56  ;;  %v14912_v56 = vld [vmem:[#allocation6 + $0x820] sm:$0xf0]  ;;  %v11477_v27 = vor.u32 %v14831_v47, %v11476_v18  ;;  %v14879_v46 = vld [vmem:[#allocation6 + $0x718] sm:$0xf0] }
 0x2ef   :  { %v7433_v6 = vadd.f32 %v17811_v21, %v7414_v17  ;;  %v14882_v21 = vld [vmem:[#allocation6 + $0x730] sm:$0xf0] }
 0x2f0   :  { %7879 = vmatpush.bf16.msra.mxu1 %v11717_v45  ;;  %7842 = vmatpush.bf16.msrb.mxu3 %v11513_v58  ;;  %v11812_v45 = vld [vmem:[#allocation6 + $0x830] sm:$0xf]  ;;  %v11489_v58 = vor.u32 %v14834_v14, %v11488_v29  ;;  %v11681_v41 = vor.u32 %v14882_v21, %v11680_v16 }
 0x2f1   :  { %v17832_v39 = vadd.f32 %v7451_v8, %v7433_v6  ;;  %v11800_v8 = vld [vmem:[#allocation6 + $0x818] sm:$0xf]  ;;  %v19039_v6 = vld [vmem:[#allocation27_spill] sm:$0xff] }
 0x2f2   :  { %7828 = vmatpush.bf16.msrb.mxu2 %v11357_v5  ;;  %7861 = vmatpush.bf16.msra.mxu0 %v11609_v11  ;;  %v11813_v5 = vor.u32 %v14915_v37, %v11812_v45  ;;  %v7396_v3 = vpop.f32.mrf.mxu3  ;;  %v11801_v17 = vor.u32 %v14912_v56, %v11800_v8  ;;  %v11788_v45 = vld [vmem:[#allocation6 + $0x800] sm:$0xf]  ;;  %v14909_v37 = vld [vmem:[#allocation6 + $0x808] sm:$0xf0]  ;;  %v14876_v8 = vld [vmem:[#allocation6 + $0x700] sm:$0xf0] }
 0x2f3   :  { %v7397_v44 = vadd.f32 %v7396_v3, %v17808_v59  ;;  %v11668_v59 = vld [vmem:[#allocation6 + $0x710] sm:$0xf]  ;;  %v11789_v29 = vor.u32 %v14909_v37, %v11788_v45  ;;  %v11464_v3 = vld [vmem:[#allocation6 + $0x578] sm:$0xf]  ;;  %v11644_v45 = vld [vmem:[#allocation6 + $0x6e0] sm:$0xf] }
 0x2f4   :  { %7880 = vmatpush.bf16.msra.mxu1 %v11705_v9  ;;  %7843 = vmatpush.bf16.msrb.mxu3 %v11501_v48  ;;  %v17835_v11 = vpop.f32.mrf.mxu1  ;;  %v11585_v9 = vor.u32 %v14858_v10, %v11584_v1  ;;  %v11572_v48 = vld [vmem:[#allocation6 + $0x650] sm:$0xf]  ;;  %v11669_v1 = vor.u32 %v14879_v46, %v11668_v59  ;;  %v11560_v10 = vld [vmem:[#allocation6 + $0x638] sm:$0xf]  ;;  %v14825_v59 = vld [vmem:[#allocation6 + $0x568] sm:$0xf0] }
 0x2f5   :  { %v11548_v46 = vld [vmem:[#allocation6 + $0x620] sm:$0xf]  ;;  %v14873_v37 = vld [vmem:[#allocation6 + $0x6e8] sm:$0xf0] }
 0x2f6   :  { %7829 = vmatpush.bf16.msrb.mxu2 %v11345_v26  ;;  %v7453_v53 = vpop.f32.mrf.mxu2  ;;  %7862 = vmatpush.bf16.msra.mxu0 %v11597_v19  ;;  %v7418_v20 = vpop.f32.mrf.mxu0  ;;  %v7416_v26 = vadd.f32 %v7415_v57, %v7397_v44  ;;  %v19040_v19 = vld [vmem:[#allocation47_spill] sm:$0xff]  ;;  %v19041_v57 = vld [vmem:[#allocation50_spill] sm:$0xff] }
 0x2f7   :  { %7721 = vmatmul.bf16.gmra.mxu0 %v19040_v19  ;;  %v14852_v44 = vld [vmem:[#allocation6 + $0x640] sm:$0xf0] }
 0x2f8   :  { %7881 = vmatpush.bf16.msra.mxu1 %v11693_v60  ;;  %7844 = vmatpush.bf16.msrb.mxu3 %v11489_v58  ;;  %v7435_v60 = vadd.f32 %v17818_v55, %v7416_v26  ;;  %v14828_v58 = vld [vmem:[#allocation6 + $0x580] sm:$0xf0]  ;;  %v11656_v55 = vld [vmem:[#allocation6 + $0x6f8] sm:$0xf]  ;;  %v11776_v26 = vld [vmem:[#allocation6 + $0x7e8] sm:$0xf] }
 0x2f9   :  { %v11465_v21 = vor.u32 %v14828_v58, %v11464_v3  ;;  %v19042_v19 = vld [vmem:[#allocation51_spill] sm:$0xff]  ;;  %v11645_v58 = vor.u32 %v14873_v37, %v11644_v45  ;;  %v14897_v37 = vld [vmem:[#allocation6 + $0x7a8] sm:$0xf0] }
 0x2fa   :  { %7898 = vmatpush.bf16.msra.mxu2 %v11813_v5  ;;  %7863 = vmatpush.bf16.msra.mxu0 %v11585_v9  ;;  %v11573_v5 = vor.u32 %v14855_v38, %v11572_v48  ;;  %v17842_v14 = vadd.f32 %v7453_v53, %v7435_v60  ;;  %v14906_v53 = vld [vmem:[#allocation6 + $0x7f0] sm:$0xf0]  ;;  %v11657_v38 = vor.u32 %v14876_v8, %v11656_v55 }
 0x2fb   :  { %13785 = vmatmul.msk.bf16.gmra.mxu3 %vm167_vm0, %v19039_v6  ;;  %7759 = vmatmul.bf16.gmra.mxu2 %v19041_v57  ;;  %v11777_v47 = vor.u32 %v14906_v53, %v11776_v26  ;;  %v14846_v8 = vld [vmem:[#allocation6 + $0x610] sm:$0xf0] }
 0x2fc   :  { %7882 = vmatpush.bf16.msra.mxu1 %v11681_v41  ;;  %7845 = vmatpush.bf16.msrb.mxu3 %v11477_v27  ;;  %v17845_v9 = vpop.f32.mrf.mxu1  ;;  %v11561_v41 = vor.u32 %v14852_v44, %v11560_v10  ;;  %v11452_v27 = vld [vmem:[#allocation6 + $0x560] sm:$0xf]  ;;  %v11440_v10 = vld [vmem:[#allocation6 + $0x548] sm:$0xf]  ;;  %v14870_v26 = vld [vmem:[#allocation6 + $0x6d0] sm:$0xf0] }
 0x2fd   :  { %7811 = vmatmul.bf16.vlgmr.msrb.gmra.mxu1 %v19042_v19  ;;  %v11453_v60 = vor.u32 %v14825_v59, %v11452_v27  ;;  %v11536_v44 = vld [vmem:[#allocation6 + $0x608] sm:$0xf]  ;;  %v11908_v19 = vld [vmem:[#allocation6 + $0x8f0] sm:$0xf] }
 0x2fe   :  { %7899 = vmatpush.bf16.msra.mxu2 %v11801_v17  ;;  %v7399_v16 = vpop.f32.mrf.mxu3  ;;  %v7456_v17 = vpop.f32.mrf.mxu2  ;;  %7864 = vmatpush.bf16.msra.mxu0 %v11573_v5  ;;  %v14903_v5 = vld [vmem:[#allocation6 + $0x7d8] sm:$0xf0] }
 0x2ff   :  { %v7400_v56 = vadd.f32 %v7399_v16, %v17815_v12  ;;  %v7420_v18 = vpop.f32.mrf.mxu0  ;;  %v14849_v12 = vld [vmem:[#allocation6 + $0x628] sm:$0xf0]  ;;  %v14822_v16 = vld [vmem:[#allocation6 + $0x550] sm:$0xf0] }
 0x300   :  { %7883 = vmatpush.bf16.msra.mxu1 %v11669_v1  ;;  %7846 = vmatpush.bf16.msrb.mxu3 %v11465_v21  ;;  %v11549_v3 = vor.u32 %v14849_v12, %v11548_v46  ;;  %v11441_v55 = vor.u32 %v14822_v16, %v11440_v10  ;;  %v11740_v12 = vld [vmem:[#allocation6 + $0x7a0] sm:$0xf]  ;;  %v12100_v10 = vld [vmem:[#allocation6 + $0xa70] sm:$0xf] }
 0x301   :  { %v7419_v48 = vadd.f32 %v7418_v20, %v7400_v56  ;;  %v11632_v56 = vld [vmem:[#allocation6 + $0x6c8] sm:$0xf] }
 0x302   :  { %7900 = vmatpush.bf16.msra.mxu2 %v11789_v29  ;;  %v11764_v29 = vld [vmem:[#allocation6 + $0x7d0] sm:$0xf]  ;;  %7865 = vmatpush.bf16.msra.mxu0 %v11561_v41  ;;  %v11752_v41 = vld [vmem:[#allocation6 + $0x7b8] sm:$0xf]  ;;  %v11633_v59 = vor.u32 %v14870_v26, %v11632_v56  ;;  %v11728_v56 = vld [vmem:[#allocation6 + $0x788] sm:$0xf] }
 0x303   :  { %v7438_v57 = vadd.f32 %v17828_v32, %v7419_v48  ;;  %v11765_v20 = vor.u32 %v14903_v5, %v11764_v29  ;;  %v19043_v29 = vld [vmem:[#allocation53_spill] sm:$0xff]  ;;  %v19044_v5 = vld [vmem:[#allocation54_spill] sm:$0xff] }
 0x304   :  { %7884 = vmatpush.bf16.msra.mxu1 %v11657_v38  ;;  %7847 = vmatpush.bf16.msrb.mxu3 %v11453_v60  ;;  %v11537_v38 = vor.u32 %v14846_v8, %v11536_v44  ;;  %v14939_v60 = vld [vmem:[#allocation6 + $0x8f8] sm:$0xf0]  ;;  %v14936_v8 = vld [vmem:[#allocation6 + $0x8e0] sm:$0xf0] }
 0x305   :  { %v17849_v1 = vadd.f32 %v7456_v17, %v7438_v57  ;;  %v14900_v17 = vld [vmem:[#allocation6 + $0x7c0] sm:$0xf0]  ;;  %v11909_v45 = vor.u32 %v14939_v60, %v11908_v19  ;;  %v14963_v57 = vld [vmem:[#allocation6 + $0x9b8] sm:$0xf0] }
 0x306   :  { %7901 = vmatpush.bf16.msra.mxu2 %v11777_v47  ;;  %v7401_v21 = vpop.f32.mrf.mxu3  ;;  %v7458_v53 = vpop.f32.mrf.mxu2  ;;  %7866 = vmatpush.bf16.msra.mxu0 %v11549_v3  ;;  %v11753_v46 = vor.u32 %v14900_v17, %v11752_v41  ;;  %v11992_v41 = vld [vmem:[#allocation6 + $0x998] sm:$0xf]  ;;  %v14960_v17 = vld [vmem:[#allocation6 + $0x9a0] sm:$0xf0] }
 0x307   :  { %v7402_v32 = vadd.f32 %v7401_v21, %v17825_v62  ;;  %v17852_v47 = vpop.f32.mrf.mxu1  ;;  %v7489_v48 = vpop.f32.mrf.mxu0  ;;  %v12004_v62 = vld [vmem:[#allocation6 + $0x9b0] sm:$0xf]  ;;  %7792 = vmatmul.bf16.vlgmr.msrb.gmra.mxu0 %v19044_v5  ;;  %v11741_v21 = vor.u32 %v14897_v37, %v11740_v12  ;;  %v19046_v5 = vld [vmem:[#allocation31_spill] sm:$0xff] }
 0x308   :  { %7885 = vmatpush.bf16.msra.mxu1 %v11645_v58  ;;  %7848 = vmatpush.bf16.msrb.mxu3 %v11441_v55  ;;  %v12005_v3 = vor.u32 %v14963_v57, %v12004_v62  ;;  %v19045_v58 = vld [vmem:[#allocation52_spill] sm:$0xff]  ;;  %v11896_v55 = vld [vmem:[#allocation6 + $0x8d8] sm:$0xf] }
 0x309   :  { %v7421_v27 = vadd.f32 %v7420_v18, %v7402_v32  ;;  %v14987_v18 = vld [vmem:[#allocation6 + $0xa78] sm:$0xf0]  ;;  %v11897_v32 = vor.u32 %v14936_v8, %v11896_v55  ;;  %v14933_v57 = vld [vmem:[#allocation6 + $0x8c8] sm:$0xf0]  ;;  %v12196_v55 = vld [vmem:[#allocation6 + $0xb30] sm:$0xf] }
 0x30a   :  { %7902 = vmatpush.bf16.msra.mxu2 %v11765_v20  ;;  %7867 = vmatpush.bf16.msra.mxu0 %v11537_v38  ;;  %v12101_v16 = vor.u32 %v14987_v18, %v12100_v10  ;;  %v14981_v10 = vld [vmem:[#allocation6 + $0xa48] sm:$0xf0] }
 0x30b   :  { %7773 = vmatmul.bf16.vlgmr.msra.gmra.mxu3 %v19043_v29  ;;  %v7440_v20 = vadd.f32 %v17835_v11, %v7421_v27  ;;  %7830 = vmatmul.bf16.vlgmr.msrb.gmra.mxu2 %v19045_v58  ;;  %v14894_v11 = vld [vmem:[#allocation6 + $0x790] sm:$0xf0]  ;;  %v11980_v29 = vld [vmem:[#allocation6 + $0x980] sm:$0xf] }
 0x30c   :  { %7886 = vmatpush.bf16.msra.mxu1 %v11633_v59  ;;  %7917 = vmatpush.bf16.msra.mxu3 %v11909_v45  ;;  %v12088_v59 = vld [vmem:[#allocation6 + $0xa58] sm:$0xf]  ;;  %v11729_v62 = vor.u32 %v14894_v11, %v11728_v56  ;;  %v11884_v45 = vld [vmem:[#allocation6 + $0x8c0] sm:$0xf]  ;;  %v11872_v56 = vld [vmem:[#allocation6 + $0x8a8] sm:$0xf] }
 0x30d   :  { %v17858_v44 = vadd.f32 %v7458_v53, %v7440_v20  ;;  %v11993_v53 = vor.u32 %v14960_v17, %v11992_v41  ;;  %7816 = vmatmul.bf16.gmra.mxu1 %v19046_v5  ;;  %v11885_v20 = vor.u32 %v14933_v57, %v11884_v45  ;;  %v11968_v11 = vld [vmem:[#allocation6 + $0x968] sm:$0xf]  ;;  %v14954_v17 = vld [vmem:[#allocation6 + $0x970] sm:$0xf0]  ;;  %v11860_v5 = vld [vmem:[#allocation6 + $0x890] sm:$0xf] }
 0x30e   :  { %7903 = vmatpush.bf16.msra.mxu2 %v11753_v46  ;;  %v7470_v26 = vpop.f32.mrf.mxu3  ;;  %7936 = vmatpush.bf16.msrb.mxu0 %v12005_v3  ;;  %v7527_v19 = vpop.f32.mrf.mxu2  ;;  %v14984_v46 = vld [vmem:[#allocation6 + $0xa60] sm:$0xf0]  ;;  %v12076_v3 = vld [vmem:[#allocation6 + $0xa40] sm:$0xf] }
 0x30f   :  { %v7471_v27 = vadd.f32 %v7470_v26, %v17832_v39  ;;  %v17861_v38 = vpop.f32.mrf.mxu1  ;;  %v7491_v60 = vpop.f32.mrf.mxu0  ;;  %v12089_v12 = vor.u32 %v14984_v46, %v12088_v59  ;;  %v14957_v39 = vld [vmem:[#allocation6 + $0x988] sm:$0xf0]  ;;  %v14930_v26 = vld [vmem:[#allocation6 + $0x8b0] sm:$0xf0] }
 0x310   :  { %7955 = vmatpush.bf16.msrb.mxu1 %v12101_v16  ;;  %7918 = vmatpush.bf16.msra.mxu3 %v11897_v32  ;;  %v11981_v58 = vor.u32 %v14957_v39, %v11980_v29  ;;  %v12077_v16 = vor.u32 %v14981_v10, %v12076_v3  ;;  %v11873_v41 = vor.u32 %v14930_v26, %v11872_v56  ;;  %v11956_v39 = vld [vmem:[#allocation6 + $0x950] sm:$0xf]  ;;  %v14951_v10 = vld [vmem:[#allocation6 + $0x958] sm:$0xf0] }
 0x311   :  { %v7490_v37 = vadd.f32 %v7489_v48, %v7471_v27  ;;  %v15011_v48 = vld [vmem:[#allocation6 + $0xb38] sm:$0xf0]  ;;  %v12064_v27 = vld [vmem:[#allocation6 + $0xa28] sm:$0xf]  ;;  %v19049_v56 = vld [vmem:[#allocation29_spill] sm:$0xff] }
 0x312   :  { %7904 = vmatpush.bf16.msra.mxu2 %v11741_v21  ;;  %7937 = vmatpush.bf16.msrb.mxu0 %v11993_v53  ;;  %v12197_v21 = vor.u32 %v15011_v48, %v12196_v55  ;;  %v19047_v55 = vld [vmem:[#allocation55_spill] sm:$0xff] }
 0x313   :  { %v7509_v18 = vadd.f32 %v17845_v9, %v7490_v37  ;;  %v14978_v9 = vld [vmem:[#allocation6 + $0xa30] sm:$0xf0]  ;;  %v12172_v48 = vld [vmem:[#allocation6 + $0xb00] sm:$0xf] }
 0x314   :  { %7956 = vmatpush.bf16.msrb.mxu1 %v12089_v12  ;;  %7919 = vmatpush.bf16.msra.mxu3 %v11885_v20  ;;  %v15008_v12 = vld [vmem:[#allocation6 + $0xb20] sm:$0xf0]  ;;  %v12065_v29 = vor.u32 %v14978_v9, %v12064_v27  ;;  %v14927_v20 = vld [vmem:[#allocation6 + $0x898] sm:$0xf0]  ;;  %v11944_v27 = vld [vmem:[#allocation6 + $0x938] sm:$0xf] }
 0x315   :  { %v17865_v8 = vadd.f32 %v7527_v19, %v7509_v18  ;;  %v12184_v19 = vld [vmem:[#allocation6 + $0xb18] sm:$0xf]  ;;  %v11861_v3 = vor.u32 %v14927_v20, %v11860_v5  ;;  %v14975_v18 = vld [vmem:[#allocation6 + $0xa18] sm:$0xf0]  ;;  %v12160_v5 = vld [vmem:[#allocation6 + $0xae8] sm:$0xf] }
 0x316   :  { %7905 = vmatpush.bf16.msra.mxu2 %v11729_v62  ;;  %v7472_v32 = vpop.f32.mrf.mxu3  ;;  %v7529_v59 = vpop.f32.mrf.mxu2  ;;  %7938 = vmatpush.bf16.msrb.mxu0 %v11981_v58  ;;  %v11969_v62 = vor.u32 %v14954_v17, %v11968_v11  ;;  %v12185_v45 = vor.u32 %v15008_v12, %v12184_v19  ;;  %v19048_v58 = vld [vmem:[#allocation56_spill] sm:$0xff]  ;;  %v14924_v17 = vld [vmem:[#allocation6 + $0x880] sm:$0xf0] }
 0x317   :  { %v7473_v53 = vadd.f32 %v7472_v32, %v17842_v14  ;;  %v17868_v46 = vpop.f32.mrf.mxu1  ;;  %v7494_v37 = vpop.f32.mrf.mxu0  ;;  %v12052_v14 = vld [vmem:[#allocation6 + $0xa10] sm:$0xf]  ;;  %7797 = vmatmul.bf16.gmra.mxu0 %v19048_v58  ;;  %v14948_v19 = vld [vmem:[#allocation6 + $0x940] sm:$0xf0] }
 0x318   :  { %7957 = vmatpush.bf16.msrb.mxu1 %v12077_v16  ;;  %7920 = vmatpush.bf16.msra.mxu3 %v11873_v41  ;;  %v12053_v32 = vor.u32 %v14975_v18, %v12052_v14  ;;  %v11848_v41 = vld [vmem:[#allocation6 + $0x878] sm:$0xf]  ;;  %v14972_v12 = vld [vmem:[#allocation6 + $0xa00] sm:$0xf0]  ;;  %v14921_v18 = vld [vmem:[#allocation6 + $0x868] sm:$0xf0] }
 0x319   :  { %v7492_v57 = vadd.f32 %v7491_v60, %v7473_v53  ;;  %v11957_v60 = vor.u32 %v14951_v10, %v11956_v39  ;;  %v11849_v53 = vor.u32 %v14924_v17, %v11848_v41  ;;  %v11824_v17 = vld [vmem:[#allocation6 + $0x848] sm:$0xf] }
 0x31a   :  { %7974 = vmatpush.bf16.msrb.mxu2 %v12197_v21  ;;  %v15005_v21 = vld [vmem:[#allocation6 + $0xb08] sm:$0xf0]  ;;  %7939 = vmatpush.bf16.msrb.mxu0 %v11969_v62 }
 0x31b   :  { %7778 = vmatmul.bf16.gmra.mxu3 %v19047_v55  ;;  %v7511_v16 = vadd.f32 %v17852_v47, %v7492_v57  ;;  %7835 = vmatmul.bf16.gmra.mxu2 %v19049_v56  ;;  %v12173_v26 = vor.u32 %v15005_v21, %v12172_v48  ;;  %v12040_v47 = vld [vmem:[#allocation6 + $0x9f8] sm:$0xf]  ;;  %v11932_v55 = vld [vmem:[#allocation6 + $0x920] sm:$0xf]  ;;  %v14969_v48 = vld [vmem:[#allocation6 + $0x9e8] sm:$0xf0] }
 0x31c   :  { %7958 = vmatpush.bf16.msrb.mxu1 %v12065_v29  ;;  %7921 = vmatpush.bf16.msra.mxu3 %v11861_v3  ;;  %v11945_v29 = vor.u32 %v14948_v19, %v11944_v27  ;;  %v12041_v14 = vor.u32 %v14972_v12, %v12040_v47  ;;  %v11836_v3 = vld [vmem:[#allocation6 + $0x860] sm:$0xf]  ;;  %v12148_v56 = vld [vmem:[#allocation6 + $0xad0] sm:$0xf]  ;;  %v14918_v27 = vld [vmem:[#allocation6 + $0x850] sm:$0xf0] }
 0x31d   :  { %v17874_v11 = vadd.f32 %v7529_v59, %v7511_v16  ;;  %v15002_v59 = vld [vmem:[#allocation6 + $0xaf0] sm:$0xf0]  ;;  %7887 = vmatmul.bf16.vlgmr.msra.gmra.mxu1 %v19009_v51  ;;  %v11837_v58 = vor.u32 %v14921_v18, %v11836_v3  ;;  %v12028_v16 = vld [vmem:[#allocation6 + $0x9e0] sm:$0xf]  ;;  %v11920_v51 = vld [vmem:[#allocation6 + $0x908] sm:$0xf] }
 0x31e   :  { %7975 = vmatpush.bf16.msrb.mxu2 %v12185_v45  ;;  %v7475_v9 = vpop.f32.mrf.mxu3  ;;  %v7532_v57 = vpop.f32.mrf.mxu2  ;;  %7940 = vmatpush.bf16.msrb.mxu0 %v11957_v60  ;;  %v12161_v39 = vor.u32 %v15002_v59, %v12160_v5  ;;  %v14999_v60 = vld [vmem:[#allocation6 + $0xad8] sm:$0xf0]  ;;  %v12029_v41 = vor.u32 %v14969_v48, %v12028_v16  ;;  %v14942_v19 = vld [vmem:[#allocation6 + $0x910] sm:$0xf0]  ;;  %v12016_v47 = vld [vmem:[#allocation6 + $0x9c8] sm:$0xf] }
 0x31f   :  { %v7476_v45 = vadd.f32 %v7475_v9, %v17849_v1  ;;  %v17877_v62 = vpop.f32.mrf.mxu1  ;;  %v7496_v20 = vpop.f32.mrf.mxu0  ;;  %v14945_v1 = vld [vmem:[#allocation6 + $0x928] sm:$0xf0]  ;;  %v14966_v12 = vld [vmem:[#allocation6 + $0x9d0] sm:$0xf0]  ;;  %v12136_v59 = vld [vmem:[#allocation6 + $0xab8] sm:$0xf] }
 0x320   :  { %7959 = vmatpush.bf16.msrb.mxu1 %v12053_v32  ;;  %7922 = vmatpush.bf16.msra.mxu3 %v11849_v53  ;;  %v11825_v53 = vor.u32 %v14918_v27, %v11824_v17  ;;  %v12292_v18 = vld [vmem:[#allocation6 + $0xbf0] sm:$0xf]  ;;  %v14993_v16 = vld [vmem:[#allocation6 + $0xaa8] sm:$0xf0]  ;;  %v15059_v48 = vld [vmem:[#allocation6 + $0xcb8] sm:$0xf0] }
 0x321   :  { %v7495_v10 = vadd.f32 %v7494_v37, %v7476_v45  ;;  %v12149_v37 = vor.u32 %v14999_v60, %v12148_v56 }
 0x322   :  { %7976 = vmatpush.bf16.msrb.mxu2 %v12173_v26  ;;  %7941 = vmatpush.bf16.msrb.mxu0 %v11945_v29  ;;  %v11933_v26 = vor.u32 %v14945_v1, %v11932_v55  ;;  %v15035_v55 = vld [vmem:[#allocation6 + $0xbf8] sm:$0xf0] }
 0x323   :  { %v7514_v21 = vadd.f32 %v17861_v38, %v7495_v10  ;;  %v12293_v1 = vor.u32 %v15035_v55, %v12292_v18 }
 0x324   :  { %7960 = vmatpush.bf16.msrb.mxu1 %v12041_v14  ;;  %7923 = vmatpush.bf16.msra.mxu3 %v11837_v58  ;;  %v12017_v14 = vor.u32 %v14966_v12, %v12016_v47  ;;  %v12124_v58 = vld [vmem:[#allocation6 + $0xaa0] sm:$0xf]  ;;  %v12376_v47 = vld [vmem:[#allocation6 + $0xc98] sm:$0xf]  ;;  %v15056_v12 = vld [vmem:[#allocation6 + $0xca0] sm:$0xf0] }
 0x325   :  { %v17881_v32 = vadd.f32 %v7532_v57, %v7514_v21  ;;  %v14996_v57 = vld [vmem:[#allocation6 + $0xac0] sm:$0xf0]  ;;  %v19050_v21 = vld [vmem:[#allocation58_spill] sm:$0xff]  ;;  %v12125_v27 = vor.u32 %v14993_v16, %v12124_v58  ;;  %v12268_v58 = vld [vmem:[#allocation6 + $0xbc0] sm:$0xf] }
 0x326   :  { %7977 = vmatpush.bf16.msrb.mxu2 %v12161_v39  ;;  %v7477_v9 = vpop.f32.mrf.mxu3  ;;  %v7534_v45 = vpop.f32.mrf.mxu2  ;;  %7942 = vmatpush.bf16.msrb.mxu0 %v11933_v26  ;;  %v11921_v39 = vor.u32 %v14942_v19, %v11920_v51  ;;  %v12137_v3 = vor.u32 %v14996_v57, %v12136_v59  ;;  %v12484_v26 = vld [vmem:[#allocation6 + $0xd70] sm:$0xf]  ;;  %v12280_v51 = vld [vmem:[#allocation6 + $0xbd8] sm:$0xf]  ;;  %v12364_v16 = vld [vmem:[#allocation6 + $0xc80] sm:$0xf] }
 0x327   :  { %v7478_v38 = vadd.f32 %v7477_v9, %v17858_v44  ;;  %v17884_v5 = vpop.f32.mrf.mxu1  ;;  %v7565_v29 = vpop.f32.mrf.mxu0  ;;  %v12388_v44 = vld [vmem:[#allocation6 + $0xcb0] sm:$0xf]  ;;  %7868 = vmatmul.bf16.vlgmr.msra.gmra.mxu0 %v19050_v21  ;;  %v15032_v9 = vld [vmem:[#allocation6 + $0xbe0] sm:$0xf0]  ;;  %v12460_v21 = vld [vmem:[#allocation6 + $0xd40] sm:$0xf] }
 0x328   :  { %7961 = vmatpush.bf16.msrb.mxu1 %v12029_v41  ;;  %7924 = vmatpush.bf16.msra.mxu3 %v11825_v53  ;;  %v12389_v60 = vor.u32 %v15059_v48, %v12388_v44  ;;  %v12112_v53 = vld [vmem:[#allocation6 + $0xa88] sm:$0xf]  ;;  %v12281_v19 = vor.u32 %v15032_v9, %v12280_v51  ;;  %v19052_v44 = vld [vmem:[#allocation22_spill] sm:$0xff]  ;;  %v15026_v9 = vld [vmem:[#allocation6 + $0xbb0] sm:$0xf0] }
 0x329   :  { %v7497_v10 = vadd.f32 %v7496_v20, %v7478_v38  ;;  %v15083_v20 = vld [vmem:[#allocation6 + $0xd78] sm:$0xf0]  ;;  %v12256_v51 = vld [vmem:[#allocation6 + $0xba8] sm:$0xf] }
 0x32a   :  { %7978 = vmatpush.bf16.msrb.mxu2 %v12149_v37  ;;  %v19051_v37 = vld [vmem:[#allocation59_spill] sm:$0xff]  ;;  %7943 = vmatpush.bf16.msrb.mxu0 %v11921_v39  ;;  %v12485_v41 = vor.u32 %v15083_v20, %v12484_v26  ;;  %v12472_v39 = vld [vmem:[#allocation6 + $0xd58] sm:$0xf] }
 0x32b   :  { %7849 = vmatmul.bf16.vlgmr.msrb.gmra.mxu3 %v19010_v54  ;;  %v7516_v56 = vadd.f32 %v17868_v46, %v7497_v10  ;;  %7906 = vmatmul.bf16.vlgmr.msra.gmra.mxu2 %v19051_v37  ;;  %v14990_v46 = vld [vmem:[#allocation6 + $0xa90] sm:$0xf0]  ;;  %v15080_v10 = vld [vmem:[#allocation6 + $0xd60] sm:$0xf0]  ;;  %v12580_v37 = vld [vmem:[#allocation6 + $0xe30] sm:$0xf] }
 0x32c   :  { %7962 = vmatpush.bf16.msrb.mxu1 %v12017_v14  ;;  %7993 = vmatpush.bf16.msrb.mxu3 %v12293_v1  ;;  %v12113_v55 = vor.u32 %v14990_v46, %v12112_v53  ;;  %v15029_v1 = vld [vmem:[#allocation6 + $0xbc8] sm:$0xf0]  ;;  %v12352_v53 = vld [vmem:[#allocation6 + $0xc68] sm:$0xf]  ;;  %v15050_v46 = vld [vmem:[#allocation6 + $0xc70] sm:$0xf0] }
 0x32d   :  { %v17890_v17 = vadd.f32 %v7534_v45, %v7516_v56  ;;  %v12377_v45 = vor.u32 %v15056_v12, %v12376_v47  ;;  %7892 = vmatmul.bf16.gmra.mxu1 %v19052_v44  ;;  %v12269_v48 = vor.u32 %v15029_v1, %v12268_v58  ;;  %v15077_v56 = vld [vmem:[#allocation6 + $0xd48] sm:$0xf0]  ;;  %v12448_v47 = vld [vmem:[#allocation6 + $0xd28] sm:$0xf]  ;;  %v12244_v1 = vld [vmem:[#allocation6 + $0xb90] sm:$0xf] }
 0x32e   :  { %7979 = vmatpush.bf16.msrb.mxu2 %v12137_v3  ;;  %v7546_v54 = vpop.f32.mrf.mxu3  ;;  %8012 = vmatpush.bf16.msra.mxu0 %v12389_v60  ;;  %v7603_v59 = vpop.f32.mrf.mxu2  ;;  %v12473_v3 = vor.u32 %v15080_v10, %v12472_v39  ;;  %v12461_v20 = vor.u32 %v15077_v56, %v12460_v21  ;;  %v15104_v39 = vld [vmem:[#allocation6 + $0xe20] sm:$0xf0]  ;;  %v12340_v44 = vld [vmem:[#allocation6 + $0xc50] sm:$0xf]  ;;  %v15071_v21 = vld [vmem:[#allocation6 + $0xd18] sm:$0xf0] }
 0x32f   :  { %v7547_v38 = vadd.f32 %v7546_v54, %v17865_v8  ;;  %v17893_v57 = vpop.f32.mrf.mxu1  ;;  %v7567_v14 = vpop.f32.mrf.mxu0  ;;  %v15053_v8 = vld [vmem:[#allocation6 + $0xc88] sm:$0xf0] }
 0x330   :  { %8031 = vmatpush.bf16.msra.mxu1 %v12485_v41  ;;  %7994 = vmatpush.bf16.msrb.mxu3 %v12281_v19  ;;  %v12365_v26 = vor.u32 %v15053_v8, %v12364_v16  ;;  %v12257_v19 = vor.u32 %v15026_v9, %v12256_v51  ;;  %v15023_v16 = vld [vmem:[#allocation6 + $0xb98] sm:$0xf0]  ;;  %v12232_v51 = vld [vmem:[#allocation6 + $0xb78] sm:$0xf]  ;;  %v15020_v9 = vld [vmem:[#allocation6 + $0xb80] sm:$0xf0] }
 0x331   :  { %v7566_v18 = vadd.f32 %v7565_v29, %v7547_v38  ;;  %v15107_v29 = vld [vmem:[#allocation6 + $0xe38] sm:$0xf0] }
 0x332   :  { %7980 = vmatpush.bf16.msrb.mxu2 %v12125_v27  ;;  %8013 = vmatpush.bf16.msra.mxu0 %v12377_v45  ;;  %v12581_v41 = vor.u32 %v15107_v29, %v12580_v37  ;;  %v15047_v8 = vld [vmem:[#allocation6 + $0xc58] sm:$0xf0] }
 0x333   :  { %v7585_v60 = vadd.f32 %v17877_v62, %v7566_v18  ;;  %v15074_v62 = vld [vmem:[#allocation6 + $0xd30] sm:$0xf0] }
 0x334   :  { %8032 = vmatpush.bf16.msra.mxu1 %v12473_v3  ;;  %7995 = vmatpush.bf16.msrb.mxu3 %v12269_v48  ;;  %v12353_v3 = vor.u32 %v15050_v46, %v12352_v53  ;;  %v12449_v58 = vor.u32 %v15074_v62, %v12448_v47  ;;  %v12245_v48 = vor.u32 %v15023_v16, %v12244_v1  ;;  %v12328_v53 = vld [vmem:[#allocation6 + $0xc38] sm:$0xf]  ;;  %v15017_v1 = vld [vmem:[#allocation6 + $0xb68] sm:$0xf0]  ;;  %v12316_v16 = vld [vmem:[#allocation6 + $0xc20] sm:$0xf] }
 0x335   :  { %v17897_v27 = vadd.f32 %v7603_v59, %v7585_v60  ;;  %v12568_v59 = vld [vmem:[#allocation6 + $0xe18] sm:$0xf]  ;;  %v12556_v60 = vld [vmem:[#allocation6 + $0xe00] sm:$0xf] }
 0x336   :  { %7981 = vmatpush.bf16.msrb.mxu2 %v12113_v55  ;;  %v7548_v54 = vpop.f32.mrf.mxu3  ;;  %v7605_v38 = vpop.f32.mrf.mxu2  ;;  %8014 = vmatpush.bf16.msra.mxu0 %v12365_v26  ;;  %v12569_v18 = vor.u32 %v15104_v39, %v12568_v59  ;;  %v15101_v26 = vld [vmem:[#allocation6 + $0xe08] sm:$0xf0] }
 0x337   :  { %v7549_v12 = vadd.f32 %v7548_v54, %v17874_v11  ;;  %v17900_v45 = vpop.f32.mrf.mxu1  ;;  %v7570_v10 = vpop.f32.mrf.mxu0  ;;  %v12436_v11 = vld [vmem:[#allocation6 + $0xd10] sm:$0xf]  ;;  %7873 = vmatmul.bf16.gmra.mxu0 %v16960_v4  ;;  %v12557_v37 = vor.u32 %v15101_v26, %v12556_v60  ;;  %v15044_v4 = vld [vmem:[#allocation6 + $0xc40] sm:$0xf0]  ;;  %v15095_v60 = vld [vmem:[#allocation6 + $0xdd8] sm:$0xf0] }
 0x338   :  { %8033 = vmatpush.bf16.msra.mxu1 %v12461_v20  ;;  %7996 = vmatpush.bf16.msrb.mxu3 %v12257_v19  ;;  %v19053_v20 = vld [vmem:[#allocation23_spill] sm:$0xff]  ;;  %v12329_v39 = vor.u32 %v15044_v4, %v12328_v53  ;;  %v15062_v4 = vld [vmem:[#allocation6 + $0xcd0] sm:$0xf0] }
 0x339   :  { %v7568_v55 = vadd.f32 %v7567_v14, %v7549_v12  ;;  %v12341_v14 = vor.u32 %v15047_v8, %v12340_v44  ;;  %v15068_v19 = vld [vmem:[#allocation6 + $0xd00] sm:$0xf0]  ;;  %v12544_v12 = vld [vmem:[#allocation6 + $0xde8] sm:$0xf]  ;;  %v12412_v8 = vld [vmem:[#allocation6 + $0xce0] sm:$0xf] }
 0x33a   :  { %8050 = vmatpush.bf16.msra.mxu2 %v12581_v41  ;;  %8015 = vmatpush.bf16.msra.mxu0 %v12353_v3  ;;  %v12437_v41 = vor.u32 %v15071_v21, %v12436_v11  ;;  %v19054_v44 = vld [vmem:[#allocation60_spill] sm:$0xff] }
 0x33b   :  { %7854 = vmatmul.bf16.gmra.mxu3 %v16958_v35  ;;  %v7587_v56 = vadd.f32 %v17884_v5, %v7568_v55  ;;  %7911 = vmatmul.bf16.gmra.mxu2 %v19053_v20  ;;  %v12233_v35 = vor.u32 %v15020_v9, %v12232_v51  ;;  %v12424_v5 = vld [vmem:[#allocation6 + $0xcf8] sm:$0xf]  ;;  %v15065_v11 = vld [vmem:[#allocation6 + $0xce8] sm:$0xf0]  ;;  %v12304_v51 = vld [vmem:[#allocation6 + $0xc08] sm:$0xf] }
 0x33c   :  { %8034 = vmatpush.bf16.msra.mxu1 %v12449_v58  ;;  %7997 = vmatpush.bf16.msrb.mxu3 %v12245_v48  ;;  %v12425_v55 = vor.u32 %v15068_v19, %v12424_v5  ;;  %v12220_v58 = vld [vmem:[#allocation6 + $0xb60] sm:$0xf] }
 0x33d   :  { %v17906_v29 = vadd.f32 %v7605_v38, %v7587_v56  ;;  %v15098_v38 = vld [vmem:[#allocation6 + $0xdf0] sm:$0xf0]  ;;  %7963 = vmatmul.bf16.vlgmr.msrb.gmra.mxu1 %v19054_v44  ;;  %v12221_v48 = vor.u32 %v15017_v1, %v12220_v58  ;;  %v12532_v56 = vld [vmem:[#allocation6 + $0xdd0] sm:$0xf]  ;;  %v15131_v58 = vld [vmem:[#allocation6 + $0xef8] sm:$0xf0] }
 0x33e   :  { %8051 = vmatpush.bf16.msra.mxu2 %v12569_v18  ;;  %v7551_v54 = vpop.f32.mrf.mxu3  ;;  %v7608_v47 = vpop.f32.mrf.mxu2  ;;  %8016 = vmatpush.bf16.msra.mxu0 %v12341_v14  ;;  %v12545_v3 = vor.u32 %v15098_v38, %v12544_v12  ;;  %v12413_v14 = vor.u32 %v15065_v11, %v12412_v8  ;;  %v12508_v1 = vld [vmem:[#allocation6 + $0xda0] sm:$0xf]  ;;  %v15089_v44 = vld [vmem:[#allocation6 + $0xda8] sm:$0xf0] }
 0x33f   :  { %v7552_v46 = vadd.f32 %v7551_v54, %v17881_v32  ;;  %v17909_v62 = vpop.f32.mrf.mxu1  ;;  %v7572_v59 = vpop.f32.mrf.mxu0  ;;  %v15041_v32 = vld [vmem:[#allocation6 + $0xc28] sm:$0xf0]  ;;  %v15038_v54 = vld [vmem:[#allocation6 + $0xc10] sm:$0xf0]  ;;  %v19056_v8 = vld [vmem:[#allocation35_spill] sm:$0xff] }
 0x340   :  { %8035 = vmatpush.bf16.msra.mxu1 %v12437_v41  ;;  %7998 = vmatpush.bf16.msrb.mxu3 %v12233_v35  ;;  %v12317_v26 = vor.u32 %v15041_v32, %v12316_v16  ;;  %v15014_v41 = vld [vmem:[#allocation6 + $0xb50] sm:$0xf0]  ;;  %v12400_v35 = vld [vmem:[#allocation6 + $0xcc8] sm:$0xf]  ;;  %v12305_v38 = vor.u32 %v15038_v54, %v12304_v51  ;;  %v19055_v32 = vld [vmem:[#allocation62_spill] sm:$0xff] }
 0x341   :  { %v7571_v18 = vadd.f32 %v7570_v10, %v7552_v46  ;;  %v12533_v10 = vor.u32 %v15095_v60, %v12532_v56  ;;  %v12520_v46 = vld [vmem:[#allocation6 + $0xdb8] sm:$0xf]  ;;  %v12868_v56 = vld [vmem:[#allocation6 + $0x1070] sm:$0xf]  ;;  %v12496_v51 = vld [vmem:[#allocation6 + $0xd88] sm:$0xf] }
 0x342   :  { %8052 = vmatpush.bf16.msra.mxu2 %v12557_v37  ;;  %8017 = vmatpush.bf16.msra.mxu0 %v12329_v39  ;;  %v12208_v37 = vld [vmem:[#allocation6 + $0xb48] sm:$0xf]  ;;  %v19057_v60 = vld [vmem:[#allocation61_spill] sm:$0xff]  ;;  %v12760_v54 = vld [vmem:[#allocation6 + $0xf98] sm:$0xf] }
 0x343   :  { %v7590_v21 = vadd.f32 %v17893_v57, %v7571_v18  ;;  %v12209_v53 = vor.u32 %v15014_v41, %v12208_v37  ;;  %v12664_v37 = vld [vmem:[#allocation6 + $0xed8] sm:$0xf]  ;;  %v15128_v41 = vld [vmem:[#allocation6 + $0xee0] sm:$0xf0] }
 0x344   :  { %8036 = vmatpush.bf16.msra.mxu1 %v12425_v55  ;;  %7999 = vmatpush.bf16.msrb.mxu3 %v12221_v48  ;;  %v12676_v55 = vld [vmem:[#allocation6 + $0xef0] sm:$0xf]  ;;  %v15155_v48 = vld [vmem:[#allocation6 + $0xfb8] sm:$0xf0] }
 0x345   :  { %v17913_v20 = vadd.f32 %v7608_v47, %v7590_v21  ;;  %v15092_v47 = vld [vmem:[#allocation6 + $0xdc0] sm:$0xf0]  ;;  %v12677_v16 = vor.u32 %v15131_v58, %v12676_v55  ;;  %v12652_v58 = vld [vmem:[#allocation6 + $0xec0] sm:$0xf] }
 0x346   :  { %8053 = vmatpush.bf16.msra.mxu2 %v12545_v3  ;;  %v7553_v9 = vpop.f32.mrf.mxu3  ;;  %v7610_v5 = vpop.f32.mrf.mxu2  ;;  %8018 = vmatpush.bf16.msra.mxu0 %v12317_v26  ;;  %v12401_v3 = vor.u32 %v15062_v4, %v12400_v35  ;;  %v12521_v18 = vor.u32 %v15092_v47, %v12520_v46  ;;  %v15152_v35 = vld [vmem:[#allocation6 + $0xfa0] sm:$0xf0]  ;;  %v12856_v47 = vld [vmem:[#allocation6 + $0x1058] sm:$0xf] }
 0x347   :  { %v7554_v57 = vadd.f32 %v7553_v9, %v17890_v17  ;;  %v17916_v19 = vpop.f32.mrf.mxu1  ;;  %v7641_v12 = vpop.f32.mrf.mxu0  ;;  %v12772_v17 = vld [vmem:[#allocation6 + $0xfb0] sm:$0xf]  ;;  %7944 = vmatmul.bf16.vlgmr.msrb.gmra.mxu0 %v19056_v8 }
 0x348   :  { %8037 = vmatpush.bf16.msra.mxu1 %v12413_v14  ;;  %8000 = vmatpush.bf16.msrb.mxu3 %v12209_v53  ;;  %v12773_v21 = vor.u32 %v15155_v48, %v12772_v17  ;;  %v12509_v14 = vor.u32 %v15089_v44, %v12508_v1  ;;  %v12665_v53 = vor.u32 %v15128_v41, %v12664_v37  ;;  %v15125_v1 = vld [vmem:[#allocation6 + $0xec8] sm:$0xf0]  ;;  %v19058_v44 = vld [vmem:[#allocation63_spill] sm:$0xff]  ;;  %v12736_v37 = vld [vmem:[#allocation6 + $0xf68] sm:$0xf] }
 0x349   :  { %v7573_v39 = vadd.f32 %v7572_v59, %v7554_v57  ;;  %v15179_v59 = vld [vmem:[#allocation6 + $0x1078] sm:$0xf0]  ;;  %v12653_v17 = vor.u32 %v15125_v1, %v12652_v58  ;;  %v12844_v48 = vld [vmem:[#allocation6 + $0x1040] sm:$0xf]  ;;  %v12724_v1 = vld [vmem:[#allocation6 + $0xf50] sm:$0xf] }
 0x34a   :  { %8054 = vmatpush.bf16.msra.mxu2 %v12533_v10  ;;  %8019 = vmatpush.bf16.msra.mxu0 %v12305_v38  ;;  %v12869_v26 = vor.u32 %v15179_v59, %v12868_v56  ;;  %v15176_v38 = vld [vmem:[#allocation6 + $0x1060] sm:$0xf0]  ;;  %v12964_v56 = vld [vmem:[#allocation6 + $0x1130] sm:$0xf]  ;;  %v15119_v58 = vld [vmem:[#allocation6 + $0xe98] sm:$0xf0] }
 0x34b   :  { %7925 = vmatmul.bf16.vlgmr.msra.gmra.mxu3 %v19055_v32  ;;  %v7592_v11 = vadd.f32 %v17900_v45, %v7573_v39  ;;  %7982 = vmatmul.bf16.vlgmr.msrb.gmra.mxu2 %v19057_v60  ;;  %v15086_v45 = vld [vmem:[#allocation6 + $0xd90] sm:$0xf0]  ;;  %v15173_v32 = vld [vmem:[#allocation6 + $0x1048] sm:$0xf0] }
 0x34c   :  { %8038 = vmatpush.bf16.msra.mxu1 %v12401_v3  ;;  %8069 = vmatpush.bf16.msra.mxu3 %v12677_v16  ;;  %v12857_v3 = vor.u32 %v15176_v38, %v12856_v47  ;;  %v12497_v55 = vor.u32 %v15086_v45, %v12496_v51  ;;  %v12748_v16 = vld [vmem:[#allocation6 + $0xf80] sm:$0xf] }
 0x34d   :  { %v17922_v10 = vadd.f32 %v7610_v5, %v7592_v11  ;;  %v12761_v5 = vor.u32 %v15152_v35, %v12760_v54  ;;  %7968 = vmatmul.bf16.gmra.mxu1 %v19058_v44  ;;  %v15143_v44 = vld [vmem:[#allocation6 + $0xf58] sm:$0xf0] }
 0x34e   :  { %8055 = vmatpush.bf16.msra.mxu2 %v12521_v18  ;;  %v7622_v9 = vpop.f32.mrf.mxu3  ;;  %8088 = vmatpush.bf16.msrb.mxu0 %v12773_v21  ;;  %v7679_v57 = vpop.f32.mrf.mxu2  ;;  %v12845_v21 = vor.u32 %v15173_v32, %v12844_v48  ;;  %v19060_v48 = vld [vmem:[#allocation64_spill] sm:$0xff] }
 0x34f   :  { %v7623_v4 = vadd.f32 %v7622_v9, %v17897_v27  ;;  %v17925_v46 = vpop.f32.mrf.mxu1  ;;  %v7643_v39 = vpop.f32.mrf.mxu0  ;;  %v15149_v27 = vld [vmem:[#allocation6 + $0xf88] sm:$0xf0]  ;;  %v15146_v9 = vld [vmem:[#allocation6 + $0xf70] sm:$0xf0] }
 0x350   :  { %8107 = vmatpush.bf16.msrb.mxu1 %v12869_v26  ;;  %8070 = vmatpush.bf16.msra.mxu3 %v12665_v53  ;;  %v12749_v11 = vor.u32 %v15149_v27, %v12748_v16  ;;  %v12640_v26 = vld [vmem:[#allocation6 + $0xea8] sm:$0xf]  ;;  %v12737_v47 = vor.u32 %v15146_v9, %v12736_v37  ;;  %v12712_v37 = vld [vmem:[#allocation6 + $0xf38] sm:$0xf]  ;;  %v15140_v9 = vld [vmem:[#allocation6 + $0xf40] sm:$0xf0] }
 0x351   :  { %v7642_v18 = vadd.f32 %v7641_v12, %v7623_v4  ;;  %v15203_v12 = vld [vmem:[#allocation6 + $0x1138] sm:$0xf0]  ;;  %v12832_v53 = vld [vmem:[#allocation6 + $0x1028] sm:$0xf]  ;;  %v12952_v4 = vld [vmem:[#allocation6 + $0x1118] sm:$0xf] }
 0x352   :  { %8056 = vmatpush.bf16.msra.mxu2 %v12509_v14  ;;  %8089 = vmatpush.bf16.msrb.mxu0 %v12761_v5  ;;  %v12965_v59 = vor.u32 %v15203_v12, %v12964_v56  ;;  %v15122_v14 = vld [vmem:[#allocation6 + $0xeb0] sm:$0xf0]  ;;  %v19059_v27 = vld [vmem:[#allocation32_spill] sm:$0xff] }
 0x353   :  { %v7661_v8 = vadd.f32 %v17909_v62, %v7642_v18  ;;  %v12641_v51 = vor.u32 %v15122_v14, %v12640_v26  ;;  %v15170_v62 = vld [vmem:[#allocation6 + $0x1030] sm:$0xf0]  ;;  %v12616_v26 = vld [vmem:[#allocation6 + $0xe78] sm:$0xf]  ;;  %v15116_v14 = vld [vmem:[#allocation6 + $0xe80] sm:$0xf0] }
 0x354   :  { %8108 = vmatpush.bf16.msrb.mxu1 %v12857_v3  ;;  %8071 = vmatpush.bf16.msra.mxu3 %v12653_v17  ;;  %v12833_v18 = vor.u32 %v15170_v62, %v12832_v53  ;;  %v15167_v17 = vld [vmem:[#allocation6 + $0x1018] sm:$0xf0]  ;;  %v15164_v53 = vld [vmem:[#allocation6 + $0x1000] sm:$0xf0] }
 0x355   :  { %v17929_v60 = vadd.f32 %v7679_v57, %v7661_v8  ;;  %v15200_v57 = vld [vmem:[#allocation6 + $0x1120] sm:$0xf0]  ;;  %v12940_v8 = vld [vmem:[#allocation6 + $0x1100] sm:$0xf] }
 0x356   :  { %8057 = vmatpush.bf16.msra.mxu2 %v12497_v55  ;;  %v7624_v41 = vpop.f32.mrf.mxu3  ;;  %v7681_v54 = vpop.f32.mrf.mxu2  ;;  %8090 = vmatpush.bf16.msrb.mxu0 %v12749_v11  ;;  %v12953_v38 = vor.u32 %v15200_v57, %v12952_v4  ;;  %v12628_v55 = vld [vmem:[#allocation6 + $0xe90] sm:$0xf]  ;;  %v15197_v11 = vld [vmem:[#allocation6 + $0x1108] sm:$0xf0]  ;;  %v12928_v57 = vld [vmem:[#allocation6 + $0x10e8] sm:$0xf] }
 0x357   :  { %v7625_v45 = vadd.f32 %v7624_v41, %v17906_v29  ;;  %v17932_v35 = vpop.f32.mrf.mxu1  ;;  %v7646_v5 = vpop.f32.mrf.mxu0  ;;  %v12629_v16 = vor.u32 %v15119_v58, %v12628_v55  ;;  %v12820_v29 = vld [vmem:[#allocation6 + $0x1010] sm:$0xf]  ;;  %7949 = vmatmul.bf16.gmra.mxu0 %v19060_v48  ;;  %v12941_v56 = vor.u32 %v15197_v11, %v12940_v8  ;;  %v12604_v58 = vld [vmem:[#allocation6 + $0xe60] sm:$0xf]  ;;  %v15191_v8 = vld [vmem:[#allocation6 + $0x10d8] sm:$0xf0] }
 0x358   :  { %8109 = vmatpush.bf16.msrb.mxu1 %v12845_v21  ;;  %8072 = vmatpush.bf16.msra.mxu3 %v12641_v51  ;;  %v19061_v21 = vld [vmem:[#allocation33_spill] sm:$0xff]  ;;  %v12617_v51 = vor.u32 %v15116_v14, %v12616_v26  ;;  %v12688_v26 = vld [vmem:[#allocation6 + $0xf08] sm:$0xf] }
 0x359   :  { %v7644_v3 = vadd.f32 %v7643_v39, %v7625_v45  ;;  %v12725_v39 = vor.u32 %v15143_v44, %v12724_v1  ;;  %v15113_v1 = vld [vmem:[#allocation6 + $0xe68] sm:$0xf0]  ;;  %v19062_v44 = vld [vmem:[#allocation34_spill] sm:$0xff] }
 0x35a   :  { %8126 = vmatpush.bf16.msrb.mxu2 %v12965_v59  ;;  %8091 = vmatpush.bf16.msrb.mxu0 %v12737_v47  ;;  %v12821_v59 = vor.u32 %v15167_v17, %v12820_v29  ;;  %v15194_v47 = vld [vmem:[#allocation6 + $0x10f0] sm:$0xf0]  ;;  %v12605_v29 = vor.u32 %v15113_v1, %v12604_v58  ;;  %v15137_v17 = vld [vmem:[#allocation6 + $0xf28] sm:$0xf0]  ;;  %v13060_v58 = vld [vmem:[#allocation6 + $0x11f0] sm:$0xf] }
 0x35b   :  { %7930 = vmatmul.bf16.gmra.mxu3 %v19059_v27  ;;  %v7663_v32 = vadd.f32 %v17916_v19, %v7644_v3  ;;  %7987 = vmatmul.bf16.gmra.mxu2 %v19061_v21  ;;  %v12808_v19 = vld [vmem:[#allocation6 + $0xff8] sm:$0xf]  ;;  %v12929_v3 = vor.u32 %v15194_v47, %v12928_v57  ;;  %v15161_v27 = vld [vmem:[#allocation6 + $0xfe8] sm:$0xf0]  ;;  %v15188_v57 = vld [vmem:[#allocation6 + $0x10c0] sm:$0xf0] }
 0x35c   :  { %8110 = vmatpush.bf16.msrb.mxu1 %v12833_v18  ;;  %8073 = vmatpush.bf16.msra.mxu3 %v12629_v16  ;;  %v12809_v55 = vor.u32 %v15164_v53, %v12808_v19  ;;  %v12700_v16 = vld [vmem:[#allocation6 + $0xf20] sm:$0xf]  ;;  %v15227_v1 = vld [vmem:[#allocation6 + $0x11f8] sm:$0xf0] }
 0x35d   :  { %v17938_v12 = vadd.f32 %v7681_v54, %v7663_v32  ;;  %8039 = vmatmul.bf16.vlgmr.msra.gmra.mxu1 %v19062_v44  ;;  %v12916_v32 = vld [vmem:[#allocation6 + $0x10d0] sm:$0xf]  ;;  %v12701_v11 = vor.u32 %v15137_v17, %v12700_v16  ;;  %v12892_v16 = vld [vmem:[#allocation6 + $0x10a0] sm:$0xf]  ;;  %v13061_v44 = vor.u32 %v15227_v1, %v13060_v58  ;;  %v15251_v17 = vld [vmem:[#allocation6 + $0x12b8] sm:$0xf0] }
 0x35e   :  { %8127 = vmatpush.bf16.msrb.mxu2 %v12953_v38  ;;  %v7627_v41 = vpop.f32.mrf.mxu3  ;;  %v7684_v45 = vpop.f32.mrf.mxu2  ;;  %8092 = vmatpush.bf16.msrb.mxu0 %v12725_v39  ;;  %v12713_v38 = vor.u32 %v15140_v9, %v12712_v37  ;;  %v15158_v9 = vld [vmem:[#allocation6 + $0xfd0] sm:$0xf0]  ;;  %v13036_v1 = vld [vmem:[#allocation6 + $0x11c0] sm:$0xf] }
 0x35f   :  { %v7628_v62 = vadd.f32 %v7627_v41, %v17913_v20  ;;  %v7736_v4 = vpop.f32.mrf.mxu1  ;;  %v7648_v54 = vpop.f32.mrf.mxu0  ;;  %v12796_v20 = vld [vmem:[#allocation6 + $0xfe0] sm:$0xf]  ;;  %v15134_v41 = vld [vmem:[#allocation6 + $0xf10] sm:$0xf0] }
 0x360   :  { %8111 = vmatpush.bf16.msrb.mxu1 %v12821_v59  ;;  %8074 = vmatpush.bf16.msra.mxu3 %v12617_v51  ;;  %v12797_v39 = vor.u32 %v15161_v27, %v12796_v20  ;;  %v15110_v59 = vld [vmem:[#allocation6 + $0xe50] sm:$0xf0]  ;;  %v12784_v51 = vld [vmem:[#allocation6 + $0xfc8] sm:$0xf]  ;;  %v12689_v47 = vor.u32 %v15134_v41, %v12688_v26  ;;  %v13144_v41 = vld [vmem:[#allocation6 + $0x1298] sm:$0xf] }
 0x361   :  { %v7647_v18 = vadd.f32 %v7646_v5, %v7628_v62  ;;  %v12917_v5 = vor.u32 %v15191_v8, %v12916_v32  ;;  %v12904_v62 = vld [vmem:[#allocation6 + $0x10b8] sm:$0xf]  ;;  %v19063_v20 = vld [vmem:[#allocation24_spill] sm:$0xff]  ;;  %v19064_v27 = vld [vmem:[#allocation25_spill] sm:$0xff] }
 0x362   :  { %8128 = vmatpush.bf16.msrb.mxu2 %v12941_v56  ;;  %8093 = vmatpush.bf16.msrb.mxu0 %v12713_v38  ;;  %v12592_v56 = vld [vmem:[#allocation6 + $0xe48] sm:$0xf]  ;;  %v19065_v8 = vld [vmem:[#allocation65_spill] sm:$0xff] }
 0x363   :  { %v7666_v48 = vadd.f32 %v17925_v46, %v7647_v18  ;;  %v12593_v37 = vor.u32 %v15110_v59, %v12592_v56  ;;  %v12785_v18 = vor.u32 %v15158_v9, %v12784_v51  ;;  %v13048_v56 = vld [vmem:[#allocation6 + $0x11d8] sm:$0xf]  ;;  %v15224_v59 = vld [vmem:[#allocation6 + $0x11e0] sm:$0xf0]  ;;  %v12880_v26 = vld [vmem:[#allocation6 + $0x1088] sm:$0xf] }
 0x364   :  { %8112 = vmatpush.bf16.msrb.mxu1 %v12809_v55  ;;  %8075 = vmatpush.bf16.msra.mxu3 %v12605_v29  ;;  %v12905_v55 = vor.u32 %v15188_v57, %v12904_v62  ;;  %v15185_v29 = vld [vmem:[#allocation6 + $0x10a8] sm:$0xf0]  ;;  %v15248_v51 = vld [vmem:[#allocation6 + $0x12a0] sm:$0xf0]  ;;  %v13240_v57 = vld [vmem:[#allocation6 + $0x1358] sm:$0xf] }
 0x365   :  { %v17943_v21 = vadd.f32 %v7684_v45, %v7666_v48 }
 0x366   :  { %8129 = vmatpush.bf16.msrb.mxu2 %v12929_v3  ;;  %v7629_v14 = vpop.f32.mrf.mxu3  ;;  %v7686_v19 = vpop.f32.mrf.mxu2  ;;  %8094 = vmatpush.bf16.msrb.mxu0 %v12701_v11 }
 0x367   :  { %v7630_v46 = vadd.f32 %v7629_v14, %v17922_v10  ;;  %v7738_v53 = vpop.f32.mrf.mxu1  ;;  %v7717_v45 = vpop.f32.mrf.mxu0  ;;  %v13156_v10 = vld [vmem:[#allocation6 + $0x12b0] sm:$0xf]  ;;  %8020 = vmatmul.bf16.vlgmr.msra.gmra.mxu0 %v19064_v27 }
 0x368   :  { %v7737_v3 = vadd.f32 %v7736_v4, %v7717_v45  ;;  %8113 = vmatpush.bf16.msrb.mxu1 %v12797_v39  ;;  %8076 = vmatpush.bf16.msra.mxu3 %v12593_v37  ;;  %v13157_v32 = vor.u32 %v15251_v17, %v13156_v10  ;;  %v15275_v4 = vld [vmem:[#allocation6 + $0x1378] sm:$0xf0]  ;;  %v12893_v39 = vor.u32 %v15185_v29, %v12892_v16  ;;  %v15272_v45 = vld [vmem:[#allocation6 + $0x1360] sm:$0xf0]  ;;  %v15221_v16 = vld [vmem:[#allocation6 + $0x11c8] sm:$0xf0] }
 0x369   :  { %v7649_v38 = vadd.f32 %v7648_v54, %v7630_v46  ;;  %v13252_v54 = vld [vmem:[#allocation6 + $0x1370] sm:$0xf]  ;;  %v13049_v37 = vor.u32 %v15224_v59, %v13048_v56  ;;  %v19066_v29 = vld [vmem:[#allocation67_spill] sm:$0xff]  ;;  %v15245_v10 = vld [vmem:[#allocation6 + $0x1288] sm:$0xf0] }
 0x36a   :  { %8130 = vmatpush.bf16.msrb.mxu2 %v12917_v5  ;;  %8095 = vmatpush.bf16.msrb.mxu0 %v12689_v47  ;;  %v13253_v11 = vor.u32 %v15275_v4, %v13252_v54  ;;  %v13228_v17 = vld [vmem:[#allocation6 + $0x1340] sm:$0xf]  ;;  %v15218_v4 = vld [vmem:[#allocation6 + $0x11b0] sm:$0xf0]  ;;  %v13216_v59 = vld [vmem:[#allocation6 + $0x1328] sm:$0xf] }
 0x36b   :  { %8001 = vmatmul.bf16.vlgmr.msrb.gmra.mxu3 %v19063_v20  ;;  %v7668_v48 = vadd.f32 %v17932_v35, %v7649_v38  ;;  %8058 = vmatmul.bf16.vlgmr.msra.gmra.mxu2 %v19065_v8  ;;  %v15182_v35 = vld [vmem:[#allocation6 + $0x1090] sm:$0xf0]  ;;  %v15269_v20 = vld [vmem:[#allocation6 + $0x1348] sm:$0xf0]  ;;  %v13120_v8 = vld [vmem:[#allocation6 + $0x1268] sm:$0xf] }
 0x36c   :  { %8114 = vmatpush.bf16.msrb.mxu1 %v12785_v18  ;;  %8145 = vmatpush.bf16.msrb.mxu3 %v13061_v44  ;;  %v13241_v18 = vor.u32 %v15272_v45, %v13240_v57  ;;  %v12881_v58 = vor.u32 %v15182_v35, %v12880_v26  ;;  %v13132_v44 = vld [vmem:[#allocation6 + $0x1280] sm:$0xf]  ;;  %v15242_v56 = vld [vmem:[#allocation6 + $0x1270] sm:$0xf0] }
 0x36d   :  { %v17950_v5 = vadd.f32 %v7686_v19, %v7668_v48  ;;  %v13145_v19 = vor.u32 %v15248_v51, %v13144_v41  ;;  %8044 = vmatmul.bf16.gmra.mxu1 %v19066_v29  ;;  %v13133_v27 = vor.u32 %v15245_v10, %v13132_v44  ;;  %v13229_v48 = vor.u32 %v15269_v20, %v13228_v17  ;;  %v15266_v26 = vld [vmem:[#allocation6 + $0x1330] sm:$0xf0]  ;;  %v13336_v41 = vld [vmem:[#allocation6 + $0x1418] sm:$0xf]  ;;  %v15296_v51 = vld [vmem:[#allocation6 + $0x1420] sm:$0xf0] }
 0x36e   :  { %8131 = vmatpush.bf16.msrb.mxu2 %v12905_v55  ;;  %v7698_v14 = vpop.f32.mrf.mxu3  ;;  %8164 = vmatpush.bf16.msra.mxu0 %v13157_v32  ;;  %v7755_v46 = vpop.f32.mrf.mxu2  ;;  %v15299_v32 = vld [vmem:[#allocation6 + $0x1438] sm:$0xf0]  ;;  %v13121_v45 = vor.u32 %v15242_v56, %v13120_v8  ;;  %v13108_v29 = vld [vmem:[#allocation6 + $0x1250] sm:$0xf]  ;;  %v13000_v8 = vld [vmem:[#allocation6 + $0x1178] sm:$0xf] }
 0x36f   :  { %v17953_v9 = vadd.f32 %v7698_v14, %v17929_v60  ;;  %v7741_v62 = vpop.f32.mrf.mxu1  ;;  %v7719_v47 = vpop.f32.mrf.mxu0  ;;  %v17955_v38 = vadd.f32 %v7755_v46, %v7737_v3  ;;  %v13037_v60 = vor.u32 %v15221_v16, %v13036_v1  ;;  %v13348_v3 = vld [vmem:[#allocation6 + $0x1430] sm:$0xf]  ;;  %v13217_v1 = vor.u32 %v15266_v26, %v13216_v59  ;;  %v15215_v44 = vld [vmem:[#allocation6 + $0x1198] sm:$0xf0]  ;;  %v15236_v26 = vld [vmem:[#allocation6 + $0x1240] sm:$0xf0] }
 0x370   :  { %8183 = vmatpush.bf16.msra.mxu1 %v13253_v11  ;;  %v7739_v55 = vadd.f32 %v7738_v53, %v7719_v47  ;;  %8146 = vmatpush.bf16.msrb.mxu3 %v13049_v37  ;;  %v13349_v54 = vor.u32 %v15299_v32, %v13348_v3  ;;  %v13024_v53 = vld [vmem:[#allocation6 + $0x11a8] sm:$0xf]  ;;  %v13337_v47 = vor.u32 %v15296_v51, %v13336_v41  ;;  %v13012_v16 = vld [vmem:[#allocation6 + $0x1190] sm:$0xf]  ;;  %v15239_v10 = vld [vmem:[#allocation6 + $0x1258] sm:$0xf0] }
 0x371   :  { %v8352_v46 = vmul.f32 %v17953_v9, %v17953_v9  ;;  %v15263_v17 = vld [vmem:[#allocation6 + $0x1318] sm:$0xf0]  ;;  %v13324_v3 = vld [vmem:[#allocation6 + $0x1400] sm:$0xf]  ;;  %v15293_v32 = vld [vmem:[#allocation6 + $0x1408] sm:$0xf0] }
 0x372   :  { %8132 = vmatpush.bf16.msrb.mxu2 %v12893_v39  ;;  %8165 = vmatpush.bf16.msra.mxu0 %v13145_v19  ;;  %v13025_v39 = vor.u32 %v15218_v4, %v13024_v53  ;;  %v13325_v53 = vor.u32 %v15293_v32, %v13324_v3  ;;  %v15260_v41 = vld [vmem:[#allocation6 + $0x1300] sm:$0xf0]  ;;  %v15257_v3 = vld [vmem:[#allocation6 + $0x12e8] sm:$0xf0]  ;;  %v13300_v32 = vld [vmem:[#allocation6 + $0x13d0] sm:$0xf] }
 0x374   :  { %8184 = vmatpush.bf16.msra.mxu1 %v13241_v18  ;;  %8147 = vmatpush.bf16.msrb.mxu3 %v13037_v60  ;;  %v13013_v60 = vor.u32 %v15215_v44, %v13012_v16 }
 0x376   :  { %8133 = vmatpush.bf16.msrb.mxu2 %v12881_v58  ;;  %v7700_v11 = vpop.f32.mrf.mxu3  ;;  %v7757_v37 = vpop.f32.mrf.mxu2  ;;  %8166 = vmatpush.bf16.msra.mxu0 %v13133_v27  ;;  %v19067_v27 = vld [vmem:[#allocation37_spill] sm:$0xff] }
 0x377   :  { %v17959_v14 = vadd.f32 %v7700_v11, %v17938_v12  ;;  %v7743_v35 = vpop.f32.mrf.mxu1  ;;  %v7722_v19 = vpop.f32.mrf.mxu0  ;;  %v17963_v57 = vadd.f32 %v7757_v37, %v7739_v55  ;;  %v13204_v55 = vld [vmem:[#allocation6 + $0x1310] sm:$0xf]  ;;  %v15212_v11 = vld [vmem:[#allocation6 + $0x1180] sm:$0xf0]  ;;  %v13192_v37 = vld [vmem:[#allocation6 + $0x12f8] sm:$0xf] }
 0x378   :  { %8185 = vmatpush.bf16.msra.mxu1 %v13229_v48  ;;  %v7742_v58 = vadd.f32 %v7741_v62, %v7722_v19  ;;  %8148 = vmatpush.bf16.msrb.mxu3 %v13025_v39  ;;  %v19068_v48 = vld [vmem:[#allocation36_spill] sm:$0xff]  ;;  %v13109_v62 = vor.u32 %v15239_v10, %v13108_v29  ;;  %v13205_v4 = vor.u32 %v15263_v17, %v13204_v55  ;;  %v13096_v39 = vld [vmem:[#allocation6 + $0x1238] sm:$0xf]  ;;  %v12988_v10 = vld [vmem:[#allocation6 + $0x1160] sm:$0xf] }
 0x379   :  { %v17967_v18 = vadd.f32 %v17959_v14, %v17953_v9  ;;  %v8355_v12 = vmul.f32 %v17959_v14, %v17959_v14  ;;  %8025 = vmatmul.bf16.gmra.mxu0 %v19068_v48  ;;  %v13001_v59 = vor.u32 %v15212_v11, %v13000_v8  ;;  %v13097_v16 = vor.u32 %v15236_v26, %v13096_v39  ;;  %v15209_v55 = vld [vmem:[#allocation6 + $0x1168] sm:$0xf0]  ;;  %v13084_v17 = vld [vmem:[#allocation6 + $0x1220] sm:$0xf]  ;;  %v13072_v8 = vld [vmem:[#allocation6 + $0x1208] sm:$0xf] }
 0x37a   :  { %8202 = vmatpush.bf16.msra.mxu2 %v13349_v54  ;;  %v19069_v54 = vld [vmem:[#allocation69_spill] sm:$0xff]  ;;  %8167 = vmatpush.bf16.msra.mxu0 %v13121_v45  ;;  %v13312_v45 = vld [vmem:[#allocation6 + $0x13e8] sm:$0xf]  ;;  %v13180_v48 = vld [vmem:[#allocation6 + $0x12e0] sm:$0xf] }
 0x37b   :  { %v17971_v20 = vadd.f32 %v8355_v12, %v8352_v46  ;;  %8006 = vmatmul.bf16.gmra.mxu3 %v19067_v27  ;;  %8063 = vmatmul.bf16.gmra.mxu2 %v19069_v54  ;;  %v15233_v27 = vld [vmem:[#allocation6 + $0x1228] sm:$0xf0]  ;;  %v15254_v26 = vld [vmem:[#allocation6 + $0x12d0] sm:$0xf0] }
 0x37c   :  { %8186 = vmatpush.bf16.msra.mxu1 %v13217_v1  ;;  %8149 = vmatpush.bf16.msrb.mxu3 %v13013_v60  ;;  %v13193_v60 = vor.u32 %v15260_v41, %v13192_v37  ;;  %v13085_v54 = vor.u32 %v15233_v27, %v13084_v17  ;;  %v15323_v27 = vld [vmem:[#allocation6 + $0x14f8] sm:$0xf0] }
 0x37d   :  { %8115 = vmatmul.bf16.vlgmr.msrb.gmra.mxu1 %v19031_v15 }
 0x37e   :  { %8203 = vmatpush.bf16.msra.mxu2 %v13337_v47  ;;  %v7703_v56 = vpop.f32.mrf.mxu3  ;;  %v7760_v46 = vpop.f32.mrf.mxu2  ;;  %v15290_v47 = vld [vmem:[#allocation6 + $0x13f0] sm:$0xf0]  ;;  %8168 = vmatpush.bf16.msra.mxu0 %v13109_v62 }
 0x37f   :  { %v17977_v51 = vadd.f32 %v7703_v56, %v17943_v21  ;;  %v17979_v19 = vpop.f32.mrf.mxu1  ;;  %v7724_v12 = vpop.f32.mrf.mxu0  ;;  %v17981_v1 = vadd.f32 %v7760_v46, %v7742_v58  ;;  %v13313_v44 = vor.u32 %v15290_v47, %v13312_v45  ;;  %v12989_v21 = vor.u32 %v15209_v55, %v12988_v10  ;;  %v15287_v58 = vld [vmem:[#allocation6 + $0x13d8] sm:$0xf0]  ;;  %v15230_v56 = vld [vmem:[#allocation6 + $0x1210] sm:$0xf0]  ;;  %v13288_v45 = vld [vmem:[#allocation6 + $0x13b8] sm:$0xf] }
 0x380   :  { %v7744_v29 = vadd.f32 %v7743_v35, %v7724_v12  ;;  %8187 = vmatpush.bf16.msra.mxu1 %v13205_v4  ;;  %8150 = vmatpush.bf16.msrb.mxu3 %v13001_v59  ;;  %v13301_v62 = vor.u32 %v15287_v58, %v13300_v32  ;;  %v13181_v35 = vor.u32 %v15257_v3, %v13180_v48  ;;  %v15206_v4 = vld [vmem:[#allocation6 + $0x1150] sm:$0xf0]  ;;  %v13168_v59 = vld [vmem:[#allocation6 + $0x12c8] sm:$0xf]  ;;  %v15284_v47 = vld [vmem:[#allocation6 + $0x13c0] sm:$0xf0] }
 0x381   :  { %v8358_v11 = vmul.f32 %v17977_v51, %v17977_v51  ;;  %v8329_v12 = vadd.f32 %v17967_v18, %v17977_v51  ;;  %v13169_v55 = vor.u32 %v15254_v26, %v13168_v59  ;;  %v13289_v17 = vor.u32 %v15284_v47, %v13288_v45  ;;  %v15281_v32 = vld [vmem:[#allocation6 + $0x13a8] sm:$0xf0]  ;;  %v13264_v26 = vld [vmem:[#allocation6 + $0x1388] sm:$0xf] }
 0x382   :  { %8204 = vmatpush.bf16.msra.mxu2 %v13325_v53  ;;  %8169 = vmatpush.bf16.msra.mxu0 %v13097_v16  ;;  %v12976_v53 = vld [vmem:[#allocation6 + $0x1148] sm:$0xf] }
 0x383   :  { %v12977_v39 = vor.u32 %v15206_v4, %v12976_v53  ;;  %v8374_v48 = vadd.f32 %v17971_v20, %v8358_v11  ;;  %v13432_v20 = vld [vmem:[#allocation6 + $0x14d8] sm:$0xf]  ;;  %v15320_v11 = vld [vmem:[#allocation6 + $0x14e0] sm:$0xf0] }
 0x384   :  { %8188 = vmatpush.bf16.msra.mxu1 %v13193_v60  ;;  %8151 = vmatpush.bf16.msrb.mxu3 %v12989_v21  ;;  %v13073_v60 = vor.u32 %v15230_v56, %v13072_v8  ;;  %v13444_v21 = vld [vmem:[#allocation6 + $0x14f0] sm:$0xf]  ;;  %v13433_v59 = vor.u32 %v15320_v11, %v13432_v20 }
 0x385   :  { %v13445_v18 = vor.u32 %v15323_v27, %v13444_v21 }
 0x386   :  { %8205 = vmatpush.bf16.msra.mxu2 %v13313_v44  ;;  %v7705_v15 = vpop.f32.mrf.mxu3  ;;  %v7762_v41 = vpop.f32.mrf.mxu2  ;;  %8170 = vmatpush.bf16.msra.mxu0 %v13085_v54  ;;  %v19070_v54 = vld [vmem:[#allocation71_spill] sm:$0xff] }
 0x387   :  { %v17987_v37 = vadd.f32 %v7705_v15, %v17950_v5  ;;  %v17989_v46 = vpop.f32.mrf.mxu1  ;;  %v7793_v16 = vpop.f32.mrf.mxu0  ;;  %v17993_v44 = vadd.f32 %v7762_v41, %v7744_v29  ;;  %v13276_v29 = vld [vmem:[#allocation6 + $0x13a0] sm:$0xf]  ;;  %v15278_v41 = vld [vmem:[#allocation6 + $0x1390] sm:$0xf0] }
 0x388   :  { %8189 = vmatpush.bf16.msra.mxu1 %v13181_v35  ;;  %8152 = vmatpush.bf16.msrb.mxu3 %v12977_v39  ;;  %v19072_v35 = vld [vmem:[#allocation68_spill] sm:$0xff]  ;;  %v13277_v8 = vor.u32 %v15281_v32, %v13276_v29  ;;  %v13265_v27 = vor.u32 %v15278_v41, %v13264_v26 }
 0x389   :  { %v8330_v10 = vsel %vm138_vm1, %v17987_v37, 0.0  ;;  %v8361_v5 = vmul.f32 %v17987_v37, %v17987_v37 }
 0x38a   :  { %8206 = vmatpush.bf16.msra.mxu2 %v13301_v62  ;;  %v8331_v3 = vadd.f32 %v8330_v10, %v8329_v12  ;;  %v19071_v62 = vld [vmem:[#allocation70_spill] sm:$0xff]  ;;  %8171 = vmatpush.bf16.msra.mxu0 %v13073_v60  ;;  %v19073_v60 = vsub.f32 %v17732_v7, %v17736_v31 }
 0x38b   :  { %v8375_v58 = vsel %vm138_vm1, %v8361_v5, 0.0  ;;  %8077 = vmatmul.bf16.vlgmr.msra.gmra.mxu3 %v19070_v54  ;;  %8096 = vmatmul.bf16.vlgmr.msrb.gmra.mxu0 %v19071_v62  ;;  %v15347_v54 = vld [vmem:[#allocation6 + $0x15b8] sm:$0xf0]  ;;  %v13732_v62 = vld [vmem:[#allocation6 + $0x1730] sm:$0xf] }
 0x38c   :  { %v8332_v53 = vrot.slane %v8331_v3, 4  ;;  %v8376_v4 = vadd.f32 %v8375_v58, %v8374_v48  ;;  %8134 = vmatmul.bf16.vlgmr.msrb.gmra.mxu2 %v19072_v35  ;;  %8190 = vmatpush.bf16.msra.mxu1 %v13169_v55  ;;  %v18010_v10 = vadd.f32 0.001, %v19073_v60  ;;  %v13420_v48 = vld [vmem:[#allocation6 + $0x14c0] sm:$0xf] }
 0x38d   :  { %8221 = vmatpush.bf16.msra.mxu3 %v13445_v18  ;;  %v13540_v18 = vld [vmem:[#allocation6 + $0x15b0] sm:$0xf]  ;;  %v15371_v35 = vld [vmem:[#allocation6 + $0x1678] sm:$0xf0]  ;;  %v15344_v60 = vld [vmem:[#allocation6 + $0x15a0] sm:$0xf0] }
 0x38e   :  { %8207 = vmatpush.bf16.msra.mxu2 %v13289_v17  ;;  %v8333_v15 = vadd.f32 %v8332_v53, %v8331_v3  ;;  %v8377_v39 = vrot.slane %v8376_v4, 4  ;;  %v7774_v56 = vpop.f32.mrf.mxu3  ;;  %v7831_v47 = vpop.f32.mrf.mxu2  ;;  %v15317_v3 = vld [vmem:[#allocation6 + $0x14c8] sm:$0xf0]  ;;  %v13541_v31 = vor.u32 %v15347_v54, %v13540_v18  ;;  %v15395_v53 = vld [vmem:[#allocation6 + $0x1738] sm:$0xf0]  ;;  %15652 = vrsqrt.f32 %v18010_v10 }
 0x38f   :  { %v7775_v45 = vadd.f32 %v7774_v56, %v17955_v38  ;;  %v18005_v12 = vpop.f32.mrf.mxu1  ;;  %v7795_v17 = vpop.f32.mrf.mxu0  ;;  %v19074_v38 = vld [vmem:[#allocation72_spill] sm:$0xff]  ;;  %v13421_v58 = vor.u32 %v15317_v3, %v13420_v48  ;;  %v13733_v20 = vor.u32 %v15395_v53, %v13732_v62  ;;  %v15314_v56 = vld [vmem:[#allocation6 + $0x14b0] sm:$0xf0]  ;;  %v15392_v48 = vld [vmem:[#allocation6 + $0x1720] sm:$0xf0]  ;;  %vm8411_vm3 = vweird.f32 %v18010_v10 }
 0x390   :  { %v8334_v5 = vrot.slane %v8333_v15, 2  ;;  %v8378_v55 = vadd.f32 %v8377_v39, %v8376_v4  ;;  %8120 = vmatmul.bf16.gmra.mxu1 %v19074_v38  ;;  %v13636_v4 = vld [vmem:[#allocation6 + $0x1670] sm:$0xf]  ;;  %8240 = vmatpush.bf16.msrb.mxu0 %v13541_v31  ;;  %v13624_v3 = vld [vmem:[#allocation6 + $0x1658] sm:$0xf] }
 0x391   :  { %v7794_v21 = vadd.f32 %v7793_v16, %v7775_v45  ;;  %8222 = vmatpush.bf16.msra.mxu3 %v13433_v59  ;;  %v13637_v11 = vor.u32 %v15371_v35, %v13636_v4  ;;  %v13528_v59 = vld [vmem:[#allocation6 + $0x1598] sm:$0xf]  ;;  %v15368_v18 = vld [vmem:[#allocation6 + $0x1660] sm:$0xf0]  ;;  %v15311_v31 = vld [vmem:[#allocation6 + $0x1498] sm:$0xf0] }
 0x392   :  { %8208 = vmatpush.bf16.msra.mxu2 %v13277_v8  ;;  %v8335_v29 = vadd.f32 %v8334_v5, %v8333_v15  ;;  %v8379_v32 = vrot.slane %v8378_v55, 2  ;;  %v13408_v15 = vld [vmem:[#allocation6 + $0x14a8] sm:$0xf]  ;;  %v13720_v5 = vld [vmem:[#allocation6 + $0x1718] sm:$0xf] }
 0x393   :  { %v7813_v7 = vadd.f32 %v17979_v19, %v7794_v21  ;;  %v13409_v45 = vor.u32 %v15314_v56, %v13408_v15  ;;  %8259 = vmatpush.bf16.msrb.mxu1 %v13637_v11  ;;  %v13721_v54 = vor.u32 %v15392_v48, %v13720_v5  ;;  %v13516_v53 = vld [vmem:[#allocation6 + $0x1580] sm:$0xf]  ;;  %v15389_v11 = vld [vmem:[#allocation6 + $0x1708] sm:$0xf0]  ;;  %v13696_v48 = vld [vmem:[#allocation6 + $0x16e8] sm:$0xf] }
 0x394   :  { %v8336_v16 = vrot.slane %v8335_v29, 1  ;;  %v8380_v8 = vadd.f32 %v8379_v32, %v8378_v55  ;;  %v13612_v15 = vld [vmem:[#allocation6 + $0x1640] sm:$0xf]  ;;  %v15365_v56 = vld [vmem:[#allocation6 + $0x1648] sm:$0xf0] }
 0x395   :  { %v18014_v39 = vadd.f32 %v7831_v47, %v7813_v7  ;;  %8223 = vmatpush.bf16.msra.mxu3 %v13421_v58  ;;  %v13625_v58 = vor.u32 %v15368_v18, %v13624_v3  ;;  %v13396_v7 = vld [vmem:[#allocation6 + $0x1490] sm:$0xf] }
 0x396   :  { %8209 = vmatpush.bf16.msra.mxu2 %v13265_v27  ;;  %v8337_v26 = vadd.f32 %v8336_v16, %v8335_v29  ;;  %v8381_v41 = vrot.slane %v8380_v8, 1  ;;  %v7776_v19 = vpop.f32.mrf.mxu3  ;;  %v7833_v21 = vpop.f32.mrf.mxu2  ;;  %v13529_v27 = vor.u32 %v15344_v60, %v13528_v59  ;;  %v13397_v35 = vor.u32 %v15311_v31, %v13396_v7  ;;  %v15341_v16 = vld [vmem:[#allocation6 + $0x1588] sm:$0xf0]  ;;  %v15308_v60 = vld [vmem:[#allocation6 + $0x1480] sm:$0xf0] }
 0x397   :  { %v7777_v55 = vadd.f32 %v7776_v19, %v17963_v57  ;;  %v18018_v47 = vpop.f32.mrf.mxu1  ;;  %v7798_v38 = vpop.f32.mrf.mxu0  ;;  %8260 = vmatpush.bf16.msrb.mxu1 %v13625_v58  ;;  %v13613_v19 = vor.u32 %v15365_v56, %v13612_v15  ;;  %v13600_v58 = vld [vmem:[#allocation6 + $0x1628] sm:$0xf] }
 0x398   :  { %v18020_v32 = vmul.f32 0.04, %v8337_v26  ;;  %v8382_v29 = vadd.f32 %v8381_v41, %v8380_v8  ;;  %8241 = vmatpush.bf16.msrb.mxu0 %v13529_v27  ;;  %v18027_v59 = vpop.eup %15652  ;;  %v15338_v27 = vld [vmem:[#allocation6 + $0x1570] sm:$0xf0] }
 0x399   :  { %v7796_v62 = vadd.f32 %v7795_v17, %v7777_v55  ;;  %8224 = vmatpush.bf16.msra.mxu3 %v13409_v45  ;;  %v13517_v17 = vor.u32 %v15341_v16, %v13516_v53  ;;  %v13492_v16 = vld [vmem:[#allocation6 + $0x1550] sm:$0xf]  ;;  %vm8412_vm13 = vweird.f32 %v18027_v59 }
 0x39a   :  { %8278 = vmatpush.bf16.msrb.mxu2 %v13733_v20  ;;  %v8394_v57 = vmul.f32 0.04, %v8382_v29  ;;  %v8397_v4 = vmul.f32 %v18020_v32, %v18020_v32  ;;  %v13708_v20 = vld [vmem:[#allocation6 + $0x1700] sm:$0xf]  ;;  %vm8413_vm5 = vmor %vm8411_vm3, %vm8412_vm13 }
 0x39b   :  { %8082 = vmatmul.bf16.gmra.mxu3 %v17214_v61  ;;  %8101 = vmatmul.bf16.gmra.mxu0 %v17197_v50  ;;  %v7815_v8 = vadd.f32 %v17989_v46, %v7796_v62  ;;  %v13709_v41 = vor.u32 %v15389_v11, %v13708_v20  ;;  %v13384_v61 = vld [vmem:[#allocation6 + $0x1478] sm:$0xf]  ;;  %v13504_v50 = vld [vmem:[#allocation6 + $0x1568] sm:$0xf]  ;;  %v15362_v62 = vld [vmem:[#allocation6 + $0x1630] sm:$0xf0] }
 0x39c   :  { %v8400_v26 = vsub.f32 %v8394_v57, %v8397_v4  ;;  %8139 = vmatmul.bf16.gmra.mxu2 %v17201_v49  ;;  %8242 = vmatpush.bf16.msrb.mxu0 %v13517_v17  ;;  %v13385_v55 = vor.u32 %v15308_v60, %v13384_v61  ;;  %v8406_v49 = vmul.f32 %v18027_v59, %v18010_v10  ;;  %v13372_v4 = vld [vmem:[#allocation6 + $0x1460] sm:$0xf]  ;;  %v15335_v20 = vld [vmem:[#allocation6 + $0x1558] sm:$0xf0]  ;;  %v15302_v60 = vld [vmem:[#allocation6 + $0x1450] sm:$0xf0] }
 0x39d   :  { %v18030_v45 = vadd.f32 %v7833_v21, %v7815_v8  ;;  %8225 = vmatpush.bf16.msra.mxu3 %v13397_v35  ;;  %v13505_v29 = vor.u32 %v15338_v27, %v13504_v50  ;;  %8261 = vmatpush.bf16.msrb.mxu1 %v13613_v19  ;;  %v13601_v53 = vor.u32 %v15362_v62, %v13600_v58  ;;  %v15305_v35 = vld [vmem:[#allocation6 + $0x1468] sm:$0xf0]  ;;  %v13684_v8 = vld [vmem:[#allocation6 + $0x16d0] sm:$0xf]  ;;  %v15383_v17 = vld [vmem:[#allocation6 + $0x16d8] sm:$0xf0] }
 0x39e   :  { %8279 = vmatpush.bf16.msrb.mxu2 %v13721_v54  ;;  %v18032_v5 = vadd.f32 0.001, %v8400_v26  ;;  %v7779_v46 = vpop.f32.mrf.mxu3  ;;  %v7836_v18 = vpop.f32.mrf.mxu2  ;;  %v15386_v54 = vld [vmem:[#allocation6 + $0x16f0] sm:$0xf0]  ;;  %v8407_v11 = vmul.f32 %v18027_v59, %v8406_v49  ;;  %v13493_v56 = vor.u32 %v15335_v20, %v13492_v16  ;;  %v13685_v26 = vor.u32 %v15383_v17, %v13684_v8  ;;  %v13480_v50 = vld [vmem:[#allocation6 + $0x1538] sm:$0xf] }
 0x39f   :  { %v7780_v3 = vadd.f32 %v7779_v46, %v17981_v1  ;;  %v18037_v21 = vpop.f32.mrf.mxu1  ;;  %v7800_v7 = vpop.f32.mrf.mxu0  ;;  %v13697_v31 = vor.u32 %v15386_v54, %v13696_v48  ;;  %v13373_v1 = vor.u32 %v15305_v35, %v13372_v4  ;;  %v15332_v48 = vld [vmem:[#allocation6 + $0x1540] sm:$0xf0]  ;;  %v13468_v20 = vld [vmem:[#allocation6 + $0x1520] sm:$0xf]  ;;  %v15329_v8 = vld [vmem:[#allocation6 + $0x1528] sm:$0xf0] }
 0x3a0   :  { %15654 = vrsqrt.f32 %v18032_v5  ;;  %8243 = vmatpush.bf16.msrb.mxu0 %v13505_v29  ;;  %8191 = vmatmul.bf16.vlgmr.msra.gmra.mxu1 %v17232_v2  ;;  %v13360_v2 = vld [vmem:[#allocation6 + $0x1448] sm:$0xf]  ;;  %v15380_v49 = vld [vmem:[#allocation6 + $0x16c0] sm:$0xf0]  ;;  %v13481_v62 = vor.u32 %v15332_v48, %v13480_v50  ;;  %v13469_v17 = vor.u32 %v15329_v8, %v13468_v20  ;;  %vm8421_vm10 = vweird.f32 %v18032_v5 }
 0x3a1   :  { %v7799_v57 = vadd.f32 %v7798_v38, %v7780_v3  ;;  %8226 = vmatpush.bf16.msra.mxu3 %v13385_v55  ;;  %v15359_v38 = vld [vmem:[#allocation6 + $0x1618] sm:$0xf0]  ;;  %8262 = vmatpush.bf16.msrb.mxu1 %v13601_v53  ;;  %v13361_v27 = vor.u32 %v15302_v60, %v13360_v2  ;;  %v8408_v3 = vmul.f32 0.5, %v8407_v11  ;;  %v15356_v53 = vld [vmem:[#allocation6 + $0x1600] sm:$0xf0] }
 0x3a2   :  { %8280 = vmatpush.bf16.msrb.mxu2 %v13709_v41  ;;  %v13588_v41 = vld [vmem:[#allocation6 + $0x1610] sm:$0xf]  ;;  %v15377_v11 = vld [vmem:[#allocation6 + $0x16a8] sm:$0xf0] }
 0x3a3   :  { %v7818_v15 = vadd.f32 %v18005_v12, %v7799_v57  ;;  %v13589_v19 = vor.u32 %v15359_v38, %v13588_v41  ;;  %v13672_v12 = vld [vmem:[#allocation6 + $0x16b8] sm:$0xf]  ;;  %v13780_v41 = vld [vmem:[#allocation6 + $0x1790] sm:$0xf]  ;;  %v15407_v38 = vld [vmem:[#allocation6 + $0x1798] sm:$0xf0] }
 0x3a4   :  { %8244 = vmatpush.bf16.msrb.mxu0 %v13493_v56  ;;  %v15353_v2 = vld [vmem:[#allocation6 + $0x15e8] sm:$0xf0] }
 0x3a5   :  { %v18043_v61 = vadd.f32 %v7836_v18, %v7818_v15  ;;  %8227 = vmatpush.bf16.msra.mxu3 %v13373_v1  ;;  %8263 = vmatpush.bf16.msrb.mxu1 %v13589_v19  ;;  %v13673_v1 = vor.u32 %v15380_v49, %v13672_v12  ;;  %v8409_v15 = vsub.f32 1.5, %v8408_v3  ;;  %v13564_v19 = vld [vmem:[#allocation6 + $0x15e0] sm:$0xf]  ;;  %v13648_v12 = vld [vmem:[#allocation6 + $0x1688] sm:$0xf] }
 0x3a6   :  { %8281 = vmatpush.bf16.msrb.mxu2 %v13697_v31  ;;  %v18045_v46 = vpop.eup %15654  ;;  %v7781_v55 = vpop.f32.mrf.mxu3  ;;  %v13576_v31 = vld [vmem:[#allocation6 + $0x15f8] sm:$0xf] }
 0x3a7   :  { %v8416_v29 = vmul.f32 %v18045_v46, %v18032_v5  ;;  %v7782_v54 = vadd.f32 %v7781_v55, %v17993_v44  ;;  %v7838_v18 = vpop.f32.mrf.mxu2  ;;  %v18050_v58 = vpop.f32.mrf.mxu1  ;;  %v13577_v4 = vor.u32 %v15356_v53, %v13576_v31  ;;  %v13660_v44 = vld [vmem:[#allocation6 + $0x16a0] sm:$0xf]  ;;  %vm8422_vm6 = vweird.f32 %v18045_v46  ;;  %v15350_v31 = vld [vmem:[#allocation6 + $0x15d0] sm:$0xf0] }
 0x3a8   :  { %v7869_v57 = vpop.f32.mrf.mxu0  ;;  %8245 = vmatpush.bf16.msrb.mxu0 %v13481_v62  ;;  %v13565_v55 = vor.u32 %v15353_v2, %v13564_v19  ;;  %v8410_v49 = vmul.f32 %v18027_v59, %v8409_v15  ;;  %v13552_v62 = vld [vmem:[#allocation6 + $0x15c8] sm:$0xf]  ;;  %vm8423_vm15 = vmor %vm8421_vm10, %vm8422_vm6 }
 0x3a9   :  { %v8417_v35 = vmul.f32 %v18045_v46, %v8416_v29  ;;  %v7801_v16 = vadd.f32 %v7800_v7, %v7782_v54  ;;  %8228 = vmatpush.bf16.msra.mxu3 %v13361_v27  ;;  %8264 = vmatpush.bf16.msrb.mxu1 %v13577_v4  ;;  %v13781_v7 = vor.u32 %v15407_v38, %v13780_v41  ;;  %v15326_v27 = vld [vmem:[#allocation6 + $0x1510] sm:$0xf0]  ;;  %v13744_v2 = vld [vmem:[#allocation6 + $0x1748] sm:$0xf] }
 0x3aa   :  { %8282 = vmatpush.bf16.msrb.mxu2 %v13685_v26  ;;  %v13553_v4 = vor.u32 %v15350_v31, %v13552_v62 }
 0x3ab   :  { %v8418_v56 = vmul.f32 0.5, %v8417_v35  ;;  %8153 = vmatmul.bf16.vlgmr.msrb.gmra.mxu3 %v17262_v42  ;;  %8172 = vmatmul.bf16.vlgmr.msra.gmra.mxu0 %v17276_v28  ;;  %v7820_v26 = vadd.f32 %v18018_v47, %v7801_v16  ;;  %v13661_v42 = vor.u32 %v15377_v11, %v13660_v44  ;;  %v13456_v28 = vld [vmem:[#allocation6 + $0x1508] sm:$0xf] }
 0x3ac   :  { %8210 = vmatmul.bf16.vlgmr.msra.gmra.mxu2 %v19037_v22  ;;  %8246 = vmatpush.bf16.msrb.mxu0 %v13469_v17  ;;  %v13457_v48 = vor.u32 %v15326_v27, %v13456_v28  ;;  %v15374_v22 = vld [vmem:[#allocation6 + $0x1690] sm:$0xf0]  ;;  %v8414_v17 = vsel %vm8413_vm5, %v18027_v59, %v8410_v49  ;;  %v13756_v59 = vld [vmem:[#allocation6 + $0x1760] sm:$0xf] }
 0x3ad   :  { %v8419_v60 = vsub.f32 1.5, %v8418_v56  ;;  %v18058_v50 = vadd.f32 %v7838_v18, %v7820_v26  ;;  %8301 = vmatpush.bf16.msrb.mxu3 %v13781_v7  ;;  %8265 = vmatpush.bf16.msrb.mxu1 %v13565_v55  ;;  %v13649_v5 = vor.u32 %v15374_v22, %v13648_v12 }
 0x3ae   :  { %8283 = vmatpush.bf16.msrb.mxu2 %v13673_v1  ;;  %v7850_v47 = vpop.f32.mrf.mxu3  ;;  %v15404_v1 = vld [vmem:[#allocation6 + $0x1780] sm:$0xf0] }
 0x3af   :  { %v8420_v3 = vmul.f32 %v18045_v46, %v8419_v60  ;;  %v7851_v29 = vadd.f32 %v7850_v47, %v18014_v39  ;;  %v7907_v54 = vpop.f32.mrf.mxu2  ;;  %v7893_v18 = vpop.f32.mrf.mxu1  ;;  %v13768_v39 = vld [vmem:[#allocation6 + $0x1778] sm:$0xf]  ;;  %v15398_v60 = vld [vmem:[#allocation6 + $0x1750] sm:$0xf0] }
 0x3b0   :  { %v18067_v53 = vpop.f32.mrf.mxu0  ;;  %8247 = vmatpush.bf16.msrb.mxu0 %v13457_v48  ;;  %8196 = vmatmul.bf16.gmra.mxu1 %v19038_v36  ;;  %v13769_v8 = vor.u32 %v15404_v1, %v13768_v39 }
 0x3b1   :  { %v8424_v35 = vsel %vm8423_vm15, %v18045_v46, %v8420_v3  ;;  %v7870_v16 = vadd.f32 %v7869_v57, %v7851_v29  ;;  %8266 = vmatpush.bf16.msrb.mxu1 %v13553_v4 }
 0x3b2   :  { %8284 = vmatpush.bf16.msrb.mxu2 %v13661_v42  ;;  %v8438_v20 = vrot.slane %v8424_v35, 7  ;;  %8302 = vmatpush.bf16.msrb.mxu3 %v13769_v8 }
 0x3b3   :  { %v7889_v44 = vadd.f32 %v18037_v21, %v7870_v16  ;;  %v15401_v21 = vld [vmem:[#allocation6 + $0x1768] sm:$0xf0] }
 0x3b4   :  { %v18077_v10 = vsel %vm138_vm1, %v8414_v17, %v8438_v20  ;;  %v13757_v26 = vor.u32 %v15401_v21, %v13756_v59 }
 0x3b5   :  { %v7908_v46 = vadd.f32 %v7907_v54, %v7889_v44 }
 0x3b6   :  { %8285 = vmatpush.bf16.msrb.mxu2 %v13649_v5  ;;  %v7852_v57 = vpop.f32.mrf.mxu3  ;;  %8303 = vmatpush.bf16.msrb.mxu3 %v13757_v26 }
 0x3b7   :  { %v18080_v11 = vadd.f32 %v7852_v57, %v18030_v45  ;;  %v18082_v15 = vpop.f32.mrf.mxu2  ;;  %v18084_v36 = vpop.f32.mrf.mxu1 }
 0x3b8   :  { %v7874_v56 = vpop.f32.mrf.mxu0 }
 0x3bb   :  { %8158 = vmatmul.bf16.gmra.mxu3 %v17375_v23  ;;  %8177 = vmatmul.bf16.gmra.mxu0 %v17386_v40  ;;  %v13745_v23 = vor.u32 %v15398_v60, %v13744_v2 }
 0x3bc   :  { %8215 = vmatmul.bf16.gmra.mxu2 %v17382_v52 }
 0x3bd   :  { %8304 = vmatpush.bf16.msrb.mxu3 %v13745_v23 }
 0x3be   :  { %v7855_v41 = vpop.f32.mrf.mxu3 }
 0x3bf   :  { %v7856_v38 = vadd.f32 %v7855_v41, %v18043_v61  ;;  %v7912_v45 = vpop.f32.mrf.mxu2  ;;  %v7964_v42 = vpop.f32.mrf.mxu1 }
 0x3c0   :  { %v18090_v7 = vpop.f32.mrf.mxu0  ;;  %8267 = vmatmul.bf16.vlgmr.msrb.gmra.mxu1 %v17416_v0 }
 0x3c1   :  { %v7875_v19 = vadd.f32 %v7874_v56, %v7856_v38 }
 0x3c3   :  { %v7894_v40 = vadd.f32 %v7893_v18, %v7875_v19 }
 0x3c5   :  { %v7913_v55 = vadd.f32 %v7912_v45, %v7894_v40 }
 0x3c6   :  { %v7857_v28 = vpop.f32.mrf.mxu3 }
 0x3c7   :  { %v18094_v52 = vadd.f32 %v7857_v28, %v18058_v50  ;;  %v18096_v27 = vpop.f32.mrf.mxu2  ;;  %v18100_v47 = vpop.f32.mrf.mxu1 }
 0x3c8   :  { %v7945_v61 = vpop.f32.mrf.mxu0 }
 0x3cb   :  { %8229 = vmatmul.bf16.vlgmr.msra.gmra.mxu3 %v17460_v25  ;;  %8248 = vmatmul.bf16.vlgmr.msrb.gmra.mxu0 %v17453_v24 }
 0x3cc   :  { %8286 = vmatmul.bf16.vlgmr.msrb.gmra.mxu2 %v17462_v33 }
 0x3ce   :  { %v7926_v0 = vpop.f32.mrf.mxu3 }
 0x3cf   :  { %v7927_v48 = vadd.f32 %v7926_v0, %v7908_v46  ;;  %v7983_v12 = vpop.f32.mrf.mxu2  ;;  %v7969_v54 = vpop.f32.mrf.mxu1 }
 0x3d0   :  { %v18103_v22 = vpop.f32.mrf.mxu0  ;;  %8272 = vmatmul.bf16.gmra.mxu1 %v17486_v13 }
 0x3d1   :  { %v7946_v49 = vadd.f32 %v7945_v61, %v7927_v48 }
 0x3d3   :  { %v7965_v50 = vadd.f32 %v7964_v42, %v7946_v49 }
 0x3d5   :  { %v7984_v3 = vadd.f32 %v7983_v12, %v7965_v50 }
 0x3d6   :  { %v18106_v29 = vpop.f32.mrf.mxu3 }
 0x3d7   :  { %v18108_v25 = vpop.f32.mrf.mxu2  ;;  %v18115_v13 = vpop.f32.mrf.mxu1 }
 0x3d8   :  { %v7950_v24 = vpop.f32.mrf.mxu0 }
 0x3db   :  { %8234 = vmatmul.bf16.gmra.mxu3 %v17509_v30  ;;  %8253 = vmatmul.bf16.gmra.mxu0 %v17501_v43 }
 0x3dc   :  { %8291 = vmatmul.bf16.gmra.mxu2 %v17505_v34 }
 0x3de   :  { %v7931_v33 = vpop.f32.mrf.mxu3 }
 0x3df   :  { %v7932_v18 = vadd.f32 %v7931_v33, %v7913_v55  ;;  %v7988_v62 = vpop.f32.mrf.mxu2  ;;  %v8040_v30 = vpop.f32.mrf.mxu1 }
 0x3e0   :  { %v18113_v31 = vpop.f32.mrf.mxu0 }
 0x3e1   :  { %v7951_v4 = vadd.f32 %v7950_v24, %v7932_v18 }
 0x3e3   :  { %v7970_v35 = vadd.f32 %v7969_v54, %v7951_v4 }
 0x3e5   :  { %v7989_v16 = vadd.f32 %v7988_v62, %v7970_v35 }
 0x3e6   :  { %v18117_v5 = vpop.f32.mrf.mxu3 }
 0x3e7   :  { %v18119_v39 = vpop.f32.mrf.mxu2  ;;  %v18125_v46 = vpop.f32.mrf.mxu1 }
 0x3e8   :  { %v8021_v1 = vpop.f32.mrf.mxu0 }
 0x3eb   :  { %13786 = vmatmul.msk.bf16.vlgmr.msrb.gmra.mxu3 %vm167_vm0, %v17527_v63 }
 0x3ee   :  { %v8002_v43 = vpop.f32.mrf.mxu3 }
 0x3ef   :  { %v8003_v34 = vadd.f32 %v8002_v43, %v7984_v3  ;;  %v8059_v20 = vpop.f32.mrf.mxu2  ;;  %v8045_v26 = vpop.f32.mrf.mxu1 }
 0x3f0   :  { %v18123_v17 = vpop.f32.mrf.mxu0 }
 0x3f1   :  { %v8022_v8 = vadd.f32 %v8021_v1, %v8003_v34 }
 0x3f3   :  { %v8041_v44 = vadd.f32 %v8040_v30, %v8022_v8  ;;  %v7872_v8 = vadd.f32 %v18067_v53, %v18080_v11 }
 0x3f5   :  { %v8060_v57 = vadd.f32 %v8059_v20, %v8041_v44 }
 0x3f6   :  { %v8004_v56 = vpop.f32.mrf.mxu3 }
 0x3f7   :  { %v18127_v59 = vpop.f32.mrf.mxu2  ;;  %v18133_v23 = vpop.f32.mrf.mxu1 }
 0x3f8   :  { %v8026_v21 = vpop.f32.mrf.mxu0 }
 0x3fb   :  { %13787 = vmatmul.msk.bf16.gmra.mxu3 %vm167_vm0, %v19039_v6 }
 0x3fe   :  { %v8007_v41 = vpop.f32.mrf.mxu3 }
 0x3ff   :  { %v8008_v63 = vadd.f32 %v8007_v41, %v7989_v16  ;;  %v8064_v38 = vpop.f32.mrf.mxu2  ;;  %v8116_v6 = vpop.f32.mrf.mxu1 }
 0x400   :  { %v18131_v60 = vpop.f32.mrf.mxu0 }
 0x401   :  { %v8027_v45 = vadd.f32 %v8026_v21, %v8008_v63 }
 0x403   :  { %v8046_v19 = vadd.f32 %v8045_v26, %v8027_v45 }
 0x405   :  { %v8065_v2 = vadd.f32 %v8064_v38, %v8046_v19 }
 0x406   :  { %v8009_v42 = vpop.f32.mrf.mxu3 }
 0x407   :  { %v18135_v40 = vpop.f32.mrf.mxu2  ;;  %v8118_v54 = vpop.f32.mrf.mxu1 }
 0x408   :  { %v8097_v61 = vpop.f32.mrf.mxu0 }
 0x40e   :  { %v8078_v55 = vpop.f32.mrf.mxu3 }
 0x40f   :  { %v8079_v28 = vadd.f32 %v8078_v55, %v8060_v57  ;;  %v8135_v48 = vpop.f32.mrf.mxu2  ;;  %v8121_v35 = vpop.f32.mrf.mxu1  ;;  %v7891_v57 = vadd.f32 %v18050_v58, %v7872_v8  ;;  %v7877_v55 = vadd.f32 %v18090_v7, %v18094_v52 }
 0x410   :  { %v8099_v3 = vpop.f32.mrf.mxu0 }
 0x411   :  { %v8098_v0 = vadd.f32 %v8097_v61, %v8079_v28  ;;  %v7910_v26 = vadd.f32 %v18082_v15, %v7891_v57  ;;  %v7896_v15 = vadd.f32 %v18084_v36, %v7877_v55 }
 0x413   :  { %v8117_v12 = vadd.f32 %v8116_v6, %v8098_v0  ;;  %v7929_v41 = vadd.f32 %v18106_v29, %v7910_v26  ;;  %v7915_v29 = vadd.f32 %v18096_v27, %v7896_v15 }
 0x415   :  { %v8136_v49 = vadd.f32 %v8135_v48, %v8117_v12  ;;  %v7948_v19 = vadd.f32 %v18103_v22, %v7929_v41  ;;  %v7934_v6 = vadd.f32 %v18117_v5, %v7915_v29 }
 0x416   :  { %v8080_v50 = vpop.f32.mrf.mxu3 }
 0x417   :  { %v8137_v33 = vpop.f32.mrf.mxu2  ;;  %v18137_v34 = vpop.f32.mrf.mxu1  ;;  %v7967_v28 = vadd.f32 %v18100_v47, %v7948_v19  ;;  %v7953_v7 = vadd.f32 %v18113_v31, %v7934_v6 }
 0x418   :  { %v8102_v62 = vpop.f32.mrf.mxu0 }
 0x419   :  { %v7986_v53 = vadd.f32 %v18108_v25, %v7967_v28 }
 0x41b   :  { %v8005_v0 = vadd.f32 %v8004_v56, %v7986_v53 }
 0x41d   :  { %v8024_v22 = vadd.f32 %v18123_v17, %v8005_v0 }
 0x41e   :  { %v8083_v24 = vpop.f32.mrf.mxu3 }
 0x41f   :  { %v8084_v18 = vadd.f32 %v8083_v24, %v8065_v2  ;;  %v8140_v16 = vpop.f32.mrf.mxu2  ;;  %v8192_v63 = vpop.f32.mrf.mxu1  ;;  %v8043_v52 = vadd.f32 %v18125_v46, %v8024_v22  ;;  %v7972_v24 = vadd.f32 %v18115_v13, %v7953_v7 }
 0x420   :  { %v8104_v1 = vpop.f32.mrf.mxu0 }
 0x421   :  { %v7991_v56 = vadd.f32 %v18119_v39, %v7972_v24 }
 0x423   :  { %v8010_v5 = vadd.f32 %v8009_v42, %v7991_v56 }
 0x425   :  { %v8029_v26 = vadd.f32 %v18131_v60, %v8010_v5 }
 0x426   :  { %v8085_v4 = vpop.f32.mrf.mxu3 }
 0x427   :  { %v18139_v20 = vpop.f32.mrf.mxu2  ;;  %v8194_v11 = vpop.f32.mrf.mxu1  ;;  %v8048_v55 = vadd.f32 %v18133_v23, %v8029_v26 }
 0x428   :  { %v8173_v21 = vpop.f32.mrf.mxu0 }
 0x429   :  { %v8067_v13 = vadd.f32 %v18135_v40, %v8048_v55 }
 0x42b   :  { %v8086_v53 = vadd.f32 %v8085_v4, %v8067_v13 }
 0x42d   :  { %v8105_v60 = vadd.f32 %v8104_v1, %v8086_v53 }
 0x42e   :  { %v8154_v30 = vpop.f32.mrf.mxu3 }
 0x42f   :  { %v8155_v43 = vadd.f32 %v8154_v30, %v8136_v49  ;;  %v8211_v38 = vpop.f32.mrf.mxu2  ;;  %v8197_v47 = vpop.f32.mrf.mxu1  ;;  %v8062_v49 = vadd.f32 %v18127_v59, %v8043_v52  ;;  %v8103_v59 = vadd.f32 %v8102_v62, %v8084_v18  ;;  %v8124_v18 = vadd.f32 %v18137_v34, %v8105_v60 }
 0x430   :  { %v8175_v2 = vpop.f32.mrf.mxu0 }
 0x431   :  { %v8081_v36 = vadd.f32 %v8080_v50, %v8062_v49  ;;  %v8174_v50 = vadd.f32 %v8173_v21, %v8155_v43  ;;  %v8122_v15 = vadd.f32 %v8121_v35, %v8103_v59  ;;  %v8143_v4 = vadd.f32 %v18139_v20, %v8124_v18 }
 0x433   :  { %v8100_v8 = vadd.f32 %v8099_v3, %v8081_v36  ;;  %v8141_v0 = vadd.f32 %v8140_v16, %v8122_v15  ;;  %v8193_v29 = vadd.f32 %v8192_v63, %v8174_v50 }
 0x435   :  { %v8119_v31 = vadd.f32 %v8118_v54, %v8100_v8  ;;  %v8212_v54 = vadd.f32 %v8211_v38, %v8193_v29 }
 0x436   :  { %v8156_v44 = vpop.f32.mrf.mxu3 }
 0x437   :  { %v8213_v58 = vpop.f32.mrf.mxu2  ;;  %v8199_v17 = vpop.f32.mrf.mxu1  ;;  %v8138_v41 = vadd.f32 %v8137_v33, %v8119_v31 }
 0x438   :  { %v8178_v48 = vpop.f32.mrf.mxu0 }
 0x439   :  { %v8157_v28 = vadd.f32 %v8156_v44, %v8138_v41 }
 0x43b   :  { %v8176_v42 = vadd.f32 %v8175_v2, %v8157_v28 }
 0x43d   :  { %v8195_v22 = vadd.f32 %v8194_v11, %v8176_v42 }
 0x43e   :  { %v8159_v45 = vpop.f32.mrf.mxu3 }
 0x43f   :  { %v8216_v25 = vpop.f32.mrf.mxu2  ;;  %v8268_v39 = vpop.f32.mrf.mxu1  ;;  %v8160_v33 = vadd.f32 %v8159_v45, %v8141_v0  ;;  %v8214_v52 = vadd.f32 %v8213_v58, %v8195_v22 }
 0x440   :  { %v8180_v27 = vpop.f32.mrf.mxu0 }
 0x441   :  { %v8179_v62 = vadd.f32 %v8178_v48, %v8160_v33 }
 0x443   :  { %v8198_v63 = vadd.f32 %v8197_v47, %v8179_v62 }
 0x445   :  { %v8217_v1 = vadd.f32 %v8216_v25, %v8198_v63 }
 0x446   :  { %v8161_v61 = vpop.f32.mrf.mxu3 }
 0x447   :  { %v8218_v57 = vpop.f32.mrf.mxu2  ;;  %v8270_v43 = vpop.f32.mrf.mxu1  ;;  %v8162_v16 = vadd.f32 %v8161_v61, %v8143_v4  ;;  %v13970_v4 = vld [vmem:[#allocation10 + $0x168] sm:$0xf] }
 0x448   :  { %v8249_v46 = vpop.f32.mrf.mxu0 }
 0x449   :  { %v8181_v11 = vadd.f32 %v8180_v27, %v8162_v16 }
 0x44b   :  { %v8200_v56 = vadd.f32 %v8199_v17, %v8181_v11 }
 0x44d   :  { %v8219_v61 = vadd.f32 %v8218_v57, %v8200_v56  ;;  %v15502_v56 = vld [vmem:[#allocation10 + $0x2f0] sm:$0xf0] }
 0x44e   :  { %v8230_v12 = vpop.f32.mrf.mxu3 }
 0x44f   :  { %v8287_v3 = vpop.f32.mrf.mxu2  ;;  %v8231_v23 = vadd.f32 %v8230_v12, %v8212_v54  ;;  %v8273_v48 = vpop.f32.mrf.mxu1 }
 0x450   :  { %v8251_v7 = vpop.f32.mrf.mxu0 }
 0x451   :  { %v8250_v35 = vadd.f32 %v8249_v46, %v8231_v23  ;;  %v13874_v23 = vld [vmem:[#allocation10 + $0xa8] sm:$0xf] }
 0x453   :  { %v8269_v38 = vadd.f32 %v8268_v39, %v8250_v35 }
 0x455   :  { %v8288_v49 = vadd.f32 %v8287_v3, %v8269_v38  ;;  %v13862_v38 = vld [vmem:[#allocation10 + $0x90] sm:$0xf] }
 0x456   :  { %v8232_v30 = vpop.f32.mrf.mxu3 }
 0x457   :  { %v8233_v40 = vadd.f32 %v8232_v30, %v8214_v52  ;;  %v8289_v44 = vpop.f32.mrf.mxu2  ;;  %v8275_v59 = vpop.f32.mrf.mxu1  ;;  %v15478_v52 = vld [vmem:[#allocation10 + $0x230] sm:$0xf0] }
 0x458   :  { %v8254_v45 = vpop.f32.mrf.mxu0 }
 0x459   :  { %v8252_v2 = vadd.f32 %v8251_v7, %v8233_v40  ;;  %v14066_v7 = vld [vmem:[#allocation10 + $0x228] sm:$0xf] }
 0x45a   :  { %v14067_v40 = vor.u32 %v15478_v52, %v14066_v7  ;;  %v14138_v52 = vld [vmem:[#allocation10 + $0x2b8] sm:$0xf] }
 0x45b   :  { %v8271_v58 = vadd.f32 %v8270_v43, %v8252_v2  ;;  %v15430_v43 = vld [vmem:[#allocation10 + $0xb0] sm:$0xf0]  ;;  %v14054_v2 = vld [vmem:[#allocation10 + $0x210] sm:$0xf] }
 0x45c   :  { %v13875_v35 = vor.u32 %v15430_v43, %v13874_v23  ;;  %10263 = vmatpush.bf16.msra.mxu2 %v14067_v40  ;;  %v15496_v23 = vld [vmem:[#allocation10 + $0x2c0] sm:$0xf0]  ;;  %v14018_v40 = vld [vmem:[#allocation10 + $0x1c8] sm:$0xf]  ;;  %v15466_v43 = vld [vmem:[#allocation10 + $0x1d0] sm:$0xf0] }
 0x45d   :  { %v8290_v24 = vadd.f32 %v8289_v44, %v8271_v58  ;;  %v15454_v44 = vld [vmem:[#allocation10 + $0x170] sm:$0xf0]  ;;  %v15427_v58 = vld [vmem:[#allocation10 + $0x98] sm:$0xf0] }
 0x45e   :  { %v8235_v19 = vpop.f32.mrf.mxu3  ;;  %v13971_v63 = vor.u32 %v15454_v44, %v13970_v4  ;;  %10225 = vmatpush.bf16.msra.mxu0 %v13875_v35  ;;  %v13826_v4 = vld [vmem:[#allocation10 + $0x48] sm:$0xf]  ;;  %v14019_v35 = vor.u32 %v15466_v43, %v14018_v40  ;;  %v15418_v44 = vld [vmem:[#allocation10 + $0x50] sm:$0xf0] }
 0x45f   :  { %v8236_v12 = vadd.f32 %v8235_v19, %v8217_v1  ;;  %v8292_v5 = vpop.f32.mrf.mxu2  ;;  %v15475_v1 = vld [vmem:[#allocation10 + $0x218] sm:$0xf0] }
 0x460   :  { %v8256_v41 = vpop.f32.mrf.mxu0  ;;  %10244 = vmatpush.bf16.msra.mxu1 %v13971_v63  ;;  %v13827_v63 = vor.u32 %v15418_v44, %v13826_v4 }
 0x461   :  { %v8255_v20 = vadd.f32 %v8254_v45, %v8236_v12  ;;  %v13958_v12 = vld [vmem:[#allocation10 + $0x150] sm:$0xf] }
 0x463   :  { %v8274_v8 = vadd.f32 %v8273_v48, %v8255_v20  ;;  %v15451_v48 = vld [vmem:[#allocation10 + $0x158] sm:$0xf0] }
 0x465   :  { %v8293_v46 = vadd.f32 %v8292_v5, %v8274_v8  ;;  %v13850_v8 = vld [vmem:[#allocation10 + $0x78] sm:$0xf] }
 0x466   :  { %v8237_v6 = vpop.f32.mrf.mxu3 }
 0x467   :  { %v8238_v26 = vadd.f32 %v8237_v6, %v8219_v61  ;;  %v8294_v13 = vpop.f32.mrf.mxu2  ;;  %v13959_v61 = vor.u32 %v15451_v48, %v13958_v12  ;;  %v13910_v48 = vld [vmem:[#allocation10 + $0xf0] sm:$0xf] }
 0x469   :  { %v8257_v19 = vadd.f32 %v8256_v41, %v8238_v26  ;;  %10245 = vmatpush.bf16.msra.mxu1 %v13959_v61  ;;  %v15490_v61 = vld [vmem:[#allocation10 + $0x290] sm:$0xf0] }
 0x46b   :  { %v8276_v50 = vadd.f32 %v8275_v59, %v8257_v19  ;;  %v15448_v59 = vld [vmem:[#allocation10 + $0x140] sm:$0xf0] }
 0x46d   :  { %v8295_v53 = vadd.f32 %v8294_v13, %v8276_v50 }
 0x46e   :  { %v8306_v21 = vpop.f32.mrf.mxu3 }
 0x46f   :  { %v18165_v34 = vadd.f32 %v8306_v21, %v8288_v49  ;;  %v14055_v49 = vor.u32 %v15475_v1, %v14054_v2  ;;  %v14126_v1 = vld [vmem:[#allocation10 + $0x2a0] sm:$0xf] }
 0x471   :  { %v8353_v47 = vmul.f32 %v18165_v34, %v18165_v34  ;;  %10264 = vmatpush.bf16.msra.mxu2 %v14055_v49  ;;  %v15463_v49 = vld [vmem:[#allocation10 + $0x1b8] sm:$0xf0] }
 0x476   :  { %v8308_v36 = vpop.f32.mrf.mxu3 }
 0x477   :  { %v18167_v30 = vadd.f32 %v8308_v36, %v8290_v24  ;;  %v13863_v24 = vor.u32 %v15427_v58, %v13862_v38  ;;  %v14162_v36 = vld [vmem:[#allocation10 + $0x2e8] sm:$0xf]  ;;  %v15493_v38 = vld [vmem:[#allocation10 + $0x2a8] sm:$0xf0]  ;;  %v13814_v58 = vld [vmem:[#allocation10 + $0x30] sm:$0xf] }
 0x479   :  { %v8338_v25 = vadd.f32 %v18167_v30, %v18165_v34  ;;  %v8356_v27 = vmul.f32 %v18167_v30, %v18167_v30  ;;  %10226 = vmatpush.bf16.msra.mxu0 %v13863_v24  ;;  %v15415_v24 = vld [vmem:[#allocation10 + $0x38] sm:$0xf0] }
 0x47b   :  { %v8383_v31 = vadd.f32 %v8356_v27, %v8353_v47  ;;  %v14163_v47 = vor.u32 %v15502_v56, %v14162_v36  ;;  %v15472_v27 = vld [vmem:[#allocation10 + $0x200] sm:$0xf0]  ;;  %v15439_v36 = vld [vmem:[#allocation10 + $0xf8] sm:$0xf0]  ;;  %v13815_v56 = vor.u32 %v15415_v24, %v13814_v58  ;;  %v15481_v24 = vld [vmem:[#allocation10 + $0x248] sm:$0xf0] }
 0x47d   :  { %10282 = vmatpush.bf16.msra.mxu3 %v14163_v47 }
 0x47e   :  { %v8311_v17 = vpop.f32.mrf.mxu3 }
 0x47f   :  { %v18175_v55 = vadd.f32 %v8311_v17, %v8293_v46  ;;  %v15424_v46 = vld [vmem:[#allocation10 + $0x80] sm:$0xf0]  ;;  %v13946_v17 = vld [vmem:[#allocation10 + $0x138] sm:$0xf] }
 0x480   :  { %v13851_v19 = vor.u32 %v15424_v46, %v13850_v8  ;;  %v13994_v8 = vld [vmem:[#allocation10 + $0x198] sm:$0xf] }
 0x481   :  { %v8339_v57 = vadd.f32 %v8338_v25, %v18175_v55  ;;  %v8359_v28 = vmul.f32 %v18175_v55, %v18175_v55  ;;  %v14042_v25 = vld [vmem:[#allocation10 + $0x1f8] sm:$0xf] }
 0x482   :  { %v14043_v41 = vor.u32 %v15472_v27, %v14042_v25  ;;  %10227 = vmatpush.bf16.msra.mxu0 %v13851_v19  ;;  %v13898_v19 = vld [vmem:[#allocation10 + $0xd8] sm:$0xf] }
 0x483   :  { %v8384_v39 = vadd.f32 %v8383_v31, %v8359_v28  ;;  %v15499_v28 = vld [vmem:[#allocation10 + $0x2d8] sm:$0xf0] }
 0x484   :  { %10265 = vmatpush.bf16.msra.mxu2 %v14043_v41  ;;  %v13802_v41 = vld [vmem:[#allocation10 + $0x18] sm:$0xf] }
 0x486   :  { %v8313_v15 = vpop.f32.mrf.mxu3 }
 0x487   :  { %v18180_v42 = vadd.f32 %v8313_v15, %v8295_v53  ;;  %v14030_v15 = vld [vmem:[#allocation10 + $0x1e0] sm:$0xf] }
 0x489   :  { %v8340_v3 = vsel %vm138_vm1, %v18180_v42, 0.0  ;;  %v8362_v0 = vmul.f32 %v18180_v42, %v18180_v42 }
 0x48a   :  { %v8341_v29 = vadd.f32 %v8340_v3, %v8339_v57  ;;  %v14150_v57 = vld [vmem:[#allocation10 + $0x2d0] sm:$0xf]  ;;  %v15469_v3 = vld [vmem:[#allocation10 + $0x1e8] sm:$0xf0] }
 0x48b   :  { %v8385_v6 = vsel %vm138_vm1, %v8362_v0, 0.0  ;;  %v14151_v53 = vor.u32 %v15499_v28, %v14150_v57  ;;  %v13838_v0 = vld [vmem:[#allocation10 + $0x60] sm:$0xf]  ;;  %v15436_v28 = vld [vmem:[#allocation10 + $0xe0] sm:$0xf0] }
 0x48c   :  { %v8342_v60 = vrot.slane %v8341_v29, 4  ;;  %v8386_v54 = vadd.f32 %v8385_v6, %v8384_v39  ;;  %v13947_v39 = vor.u32 %v15448_v59, %v13946_v17  ;;  %v14031_v6 = vor.u32 %v15469_v3, %v14030_v15  ;;  %v15412_v17 = vld [vmem:[#allocation10 + $0x20] sm:$0xf0]  ;;  %v13982_v15 = vld [vmem:[#allocation10 + $0x180] sm:$0xf] }
 0x48d   :  { %10283 = vmatpush.bf16.msra.mxu3 %v14151_v53  ;;  %v13803_v57 = vor.u32 %v15412_v17, %v13802_v41  ;;  %v15457_v3 = vld [vmem:[#allocation10 + $0x188] sm:$0xf0]  ;;  %v14342_v17 = vld [vmem:[#allocation10 + $0x450] sm:$0xf] }
 0x48e   :  { %v8343_v33 = vadd.f32 %v8342_v60, %v8341_v29  ;;  %v8387_v22 = vrot.slane %v8386_v54, 4  ;;  %10246 = vmatpush.bf16.msra.mxu1 %v13947_v39  ;;  %v15421_v60 = vld [vmem:[#allocation10 + $0x68] sm:$0xf0]  ;;  %10266 = vmatpush.bf16.msra.mxu2 %v14031_v6  ;;  %v13899_v39 = vor.u32 %v15436_v28, %v13898_v19  ;;  %v13983_v6 = vor.u32 %v15457_v3, %v13982_v15  ;;  %v15547_v19 = vld [vmem:[#allocation10 + $0x458] sm:$0xf0] }
 0x490   :  { %v8344_v18 = vrot.slane %v8343_v33, 2  ;;  %v8388_v62 = vadd.f32 %v8387_v22, %v8386_v54  ;;  %v13934_v54 = vld [vmem:[#allocation10 + $0x120] sm:$0xf]  ;;  %v13839_v22 = vor.u32 %v15421_v60, %v13838_v0  ;;  %v15409_v60 = vld [vmem:[#allocation10 + $0x8] sm:$0xf0] }
 0x491   :  { %v13790_v0 = vld [vmem:[#allocation10] sm:$0xf] }
 0x492   :  { %v8345_v21 = vadd.f32 %v8344_v18, %v8343_v33  ;;  %v8389_v16 = vrot.slane %v8388_v62, 2  ;;  %v15445_v33 = vld [vmem:[#allocation10 + $0x128] sm:$0xf0]  ;;  %10228 = vmatpush.bf16.msra.mxu0 %v13839_v22  ;;  %10267 = vmatpush.bf16.msra.mxu2 %v14019_v35  ;;  %v8316_v35 = vld [vmem:[#allocation7] sm:$0x7] }
 0x493   :  { %v13935_v7 = vor.u32 %v15445_v33, %v13934_v54  ;;  %v13886_v54 = vld [vmem:[#allocation10 + $0xc0] sm:$0xf]  ;;  %v13791_v33 = vor.u32 %v15409_v60, %v13790_v0  ;;  %v15433_v22 = vld [vmem:[#allocation10 + $0xc8] sm:$0xf0]  ;;  %v14343_v0 = vor.u32 %v15547_v19, %v14342_v17 }
 0x494   :  { %v8346_v45 = vrot.slane %v8345_v21, 1  ;;  %v8390_v11 = vadd.f32 %v8389_v16, %v8388_v62  ;;  %v14139_v62 = vor.u32 %v15496_v23, %v14138_v52  ;;  %v15442_v16 = vld [vmem:[#allocation10 + $0x110] sm:$0xf0]  ;;  %v15484_v52 = vld [vmem:[#allocation10 + $0x260] sm:$0xf0] }
 0x495   :  { %10247 = vmatpush.bf16.msra.mxu1 %v13935_v7  ;;  %v14090_v7 = vld [vmem:[#allocation10 + $0x258] sm:$0xf] }
 0x496   :  { %v8347_v20 = vadd.f32 %v8346_v45, %v8345_v21  ;;  %v8391_v5 = vrot.slane %v8390_v11, 1  ;;  %10284 = vmatpush.bf16.msra.mxu3 %v14139_v62  ;;  %v13922_v21 = vld [vmem:[#allocation10 + $0x108] sm:$0xf]  ;;  %v14127_v45 = vor.u32 %v15493_v38, %v14126_v1  ;;  %10229 = vmatpush.bf16.msra.mxu0 %v13827_v63  ;;  %v13887_v62 = vor.u32 %v15433_v22, %v13886_v54  ;;  %v15574_v63 = vld [vmem:[#allocation10 + $0x530] sm:$0xf0] }
 0x497   :  { %v13923_v2 = vor.u32 %v15442_v16, %v13922_v21  ;;  %v14091_v40 = vor.u32 %v15484_v52, %v14090_v7  ;;  %v14450_v16 = vld [vmem:[#allocation10 + $0x528] sm:$0xf] }
 0x498   :  { %v18187_v26 = vmul.f32 0.04, %v8347_v20  ;;  %v8392_v31 = vadd.f32 %v8391_v5, %v8390_v11  ;;  %v14006_v11 = vld [vmem:[#allocation10 + $0x1b0] sm:$0xf]  ;;  %v13911_v20 = vor.u32 %v15439_v36, %v13910_v48  ;;  %v14114_v5 = vld [vmem:[#allocation10 + $0x288] sm:$0xf]  ;;  %v14451_v38 = vor.u32 %v15574_v63, %v14450_v16 }
 0x499   :  { %10248 = vmatpush.bf16.msra.mxu1 %v13923_v2  ;;  %v14007_v12 = vor.u32 %v15463_v49, %v14006_v11  ;;  %v14115_v25 = vor.u32 %v15490_v61, %v14114_v5  ;;  %v14258_v2 = vld [vmem:[#allocation10 + $0x3a8] sm:$0xf]  ;;  %v15550_v49 = vld [vmem:[#allocation10 + $0x470] sm:$0xf0]  ;;  %v14438_v48 = vld [vmem:[#allocation10 + $0x510] sm:$0xf] }
 0x49a   :  { %v8395_v13 = vmul.f32 0.04, %v8392_v31  ;;  %v8398_v50 = vmul.f32 %v18187_v26, %v18187_v26  ;;  %10285 = vmatpush.bf16.msra.mxu3 %v14127_v45  ;;  %10230 = vmatpush.bf16.msra.mxu0 %v13815_v56  ;;  %v15460_v31 = vld [vmem:[#allocation10 + $0x1a0] sm:$0xf0]  ;;  %v15526_v45 = vld [vmem:[#allocation10 + $0x3b0] sm:$0xf0] }
 0x49b   :  { %10268 = vmatpush.bf16.msra.mxu2 %v14007_v12  ;;  %v13995_v46 = vor.u32 %v15460_v31, %v13994_v8  ;;  %v14354_v11 = vld [vmem:[#allocation10 + $0x468] sm:$0xf]  ;;  %v14259_v58 = vor.u32 %v15526_v45, %v14258_v2  ;;  %v14078_v12 = vld [vmem:[#allocation10 + $0x240] sm:$0xf]  ;;  %v15571_v61 = vld [vmem:[#allocation10 + $0x518] sm:$0xf0] }
 0x49c   :  { %v8401_v29 = vsub.f32 %v8395_v13, %v8398_v50  ;;  %v14102_v13 = vld [vmem:[#allocation10 + $0x270] sm:$0xf]  ;;  %v15487_v50 = vld [vmem:[#allocation10 + $0x278] sm:$0xf0]  ;;  %v14079_v5 = vor.u32 %v15481_v24, %v14078_v12  ;;  %v19079_v7 = vld [vmem:[#allocation17_spill] sm:$0xff] }
 0x49d   :  { %10249 = vmatpush.bf16.msra.mxu1 %v13911_v20  ;;  %v14103_v53 = vor.u32 %v15487_v50, %v14102_v13  ;;  %v19077_v13 = vld [vmem:[#allocation16_spill] sm:$0xff] }
 0x49e   :  { %v18191_v18 = vadd.f32 0.001, %v8401_v29  ;;  %10286 = vmatpush.bf16.msra.mxu3 %v14115_v25  ;;  %10231 = vmatpush.bf16.msra.mxu0 %v13803_v57  ;;  %v19075_v25 = vld [vmem:[#allocation19_spill] sm:$0xff] }
 0x49f   :  { %10269 = vmatpush.bf16.msra.mxu2 %v13995_v46  ;;  %v15523_v46 = vld [vmem:[#allocation10 + $0x398] sm:$0xf0] }
 0x4a0   :  { %15656 = vrsqrt.f32 %v18191_v18  ;;  %vm8431_vm3 = vweird.f32 %v18191_v18 }
 0x4a1   :  { %10250 = vmatpush.bf16.msra.mxu1 %v13899_v39 }
 0x4a2   :  { %10287 = vmatpush.bf16.msra.mxu3 %v14103_v53  ;;  %10232 = vmatpush.bf16.msra.mxu0 %v13791_v33 }
 0x4a3   :  { %10270 = vmatpush.bf16.msra.mxu2 %v13983_v6 }
 0x4a5   :  { %10251 = vmatpush.bf16.msra.mxu1 %v13887_v62 }
 0x4a6   :  { %v15657_v47 = vpop.eup %15656  ;;  %10288 = vmatpush.bf16.msra.mxu3 %v14091_v40  ;;  %10301 = vmatpush.bf16.msrb.mxu0 %v14259_v58 }
 0x4a7   :  { %v8426_v27 = vmul.f32 %v15657_v47, %v18191_v18  ;;  %vm8432_vm0 = vweird.f32 %v15657_v47  ;;  %v14355_v18 = vor.u32 %v15550_v49, %v14354_v11  ;;  %10339 = vmatpush.bf16.msrb.mxu2 %v14451_v38 }
 0x4a8   :  { %vm8433_vm5 = vmor %vm8431_vm3, %vm8432_vm0 }
 0x4a9   :  { %v8427_v59 = vmul.f32 %v15657_v47, %v8426_v27  ;;  %10320 = vmatpush.bf16.msrb.mxu1 %v14355_v18 }
 0x4aa   :  { %10289 = vmatpush.bf16.msra.mxu3 %v14079_v5 }
 0x4ab   :  { %v8428_v29 = vmul.f32 0.5, %v8427_v59  ;;  %v19076_v59 = vld [vmem:[#allocation28_spill] sm:$0xff] }
 0x4ad   :  { %v8429_v23 = vsub.f32 1.5, %v8428_v29  ;;  %10321 = vmatpush.bf16.msrb.mxu1 %v14343_v0 }
 0x4af   :  { %v8430_v43 = vmul.f32 %v15657_v47, %v8429_v23 }
 0x4b1   :  { %v8434_v4 = vsel %vm8433_vm5, %v15657_v47, %v8430_v43  ;;  %v14246_v47 = vld [vmem:[#allocation10 + $0x390] sm:$0xf] }
 0x4b2   :  { %v8439_v44 = vrot.slane %v8434_v4, 6  ;;  %v14247_v3 = vor.u32 %v15523_v46, %v14246_v47 }
 0x4b4   :  { %v8441_v21 = vsel %vm311_vm2, %v18077_v10, %v8439_v44  ;;  %v14439_v10 = vor.u32 %v15571_v61, %v14438_v48  ;;  %10302 = vmatpush.bf16.msrb.mxu0 %v14247_v3 }
 0x4b5   :  { %v8443_v1 = vmul.f32 %v8441_v21, %v8316_v35 }
 0x4b6   :  { %10340 = vmatpush.bf16.msrb.mxu2 %v14439_v10  ;;  %v14222_v10 = vld [vmem:[#allocation10 + $0x360] sm:$0xf] }
 0x4b7   :  { %v8445_v36 = vperm.slane %v8443_v1, 0  ;;  %v8446_v56 = vperm.slane %v8443_v1, 1  ;;  %v8447_v20 = vperm.slane %v8443_v1, 2 }
 0x4b9   :  { %v8451_v27 = vmul.f32 %v8445_v36, %v19075_v25  ;;  %v8452_v8 = vmul.f32 %v8446_v56, %v18020_v32  ;;  %v8453_v31 = vmul.f32 %v8447_v20, %v18187_v26  ;;  %v8474_v41 = vmul.f32 %v8447_v20, %v18180_v42  ;;  %v8317_v42 = vld [vmem:[#allocation9] sm:$0x7] }
 0x4ba   :  { %v8463_v57 = vmul.f32 %v8445_v36, %v19076_v59  ;;  %v8464_v28 = vmul.f32 %v8446_v56, %v17953_v9  ;;  %v8466_v50 = vmul.f32 %v8445_v36, %v19077_v13  ;;  %v8467_v39 = vmul.f32 %v8446_v56, %v17959_v14 }
 0x4bb   :  { %v8457_v53 = vrot.slane %v8452_v8, 7  ;;  %v8458_v15 = vrot.slane %v8453_v31, 6  ;;  %v8465_v32 = vmul.f32 %v8447_v20, %v18165_v34  ;;  %v8468_v26 = vmul.f32 %v8447_v20, %v18167_v30  ;;  %v19078_v34 = vld [vmem:[#allocation18_spill] sm:$0xff] }
 0x4bc   :  { %v18210_v6 = vmul.f32 %v8447_v20, %v18175_v55  ;;  %v8469_v30 = vmul.f32 %v8445_v36, %v19078_v34  ;;  %v8470_v22 = vmul.f32 %v8446_v56, %v17977_v51  ;;  %v8472_v52 = vmul.f32 %v8445_v36, %v19079_v7 }
 0x4bd   :  { %v8459_v29 = vsel %vm138_vm1, %v8451_v27, %v8457_v53  ;;  %v8473_v2 = vmul.f32 %v8446_v56, %v17987_v37 }
 0x4be   :  { %v8460_v9 = vsel %vm311_vm2, %v8459_v29, %v8458_v15 }
 0x4bf   :  { %v8462_v14 = vsub.f32 %v8317_v42, %v8460_v9  ;;  %v15598_v9 = vld [vmem:[#allocation10 + $0x5f0] sm:$0xf0] }
 0x4c1   :  { %v8476_v60 = vperm.slane %v8462_v14, 0  ;;  %v8477_v54 = vperm.slane %v8462_v14, 1  ;;  %v18213_v33 = vperm.slane %v8462_v14, 2 }
 0x4c3   :  { %v8493_v23 = vadd.f32 %v18213_v33, %v8474_v41  ;;  %v8482_v62 = vadd.f32 %v8476_v60, %v8463_v57  ;;  %v8483_v55 = vadd.f32 %v8477_v54, %v8464_v28  ;;  %v8485_v40 = vadd.f32 %v8476_v60, %v8466_v50 }
 0x4c4   :  { %v8486_v43 = vadd.f32 %v8477_v54, %v8467_v39  ;;  %v8484_v4 = vadd.f32 %v18213_v33, %v8465_v32  ;;  %v8487_v35 = vadd.f32 %v18213_v33, %v8468_v26  ;;  %v8488_v44 = vadd.f32 %v8476_v60, %v8469_v30  ;;  %v14546_v26 = vld [vmem:[#allocation10 + $0x5e8] sm:$0xf] }
 0x4c5   :  { %v8494_v21 = vmax.f32 %v8482_v62, 0.0  ;;  %v8495_v16 = vmax.f32 %v8483_v55, 0.0  ;;  %v8497_v63 = vmax.f32 %v8485_v40, 0.0  ;;  %v8489_v45 = vadd.f32 %v8477_v54, %v8470_v22  ;;  %v15568_v62 = vld [vmem:[#allocation10 + $0x500] sm:$0xf0] }
 0x4c6   :  { %v8498_v1 = vmax.f32 %v8486_v43, 0.0  ;;  %v8496_v51 = vmax.f32 %v8484_v4, 0.0  ;;  %v8499_v38 = vmax.f32 %v8487_v35, 0.0  ;;  %v8505_v11 = vmax.f32 %v8493_v23, 0.0  ;;  %v14426_v23 = vld [vmem:[#allocation10 + $0x4f8] sm:$0xf] }
 0x4c7   :  { %v8518_v49 = vrot.slane %v8494_v21, 7  ;;  %v8519_v58 = vrot.slane %v8495_v16, 7  ;;  %v8521_v18 = vrot.slane %v8497_v63, 7  ;;  %v8491_v36 = vadd.f32 %v8476_v60, %v8472_v52  ;;  %v14234_v35 = vld [vmem:[#allocation10 + $0x378] sm:$0xf] }
 0x4c8   :  { %v8523_v12 = vrot.slane %v8498_v1, 7  ;;  %v8520_v24 = vrot.slane %v8496_v51, 7  ;;  %v18222_v48 = vrot.slane %v8499_v38, 7  ;;  %v8492_v56 = vadd.f32 %v8477_v54, %v8473_v2  ;;  %v14330_v21 = vld [vmem:[#allocation10 + $0x438] sm:$0xf] }
 0x4c9   :  { %v18225_v20 = vsel %vm138_vm1, %v8518_v49, %v8521_v18  ;;  %v18228_v5 = vsel %vm138_vm1, 0.0, %v8518_v49  ;;  %v18231_v37 = vsel %vm138_vm1, 0.0, %v8519_v58  ;;  %v18248_v46 = vrot.slane %v8505_v11, 7  ;;  %v15544_v16 = vld [vmem:[#allocation10 + $0x440] sm:$0xf0] }
 0x4ca   :  { %v18234_v61 = vsel %vm138_vm1, %v8519_v58, %v8523_v12  ;;  %v8557_v47 = vsel %vm16285_vm4, %v18228_v5, 0.0  ;;  %v8558_v25 = vsel %vm16285_vm4, %v18231_v37, 0.0  ;;  %v8560_v8 = vsel %vm16293_vm7, %v18225_v20, 0.0  ;;  %v14534_v38 = vld [vmem:[#allocation10 + $0x5d0] sm:$0xf] }
 0x4cb   :  { %v8561_v31 = vsel %vm16293_vm7, %v18234_v61, 0.0  ;;  %v8569_v41 = vpack.c.bf16 %v8558_v25, %v8557_v47  ;;  %v8591_v19 = vrot.slane %v18228_v5, 2  ;;  %v18253_v59 = vsel %vm138_vm1, %v8520_v24, %v18222_v48  ;;  %v14414_v11 = vld [vmem:[#allocation10 + $0x4e0] sm:$0xf]  ;;  %v15565_v49 = vld [vmem:[#allocation10 + $0x4e8] sm:$0xf0] }
 0x4cc   :  { %v8571_v17 = vpack.c.bf16 %v8561_v31, %v8560_v8  ;;  %v18256_v13 = vsel %vm138_vm1, 0.0, %v8520_v24  ;;  %v8562_v50 = vsel %vm16293_vm7, %v18253_v59, 0.0  ;;  %v8592_v42 = vrot.slane %v18225_v20, 2  ;;  %v15517_v47 = vld [vmem:[#allocation10 + $0x368] sm:$0xf0] }
 0x4cd   :  { %v8652_v57 = vunpack.c.l.b16 %v8569_v41  ;;  %v8653_v28 = vunpack.c.h.b16 %v8569_v41  ;;  %v8559_v15 = vsel %vm16285_vm4, %v18256_v13, 0.0  ;;  %v8572_v32 = vpack.c.bf16 %v8562_v50, %v8562_v50  ;;  %v15541_v31 = vld [vmem:[#allocation10 + $0x428] sm:$0xf0]  ;;  %v14522_v50 = vld [vmem:[#allocation10 + $0x5b8] sm:$0xf] }
 0x4ce   :  { %v8655_v39 = vunpack.c.l.b16 %v8571_v17  ;;  %v8656_v53 = vunpack.c.h.b16 %v8571_v17  ;;  %v8594_v3 = vrot.slane %v18231_v37, 2  ;;  %v8570_v0 = vpack.c.bf16 %v8559_v15, %v8559_v15 }
 0x4cf   :  { %v8500_v29 = vmax.f32 %v8488_v44, 0.0  ;;  %v8657_v54 = vunpack.c.l.b16 %v8572_v32  ;;  %v8501_v34 = vmax.f32 %v8489_v45, 0.0  ;;  %v8503_v22 = vmax.f32 %v8491_v36, 0.0  ;;  %v15520_v44 = vld [vmem:[#allocation10 + $0x380] sm:$0xf0] }
 0x4d0   :  { %v18266_v14 = vpack.c.b16 %v8655_v39, %v8652_v57  ;;  %v18268_v60 = vpack.c.b16 %v8656_v53, %v8653_v28  ;;  %v8654_v30 = vunpack.c.l.b16 %v8570_v0  ;;  %v8504_v7 = vmax.f32 %v8492_v56, 0.0  ;;  %v15595_v45 = vld [vmem:[#allocation10 + $0x5d8] sm:$0xf0]  ;;  %v15592_v39 = vld [vmem:[#allocation10 + $0x5c0] sm:$0xf0] }
 0x4d1   :  { %v8527_v52 = vrot.slane %v8500_v29, 7  ;;  %v8529_v55 = vrot.slane %v8501_v34, 7  ;;  %v18274_v40 = vpack.c.bf16 %v18231_v37, %v18228_v5  ;;  %v18278_v43 = vpack.c.bf16 %v18234_v61, %v18225_v20  ;;  %v14402_v0 = vld [vmem:[#allocation10 + $0x4c8] sm:$0xf]  ;;  %v13876_v5 = vld [vmem:[#allocation10 + $0xb4] sm:$0xf0] }
 0x4d2   :  { %10233 = vmatmul.bf16.vlgmr.msra.gmra.mxu0 %v18266_v14  ;;  %10252 = vmatmul.bf16.vlgmr.msra.gmra.mxu1 %v18268_v60  ;;  %v14547_v4 = vor.u32 %v15598_v9, %v14546_v26  ;;  %v18280_v63 = vpack.c.b16 %v8657_v54, %v8654_v30  ;;  %v8533_v1 = vrot.slane %v8503_v22, 7  ;;  %v8535_v51 = vrot.slane %v8504_v7, 7  ;;  %v15562_v30 = vld [vmem:[#allocation10 + $0x4d0] sm:$0xf0]  ;;  %v18305_v22 = vld [vmem:[#allocation10 + $0x348] sm:$0xf] }
 0x4d3   :  { %v18283_v2 = vsel %vm138_vm1, %v8521_v18, %v8527_v52  ;;  %v8595_v58 = vrot.slane %v18234_v61, 2  ;;  %v18287_v24 = vsel %vm138_vm1, %v8523_v12, %v8529_v55  ;;  %v8684_v36 = vunpack.c.l.b16 %v18274_v40  ;;  %v14318_v12 = vld [vmem:[#allocation10 + $0x420] sm:$0xf] }
 0x4d4   :  { %v8687_v56 = vunpack.c.l.b16 %v18278_v43  ;;  %10358 = vmatpush.bf16.msrb.mxu3 %v14547_v4  ;;  %10271 = vmatmul.bf16.vlgmr.msra.gmra.mxu2 %v18280_v63  ;;  %v8534_v18 = vsel %vm138_vm1, %v8527_v52, %v8533_v1  ;;  %v8536_v25 = vsel %vm138_vm1, %v8529_v55, %v8535_v51  ;;  %v8581_v27 = vpack.c.bf16 %v18287_v24, %v18283_v2  ;;  %v15514_v55 = vld [vmem:[#allocation10 + $0x350] sm:$0xf0]  ;;  %v14306_v4 = vld [vmem:[#allocation10 + $0x408] sm:$0xf] }
 0x4d5   :  { %v8600_v8 = vrot.slane %v18283_v2, 2  ;;  %v18298_v41 = vsel %vm311_vm2, %v8534_v18, 0.0  ;;  %v18301_v17 = vsel %vm311_vm2, %v8536_v25, 0.0  ;;  %v14427_v28 = vor.u32 %v15568_v62, %v14426_v23  ;;  %v15538_v1 = vld [vmem:[#allocation10 + $0x410] sm:$0xf0] }
 0x4d6   :  { %v8696_v57 = vpack.c.b16 %v8687_v56, %v8684_v36  ;;  %v8575_v53 = vpack.c.bf16 %v18301_v17, %v18298_v41  ;;  %v8690_v15 = vunpack.c.l.b16 %v8581_v27  ;;  %v14235_v32 = vor.u32 %v15520_v44, %v14234_v35  ;;  %v18325_v18 = vld [vmem:[#allocation10 + $0x330] sm:$0xf] }
 0x4d7   :  { %v14331_v26 = vor.u32 %v15544_v16, %v14330_v21  ;;  %10341 = vmatpush.bf16.msrb.mxu2 %v14427_v28  ;;  %v14535_v54 = vor.u32 %v15595_v45, %v14534_v38  ;;  %v14415_v34 = vor.u32 %v15565_v49, %v14414_v11  ;;  %v14223_v52 = vor.u32 %v15517_v47, %v14222_v10  ;;  %v18313_v38 = vld [vmem:[#allocation10 + $0x5a0] sm:$0xf]  ;;  %v18315_v45 = vld [vmem:[#allocation10 + $0x5a8] sm:$0xf0]  ;;  %v18321_v10 = vld [vmem:[#allocation10 + $0x4b0] sm:$0xf] }
 0x4d8   :  { %v8703_v29 = vshrl.u32 %v8696_v57, 16  ;;  %v8705_v9 = vshll.u32 %v8696_v57, 16  ;;  %v8661_v7 = vunpack.c.l.b16 %v8575_v53  ;;  %10303 = vmatpush.bf16.msrb.mxu0 %v14235_v32  ;;  %v14319_v23 = vor.u32 %v15541_v31, %v14318_v12  ;;  %v18323_v47 = vld [vmem:[#allocation10 + $0x4b8] sm:$0xf0]  ;;  %v15586_v32 = vld [vmem:[#allocation10 + $0x590] sm:$0xf0] }
 0x4d9   :  { %10322 = vmatpush.bf16.msrb.mxu1 %v14331_v26  ;;  %v14523_v62 = vor.u32 %v15592_v39, %v14522_v50  ;;  %10359 = vmatpush.bf16.msrb.mxu3 %v14535_v54  ;;  %v8563_v21 = vsel %vm16265_vm14, %v18283_v2, 0.0  ;;  %v8564_v16 = vsel %vm16265_vm14, %v18287_v24, 0.0  ;;  %v8662_v51 = vunpack.c.h.b16 %v8575_v53  ;;  %v18328_v28 = vld [vmem:[#allocation10 + $0x338] sm:$0xf0]  ;;  %v18330_v50 = vld [vmem:[#allocation10 + $0x3f0] sm:$0xf] }
 0x4da   :  { %v8707_v35 = vrot.slane %v8705_v9, 1  ;;  %v18317_v11 = vpack.c.b16 %v8661_v7, %v8690_v15  ;;  %v8573_v49 = vpack.c.bf16 %v8564_v16, %v8563_v21  ;;  %v8691_v36 = vunpack.c.h.b16 %v8581_v27  ;;  %v15535_v27 = vld [vmem:[#allocation10 + $0x3f8] sm:$0xf0]  ;;  %v18335_v15 = vld [vmem:[#allocation10 + $0x588] sm:$0xf] }
 0x4db   :  { %v8490_v56 = vadd.f32 %v18213_v33, %v18210_v6  ;;  %10342 = vmatpush.bf16.msrb.mxu2 %v14415_v34  ;;  %v14403_v12 = vor.u32 %v15562_v30, %v14402_v0  ;;  %v14211_v31 = vor.u32 %v15514_v55, %v18305_v22  ;;  %v14307_v57 = vor.u32 %v15538_v1, %v14306_v4  ;;  %v18340_v9 = vld [vmem:[#allocation10 + $0x4a0] sm:$0xf0]  ;;  %v18354_v55 = vld [vmem:[#allocation10 + $0x3d8] sm:$0xf]  ;;  %v18361_v21 = vld [vmem:[#allocation10 + $0x570] sm:$0xf] }
 0x4dc   :  { %v8708_v25 = vor.u32 %v8707_v35, %v8703_v29  ;;  %v8710_v39 = vshll.u32 %v18317_v11, 16  ;;  %10304 = vmatpush.bf16.msrb.mxu0 %v14223_v52  ;;  %v8658_v6 = vunpack.c.l.b16 %v8573_v49  ;;  %v8659_v33 = vunpack.c.h.b16 %v8573_v49  ;;  %v18338_v29 = vld [vmem:[#allocation10 + $0x498] sm:$0xf]  ;;  %v18363_v16 = vld [vmem:[#allocation10 + $0x578] sm:$0xf0] }
 0x4dd   :  { %10323 = vmatpush.bf16.msrb.mxu1 %v14319_v23  ;;  %v18333_v53 = vpack.c.b16 %v8662_v51, %v8691_v36  ;;  %v8602_v26 = vrot.slane %v18287_v24, 2  ;;  %10360 = vmatpush.bf16.msrb.mxu3 %v14523_v62  ;;  %v8502_v0 = vmax.f32 %v8490_v56, 0.0  ;;  %v14511_v22 = vor.u32 %v18315_v45, %v18313_v38  ;;  %v18350_v52 = vld [vmem:[#allocation10 + $0x318] sm:$0xf]  ;;  %v18352_v23 = vld [vmem:[#allocation10 + $0x320] sm:$0xf0] }
 0x4de   :  { %v18342_v54 = vrot.slane %v8710_v39, 1  ;;  %v18344_v34 = vpack.c.b16 %v8661_v7, %v8658_v6  ;;  %v18346_v30 = vpack.c.b16 %v8662_v51, %v8659_v33  ;;  %v15532_v62 = vld [vmem:[#allocation10 + $0x3e0] sm:$0xf0]  ;;  %v14391_v7 = vor.u32 %v18323_v47, %v18321_v10  ;;  %v18365_v51 = vld [vmem:[#allocation10 + $0x480] sm:$0xf] }
 0x4df   :  { %v8722_v4 = vshll.u32 %v18333_v53, 16  ;;  %v8531_v1 = vrot.slane %v8502_v0, 7  ;;  %10343 = vmatpush.bf16.msrb.mxu2 %v14403_v12  ;;  %v14199_v35 = vor.u32 %v18328_v28, %v18325_v18  ;;  %vm19083_vm4 = vsmask.f32 7424  ;;  %v18374_v56 = vld [vmem:[#allocation10 + $0x488] sm:$0xf0] }
 0x4e0   :  { %v18369_v38 = vsel %vm19083_vm4, %v8708_v25, %v18342_v54  ;;  %10305 = vmatpush.bf16.msrb.mxu0 %v14211_v31  ;;  %v14295_v45 = vor.u32 %v15535_v27, %v18330_v50  ;;  %v8738_v49 = vshrl.u32 %v18317_v11, 16  ;;  %v14499_v36 = vor.u32 %v15586_v32, %v18335_v15  ;;  %v18376_v10 = vld [vmem:[#allocation10 + $0x300] sm:$0xf]  ;;  %v18388_v12 = vld [vmem:[#allocation10 + $0x308] sm:$0xf0]  ;;  %vm19090_vm6 = vmmov %vm19083_vm4 }
 0x4e1   :  { %10324 = vmatpush.bf16.msrb.mxu1 %v14307_v57  ;;  %10290 = vmatmul.bf16.vlgmr.msra.gmra.mxu3 %v18369_v38  ;;  %v18382_v47 = vsel %vm138_vm1, %v18222_v48, %v8531_v1  ;;  %v8538_v18 = vsel %vm138_vm1, %v8531_v1, %v18248_v46  ;;  %v14379_v25 = vor.u32 %v18340_v9, %v18338_v29  ;;  %v18390_v31 = vld [vmem:[#allocation10 + $0x3c0] sm:$0xf]  ;;  %v18392_v57 = vld [vmem:[#allocation10 + $0x3c8] sm:$0xf0]  ;;  %v8685_v28 = vunpack.c.h.b16 %v18274_v40  ;;  %v18404_v27 = vld [vmem:[#allocation10 + $0x558] sm:$0xf] }
 0x4e2   :  { %10238 = vmatmul.bf16.gmra.mxu0 %v18344_v34  ;;  %10257 = vmatmul.bf16.gmra.mxu1 %v18346_v30  ;;  %v18397_v50 = vsel %vm311_vm2, %v8538_v18, 0.0  ;;  %v8565_v48 = vsel %vm16265_vm14, %v18382_v47, 0.0  ;;  %v8582_v46 = vpack.c.bf16 %v18382_v47, %v18382_v47  ;;  %v18406_v39 = vld [vmem:[#allocation10 + $0x560] sm:$0xf0]  ;;  %v8688_v6 = vunpack.c.h.b16 %v18278_v43  ;;  %vm19091_vm13 = vmmov %vm19083_vm4  ;;  %v14594_v2 = vld [vmem:[#allocation10 + $0x648] sm:$0xf] }
 0x4e3   :  { %10361 = vmatpush.bf16.msrb.mxu3 %v14511_v22  ;;  %v8574_v40 = vpack.c.bf16 %v8565_v48, %v8565_v48  ;;  %v8576_v33 = vpack.c.bf16 %v18397_v50, %v18397_v50  ;;  %10344 = vmatpush.bf16.msrb.mxu2 %v14391_v7  ;;  %v14187_v15 = vor.u32 %v18352_v23, %v18350_v52  ;;  %vm19084_vm1 = vcmask 1045504   ;;  %v14462_v48 = vld [vmem:[#allocation10 + $0x540] sm:$0xf]  ;;  %v15417_v24 = vld [vmem:[#allocation10 + $0x4c] sm:$0xf] }
 0x4e4   :  { %v14283_v44 = vor.u32 %v15532_v62, %v18354_v55  ;;  %v8692_v32 = vunpack.c.l.b16 %v8582_v46  ;;  %10306 = vmatpush.bf16.msrb.mxu0 %v14199_v35  ;;  %v14487_v0 = vor.u32 %v18363_v16, %v18361_v21  ;;  %v14367_v29 = vor.u32 %v18374_v56, %v18365_v51  ;;  %vm19085_vm2 = vmmov %vm19084_vm1  ;;  %v15453_v51 = vld [vmem:[#allocation10 + $0x16c] sm:$0xf] }
 0x4e5   :  { %10325 = vmatpush.bf16.msrb.mxu1 %v14295_v45  ;;  %v14175_v43 = vor.u32 %v18388_v12, %v18376_v10  ;;  %v8660_v9 = vunpack.c.l.b16 %v8574_v40  ;;  %v8663_v22 = vunpack.c.l.b16 %v8576_v33  ;;  %v14271_v1 = vor.u32 %v18392_v57, %v18390_v31  ;;  %v13972_v45 = vld [vmem:[#allocation10 + $0x174] sm:$0xf0]  ;;  %v15622_v12 = vld [vmem:[#allocation10 + $0x6b0] sm:$0xf0]  ;;  %v15429_v31 = vld [vmem:[#allocation10 + $0xac] sm:$0xf] }
 0x4e6   :  { %v14475_v52 = vor.u32 %v18406_v39, %v18404_v27  ;;  %v8697_v23 = vpack.c.b16 %v8688_v6, %v8685_v28  ;;  %v18424_v55 = vrot.slane %v8722_v4, 1  ;;  %v8578_v62 = vpack.c.bf16 %v18256_v13, %v18256_v13  ;;  %vm19086_vm14 = vmmov %vm19084_vm1  ;;  %v15577_v46 = vld [vmem:[#allocation10 + $0x548] sm:$0xf0]  ;;  %v15450_v40 = vld [vmem:[#allocation10 + $0x154] sm:$0xf] }
 0x4e7   :  { %10362 = vmatpush.bf16.msrb.mxu3 %v14499_v36  ;;  %v8580_v7 = vpack.c.bf16 %v18253_v59, %v18253_v59  ;;  %v18430_v35 = vpack.c.b16 %v8663_v22, %v8660_v9  ;;  %v18432_v21 = vpack.c.b16 %v8663_v22, %v8692_v32  ;;  %10345 = vmatpush.bf16.msrb.mxu2 %v14379_v25  ;;  %v14642_v25 = vld [vmem:[#allocation10 + $0x6a8] sm:$0xf]  ;;  %vm19087_vm7 = vmmov %vm19084_vm1  ;;  %v14630_v32 = vld [vmem:[#allocation10 + $0x690] sm:$0xf] }
 0x4e8   :  { %v8593_v16 = vsel %vm19084_vm1, %v8591_v19, %v8592_v42  ;;  %v8596_v4 = vsel %vm19085_vm2, %v8594_v3, %v8595_v58  ;;  %10307 = vmatpush.bf16.msrb.mxu0 %v14187_v15  ;;  %v8715_v36 = vshrl.u32 %v8697_v23, 16  ;;  %v8717_v56 = vshll.u32 %v8697_v23, 16  ;;  %vm19092_vm10 = vmmov %vm19084_vm1 }
 0x4e9   :  { %10326 = vmatpush.bf16.msrb.mxu1 %v14283_v44  ;;  %v8686_v10 = vunpack.c.l.b16 %v8578_v62  ;;  %v8689_v18 = vunpack.c.l.b16 %v8580_v7  ;;  %v8734_v19 = vshll.u32 %v18432_v21, 16  ;;  %10276 = vmatmul.bf16.gmra.mxu2 %v18430_v35  ;;  %v8601_v37 = vsel %vm19086_vm14, %v8592_v42, %v8600_v8  ;;  %v13960_v44 = vld [vmem:[#allocation10 + $0x15c] sm:$0xf0]  ;;  %v15619_v62 = vld [vmem:[#allocation10 + $0x698] sm:$0xf0]  ;;  %vm19094_vm15 = vmmov %vm19084_vm1 }
 0x4ea   :  { %v8603_v3 = vsel %vm19087_vm7, %v8595_v58, %v8602_v26  ;;  %v8624_v28 = vsel %vm16502_vm11, %v8593_v16, 0.0  ;;  %v8719_v27 = vrot.slane %v8717_v56, 1  ;;  %v8625_v6 = vsel %vm16502_vm11, %v8596_v4, 0.0  ;;  %v15426_v7 = vld [vmem:[#allocation10 + $0x94] sm:$0xf]  ;;  %vm19096_vm0 = vmmov %vm19084_vm1 }
 0x4eb   :  { %10363 = vmatpush.bf16.msrb.mxu3 %v14487_v0  ;;  %v8698_v39 = vpack.c.b16 %v8689_v18, %v8686_v10  ;;  %v8627_v42 = vsel %vm16514_vm12, %v8601_v37, 0.0  ;;  %10346 = vmatpush.bf16.msrb.mxu2 %v14367_v29  ;;  %v18462_v33 = vrot.slane %v8734_v19, 1  ;;  %v8628_v61 = vsel %vm16514_vm12, %v8603_v3, 0.0  ;;  %v13864_v10 = vld [vmem:[#allocation10 + $0x9c] sm:$0xf0]  ;;  %vm19097_vm3 = vmmov %vm19096_vm0 }
 0x4ec   :  { %v8636_v58 = vpack.c.bf16 %v8625_v6, %v8624_v28  ;;  %v13975_v15 = vor.u32 %v15453_v51, %v13972_v45  ;;  %10308 = vmatpush.bf16.msrb.mxu0 %v14175_v43  ;;  %v8720_v0 = vor.u32 %v8719_v27, %v8715_v36  ;;  %v8638_v23 = vpack.c.bf16 %v8628_v61, %v8627_v42  ;;  %v15477_v18 = vld [vmem:[#allocation10 + $0x22c] sm:$0xf]  ;;  %v14068_v19 = vld [vmem:[#allocation10 + $0x234] sm:$0xf0]  ;;  %v13948_v37 = vld [vmem:[#allocation10 + $0x144] sm:$0xf0] }
 0x4ed   :  { %10327 = vmatpush.bf16.msrb.mxu1 %v14271_v1  ;;  %v8727_v9 = vshrl.u32 %v8698_v39, 16  ;;  %v8729_v22 = vshll.u32 %v8698_v39, 16  ;;  %v14643_v29 = vor.u32 %v15622_v12, %v14642_v25  ;;  %v13879_v4 = vor.u32 %v15429_v31, %v13876_v5  ;;  %v15447_v5 = vld [vmem:[#allocation10 + $0x13c] sm:$0xf]  ;;  %v15616_v27 = vld [vmem:[#allocation10 + $0x680] sm:$0xf0] }
 0x4ee   :  { %v8761_v16 = vunpack.c.l.b16 %v8636_v58  ;;  %v14463_v56 = vor.u32 %v15577_v46, %v14462_v48  ;;  %v18468_v51 = vsel %vm19090_vm6, %v8720_v0, %v18424_v55  ;;  %v8764_v1 = vunpack.c.l.b16 %v8638_v23  ;;  %v14618_v46 = vld [vmem:[#allocation10 + $0x678] sm:$0xf]  ;;  %v15423_v39 = vld [vmem:[#allocation10 + $0x7c] sm:$0xf]  ;;  %v14056_v6 = vld [vmem:[#allocation10 + $0x21c] sm:$0xf0] }
 0x4ef   :  { %10415 = vmatpush.bf16.msra.mxu2 %v13975_v15  ;;  %10364 = vmatpush.bf16.msrb.mxu3 %v14475_v52  ;;  %v8731_v43 = vrot.slane %v8729_v22, 1  ;;  %v13963_v45 = vor.u32 %v15450_v40, %v13960_v44  ;;  %v18473_v36 = vor.u32 %v8738_v49, %v18342_v54  ;;  %v14631_v25 = vor.u32 %v15619_v62, %v14630_v32  ;;  %v13852_v54 = vld [vmem:[#allocation10 + $0x84] sm:$0xf0]  ;;  %v15474_v49 = vld [vmem:[#allocation10 + $0x214] sm:$0xf] }
 0x4f0   :  { %10377 = vmatpush.bf16.msra.mxu0 %v14643_v29  ;;  %v8762_v12 = vunpack.c.h.b16 %v8636_v58  ;;  %v8765_v31 = vunpack.c.h.b16 %v8638_v23  ;;  %v18475_v3 = vpack.c.b16 %v8764_v1, %v8761_v16  ;;  %v13867_v28 = vor.u32 %v15426_v7, %v13864_v10  ;;  %v15444_v61 = vld [vmem:[#allocation10 + $0x124] sm:$0xf]  ;;  %v13936_v58 = vld [vmem:[#allocation10 + $0x12c] sm:$0xf0]  ;;  %v14606_v15 = vld [vmem:[#allocation10 + $0x660] sm:$0xf] }
 0x4f1   :  { %10396 = vmatpush.bf16.msra.mxu1 %v13879_v4  ;;  %v8732_v52 = vor.u32 %v8731_v43, %v8727_v9  ;;  %v14071_v48 = vor.u32 %v15477_v18, %v14068_v19  ;;  %10295 = vmatmul.bf16.gmra.mxu3 %v18473_v36  ;;  %v13951_v40 = vor.u32 %v15447_v5, %v13948_v37  ;;  %v15613_v32 = vld [vmem:[#allocation10 + $0x668] sm:$0xf0]  ;;  %v15420_v0 = vld [vmem:[#allocation10 + $0x64] sm:$0xf]  ;;  %v8606_v9 = vrot.slane %v18298_v41, 2 }
 0x4f2   :  { %10309 = vmatmul.bf16.vlgmr.msrb.gmra.mxu0 %v18468_v51  ;;  %v18479_v11 = vpack.c.b16 %v8765_v31, %v8762_v12  ;;  %v14619_v44 = vor.u32 %v15616_v27, %v14618_v46  ;;  %v13855_v22 = vor.u32 %v15423_v39, %v13852_v54  ;;  %v14059_v23 = vor.u32 %v15474_v49, %v14056_v6  ;;  %v13840_v62 = vld [vmem:[#allocation10 + $0x6c] sm:$0xf0]  ;;  %v15471_v7 = vld [vmem:[#allocation10 + $0x1fc] sm:$0xf]  ;;  %v14044_v4 = vld [vmem:[#allocation10 + $0x204] sm:$0xf0] }
 0x4f3   :  { %v18483_v42 = vsel %vm19091_vm13, %v8732_v52, %v18462_v33  ;;  %10365 = vmatpush.bf16.msrb.mxu3 %v14463_v56  ;;  %10416 = vmatpush.bf16.msra.mxu2 %v13963_v45  ;;  %v8608_v16 = vrot.slane %v18301_v17, 2  ;;  %v8597_v29 = vrot.slane %v18256_v13, 2  ;;  %v8607_v56 = vsel %vm19092_vm10, %v8600_v8, %v8606_v9  ;;  %v15441_v19 = vld [vmem:[#allocation10 + $0x10c] sm:$0xf]  ;;  %v13924_v45 = vld [vmem:[#allocation10 + $0x114] sm:$0xf0] }
 0x4f4   :  { %10328 = vmatmul.bf16.vlgmr.msrb.gmra.mxu1 %v18483_v42  ;;  %10378 = vmatpush.bf16.msra.mxu0 %v14631_v25  ;;  %v8633_v18 = vsel %vm16590_vm9, %v8606_v9, 0.0  ;;  %v13939_v41 = vor.u32 %v15444_v61, %v13936_v58  ;;  %v8630_v17 = vsel %vm16577_vm8, %v8607_v56, 0.0  ;;  %v8598_v8 = vrot.slane %v18253_v59, 2  ;;  %v15610_v5 = vld [vmem:[#allocation10 + $0x650] sm:$0xf0] }
 0x4f5   :  { %10397 = vmatpush.bf16.msra.mxu1 %v13867_v28  ;;  %v8609_v43 = vsel %vm19094_vm15, %v8602_v26, %v8608_v16  ;;  %v8634_v13 = vsel %vm16590_vm9, %v8608_v16, 0.0  ;;  %v14607_v25 = vor.u32 %v15613_v32, %v14606_v15  ;;  %v13843_v26 = vor.u32 %v15420_v0, %v13840_v62  ;;  %v13828_v28 = vld [vmem:[#allocation10 + $0x54] sm:$0xf0]  ;;  %v14032_v46 = vld [vmem:[#allocation10 + $0x1ec] sm:$0xf0] }
 0x4f6   :  { %v8631_v12 = vsel %vm16577_vm8, %v8609_v43, 0.0  ;;  %v8642_v31 = vpack.c.bf16 %v8634_v13, %v8633_v18  ;;  %v14047_v37 = vor.u32 %v15471_v7, %v14044_v4  ;;  %v8604_v27 = vrot.slane %v18382_v47, 2  ;;  %v13912_v32 = vld [vmem:[#allocation10 + $0xfc] sm:$0xf0]  ;;  %v14582_v0 = vld [vmem:[#allocation10 + $0x630] sm:$0xf] }
 0x4f7   :  { %10434 = vmatpush.bf16.msra.mxu3 %v14071_v48  ;;  %10417 = vmatpush.bf16.msra.mxu2 %v13951_v40  ;;  %v8640_v52 = vpack.c.bf16 %v8631_v12, %v8630_v17  ;;  %v15468_v48 = vld [vmem:[#allocation10 + $0x1e4] sm:$0xf]  ;;  %v8610_v54 = vrot.slane %v18397_v50, 2  ;;  %v13927_v6 = vor.u32 %v15441_v19, %v13924_v45  ;;  %v14595_v61 = vor.u32 %v15610_v5, %v14594_v2  ;;  %v15607_v9 = vld [vmem:[#allocation10 + $0x638] sm:$0xf0] }
 0x4f8   :  { %10379 = vmatpush.bf16.msra.mxu0 %v14619_v44  ;;  %v8770_v59 = vunpack.c.l.b16 %v8642_v31  ;;  %v8771_v39 = vunpack.c.h.b16 %v8642_v31  ;;  %v13831_v58 = vor.u32 %v15417_v24, %v13828_v28  ;;  %v14035_v15 = vor.u32 %v15468_v48, %v14032_v46  ;;  %v15438_v44 = vld [vmem:[#allocation10 + $0xf4] sm:$0xf]  ;;  %v15465_v16 = vld [vmem:[#allocation10 + $0x1cc] sm:$0xf]  ;;  %v14020_v4 = vld [vmem:[#allocation10 + $0x1d4] sm:$0xf0] }
 0x4f9   :  { %10398 = vmatpush.bf16.msra.mxu1 %v13855_v22  ;;  %10347 = vmatmul.bf16.vlgmr.msrb.gmra.mxu2 %v18475_v3  ;;  %v8767_v49 = vunpack.c.l.b16 %v8640_v52  ;;  %v8768_v40 = vunpack.c.h.b16 %v8640_v52  ;;  %v15414_v22 = vld [vmem:[#allocation10 + $0x34] sm:$0xf]  ;;  %v8599_v50 = vsel %vm19096_vm0, %v8597_v29, %v8598_v8  ;;  %v8741_v7 = vshrl.u32 %v18333_v53, 16  ;;  %v15435_v29 = vld [vmem:[#allocation10 + $0xdc] sm:$0xf] }
 0x4fa   :  { %v8605_v56 = vsel %vm19097_vm3, %v8598_v8, %v8604_v27  ;;  %v8626_v18 = vsel %vm16502_vm11, %v8599_v50, 0.0  ;;  %v8744_v19 = vshrl.u32 %v18432_v21, 16  ;;  %v14583_v53 = vor.u32 %v15607_v9, %v14582_v0  ;;  %v13900_v45 = vld [vmem:[#allocation10 + $0xe4] sm:$0xf0]  ;;  %v14570_v2 = vld [vmem:[#allocation10 + $0x618] sm:$0xf]  ;;  %vm19098_vm11 = vmmov %vm19096_vm0 }
 0x4fb   :  { %10435 = vmatpush.bf16.msra.mxu3 %v14059_v23  ;;  %10418 = vmatpush.bf16.msra.mxu2 %v13939_v41  ;;  %v18507_v47 = vpack.c.b16 %v8770_v59, %v8767_v49  ;;  %v13816_v23 = vld [vmem:[#allocation10 + $0x3c] sm:$0xf0]  ;;  %v18509_v62 = vpack.c.b16 %v8771_v39, %v8768_v40  ;;  %v13915_v41 = vor.u32 %v15438_v44, %v13912_v32  ;;  %v8629_v43 = vsel %vm16514_vm12, %v8605_v56, 0.0  ;;  %v15604_v21 = vld [vmem:[#allocation10 + $0x620] sm:$0xf0] }
 0x4fc   :  { %10380 = vmatpush.bf16.msra.mxu0 %v14607_v25  ;;  %v8637_v17 = vpack.c.bf16 %v8626_v18, %v8626_v18  ;;  %v18520_v13 = vor.u32 %v8741_v7, %v18424_v55  ;;  %v8639_v8 = vpack.c.bf16 %v8629_v43, %v8629_v43  ;;  %v13819_v57 = vor.u32 %v15414_v22, %v13816_v23  ;;  %v15411_v12 = vld [vmem:[#allocation10 + $0x1c] sm:$0xf]  ;;  %v13804_v31 = vld [vmem:[#allocation10 + $0x24] sm:$0xf0]  ;;  %v15462_v24 = vld [vmem:[#allocation10 + $0x1b4] sm:$0xf] }
 0x4fd   :  { %10399 = vmatpush.bf16.msra.mxu1 %v13843_v26  ;;  %v14023_v25 = vor.u32 %v15465_v16, %v14020_v4  ;;  %v8611_v20 = vsel %vm19098_vm11, %v8604_v27, %v8610_v54  ;;  %v18526_v55 = vor.u32 %v8744_v19, %v18462_v33  ;;  %v14008_v26 = vld [vmem:[#allocation10 + $0x1bc] sm:$0xf0]  ;;  %v8635_v52 = vsel %vm16590_vm9, %v8610_v54, 0.0  ;;  %v15432_v48 = vld [vmem:[#allocation10 + $0xc4] sm:$0xf] }
 0x4fe   :  { %v8763_v5 = vunpack.c.l.b16 %v8637_v17  ;;  %v13903_v28 = vor.u32 %v15435_v29, %v13900_v45  ;;  %v13888_v46 = vld [vmem:[#allocation10 + $0xcc] sm:$0xf0]  ;;  %v14571_v27 = vor.u32 %v15604_v21, %v14570_v2  ;;  %v14558_v59 = vld [vmem:[#allocation10 + $0x600] sm:$0xf]  ;;  %v15601_v39 = vld [vmem:[#allocation10 + $0x608] sm:$0xf0]  ;;  %v13807_v33 = vor.u32 %v15411_v12, %v13804_v31 }
 0x4ff   :  { %10436 = vmatpush.bf16.msra.mxu3 %v14047_v37  ;;  %10419 = vmatpush.bf16.msra.mxu2 %v13927_v6  ;;  %v8766_v37 = vunpack.c.l.b16 %v8639_v8  ;;  %v15408_v49 = vld [vmem:[#allocation10 + $0x4] sm:$0xf]  ;;  %v14011_v40 = vor.u32 %v15462_v24, %v14008_v26  ;;  %v15549_v10 = vld [vmem:[#allocation10 + $0x46c] sm:$0xf]  ;;  %v14356_v54 = vld [vmem:[#allocation10 + $0x474] sm:$0xf0]  ;;  %v13891_v0 = vor.u32 %v15432_v48, %v13888_v46  ;;  %v14559_v50 = vor.u32 %v15601_v39, %v14558_v59 }
 0x500   :  { %10381 = vmatpush.bf16.msra.mxu0 %v14595_v61  ;;  %v13792_v61 = vld [vmem:[#allocation10 + $0xc] sm:$0xf0]  ;;  %v13996_v44 = vld [vmem:[#allocation10 + $0x1a4] sm:$0xf0]  ;;  %v15501_v32 = vld [vmem:[#allocation10 + $0x2ec] sm:$0xf]  ;;  %v14359_v7 = vor.u32 %v15549_v10, %v14356_v54 }
 0x501   :  { %10400 = vmatpush.bf16.msra.mxu1 %v13831_v58  ;;  %10366 = vmatmul.bf16.vlgmr.msrb.gmra.mxu3 %v18479_v11  ;;  %v18531_v6 = vpack.c.b16 %v8766_v37, %v8763_v5  ;;  %v8643_v58 = vpack.c.bf16 %v8635_v52, %v8635_v52  ;;  %v14164_v9 = vld [vmem:[#allocation10 + $0x2f4] sm:$0xf0]  ;;  %v15525_v22 = vld [vmem:[#allocation10 + $0x3ac] sm:$0xf]  ;;  %v8632_v16 = vsel %vm16577_vm8, %v8611_v20, 0.0  ;;  %v13795_v4 = vor.u32 %v15408_v49, %v13792_v61 }
 0x502   :  { %10314 = vmatmul.bf16.gmra.mxu0 %v18520_v13  ;;  %v14260_v23 = vld [vmem:[#allocation10 + $0x3b4] sm:$0xf0]  ;;  %v15546_v18 = vld [vmem:[#allocation10 + $0x454] sm:$0xf]  ;;  %v14344_v19 = vld [vmem:[#allocation10 + $0x45c] sm:$0xf0]  ;;  %v14167_v17 = vor.u32 %v15501_v32, %v14164_v9 }
 0x503   :  { %10437 = vmatpush.bf16.msra.mxu3 %v14035_v15  ;;  %10420 = vmatpush.bf16.msra.mxu2 %v13915_v41  ;;  %v15459_v15 = vld [vmem:[#allocation10 + $0x19c] sm:$0xf]  ;;  %v8641_v41 = vpack.c.bf16 %v8632_v16, %v8632_v16  ;;  %v8772_v43 = vunpack.c.l.b16 %v8643_v58  ;;  %v15456_v29 = vld [vmem:[#allocation10 + $0x184] sm:$0xf]  ;;  %v13984_v45 = vld [vmem:[#allocation10 + $0x18c] sm:$0xf0]  ;;  %v14347_v1 = vor.u32 %v15546_v18, %v14344_v19 }
 0x504   :  { %10333 = vmatmul.bf16.gmra.mxu1 %v18526_v55  ;;  %10382 = vmatpush.bf16.msra.mxu0 %v14583_v53  ;;  %v13999_v56 = vor.u32 %v15459_v15, %v13996_v44  ;;  %v14263_v53 = vor.u32 %v15525_v22, %v14260_v23  ;;  %v15498_v2 = vld [vmem:[#allocation10 + $0x2d4] sm:$0xf]  ;;  %v14248_v21 = vld [vmem:[#allocation10 + $0x39c] sm:$0xf0]  ;;  %v13987_v12 = vor.u32 %v15456_v29, %v13984_v45  ;;  %v15573_v31 = vld [vmem:[#allocation10 + $0x52c] sm:$0xf] }
 0x505   :  { %10401 = vmatpush.bf16.msra.mxu1 %v13819_v57  ;;  %v8769_v8 = vunpack.c.l.b16 %v8641_v41  ;;  %v14152_v57 = vld [vmem:[#allocation10 + $0x2dc] sm:$0xf0]  ;;  %v14452_v5 = vld [vmem:[#allocation10 + $0x534] sm:$0xf0]  ;;  %v15543_v24 = vld [vmem:[#allocation10 + $0x43c] sm:$0xf] }
 0x506   :  { %v14332_v26 = vld [vmem:[#allocation10 + $0x444] sm:$0xf0]  ;;  %v14155_v37 = vor.u32 %v15498_v2, %v14152_v57  ;;  %v14455_v48 = vor.u32 %v15573_v31, %v14452_v5  ;;  %v15570_v49 = vld [vmem:[#allocation10 + $0x514] sm:$0xf]  ;;  %v14320_v61 = vld [vmem:[#allocation10 + $0x42c] sm:$0xf0] }
 0x507   :  { %10438 = vmatpush.bf16.msra.mxu3 %v14023_v25  ;;  %10421 = vmatpush.bf16.msra.mxu2 %v13903_v28  ;;  %v15522_v25 = vld [vmem:[#allocation10 + $0x394] sm:$0xf]  ;;  %v18536_v20 = vpack.c.b16 %v8772_v43, %v8769_v8  ;;  %v15495_v28 = vld [vmem:[#allocation10 + $0x2bc] sm:$0xf]  ;;  %v14140_v46 = vld [vmem:[#allocation10 + $0x2c4] sm:$0xf0]  ;;  %v14335_v39 = vor.u32 %v15543_v24, %v14332_v26 }
 0x508   :  { %10383 = vmatpush.bf16.msra.mxu0 %v14571_v27  ;;  %v14251_v52 = vor.u32 %v15522_v25, %v14248_v21  ;;  %v15519_v27 = vld [vmem:[#allocation10 + $0x37c] sm:$0xf]  ;;  %v14236_v59 = vld [vmem:[#allocation10 + $0x384] sm:$0xf0]  ;;  %v14143_v10 = vor.u32 %v15495_v28, %v14140_v46  ;;  %v15492_v58 = vld [vmem:[#allocation10 + $0x2a4] sm:$0xf] }
 0x509   :  { %10402 = vmatpush.bf16.msra.mxu1 %v13807_v33  ;;  %10352 = vmatmul.bf16.gmra.mxu2 %v18507_v47  ;;  %v14440_v33 = vld [vmem:[#allocation10 + $0x51c] sm:$0xf0]  ;;  %v14239_v54 = vor.u32 %v15519_v27, %v14236_v59  ;;  %v14128_v44 = vld [vmem:[#allocation10 + $0x2ac] sm:$0xf0]  ;;  %v15516_v32 = vld [vmem:[#allocation10 + $0x364] sm:$0xf] }
 0x50a   :  { %v14443_v15 = vor.u32 %v15570_v49, %v14440_v33  ;;  %v15567_v22 = vld [vmem:[#allocation10 + $0x4fc] sm:$0xf]  ;;  %v14428_v23 = vld [vmem:[#allocation10 + $0x504] sm:$0xf0]  ;;  %v14131_v16 = vor.u32 %v15492_v58, %v14128_v44  ;;  %v14116_v19 = vld [vmem:[#allocation10 + $0x294] sm:$0xf0] }
 0x50b   :  { %10439 = vmatpush.bf16.msra.mxu3 %v14011_v40  ;;  %10422 = vmatpush.bf16.msra.mxu2 %v13891_v0  ;;  %v15540_v40 = vld [vmem:[#allocation10 + $0x424] sm:$0xf]  ;;  %v14224_v0 = vld [vmem:[#allocation10 + $0x36c] sm:$0xf0]  ;;  %v14431_v18 = vor.u32 %v15567_v22, %v14428_v23  ;;  %v15513_v41 = vld [vmem:[#allocation10 + $0x34c] sm:$0xf] }
 0x50c   :  { %10384 = vmatpush.bf16.msra.mxu0 %v14559_v50  ;;  %v14323_v9 = vor.u32 %v15540_v40, %v14320_v61  ;;  %v15537_v50 = vld [vmem:[#allocation10 + $0x40c] sm:$0xf]  ;;  %v14212_v43 = vld [vmem:[#allocation10 + $0x354] sm:$0xf0]  ;;  %v14416_v29 = vld [vmem:[#allocation10 + $0x4ec] sm:$0xf0] }
 0x50d   :  { %10403 = vmatpush.bf16.msra.mxu1 %v13795_v4  ;;  %v14227_v4 = vor.u32 %v15516_v32, %v14224_v0  ;;  %v15534_v45 = vld [vmem:[#allocation10 + $0x3f4] sm:$0xf]  ;;  %v14296_v2 = vld [vmem:[#allocation10 + $0x3fc] sm:$0xf0]  ;;  %v15561_v24 = vld [vmem:[#allocation10 + $0x4cc] sm:$0xf] }
 0x50e   :  { %v15486_v57 = vld [vmem:[#allocation10 + $0x274] sm:$0xf]  ;;  %v14104_v21 = vld [vmem:[#allocation10 + $0x27c] sm:$0xf0]  ;;  %v14299_v5 = vor.u32 %v15534_v45, %v14296_v2  ;;  %v14404_v26 = vld [vmem:[#allocation10 + $0x4d4] sm:$0xf0] }
 0x50f   :  { %10491 = vmatpush.bf16.msrb.mxu2 %v14359_v7  ;;  %10440 = vmatpush.bf16.msra.mxu3 %v13999_v56  ;;  %v14308_v7 = vld [vmem:[#allocation10 + $0x414] sm:$0xf0]  ;;  %v15489_v56 = vld [vmem:[#allocation10 + $0x28c] sm:$0xf]  ;;  %v14200_v31 = vld [vmem:[#allocation10 + $0x33c] sm:$0xf0]  ;;  %v14107_v28 = vor.u32 %v15486_v57, %v14104_v21  ;;  %v14407_v27 = vor.u32 %v15561_v24, %v14404_v26 }
 0x510   :  { %10453 = vmatpush.bf16.msrb.mxu0 %v14167_v17  ;;  %v14311_v17 = vor.u32 %v15537_v50, %v14308_v7  ;;  %v14119_v8 = vor.u32 %v15489_v56, %v14116_v19  ;;  %v15483_v46 = vld [vmem:[#allocation10 + $0x25c] sm:$0xf]  ;;  %v14092_v59 = vld [vmem:[#allocation10 + $0x264] sm:$0xf0]  ;;  %v15558_v40 = vld [vmem:[#allocation10 + $0x4b4] sm:$0xf] }
 0x511   :  { %10472 = vmatpush.bf16.msrb.mxu1 %v14263_v53  ;;  %10371 = vmatmul.bf16.gmra.mxu3 %v18509_v62  ;;  %v15564_v53 = vld [vmem:[#allocation10 + $0x4e4] sm:$0xf]  ;;  %v14188_v49 = vld [vmem:[#allocation10 + $0x324] sm:$0xf0]  ;;  %v14392_v61 = vld [vmem:[#allocation10 + $0x4bc] sm:$0xf0]  ;;  %v14095_v58 = vor.u32 %v15483_v46, %v14092_v59 }
 0x512   :  { %10385 = vmatmul.bf16.vlgmr.msra.gmra.mxu0 %v18531_v6  ;;  %v14419_v25 = vor.u32 %v15564_v53, %v14416_v29  ;;  %v15480_v44 = vld [vmem:[#allocation10 + $0x244] sm:$0xf]  ;;  %v14080_v32 = vld [vmem:[#allocation10 + $0x24c] sm:$0xf0]  ;;  %v15555_v23 = vld [vmem:[#allocation10 + $0x49c] sm:$0xf] }
 0x513   :  { %10492 = vmatpush.bf16.msrb.mxu2 %v14347_v1  ;;  %10441 = vmatpush.bf16.msra.mxu3 %v13987_v12  ;;  %v14215_v1 = vor.u32 %v15513_v41, %v14212_v43  ;;  %v15510_v12 = vld [vmem:[#allocation10 + $0x334] sm:$0xf]  ;;  %v15504_v0 = vld [vmem:[#allocation10 + $0x304] sm:$0xf]  ;;  %v14176_v22 = vld [vmem:[#allocation10 + $0x30c] sm:$0xf0]  ;;  %v14083_v43 = vor.u32 %v15480_v44, %v14080_v32 }
 0x514   :  { %10454 = vmatpush.bf16.msrb.mxu0 %v14155_v37  ;;  %10404 = vmatmul.bf16.vlgmr.msra.gmra.mxu1 %v18266_v14  ;;  %v15531_v37 = vld [vmem:[#allocation10 + $0x3dc] sm:$0xf]  ;;  %v14380_v50 = vld [vmem:[#allocation10 + $0x4a4] sm:$0xf0]  ;;  %v15597_v56 = vld [vmem:[#allocation10 + $0x5ec] sm:$0xf] }
 0x515   :  { %10473 = vmatpush.bf16.msrb.mxu1 %v14251_v52  ;;  %v14284_v52 = vld [vmem:[#allocation10 + $0x3e4] sm:$0xf0]  ;;  %v15621_v19 = vld [vmem:[#allocation10 + $0x6ac] sm:$0xf]  ;;  %v14644_v41 = vld [vmem:[#allocation10 + $0x6b4] sm:$0xf0]  ;;  %v14383_v53 = vor.u32 %v15555_v23, %v14380_v50 }
 0x516   :  { %v14287_v33 = vor.u32 %v15531_v37, %v14284_v52  ;;  %v15552_v45 = vld [vmem:[#allocation10 + $0x484] sm:$0xf]  ;;  %v14368_v2 = vld [vmem:[#allocation10 + $0x48c] sm:$0xf0]  ;;  %v13870_v57 = vld [vmem:[#allocation10 + $0x98] sm:$0xf] }
 0x517   :  { %10510 = vmatpush.bf16.msrb.mxu3 %v14455_v48  ;;  %10493 = vmatpush.bf16.msrb.mxu2 %v14335_v39  ;;  %v14203_v48 = vor.u32 %v15510_v12, %v14200_v31  ;;  %v15507_v39 = vld [vmem:[#allocation10 + $0x31c] sm:$0xf]  ;;  %v15594_v21 = vld [vmem:[#allocation10 + $0x5d4] sm:$0xf]  ;;  %v14536_v12 = vld [vmem:[#allocation10 + $0x5dc] sm:$0xf0]  ;;  %v14371_v24 = vor.u32 %v15552_v45, %v14368_v2 }
 0x518   :  { %10455 = vmatpush.bf16.msrb.mxu0 %v14143_v10  ;;  %v15528_v10 = vld [vmem:[#allocation10 + $0x3c4] sm:$0xf]  ;;  %v15618_v31 = vld [vmem:[#allocation10 + $0x694] sm:$0xf]  ;;  %v13978_v37 = vld [vmem:[#allocation10 + $0x170] sm:$0xf] }
 0x519   :  { %10474 = vmatpush.bf16.msrb.mxu1 %v14239_v54  ;;  %10423 = vmatmul.bf16.vlgmr.msra.gmra.mxu2 %v18268_v60  ;;  %v14272_v54 = vld [vmem:[#allocation10 + $0x3cc] sm:$0xf0]  ;;  %v15455_v52 = vld [vmem:[#allocation10 + $0x178] sm:$0xf0]  ;;  %v13858_v46 = vld [vmem:[#allocation10 + $0x80] sm:$0xf] }
 0x51a   :  { %v14275_v7 = vor.u32 %v15528_v10, %v14272_v54  ;;  %v15591_v59 = vld [vmem:[#allocation10 + $0x5bc] sm:$0xf]  ;;  %v13966_v10 = vld [vmem:[#allocation10 + $0x158] sm:$0xf]  ;;  %v15452_v54 = vld [vmem:[#allocation10 + $0x160] sm:$0xf0] }
 0x51b   :  { %10511 = vmatpush.bf16.msrb.mxu3 %v14443_v15  ;;  %10494 = vmatpush.bf16.msrb.mxu2 %v14323_v9  ;;  %v14191_v15 = vor.u32 %v15507_v39, %v14188_v49  ;;  %v14395_v9 = vor.u32 %v15558_v40, %v14392_v61  ;;  %v14524_v39 = vld [vmem:[#allocation10 + $0x5c4] sm:$0xf0]  ;;  %v15615_v49 = vld [vmem:[#allocation10 + $0x67c] sm:$0xf]  ;;  %v13979_v40 = vor.u32 %v15455_v52, %v13978_v37  ;;  %v15422_v32 = vld [vmem:[#allocation10 + $0x70] sm:$0xf0] }
 0x51c   :  { %10456 = vmatpush.bf16.msrb.mxu0 %v14131_v16  ;;  %v13882_v16 = vld [vmem:[#allocation10 + $0xb0] sm:$0xf]  ;;  %v13846_v44 = vld [vmem:[#allocation10 + $0x68] sm:$0xf]  ;;  %v13967_v50 = vor.u32 %v15452_v54, %v13966_v10 }
 0x51d   :  { %10475 = vmatpush.bf16.msrb.mxu1 %v14227_v4  ;;  %v15431_v4 = vld [vmem:[#allocation10 + $0xb8] sm:$0xf0]  ;;  %v14608_v23 = vld [vmem:[#allocation10 + $0x66c] sm:$0xf0] }
 0x51e   :  { %v13883_v29 = vor.u32 %v15431_v4, %v13882_v16  ;;  %v13954_v16 = vld [vmem:[#allocation10 + $0x140] sm:$0xf]  ;;  %v15449_v4 = vld [vmem:[#allocation10 + $0x148] sm:$0xf0] }
 0x51f   :  { %10512 = vmatpush.bf16.msrb.mxu3 %v14431_v18  ;;  %10495 = vmatpush.bf16.msrb.mxu2 %v14311_v17  ;;  %v14548_v18 = vld [vmem:[#allocation10 + $0x5f4] sm:$0xf0]  ;;  %v14179_v17 = vor.u32 %v15504_v0, %v14176_v22  ;;  %v15588_v0 = vld [vmem:[#allocation10 + $0x5a4] sm:$0xf]  ;;  %v13955_v45 = vor.u32 %v15449_v4, %v13954_v16  ;;  %v13906_v4 = vld [vmem:[#allocation10 + $0xe0] sm:$0xf] }
 0x520   :  { %10457 = vmatpush.bf16.msrb.mxu0 %v14119_v8  ;;  %v14551_v8 = vor.u32 %v15597_v56, %v14548_v18  ;;  %v15612_v22 = vld [vmem:[#allocation10 + $0x664] sm:$0xf] }
 0x521   :  { %10476 = vmatpush.bf16.msrb.mxu1 %v14215_v1  ;;  %10442 = vmatmul.bf16.vlgmr.msra.gmra.mxu3 %v18280_v63  ;;  %v14647_v1 = vor.u32 %v15621_v19, %v14644_v41  ;;  %v14611_v18 = vor.u32 %v15612_v22, %v14608_v23  ;;  %v13834_v19 = vld [vmem:[#allocation10 + $0x50] sm:$0xf]  ;;  %v15419_v41 = vld [vmem:[#allocation10 + $0x58] sm:$0xf0]  ;;  %v15576_v22 = vld [vmem:[#allocation10 + $0x544] sm:$0xf] }
 0x522   :  { %10390 = vmatmul.bf16.gmra.mxu0 %v18536_v20  ;;  %v13835_v2 = vor.u32 %v15419_v41, %v13834_v19  ;;  %v14464_v23 = vld [vmem:[#allocation10 + $0x54c] sm:$0xf0]  ;;  %v15437_v41 = vld [vmem:[#allocation10 + $0xe8] sm:$0xf0] }
 0x523   :  { %10513 = vmatpush.bf16.msrb.mxu3 %v14419_v25  ;;  %10496 = vmatpush.bf16.msrb.mxu2 %v14299_v5  ;;  %v15428_v25 = vld [vmem:[#allocation10 + $0xa0] sm:$0xf0]  ;;  %v14632_v5 = vld [vmem:[#allocation10 + $0x69c] sm:$0xf0] }
 0x524   :  { %10458 = vmatpush.bf16.msrb.mxu0 %v14107_v28  ;;  %10409 = vmatmul.bf16.gmra.mxu1 %v18344_v34  ;;  %v13871_v26 = vor.u32 %v15428_v25, %v13870_v57  ;;  %v14539_v28 = vor.u32 %v15594_v21, %v14536_v12  ;;  %v13822_v21 = vld [vmem:[#allocation10 + $0x38] sm:$0xf]  ;;  %v15416_v12 = vld [vmem:[#allocation10 + $0x40] sm:$0xf0] }
 0x525   :  { %10477 = vmatpush.bf16.msrb.mxu1 %v14203_v48  ;;  %v14635_v48 = vor.u32 %v15618_v31, %v14632_v5  ;;  %v15582_v31 = vld [vmem:[#allocation10 + $0x574] sm:$0xf]  ;;  %v14488_v5 = vld [vmem:[#allocation10 + $0x57c] sm:$0xf0]  ;;  %v13823_v52 = vor.u32 %v15416_v12, %v13822_v21  ;;  %v14062_v12 = vld [vmem:[#allocation10 + $0x218] sm:$0xf] }
 0x526   :  { %v15434_v21 = vld [vmem:[#allocation10 + $0xd0] sm:$0xf0] }
 0x527   :  { %10514 = vmatpush.bf16.msrb.mxu3 %v14407_v27  ;;  %10497 = vmatpush.bf16.msrb.mxu2 %v14287_v33  ;;  %v15425_v27 = vld [vmem:[#allocation10 + $0x88] sm:$0xf0]  ;;  %v14620_v33 = vld [vmem:[#allocation10 + $0x684] sm:$0xf0] }
 0x528   :  { %10459 = vmatpush.bf16.msrb.mxu0 %v14095_v58  ;;  %v13859_v61 = vor.u32 %v15425_v27, %v13858_v46  ;;  %v14527_v58 = vor.u32 %v15591_v59, %v14524_v39  ;;  %v14491_v46 = vor.u32 %v15582_v31, %v14488_v5  ;;  %v13810_v59 = vld [vmem:[#allocation10 + $0x20] sm:$0xf]  ;;  %v15413_v39 = vld [vmem:[#allocation10 + $0x28] sm:$0xf0]  ;;  %v15476_v31 = vld [vmem:[#allocation10 + $0x220] sm:$0xf0] }
 0x529   :  { %10478 = vmatpush.bf16.msrb.mxu1 %v14191_v15  ;;  %10428 = vmatmul.bf16.gmra.mxu2 %v18346_v30  ;;  %v14623_v15 = vor.u32 %v15615_v49, %v14620_v33  ;;  %v15579_v49 = vld [vmem:[#allocation10 + $0x55c] sm:$0xf]  ;;  %v14476_v33 = vld [vmem:[#allocation10 + $0x564] sm:$0xf0]  ;;  %v13811_v54 = vor.u32 %v15413_v39, %v13810_v59  ;;  %v14242_v39 = vld [vmem:[#allocation10 + $0x380] sm:$0xf] }
 0x52b   :  { %10515 = vmatpush.bf16.msrb.mxu3 %v14395_v9  ;;  %10498 = vmatpush.bf16.msrb.mxu2 %v14275_v7  ;;  %v14512_v9 = vld [vmem:[#allocation10 + $0x5ac] sm:$0xf0]  ;;  %v13847_v7 = vor.u32 %v15422_v32, %v13846_v44  ;;  %v14479_v44 = vor.u32 %v15579_v49, %v14476_v33 }
 0x52c   :  { %10460 = vmatpush.bf16.msrb.mxu0 %v14083_v43  ;;  %v14515_v56 = vor.u32 %v15588_v0, %v14512_v9  ;;  %v15585_v43 = vld [vmem:[#allocation10 + $0x58c] sm:$0xf]  ;;  %v13798_v0 = vld [vmem:[#allocation10 + $0x8] sm:$0xf]  ;;  %v15410_v9 = vld [vmem:[#allocation10 + $0x10] sm:$0xf0] }
 0x52d   :  { %10479 = vmatpush.bf16.msrb.mxu1 %v14179_v17  ;;  %v14500_v17 = vld [vmem:[#allocation10 + $0x594] sm:$0xf0]  ;;  %v13799_v19 = vor.u32 %v15410_v9, %v13798_v0 }
 0x52e   :  { %v14503_v57 = vor.u32 %v15585_v43, %v14500_v17  ;;  %v14266_v43 = vld [vmem:[#allocation10 + $0x3b0] sm:$0xf]  ;;  %v15527_v17 = vld [vmem:[#allocation10 + $0x3b8] sm:$0xf0] }
 0x52f   :  { %10516 = vmatpush.bf16.msrb.mxu3 %v14383_v53  ;;  %10567 = vmatpush.bf16.msra.mxu2 %v13883_v29  ;;  %v15609_v53 = vld [vmem:[#allocation10 + $0x64c] sm:$0xf]  ;;  %v14596_v29 = vld [vmem:[#allocation10 + $0x654] sm:$0xf0] }
 0x530   :  { %10529 = vmatpush.bf16.msra.mxu0 %v14551_v8  ;;  %v13942_v8 = vld [vmem:[#allocation10 + $0x128] sm:$0xf]  ;;  %v14599_v25 = vor.u32 %v15609_v53, %v14596_v29  ;;  %v14467_v53 = vor.u32 %v15576_v22, %v14464_v23 }
 0x531   :  { %10548 = vmatpush.bf16.msra.mxu1 %v14647_v1  ;;  %10447 = vmatmul.bf16.gmra.mxu3 %v18430_v35  ;;  %v15446_v1 = vld [vmem:[#allocation10 + $0x130] sm:$0xf0]  ;;  %v14230_v23 = vld [vmem:[#allocation10 + $0x368] sm:$0xf] }
 0x532   :  { %10461 = vmatmul.bf16.vlgmr.msrb.gmra.mxu0 %v18369_v38  ;;  %v13943_v37 = vor.u32 %v15446_v1, %v13942_v8  ;;  %v13894_v1 = vld [vmem:[#allocation10 + $0xc8] sm:$0xf] }
 0x533   :  { %10517 = vmatpush.bf16.msrb.mxu3 %v14371_v24  ;;  %10568 = vmatpush.bf16.msra.mxu2 %v13871_v26  ;;  %v15606_v24 = vld [vmem:[#allocation10 + $0x634] sm:$0xf]  ;;  %v14584_v26 = vld [vmem:[#allocation10 + $0x63c] sm:$0xf0] }
 0x534   :  { %10530 = vmatpush.bf16.msra.mxu0 %v14539_v28  ;;  %10480 = vmatmul.bf16.vlgmr.msrb.gmra.mxu1 %v18468_v51  ;;  %v13930_v28 = vld [vmem:[#allocation10 + $0x110] sm:$0xf]  ;;  %v14587_v27 = vor.u32 %v15606_v24, %v14584_v26  ;;  %v14254_v24 = vld [vmem:[#allocation10 + $0x398] sm:$0xf]  ;;  %v15524_v26 = vld [vmem:[#allocation10 + $0x3a0] sm:$0xf0] }
 0x535   :  { %10549 = vmatpush.bf16.msra.mxu1 %v14635_v48  ;;  %v15443_v48 = vld [vmem:[#allocation10 + $0x118] sm:$0xf0]  ;;  %v14255_v59 = vor.u32 %v15524_v26, %v14254_v24 }
 0x536   :  { %v13931_v10 = vor.u32 %v15443_v48, %v13930_v28  ;;  %v14362_v28 = vld [vmem:[#allocation10 + $0x470] sm:$0xf]  ;;  %v15551_v48 = vld [vmem:[#allocation10 + $0x478] sm:$0xf0] }
 0x537   :  { %10586 = vmatpush.bf16.msra.mxu3 %v13979_v40  ;;  %10569 = vmatpush.bf16.msra.mxu2 %v13859_v61  ;;  %v15603_v40 = vld [vmem:[#allocation10 + $0x61c] sm:$0xf]  ;;  %v14572_v61 = vld [vmem:[#allocation10 + $0x624] sm:$0xf0]  ;;  %v14363_v33 = vor.u32 %v15551_v48, %v14362_v28  ;;  %v15512_v48 = vld [vmem:[#allocation10 + $0x340] sm:$0xf0] }
 0x538   :  { %10531 = vmatpush.bf16.msra.mxu0 %v14527_v58  ;;  %v13918_v58 = vld [vmem:[#allocation10 + $0xf8] sm:$0xf]  ;;  %v14575_v32 = vor.u32 %v15603_v40, %v14572_v61  ;;  %v15521_v40 = vld [vmem:[#allocation10 + $0x388] sm:$0xf0]  ;;  %v14050_v61 = vld [vmem:[#allocation10 + $0x200] sm:$0xf] }
 0x539   :  { %10550 = vmatpush.bf16.msra.mxu1 %v14623_v15  ;;  %10499 = vmatmul.bf16.vlgmr.msrb.gmra.mxu2 %v18483_v42  ;;  %v15440_v15 = vld [vmem:[#allocation10 + $0x100] sm:$0xf0]  ;;  %v14243_v9 = vor.u32 %v15521_v40, %v14242_v39  ;;  %v14110_v40 = vld [vmem:[#allocation10 + $0x278] sm:$0xf] }
 0x53a   :  { %v13919_v16 = vor.u32 %v15440_v15, %v13918_v58  ;;  %v15548_v58 = vld [vmem:[#allocation10 + $0x460] sm:$0xf0]  ;;  %v14146_v15 = vld [vmem:[#allocation10 + $0x2c0] sm:$0xf] }
 0x53b   :  { %10587 = vmatpush.bf16.msra.mxu3 %v13967_v50  ;;  %10570 = vmatpush.bf16.msra.mxu2 %v13847_v7  ;;  %v15600_v50 = vld [vmem:[#allocation10 + $0x604] sm:$0xf]  ;;  %v14560_v7 = vld [vmem:[#allocation10 + $0x60c] sm:$0xf0] }
 0x53c   :  { %10532 = vmatpush.bf16.msra.mxu0 %v14515_v56  ;;  %v14074_v56 = vld [vmem:[#allocation10 + $0x230] sm:$0xf]  ;;  %v14563_v29 = vor.u32 %v15600_v50, %v14560_v7  ;;  %v15518_v7 = vld [vmem:[#allocation10 + $0x370] sm:$0xf0] }
 0x53d   :  { %10551 = vmatpush.bf16.msra.mxu1 %v14611_v18  ;;  %v15479_v18 = vld [vmem:[#allocation10 + $0x238] sm:$0xf0] }
 0x53e   :  { %v14075_v8 = vor.u32 %v15479_v18, %v14074_v56  ;;  %v14338_v18 = vld [vmem:[#allocation10 + $0x440] sm:$0xf] }
 0x53f   :  { %10588 = vmatpush.bf16.msra.mxu3 %v13955_v45  ;;  %10571 = vmatpush.bf16.msra.mxu2 %v13835_v2  ;;  %v14170_v45 = vld [vmem:[#allocation10 + $0x2f0] sm:$0xf]  ;;  %v15503_v2 = vld [vmem:[#allocation10 + $0x2f8] sm:$0xf0] }
 0x540   :  { %10533 = vmatpush.bf16.msra.mxu0 %v14503_v57  ;;  %v13907_v57 = vor.u32 %v15437_v41, %v13906_v4  ;;  %v14171_v5 = vor.u32 %v15503_v2, %v14170_v45  ;;  %v15470_v4 = vld [vmem:[#allocation10 + $0x1f0] sm:$0xf0]  ;;  %v14134_v41 = vld [vmem:[#allocation10 + $0x2a8] sm:$0xf]  ;;  %v15515_v2 = vld [vmem:[#allocation10 + $0x358] sm:$0xf0] }
 0x541   :  { %10552 = vmatpush.bf16.msra.mxu1 %v14599_v25  ;;  %10518 = vmatmul.bf16.vlgmr.msrb.gmra.mxu3 %v18475_v3  ;;  %v14267_v25 = vor.u32 %v15527_v17, %v14266_v43  ;;  %v15494_v43 = vld [vmem:[#allocation10 + $0x2b0] sm:$0xf0]  ;;  %v14231_v17 = vor.u32 %v15518_v7, %v14230_v23  ;;  %v15536_v7 = vld [vmem:[#allocation10 + $0x400] sm:$0xf0] }
 0x542   :  { %10466 = vmatmul.bf16.gmra.mxu0 %v18473_v36 }
 0x543   :  { %10589 = vmatpush.bf16.msra.mxu3 %v13943_v37  ;;  %10572 = vmatpush.bf16.msra.mxu2 %v13823_v52  ;;  %v14158_v37 = vld [vmem:[#allocation10 + $0x2d8] sm:$0xf]  ;;  %v15500_v52 = vld [vmem:[#allocation10 + $0x2e0] sm:$0xf0] }
 0x544   :  { %10534 = vmatpush.bf16.msra.mxu0 %v14491_v46  ;;  %10485 = vmatmul.bf16.gmra.mxu1 %v18520_v13  ;;  %v14063_v46 = vor.u32 %v15476_v31, %v14062_v12  ;;  %v14159_v49 = vor.u32 %v15500_v52, %v14158_v37  ;;  %v14122_v12 = vld [vmem:[#allocation10 + $0x290] sm:$0xf]  ;;  %v15491_v31 = vld [vmem:[#allocation10 + $0x298] sm:$0xf0]  ;;  %v14206_v52 = vld [vmem:[#allocation10 + $0x338] sm:$0xf] }
 0x545   :  { %10553 = vmatpush.bf16.msra.mxu1 %v14587_v27  ;;  %v13895_v27 = vor.u32 %v15434_v21, %v13894_v1  ;;  %v15467_v1 = vld [vmem:[#allocation10 + $0x1d8] sm:$0xf0]  ;;  %v15542_v21 = vld [vmem:[#allocation10 + $0x430] sm:$0xf0]  ;;  %v14123_v39 = vor.u32 %v15491_v31, %v14122_v12  ;;  %v14458_v12 = vld [vmem:[#allocation10 + $0x530] sm:$0xf] }
 0x546   :  { %v15575_v31 = vld [vmem:[#allocation10 + $0x538] sm:$0xf0] }
 0x547   :  { %10590 = vmatpush.bf16.msra.mxu3 %v13931_v10  ;;  %10573 = vmatpush.bf16.msra.mxu2 %v13811_v54  ;;  %v15473_v10 = vld [vmem:[#allocation10 + $0x208] sm:$0xf0]  ;;  %v14350_v54 = vld [vmem:[#allocation10 + $0x458] sm:$0xf] }
 0x548   :  { %10535 = vmatpush.bf16.msra.mxu0 %v14479_v44  ;;  %v15497_v44 = vld [vmem:[#allocation10 + $0x2c8] sm:$0xf0]  ;;  %v14051_v22 = vor.u32 %v15473_v10, %v14050_v61  ;;  %v14351_v50 = vor.u32 %v15548_v58, %v14350_v54  ;;  %v15488_v61 = vld [vmem:[#allocation10 + $0x280] sm:$0xf0]  ;;  %v14207_v10 = vor.u32 %v15512_v48, %v14206_v52  ;;  %v14194_v58 = vld [vmem:[#allocation10 + $0x320] sm:$0xf] }
 0x549   :  { %10554 = vmatpush.bf16.msra.mxu1 %v14575_v32  ;;  %10504 = vmatmul.bf16.gmra.mxu2 %v18526_v55  ;;  %v14147_v56 = vor.u32 %v15497_v44, %v14146_v15  ;;  %v15509_v44 = vld [vmem:[#allocation10 + $0x328] sm:$0xf0]  ;;  %v14111_v23 = vor.u32 %v15488_v61, %v14110_v40  ;;  %v15599_v48 = vld [vmem:[#allocation10 + $0x5f8] sm:$0xf0]  ;;  %v15530_v40 = vld [vmem:[#allocation10 + $0x3d0] sm:$0xf0] }
 0x54a   :  { %v14638_v61 = vld [vmem:[#allocation10 + $0x698] sm:$0xf] }
 0x54b   :  { %10591 = vmatpush.bf16.msra.mxu3 %v13919_v16  ;;  %10574 = vmatpush.bf16.msra.mxu2 %v13799_v19  ;;  %v14038_v16 = vld [vmem:[#allocation10 + $0x1e8] sm:$0xf]  ;;  %v15545_v19 = vld [vmem:[#allocation10 + $0x448] sm:$0xf0] }
 0x54c   :  { %10536 = vmatpush.bf16.msra.mxu0 %v14467_v53  ;;  %v14039_v53 = vor.u32 %v15470_v4, %v14038_v16  ;;  %v14339_v45 = vor.u32 %v15545_v19, %v14338_v18  ;;  %v14098_v16 = vld [vmem:[#allocation10 + $0x260] sm:$0xf]  ;;  %v15485_v4 = vld [vmem:[#allocation10 + $0x268] sm:$0xf0]  ;;  %v14182_v19 = vld [vmem:[#allocation10 + $0x308] sm:$0xf] }
 0x54d   :  { %10555 = vmatpush.bf16.msra.mxu1 %v14563_v29  ;;  %v14218_v29 = vld [vmem:[#allocation10 + $0x350] sm:$0xf] }
 0x54e   :  { %v14219_v26 = vor.u32 %v15515_v2, %v14218_v29  ;;  %v15458_v29 = vld [vmem:[#allocation10 + $0x190] sm:$0xf0]  ;;  %v14290_v2 = vld [vmem:[#allocation10 + $0x3e0] sm:$0xf] }
 0x54f   :  { %10592 = vmatpush.bf16.msra.mxu3 %v13907_v57  ;;  %10643 = vmatpush.bf16.msrb.mxu2 %v14267_v25  ;;  %v18554_v32 = vpop.f32.mrf.mxu0  ;;  %v18556_v0 = vpop.f32.mrf.mxu1  ;;  %v14135_v57 = vor.u32 %v15494_v43, %v14134_v41  ;;  %v14326_v25 = vld [vmem:[#allocation10 + $0x428] sm:$0xf]  ;;  %v15506_v41 = vld [vmem:[#allocation10 + $0x310] sm:$0xf0] }
 0x550   :  { %10605 = vmatpush.bf16.msrb.mxu0 %v14075_v8  ;;  %v14026_v8 = vld [vmem:[#allocation10 + $0x1d0] sm:$0xf]  ;;  %v14327_v28 = vor.u32 %v15542_v21, %v14326_v25  ;;  %v13990_v43 = vld [vmem:[#allocation10 + $0x188] sm:$0xf]  ;;  %v15623_v25 = vld [vmem:[#allocation10 + $0x6b8] sm:$0xf0] }
 0x551   :  { %10624 = vmatpush.bf16.msrb.mxu1 %v14171_v5  ;;  %10523 = vmatmul.bf16.gmra.mxu3 %v18507_v47  ;;  %v14027_v37 = vor.u32 %v15467_v1, %v14026_v8  ;;  %v14099_v8 = vor.u32 %v15485_v4, %v14098_v16  ;;  %v15533_v1 = vld [vmem:[#allocation10 + $0x3e8] sm:$0xf0]  ;;  %v15482_v21 = vld [vmem:[#allocation10 + $0x250] sm:$0xf0]  ;;  %v13991_v52 = vor.u32 %v15458_v29, %v13990_v43  ;;  %v14626_v4 = vld [vmem:[#allocation10 + $0x680] sm:$0xf] }
 0x552   :  { %10537 = vmatmul.bf16.vlgmr.msra.gmra.mxu0 %v18479_v11  ;;  %v15593_v29 = vld [vmem:[#allocation10 + $0x5c8] sm:$0xf0] }
 0x553   :  { %10593 = vmatpush.bf16.msra.mxu3 %v13895_v27  ;;  %10644 = vmatpush.bf16.msrb.mxu2 %v14255_v59  ;;  %v15464_v27 = vld [vmem:[#allocation10 + $0x1c0] sm:$0xf0] }
 0x554   :  { %10606 = vmatpush.bf16.msrb.mxu0 %v14063_v46  ;;  %10556 = vmatmul.bf16.vlgmr.msra.gmra.mxu1 %v18531_v6  ;;  %v14014_v46 = vld [vmem:[#allocation10 + $0x1b8] sm:$0xf] }
 0x555   :  { %10625 = vmatpush.bf16.msrb.mxu1 %v14159_v49  ;;  %v14314_v49 = vld [vmem:[#allocation10 + $0x410] sm:$0xf]  ;;  %v14015_v54 = vor.u32 %v15464_v27, %v14014_v46  ;;  %v14291_v46 = vor.u32 %v15533_v1, %v14290_v2  ;;  %v14614_v1 = vld [vmem:[#allocation10 + $0x668] sm:$0xf] }
 0x557   :  { %10662 = vmatpush.bf16.msrb.mxu3 %v14363_v33  ;;  %10645 = vmatpush.bf16.msrb.mxu2 %v14243_v9  ;;  %v18561_v5 = vpop.f32.mrf.mxu0  ;;  %v18563_v24 = vpop.f32.mrf.mxu1  ;;  %v15539_v33 = vld [vmem:[#allocation10 + $0x418] sm:$0xf0]  ;;  %v14002_v9 = vld [vmem:[#allocation10 + $0x1a0] sm:$0xf] }
 0x558   :  { %10607 = vmatpush.bf16.msrb.mxu0 %v14051_v22  ;;  %v18565_v59 = vpop.f32.mrf.mxu2  ;;  %v14315_v15 = vor.u32 %v15539_v33, %v14314_v49  ;;  %v15461_v22 = vld [vmem:[#allocation10 + $0x1a8] sm:$0xf0]  ;;  %v14459_v33 = vor.u32 %v15575_v31, %v14458_v12 }
 0x559   :  { %10626 = vmatpush.bf16.msrb.mxu1 %v14147_v56  ;;  %10575 = vmatmul.bf16.vlgmr.msra.gmra.mxu2 %v18266_v14  ;;  %v14195_v14 = vor.u32 %v15509_v44, %v14194_v58  ;;  %v14003_v18 = vor.u32 %v15461_v22, %v14002_v9  ;;  %v14446_v58 = vld [vmem:[#allocation10 + $0x518] sm:$0xf]  ;;  %v15596_v22 = vld [vmem:[#allocation10 + $0x5e0] sm:$0xf0] }
 0x55a   :  { %v14542_v9 = vld [vmem:[#allocation10 + $0x5d8] sm:$0xf] }
 0x55b   :  { %10663 = vmatpush.bf16.msrb.mxu3 %v14351_v50  ;;  %10646 = vmatpush.bf16.msrb.mxu2 %v14231_v17  ;;  %v14302_v50 = vld [vmem:[#allocation10 + $0x3f8] sm:$0xf] }
 0x55c   :  { %10608 = vmatpush.bf16.msrb.mxu0 %v14039_v53  ;;  %v14303_v53 = vor.u32 %v15536_v7, %v14302_v50 }
 0x55d   :  { %10627 = vmatpush.bf16.msrb.mxu1 %v14135_v57  ;;  %v14650_v57 = vld [vmem:[#allocation10 + $0x6b0] sm:$0xf] }
 0x55e   :  { %v14651_v27 = vor.u32 %v15623_v25, %v14650_v57  ;;  %v15614_v57 = vld [vmem:[#allocation10 + $0x670] sm:$0xf0] }
 0x55f   :  { %10664 = vmatpush.bf16.msrb.mxu3 %v14339_v45  ;;  %10647 = vmatpush.bf16.msrb.mxu2 %v14219_v26  ;;  %v18568_v56 = vpop.f32.mrf.mxu0  ;;  %v18570_v17 = vpop.f32.mrf.mxu1  ;;  %v14086_v45 = vld [vmem:[#allocation10 + $0x248] sm:$0xf]  ;;  %v15566_v25 = vld [vmem:[#allocation10 + $0x4f0] sm:$0xf0]  ;;  %v14615_v31 = vor.u32 %v15614_v57, %v14614_v1  ;;  %v14482_v1 = vld [vmem:[#allocation10 + $0x560] sm:$0xf] }
 0x560   :  { %10609 = vmatpush.bf16.msrb.mxu0 %v14027_v37  ;;  %v18574_v26 = vpop.f32.mrf.mxu2  ;;  %v14183_v37 = vor.u32 %v15506_v41, %v14182_v19  ;;  %v14087_v49 = vor.u32 %v15482_v21, %v14086_v45  ;;  %v14434_v19 = vld [vmem:[#allocation10 + $0x500] sm:$0xf]  ;;  %v15569_v41 = vld [vmem:[#allocation10 + $0x508] sm:$0xf0] }
 0x561   :  { %10628 = vmatpush.bf16.msrb.mxu1 %v14123_v39  ;;  %10594 = vmatmul.bf16.vlgmr.msra.gmra.mxu3 %v18268_v60  ;;  %v14278_v39 = vld [vmem:[#allocation10 + $0x3c8] sm:$0xf]  ;;  %v15581_v57 = vld [vmem:[#allocation10 + $0x568] sm:$0xf0] }
 0x562   :  { %10542 = vmatmul.bf16.gmra.mxu0 %v18509_v62  ;;  %v14279_v50 = vor.u32 %v15530_v40, %v14278_v39  ;;  %v14410_v39 = vld [vmem:[#allocation10 + $0x4d0] sm:$0xf] }
 0x563   :  { %10665 = vmatpush.bf16.msrb.mxu3 %v14327_v28  ;;  %10648 = vmatpush.bf16.msrb.mxu2 %v14207_v10  ;;  %v14554_v28 = vld [vmem:[#allocation10 + $0x5f0] sm:$0xf]  ;;  %v15620_v10 = vld [vmem:[#allocation10 + $0x6a0] sm:$0xf0] }
 0x564   :  { %10610 = vmatpush.bf16.msrb.mxu0 %v14015_v54  ;;  %10561 = vmatmul.bf16.gmra.mxu1 %v18536_v20  ;;  %v18577_v60 = vpop.f32.mrf.mxu3  ;;  %v14555_v54 = vor.u32 %v15599_v48, %v14554_v28  ;;  %v14639_v7 = vor.u32 %v15620_v10, %v14638_v61  ;;  %v14506_v61 = vld [vmem:[#allocation10 + $0x590] sm:$0xf]  ;;  %v15587_v10 = vld [vmem:[#allocation10 + $0x598] sm:$0xf0] }
 0x565   :  { %10629 = vmatpush.bf16.msrb.mxu1 %v14111_v23 }
 0x567   :  { %10666 = vmatpush.bf16.msrb.mxu3 %v14315_v15  ;;  %10649 = vmatpush.bf16.msrb.mxu2 %v14195_v14  ;;  %v15572_v15 = vld [vmem:[#allocation10 + $0x520] sm:$0xf0]  ;;  %v18579_v44 = vpop.f32.mrf.mxu0  ;;  %v18581_v23 = vpop.f32.mrf.mxu1  ;;  %v15617_v14 = vld [vmem:[#allocation10 + $0x688] sm:$0xf0] }
 0x568   :  { %10611 = vmatpush.bf16.msrb.mxu0 %v14003_v18  ;;  %v14447_v16 = vor.u32 %v15572_v15, %v14446_v58  ;;  %v14543_v18 = vor.u32 %v15596_v22, %v14542_v9  ;;  %v14627_v43 = vor.u32 %v15617_v14, %v14626_v4  ;;  %v15608_v9 = vld [vmem:[#allocation10 + $0x640] sm:$0xf0] }
 0x569   :  { %10630 = vmatpush.bf16.msrb.mxu1 %v14099_v8  ;;  %10580 = vmatmul.bf16.gmra.mxu2 %v18344_v34  ;;  %v14435_v8 = vor.u32 %v15569_v41, %v14434_v19  ;;  %v14422_v34 = vld [vmem:[#allocation10 + $0x4e8] sm:$0xf]  ;;  %v15560_v22 = vld [vmem:[#allocation10 + $0x4c0] sm:$0xf0]  ;;  %v14578_v19 = vld [vmem:[#allocation10 + $0x620] sm:$0xf] }
 0x56a   :  { %v14423_v48 = vor.u32 %v15566_v25, %v14422_v34  ;;  %v15584_v4 = vld [vmem:[#allocation10 + $0x580] sm:$0xf0]  ;;  %v15605_v41 = vld [vmem:[#allocation10 + $0x628] sm:$0xf0] }
 0x56b   :  { %10667 = vmatpush.bf16.msrb.mxu3 %v14303_v53  ;;  %10650 = vmatpush.bf16.msrb.mxu2 %v14183_v37  ;;  %v14530_v53 = vld [vmem:[#allocation10 + $0x5c0] sm:$0xf]  ;;  %v14518_v37 = vld [vmem:[#allocation10 + $0x5a8] sm:$0xf] }
 0x56c   :  { %10612 = vmatpush.bf16.msrb.mxu0 %v13991_v52  ;;  %v18584_v45 = vpop.f32.mrf.mxu3  ;;  %v18586_v2 = vpop.f32.mrf.mxu2  ;;  %v14531_v12 = vor.u32 %v15593_v29, %v14530_v53  ;;  %v15590_v52 = vld [vmem:[#allocation10 + $0x5b0] sm:$0xf0]  ;;  %v15557_v53 = vld [vmem:[#allocation10 + $0x4a8] sm:$0xf0] }
 0x56d   :  { %10631 = vmatpush.bf16.msrb.mxu1 %v14087_v49  ;;  %v15563_v49 = vld [vmem:[#allocation10 + $0x4d8] sm:$0xf0] }
 0x56e   :  { %v14411_v15 = vor.u32 %v15563_v49, %v14410_v39  ;;  %v14470_v49 = vld [vmem:[#allocation10 + $0x548] sm:$0xf] }
 0x56f   :  { %10668 = vmatpush.bf16.msrb.mxu3 %v14291_v46  ;;  %10719 = vmatpush.bf16.msra.mxu2 %v14651_v27  ;;  %v18588_v21 = vpop.f32.mrf.mxu0  ;;  %v14602_v46 = vld [vmem:[#allocation10 + $0x650] sm:$0xf]  ;;  %v15611_v27 = vld [vmem:[#allocation10 + $0x658] sm:$0xf0] }
 0x570   :  { %10681 = vmatpush.bf16.msra.mxu0 %v14459_v33  ;;  %v14603_v40 = vor.u32 %v15611_v27, %v14602_v46  ;;  %v10254_v27 = vadd.f32 %v18556_v0, %v18554_v32 }
 0x571   :  { %10700 = vmatpush.bf16.msra.mxu1 %v14555_v54  ;;  %v18590_v28 = vpop.f32.mrf.mxu1  ;;  %10599 = vmatmul.bf16.gmra.mxu3 %v18346_v30  ;;  %v14590_v30 = vld [vmem:[#allocation10 + $0x638] sm:$0xf] }
 0x572   :  { %10613 = vmatmul.bf16.vlgmr.msrb.gmra.mxu0 %v18280_v63  ;;  %v14398_v63 = vld [vmem:[#allocation10 + $0x4b8] sm:$0xf] }
 0x573   :  { %10669 = vmatpush.bf16.msrb.mxu3 %v14279_v50  ;;  %10720 = vmatpush.bf16.msra.mxu2 %v14639_v7  ;;  %v14507_v7 = vor.u32 %v15587_v10, %v14506_v61  ;;  %v10273_v10 = vadd.f32 %v18565_v59, %v10254_v27 }
 0x574   :  { %10682 = vmatpush.bf16.msra.mxu0 %v14447_v16  ;;  %10632 = vmatmul.bf16.vlgmr.msrb.gmra.mxu1 %v18369_v38  ;;  %v18595_v54 = vpop.f32.mrf.mxu3  ;;  %v18597_v58 = vpop.f32.mrf.mxu2  ;;  %v14591_v38 = vor.u32 %v15608_v9, %v14590_v30 }
 0x575   :  { %10701 = vmatpush.bf16.msra.mxu1 %v14543_v18  ;;  %v14399_v18 = vor.u32 %v15560_v22, %v14398_v63  ;;  %v10292_v30 = vadd.f32 %v18577_v60, %v10273_v10 }
 0x577   :  { %15624 = vmatpush.bf16.msra.mxu3 %v14459_v33  ;;  %10721 = vmatpush.bf16.msra.mxu2 %v14627_v43  ;;  %v14519_v33 = vor.u32 %v15590_v52, %v14518_v37  ;;  %v18599_v50 = vpop.f32.mrf.mxu0  ;;  %v14386_v43 = vld [vmem:[#allocation10 + $0x4a0] sm:$0xf]  ;;  %v15602_v37 = vld [vmem:[#allocation10 + $0x610] sm:$0xf0]  ;;  %v14374_v52 = vld [vmem:[#allocation10 + $0x488] sm:$0xf]  ;;  %v10311_v9 = vadd.f32 %v18588_v21, %v10292_v30 }
 0x578   :  { %10683 = vmatpush.bf16.msra.mxu0 %v14435_v8 }
 0x579   :  { %10702 = vmatpush.bf16.msra.mxu1 %v14531_v12  ;;  %v18601_v14 = vpop.f32.mrf.mxu1  ;;  %10651 = vmatmul.bf16.vlgmr.msrb.gmra.mxu2 %v18468_v51  ;;  %v14387_v12 = vor.u32 %v15557_v53, %v14386_v43  ;;  %v14483_v51 = vor.u32 %v15581_v57, %v14482_v1  ;;  %v10330_v60 = vadd.f32 %v18590_v28, %v10311_v9 }
 0x57b   :  { %15625 = vmatpush.bf16.msra.mxu3 %v14447_v16  ;;  %10722 = vmatpush.bf16.msra.mxu2 %v14615_v31  ;;  %v14494_v16 = vld [vmem:[#allocation10 + $0x578] sm:$0xf]  ;;  %v14566_v31 = vld [vmem:[#allocation10 + $0x608] sm:$0xf] }
 0x57c   :  { %10684 = vmatpush.bf16.msra.mxu0 %v14423_v48  ;;  %v14495_v29 = vor.u32 %v15584_v4, %v14494_v16  ;;  %v18604_v34 = vpop.f32.mrf.mxu3  ;;  %v10348_v25 = vpop.f32.mrf.mxu2  ;;  %v14567_v39 = vor.u32 %v15602_v37, %v14566_v31 }
 0x57d   :  { %10703 = vmatpush.bf16.msra.mxu1 %v14519_v33  ;;  %v15578_v33 = vld [vmem:[#allocation10 + $0x550] sm:$0xf0]  ;;  %v10349_v22 = vadd.f32 %v10348_v25, %v10330_v60 }
 0x57f   :  { %15626 = vmatpush.bf16.msra.mxu3 %v14435_v8  ;;  %10723 = vmatpush.bf16.msra.mxu2 %v14603_v40  ;;  %v14579_v8 = vor.u32 %v15605_v41, %v14578_v19  ;;  %v10315_v46 = vpop.f32.mrf.mxu0 }
 0x580   :  { %10685 = vmatpush.bf16.msra.mxu0 %v14411_v15 }
 0x581   :  { %10704 = vmatpush.bf16.msra.mxu1 %v14507_v7  ;;  %v10334_v40 = vpop.f32.mrf.mxu1  ;;  %10670 = vmatmul.bf16.vlgmr.msrb.gmra.mxu3 %v18483_v42  ;;  %v10256_v42 = vadd.f32 %v18563_v24, %v18561_v5  ;;  %v10259_v5 = vadd.f32 %v18570_v17, %v18568_v56 }
 0x582   :  { %10618 = vmatmul.bf16.gmra.mxu0 %v18430_v35 }
 0x583   :  { %15627 = vmatpush.bf16.msra.mxu3 %v14423_v48  ;;  %10724 = vmatpush.bf16.msra.mxu2 %v14591_v38  ;;  %v15554_v48 = vld [vmem:[#allocation10 + $0x490] sm:$0xf0]  ;;  %v10275_v35 = vadd.f32 %v18574_v26, %v10256_v42  ;;  %v10278_v26 = vadd.f32 %v18586_v2, %v10259_v5 }
 0x584   :  { %10686 = vmatpush.bf16.msra.mxu0 %v14399_v18  ;;  %v14375_v61 = vor.u32 %v15554_v48, %v14374_v52  ;;  %10637 = vmatmul.bf16.gmra.mxu1 %v18473_v36  ;;  %v10367_v32 = vpop.f32.mrf.mxu3  ;;  %v10350_v0 = vpop.f32.mrf.mxu2 }
 0x585   :  { %10705 = vmatpush.bf16.msra.mxu1 %v14495_v29  ;;  %v10294_v36 = vadd.f32 %v18584_v45, %v10275_v35  ;;  %v10368_v16 = vadd.f32 %v10367_v32, %v10349_v22 }
 0x587   :  { %15628 = vmatpush.bf16.msra.mxu3 %v14411_v15  ;;  %10725 = vmatpush.bf16.msra.mxu2 %v14579_v8  ;;  %v14471_v15 = vor.u32 %v15578_v33, %v14470_v49  ;;  %v10317_v63 = vpop.f32.mrf.mxu0  ;;  %v10313_v21 = vadd.f32 %v18599_v50, %v10294_v36 }
 0x588   :  { %10687 = vmatpush.bf16.msra.mxu0 %v14387_v12 }
 0x589   :  { %10706 = vmatpush.bf16.msra.mxu1 %v14483_v51  ;;  %v10336_v59 = vpop.f32.mrf.mxu1  ;;  %10656 = vmatmul.bf16.gmra.mxu2 %v18520_v13  ;;  %v10332_v28 = vadd.f32 %v18601_v14, %v10313_v21  ;;  %v10297_v13 = vadd.f32 %v18595_v54, %v10278_v26  ;;  %v10261_v14 = vadd.f32 %v18581_v23, %v18579_v44 }
 0x58b   :  { %15629 = vmatpush.bf16.msra.mxu3 %v14399_v18  ;;  %10726 = vmatpush.bf16.msra.mxu2 %v14567_v39  ;;  %v10351_v45 = vadd.f32 %v10350_v0, %v10332_v28  ;;  %v10316_v50 = vadd.f32 %v10315_v46, %v10297_v13  ;;  %v10280_v43 = vadd.f32 %v18597_v58, %v10261_v14 }
 0x58c   :  { %10688 = vmatpush.bf16.msra.mxu0 %v14375_v61  ;;  %v10369_v7 = vpop.f32.mrf.mxu3  ;;  %v10353_v38 = vpop.f32.mrf.mxu2 }
 0x58d   :  { %10707 = vmatpush.bf16.msra.mxu1 %v14471_v15  ;;  %v10370_v19 = vadd.f32 %v10369_v7, %v10351_v45  ;;  %v10335_v53 = vadd.f32 %v10334_v40, %v10316_v50 }
 0x58f   :  { %15630 = vmatpush.bf16.msra.mxu3 %v14387_v12  ;;  %v10386_v4 = vpop.f32.mrf.mxu0 }
 0x590   :  { %v10387_v24 = vadd.f32 %v10386_v4, %v10368_v16 }
 0x591   :  { %v10405_v18 = vpop.f32.mrf.mxu1  ;;  %10675 = vmatmul.bf16.gmra.mxu3 %v18526_v55 }
 0x592   :  { %10738 = vst [vmem:[%s18680_s7] sm:$0xff] %v10387_v24  ;;  %10689 = vmatmul.bf16.vlgmr.msra.gmra.mxu0 %v18475_v3  ;;  %v10299_v3 = vadd.f32 %v18604_v34, %v10280_v43 }
 0x593   :  { %15631 = vmatpush.bf16.msra.mxu3 %v14375_v61 }
 0x594   :  { %10708 = vmatmul.bf16.vlgmr.msra.gmra.mxu1 %v18479_v11  ;;  %v10372_v56 = vpop.f32.mrf.mxu3  ;;  %v10355_v17 = vpop.f32.mrf.mxu2  ;;  %v10354_v11 = vadd.f32 %v10353_v38, %v10335_v53  ;;  %v10318_v8 = vadd.f32 %v10317_v63, %v10299_v3 }
 0x596   :  { %v10373_v1 = vadd.f32 %v10372_v56, %v10354_v11  ;;  %v10337_v25 = vadd.f32 %v10336_v59, %v10318_v8 }
 0x597   :  { %v10388_v2 = vpop.f32.mrf.mxu0 }
 0x598   :  { %v10389_v55 = vadd.f32 %v10388_v2, %v10370_v19 }
 0x599   :  { %v10407_v41 = vpop.f32.mrf.mxu1  ;;  %10727 = vmatmul.bf16.vlgmr.msra.gmra.mxu2 %v18531_v6  ;;  %v10356_v6 = vadd.f32 %v10355_v17, %v10337_v25 }
 0x59a   :  { %10741 = vst [vmem:[%s18680_s7 + $0x18] sm:$0xff] %v10389_v55 }
 0x59c   :  { %v10374_v54 = vpop.f32.mrf.mxu3  ;;  %v10424_v29 = vpop.f32.mrf.mxu2 }
 0x59d   :  { %v10375_v12 = vadd.f32 %v10374_v54, %v10356_v6  ;;  %v10425_v15 = vadd.f32 %v10424_v29, %v10405_v18 }
 0x59f   :  { %v10391_v57 = vpop.f32.mrf.mxu0 }
 0x5a0   :  { %v10392_v44 = vadd.f32 %v10391_v57, %v10373_v1 }
 0x5a1   :  { %v10410_v23 = vpop.f32.mrf.mxu1  ;;  %10694 = vmatmul.bf16.vlgmr.msra.gmra.mxu3 %v18507_v47 }
 0x5a2   :  { %10744 = vst [vmem:[%s18680_s7 + $0x30] sm:$0xff] %v10392_v44 }
 0x5a4   :  { %10713 = vmatmul.bf16.gmra.mxu1 %v18509_v62  ;;  %v10443_v58 = vpop.f32.mrf.mxu3  ;;  %v10426_v34 = vpop.f32.mrf.mxu2 }
 0x5a5   :  { %v10444_v30 = vadd.f32 %v10443_v58, %v10425_v15  ;;  %v10427_v42 = vadd.f32 %v10426_v34, %v10407_v41 }
 0x5a7   :  { %v10393_v31 = vpop.f32.mrf.mxu0 }
 0x5a8   :  { %v10394_v37 = vadd.f32 %v10393_v31, %v10375_v12 }
 0x5a9   :  { %v10412_v52 = vpop.f32.mrf.mxu1  ;;  %10732 = vmatmul.bf16.gmra.mxu2 %v18536_v20 }
 0x5aa   :  { %10747 = vst [vmem:[%s18680_s7 + $0x48] sm:$0x1] %v10394_v37 }
 0x5ac   :  { %v10445_v47 = vpop.f32.mrf.mxu3  ;;  %v10429_v48 = vpop.f32.mrf.mxu2 }
 0x5ad   :  { %v10446_v35 = vadd.f32 %v10445_v47, %v10427_v42  ;;  %v10430_v5 = vadd.f32 %v10429_v48, %v10410_v23 }
 0x5af   :  { %v10462_v46 = vpop.f32.mrf.mxu0 }
 0x5b0   :  { %v10463_v0 = vadd.f32 %v10462_v46, %v10444_v30 }
 0x5b1   :  { %v10481_v51 = vpop.f32.mrf.mxu1 }
 0x5b2   :  { %v10482_v59 = vadd.f32 %v10481_v51, %v10463_v0 }
 0x5b4   :  { %v10448_v27 = vpop.f32.mrf.mxu3  ;;  %v10431_v39 = vpop.f32.mrf.mxu2 }
 0x5b5   :  { %v10449_v26 = vadd.f32 %v10448_v27, %v10430_v5  ;;  %v10432_v14 = vadd.f32 %v10431_v39, %v10412_v52 }
 0x5b7   :  { %v10464_v49 = vpop.f32.mrf.mxu0 }
 0x5b8   :  { %v10465_v7 = vadd.f32 %v10464_v49, %v10446_v35 }
 0x5b9   :  { %v10483_v62 = vpop.f32.mrf.mxu1 }
 0x5ba   :  { %v10484_v24 = vadd.f32 %v10483_v62, %v10465_v7 }
 0x5bc   :  { %v10450_v33 = vpop.f32.mrf.mxu3  ;;  %v10500_v40 = vpop.f32.mrf.mxu2 }
 0x5bd   :  { %v10501_v60 = vadd.f32 %v10500_v40, %v10482_v59  ;;  %v10451_v43 = vadd.f32 %v10450_v33, %v10432_v14 }
 0x5bf   :  { %v10467_v61 = vpop.f32.mrf.mxu0 }
 0x5c0   :  { %v10468_v56 = vadd.f32 %v10467_v61, %v10449_v26 }
 0x5c1   :  { %v10486_v10 = vpop.f32.mrf.mxu1 }
 0x5c2   :  { %v10487_v55 = vadd.f32 %v10486_v10, %v10468_v56 }
 0x5c4   :  { %v10519_v32 = vpop.f32.mrf.mxu3  ;;  %v10502_v20 = vpop.f32.mrf.mxu2 }
 0x5c5   :  { %v10520_v38 = vadd.f32 %v10519_v32, %v10501_v60  ;;  %v10503_v28 = vadd.f32 %v10502_v20, %v10484_v24 }
 0x5c7   :  { %v10469_v9 = vpop.f32.mrf.mxu0 }
 0x5c8   :  { %v10470_v54 = vadd.f32 %v10469_v9, %v10451_v43 }
 0x5c9   :  { %v10488_v63 = vpop.f32.mrf.mxu1 }
 0x5ca   :  { %v10489_v44 = vadd.f32 %v10488_v63, %v10470_v54 }
 0x5cc   :  { %v10521_v36 = vpop.f32.mrf.mxu3  ;;  %v10505_v22 = vpop.f32.mrf.mxu2 }
 0x5cd   :  { %v10522_v17 = vadd.f32 %v10521_v36, %v10503_v28  ;;  %v10506_v53 = vadd.f32 %v10505_v22, %v10487_v55 }
 0x5cf   :  { %v10538_v21 = vpop.f32.mrf.mxu0 }
 0x5d0   :  { %v10539_v16 = vadd.f32 %v10538_v21, %v10520_v38 }
 0x5d1   :  { %v10557_v4 = vpop.f32.mrf.mxu1 }
 0x5d2   :  { %v10558_v18 = vadd.f32 %v10557_v4, %v10539_v16 }
 0x5d4   :  { %10739 = vst [vmem:[%s18680_s7 + $0x8] sm:$0xff] %v10558_v18  ;;  %v10524_v13 = vpop.f32.mrf.mxu3  ;;  %v10507_v45 = vpop.f32.mrf.mxu2 }
 0x5d5   :  { %v10525_v29 = vadd.f32 %v10524_v13, %v10506_v53  ;;  %v10508_v25 = vadd.f32 %v10507_v45, %v10489_v44 }
 0x5d7   :  { %v10540_v50 = vpop.f32.mrf.mxu0 }
 0x5d8   :  { %v10541_v19 = vadd.f32 %v10540_v50, %v10522_v17 }
 0x5d9   :  { %v10559_v2 = vpop.f32.mrf.mxu1 }
 0x5da   :  { %v10560_v41 = vadd.f32 %v10559_v2, %v10541_v19 }
 0x5dc   :  { %10742 = vst [vmem:[%s18680_s7 + $0x20] sm:$0xff] %v10560_v41  ;;  %v10526_v3 = vpop.f32.mrf.mxu3  ;;  %v10576_v11 = vpop.f32.mrf.mxu2 }
 0x5dd   :  { %v10527_v34 = vadd.f32 %v10526_v3, %v10508_v25 }
 0x5df   :  { %v10543_v8 = vpop.f32.mrf.mxu0 }
 0x5e0   :  { %v10544_v1 = vadd.f32 %v10543_v8, %v10525_v29 }
 0x5e1   :  { %v10562_v57 = vpop.f32.mrf.mxu1 }
 0x5e2   :  { %v10563_v23 = vadd.f32 %v10562_v57, %v10544_v1 }
 0x5e4   :  { %10745 = vst [vmem:[%s18680_s7 + $0x38] sm:$0xff] %v10563_v23  ;;  %v10595_v6 = vpop.f32.mrf.mxu3  ;;  %v10578_v58 = vpop.f32.mrf.mxu2 }
 0x5e5   :  { %v10596_v0 = vadd.f32 %v10595_v6, %v10576_v11 }
 0x5e7   :  { %v10545_v12 = vpop.f32.mrf.mxu0 }
 0x5e8   :  { %v10546_v31 = vadd.f32 %v10545_v12, %v10527_v34 }
 0x5e9   :  { %v10564_v37 = vpop.f32.mrf.mxu1 }
 0x5ea   :  { %v10565_v52 = vadd.f32 %v10564_v37, %v10546_v31 }
 0x5ec   :  { %10748 = vst [vmem:[%s18680_s7 + $0x50] sm:$0x1] %v10565_v52  ;;  %v10597_v47 = vpop.f32.mrf.mxu3  ;;  %v10581_v48 = vpop.f32.mrf.mxu2 }
 0x5ed   :  { %v10598_v36 = vadd.f32 %v10597_v47, %v10578_v58 }
 0x5ef   :  { %v10614_v46 = vpop.f32.mrf.mxu0 }
 0x5f0   :  { %v10615_v42 = vadd.f32 %v10614_v46, %v10596_v0 }
 0x5f1   :  { %v10633_v51 = vpop.f32.mrf.mxu1 }
 0x5f2   :  { %v10634_v59 = vadd.f32 %v10633_v51, %v10615_v42 }
 0x5f4   :  { %v10600_v27 = vpop.f32.mrf.mxu3  ;;  %v10583_v39 = vpop.f32.mrf.mxu2 }
 0x5f5   :  { %v10601_v56 = vadd.f32 %v10600_v27, %v10581_v48 }
 0x5f7   :  { %v10616_v49 = vpop.f32.mrf.mxu0 }
 0x5f8   :  { %v10617_v21 = vadd.f32 %v10616_v49, %v10598_v36 }
 0x5f9   :  { %v10635_v62 = vpop.f32.mrf.mxu1 }
 0x5fa   :  { %v10636_v5 = vadd.f32 %v10635_v62, %v10617_v21 }
 0x5fc   :  { %v10602_v33 = vpop.f32.mrf.mxu3  ;;  %v10652_v40 = vpop.f32.mrf.mxu2 }
 0x5fd   :  { %v10653_v22 = vadd.f32 %v10652_v40, %v10634_v59  ;;  %v10603_v53 = vadd.f32 %v10602_v33, %v10583_v39 }
 0x5ff   :  { %v10619_v61 = vpop.f32.mrf.mxu0 }
 0x600   :  { %v10620_v19 = vadd.f32 %v10619_v61, %v10601_v56 }
 0x601   :  { %v10638_v10 = vpop.f32.mrf.mxu1 }
 0x602   :  { %v10639_v14 = vadd.f32 %v10638_v10, %v10620_v19 }
 0x604   :  { %v10671_v15 = vpop.f32.mrf.mxu3  ;;  %v10654_v30 = vpop.f32.mrf.mxu2 }
 0x605   :  { %v10672_v16 = vadd.f32 %v10671_v15, %v10653_v22  ;;  %v10655_v24 = vadd.f32 %v10654_v30, %v10636_v5 }
 0x607   :  { %v10621_v32 = vpop.f32.mrf.mxu0 }
 0x608   :  { %v10622_v29 = vadd.f32 %v10621_v32, %v10603_v53 }
 0x609   :  { %v10640_v20 = vpop.f32.mrf.mxu1 }
 0x60a   :  { %v10641_v57 = vadd.f32 %v10640_v20, %v10622_v29 }
 0x60c   :  { %v10673_v9 = vpop.f32.mrf.mxu3  ;;  %v10657_v63 = vpop.f32.mrf.mxu2 }
 0x60d   :  { %v10674_v17 = vadd.f32 %v10673_v9, %v10655_v24  ;;  %v10658_v3 = vadd.f32 %v10657_v63, %v10639_v14 }
 0x60f   :  { %v10690_v35 = vpop.f32.mrf.mxu0 }
 0x610   :  { %v10691_v4 = vadd.f32 %v10690_v35, %v10672_v16 }
 0x611   :  { %v10709_v60 = vpop.f32.mrf.mxu1 }
 0x612   :  { %v10710_v18 = vadd.f32 %v10709_v60, %v10691_v4 }
 0x614   :  { %v10676_v7 = vpop.f32.mrf.mxu3  ;;  %v10659_v38 = vpop.f32.mrf.mxu2 }
 0x615   :  { %v10677_v8 = vadd.f32 %v10676_v7, %v10658_v3  ;;  %v10660_v25 = vadd.f32 %v10659_v38, %v10641_v57 }
 0x617   :  { %v10692_v26 = vpop.f32.mrf.mxu0 }
 0x618   :  { %v10693_v2 = vadd.f32 %v10692_v26, %v10674_v17 }
 0x619   :  { %v10711_v28 = vpop.f32.mrf.mxu1 }
 0x61a   :  { %v10712_v55 = vadd.f32 %v10711_v28, %v10693_v2 }
 0x61c   :  { %v10678_v13 = vpop.f32.mrf.mxu3  ;;  %v10728_v45 = vpop.f32.mrf.mxu2 }
 0x61d   :  { %v10729_v50 = vadd.f32 %v10728_v45, %v10710_v18  ;;  %v10679_v34 = vadd.f32 %v10678_v13, %v10660_v25 }
 0x61f   :  { %10740 = vst [vmem:[%s18680_s7 + $0x10] sm:$0xff] %v10729_v50 }
 0x621   :  { %v10714_v54 = vpop.f32.mrf.mxu1 }
 0x624   :  { %v10695_v41 = vpop.f32.mrf.mxu3  ;;  %v10730_v43 = vpop.f32.mrf.mxu2 }
 0x625   :  { %v10731_v11 = vadd.f32 %v10730_v43, %v10712_v55  ;;  %v10696_v1 = vadd.f32 %v10695_v41, %v10677_v8 }
 0x627   :  { %10743 = vst [vmem:[%s18680_s7 + $0x28] sm:$0xff] %v10731_v11  ;;  %v10715_v44 = vadd.f32 %v10714_v54, %v10696_v1 }
 0x629   :  { %v10716_v12 = vpop.f32.mrf.mxu1 }
 0x62c   :  { %v10733_v23 = vpop.f32.mrf.mxu2  ;;  %v10697_v58 = vpop.f32.mrf.mxu3 }
 0x62d   :  { %v10734_v6 = vadd.f32 %v10733_v23, %v10715_v44  ;;  %v10698_v31 = vadd.f32 %v10697_v58, %v10679_v34 }
 0x62f   :  { %10746 = vst [vmem:[%s18680_s7 + $0x40] sm:$0xff] %v10734_v6  ;;  %v10717_v37 = vadd.f32 %v10716_v12, %v10698_v31 }
 0x634   :  { %v10735_v52 = vpop.f32.mrf.mxu2 }
 0x635   :  { %v10736_v47 = vadd.f32 %v10735_v52, %v10717_v37 }
 0x637   :  { %10749 = vst [vmem:[%s18680_s7 + $0x58] sm:$0x1] %v10736_v47 }
 0x638   :  { %10754 = vsyncpa [#allocation3], 1 }
 0x639   :  { %10755 = vsyncpa [#allocation5], 1 }
 0x63a   :  { %10756 = vsyncpa [#allocation8], 1 }
 0x63b   :  { %10757 = vsyncpa [#allocation11], 1 }

</bundles_post_ra>
